<compile_context>
chip_gen: v7x
topology: tpu7x:2x2x1
jax: 0.10.0
libtpu: 0.0.40
codegen_flags: <defaults>
</compile_context>

<pallas_src>
import functools

import numpy as np
import jax
import jax.numpy as jnp
from jax.experimental import pallas as pl
from jax.experimental.pallas import tpu as pltpu

LEAK = 0.2
KSIZE = 4
PAD = 1
EPS = 1e-5

_MAX_TK = 2048                       # K-reduction tile
_VMEM_BUDGET = 24 * 1024 * 1024      # working-set target (under 32 MiB limit)
_VMEM_LIMIT = 32 * 1024 * 1024       # explicit scoped-VMEM limit (safe on all gens)


def _round_up(x, m):
    return ((x + m - 1) // m) * m


# ----------------------------- Pallas kernels ------------------------------ #
def conv_single_k_kernel(p_ref, w_ref, bias_ref, o_ref, *, apply_act):
    """Whole-K MXU matmul + folded bias + LeakyReLU, written straight to output."""
    y = jnp.dot(p_ref[...], w_ref[...], preferred_element_type=jnp.float32)
    y = y + bias_ref[...]                         # folded conv-bias + BN shift
    if apply_act:
        y = jnp.where(y >= 0.0, y, LEAK * y)      # LeakyReLU(0.2)
    o_ref[...] = y.astype(o_ref.dtype)


def conv_tiled_k_kernel(p_ref, w_ref, bias_ref, o_ref, acc_ref, *, apply_act):
    """One (TM, TK) x (TK, Coutp) MXU step; bias + LeakyReLU at the last K step."""
    k = pl.program_id(1)

    @pl.when(k == 0)
    def _init():
        acc_ref[...] = jnp.zeros_like(acc_ref)

    acc_ref[...] += jnp.dot(p_ref[...], w_ref[...],
                            preferred_element_type=jnp.float32)

    @pl.when(k == pl.num_programs(1) - 1)
    def _finalize():
        y = acc_ref[...] + bias_ref[...]          # folded conv-bias + BN
        if apply_act:
            y = jnp.where(y >= 0.0, y, LEAK * y)  # LeakyReLU(0.2)
        o_ref[...] = y.astype(o_ref.dtype)


def _pick_tm(M, TK, Coutp, n_k):
    """Largest row tile that keeps the VMEM working set under budget."""
    wbuf = 1 if n_k == 1 else 2                       # weight buffering depth
    fixed = wbuf * TK * Coutp * 2 + Coutp * 4         # bf16 weight + f32 bias
    acc = 0 if n_k == 1 else Coutp * 4                # f32 accumulator scratch
    per_row = (2 * TK * 2            # patches, bf16, double-buffered
               + 2 * Coutp * 4       # output (<= f32), double-buffered
               + acc)
    cap = max(8, (_VMEM_BUDGET - fixed) // per_row)
    tm = 8
    for cand in (2048, 1024, 512, 256, 128, 64, 32, 16, 8):
        if cand <= cap:
            tm = cand
            break
    return min(tm, _round_up(M, 8))


def fused_conv_matmul(patches, w_bf, bias_p, cout, apply_act, out_dtype):
    """patches: [M, K] -> [M, cout]; w_bf: [Kp, Coutp] bf16 (scale-folded, padded)."""
    M, K = patches.shape
    Kp, Coutp = w_bf.shape
    TK = Kp if Kp <= _MAX_TK else _MAX_TK
    n_k = Kp // TK

    patches = patches.astype(jnp.bfloat16)
    if Kp != K:
        patches = jnp.pad(patches, ((0, 0), (0, Kp - K)))

    TM = _pick_tm(M, TK, Coutp, n_k)
    Mp = _round_up(M, TM)
    if Mp != M:
        patches = jnp.pad(patches, ((0, Mp - M), (0, 0)))

    if n_k == 1:
        # K fits one tile: scratch-free kernel, weight/bias kept resident.
        out = pl.pallas_call(
            functools.partial(conv_single_k_kernel, apply_act=apply_act),
            out_shape=jax.ShapeDtypeStruct((Mp, Coutp), out_dtype),
            grid=(Mp // TM,),
            in_specs=[
                pl.BlockSpec((TM, TK), lambda i: (i, 0)),          # patches tile
                pl.BlockSpec((TK, Coutp), lambda i: (0, 0),
                             pipeline_mode=pl.Buffered(1)),        # folded weight
                pl.BlockSpec((1, Coutp), lambda i: (0, 0),
                             pipeline_mode=pl.Buffered(1)),        # folded bias
            ],
            out_specs=pl.BlockSpec((TM, Coutp), lambda i: (i, 0)),
            compiler_params=pltpu.CompilerParams(
                dimension_semantics=("parallel",),
                vmem_limit_bytes=_VMEM_LIMIT),
        )(patches, w_bf, bias_p)
    else:
        # Deep layers: K-tiled reduction with f32 VMEM accumulator.
        out = pl.pallas_call(
            functools.partial(conv_tiled_k_kernel, apply_act=apply_act),
            out_shape=jax.ShapeDtypeStruct((Mp, Coutp), out_dtype),
            grid=(Mp // TM, n_k),
            in_specs=[
                pl.BlockSpec((TM, TK), lambda i, k: (i, k)),       # patches tile
                pl.BlockSpec((TK, Coutp), lambda i, k: (k, 0)),    # weight K-slab
                pl.BlockSpec((1, Coutp), lambda i, k: (0, 0),
                             pipeline_mode=pl.Buffered(1)),        # folded bias
            ],
            out_specs=pl.BlockSpec((TM, Coutp), lambda i, k: (i, 0)),
            scratch_shapes=[pltpu.VMEM((TM, Coutp), jnp.float32)],
            compiler_params=pltpu.CompilerParams(
                dimension_semantics=("parallel", "arbitrary"),
                vmem_limit_bytes=_VMEM_LIMIT),
        )(patches, w_bf, bias_p)
    return out[:M, :cout]


# ------------------------------- glue (JAX) -------------------------------- #
def _im2col(x_nhwc, stride):
    N, H, W, C = x_nhwc.shape
    Ho = (H + 2 * PAD - KSIZE) // stride + 1
    Wo = (W + 2 * PAD - KSIZE) // stride + 1
    xp = jnp.pad(x_nhwc, ((0, 0), (PAD, PAD), (PAD, PAD), (0, 0)))
    cols = []
    for kh in range(KSIZE):
        for kw in range(KSIZE):
            cols.append(xp[:, kh::stride, kw::stride, :][:, :Ho, :Wo, :])
    # (N, Ho, Wo, Kh*Kw, C) -> (N*Ho*Wo, Kh*Kw*C); feature order (kh, kw, cin)
    patches = jnp.stack(cols, axis=3).reshape(N * Ho * Wo, KSIZE * KSIZE * C)
    return patches, (N, Ho, Wo)


def conv_layer(x_nhwc, layer, apply_act, out_dtype):
    patches, (N, Ho, Wo) = _im2col(x_nhwc, layer["stride"])
    out = fused_conv_matmul(patches, layer["w_bf"], layer["bias_p"],
                            layer["cout"], apply_act, out_dtype)
    return out.reshape(N, Ho, Wo, layer["cout"])


def patch_discriminator(img, mask, layers):
    # x = torch.cat([img, mask], dim=1)  -> [N, 4, H, W]
    x = jnp.concatenate([img, mask], axis=1)
    x = jnp.transpose(x, (0, 2, 3, 1)).astype(jnp.bfloat16)   # NCHW -> NHWC bf16
    for i, layer in enumerate(layers):
        last = (i == len(layers) - 1)
        x = conv_layer(x, layer, apply_act=not last,
                       out_dtype=jnp.float32 if last else jnp.bfloat16)
    return jnp.transpose(x, (0, 3, 1, 2))                     # NHWC -> NCHW [N,1,h,w]


# --------------------------- parameter creation ---------------------------- #
def _pack_layer(w_mat_folded, bias, stride, cout, extras):
    """Pad to MXU-friendly shapes once, offline; cast weight to bf16."""
    K = w_mat_folded.shape[0]
    Coutp = _round_up(cout, 128)
    if K <= _MAX_TK:
        Kp = _round_up(K, 128)          # lane-dense patch loads (first layer)
    else:
        Kp = _round_up(K, _MAX_TK)
    w_bf = jnp.pad(w_mat_folded,
                   ((0, Kp - K), (0, Coutp - cout))).astype(jnp.bfloat16)
    bias_p = jnp.pad(bias.reshape(1, cout), ((0, 0), (0, Coutp - cout)))
    d = dict(w_bf=w_bf, bias_p=bias_p.astype(jnp.float32),
             stride=stride, cout=cout)
    d.update(extras)
    return d


def init_params(key, in_c=4):
    cfgs = [(in_c, 64, 2), (64, 128, 2), (128, 256, 2), (256, 512, 1)]
    layers = []
    for cin, cout, stride in cfgs:
        key, k1, k2, k3, k4, k5, k6 = jax.random.split(key, 7)
        fan_in = cin * KSIZE * KSIZE
        w = jax.random.normal(k1, (cout, cin, KSIZE, KSIZE),
                              jnp.float32) / np.sqrt(fan_in)
        b = 0.01 * jax.random.normal(k2, (cout,), jnp.float32)
        gamma = 1.0 + 0.1 * jax.random.normal(k3, (cout,), jnp.float32)
        beta = 0.1 * jax.random.normal(k4, (cout,), jnp.float32)
        rmean = 0.1 * jax.random.normal(k5, (cout,), jnp.float32)
        rvar = 1.0 + 0.1 * jax.random.uniform(k6, (cout,), jnp.float32)
        scale = gamma / jnp.sqrt(rvar + EPS)
        bias = beta + scale * (b - rmean)                # fold conv-bias + BN shift
        w_mat = jnp.transpose(w, (2, 3, 1, 0)).reshape(KSIZE * KSIZE * cin, cout)
        w_folded = w_mat * scale[None, :]                # fold BN scale into W
        layers.append(_pack_layer(
            w_folded, bias, stride, cout,
            extras=dict(w_oihw=w, b=b, gamma=gamma, beta=beta,
                        rmean=rmean, rvar=rvar)))
    # final Conv2d(512, 1, 4, stride=1, padding=1) — no BN, no activation
    key, k1, k2 = jax.random.split(key, 3)
    cin, cout = 512, 1
    w = jax.random.normal(k1, (cout, cin, KSIZE, KSIZE),
                          jnp.float32) / np.sqrt(cin * KSIZE * KSIZE)
    b = 0.01 * jax.random.normal(k2, (cout,), jnp.float32)
    w_mat = jnp.transpose(w, (2, 3, 1, 0)).reshape(KSIZE * KSIZE * cin, cout)
    layers.append(_pack_layer(w_mat, b, 1, cout, extras=dict(w_oihw=w, b=b)))
    return layers


# ------------------------- pure-JAX reference check ------------------------ #
def reference(img, mask, layers):
    x = jnp.concatenate([img, mask], axis=1)
    for i, layer in enumerate(layers):
        s = layer["stride"]
        x = jax.lax.conv_general_dilated(
            x, layer["w_oihw"], (s, s), ((PAD, PAD), (PAD, PAD)),
            dimension_numbers=("NCHW", "OIHW", "NCHW"),
            preferred_element_type=jnp.float32)
        x = x + layer["b"][None, :, None, None]
        if i < len(layers) - 1:
            sc = layer["gamma"] / jnp.sqrt(layer["rvar"] + EPS)
            x = (sc[None, :, None, None]
                 * (x - layer["rmean"][None, :, None, None])
                 + layer["beta"][None, :, None, None])
            x = jnp.where(x >= 0.0, x, LEAK * x)
    return x


if __name__ == "__main__":
    key = jax.random.PRNGKey(0)
    kp, ki, km = jax.random.split(key, 3)
    N, H, W = 2, 32, 32
    img = jax.random.normal(ki, (N, 3, H, W), jnp.float32)    # RGB image
    mask = jax.random.normal(km, (N, 1, H, W), jnp.float32)   # 1-channel mask
    layers = init_params(kp, in_c=4)

    fwd = jax.jit(lambda a, b: patch_discriminator(a, b, layers))
    out = jax.block_until_ready(fwd(img, mask))

    ref = jax.block_until_ready(reference(img, mask, layers))
    assert out.shape == ref.shape == (N, 1, 2, 2), out.shape
    # bf16 matmul inputs / activations vs f32 reference -> bf16-class tolerance.
    np.testing.assert_allclose(np.asarray(out), np.asarray(ref),
                               rtol=3e-2, atol=3e-2)
    print("KERNEL_OK")
</pallas_src>

<mosaic_0001>
module attributes {stable_mosaic.version = 11 : i64} {
  func.func @conv_single_k_kernel(%arg0: i32, %arg1: memref<512x128xbf16, #tpu.memory_space<vmem>>, %arg2: memref<128x128xbf16, #tpu.memory_space<vmem>>, %arg3: memref<1x128xf32, #tpu.memory_space<vmem>>, %arg4: memref<512x128xbf16, #tpu.memory_space<vmem>>) attributes {dimension_semantics = [#tpu.dimension_semantics<parallel>], iteration_bounds = array<i64: 1>, scalar_prefetch = 0 : i64, scratch_operands = 0 : i64, tpu.core_type = #tpu.core_type<tc>, window_params = [{transform_indices = @transform_0, window_bounds = array<i64: 512, 128>}, {pipeline_mode = #tpu.pipeline_mode<synchronous>, transform_indices = @transform_1, window_bounds = array<i64: 128, 128>}, {pipeline_mode = #tpu.pipeline_mode<synchronous>, transform_indices = @transform_2, window_bounds = array<i64: 1, 128>}, {transform_indices = @transform_3, window_bounds = array<i64: 512, 128>}]} {
    %c0 = arith.constant 0 : index
    %c0_0 = arith.constant 0 : index
    %0 = vector.load %arg1[%c0, %c0_0] : memref<512x128xbf16, #tpu.memory_space<vmem>>, vector<512x128xbf16>
    %c0_1 = arith.constant 0 : index
    %c0_2 = arith.constant 0 : index
    %1 = vector.load %arg2[%c0_1, %c0_2] : memref<128x128xbf16, #tpu.memory_space<vmem>>, vector<128x128xbf16>
    %cst = arith.constant dense<0.000000e+00> : vector<512x128xf32>
    %2 = tpu.matmul %0, %1, %cst {dimension_numbers = #tpu.dot_dimension_numbers<[1], [0], [0], [1], [0, 0, 1, 1], [], []>} : vector<512x128xbf16>, vector<128x128xbf16>, vector<512x128xf32> -> vector<512x128xf32>
    %c0_3 = arith.constant 0 : index
    %c0_4 = arith.constant 0 : index
    %3 = vector.load %arg3[%c0_3, %c0_4] : memref<1x128xf32, #tpu.memory_space<vmem>>, vector<1x128xf32>
    %4 = vector.broadcast %3 : vector<1x128xf32> to vector<512x128xf32>
    %5 = arith.addf %2, %4 : vector<512x128xf32>
    %cst_5 = arith.constant 0.000000e+00 : f32
    %6 = vector.broadcast %cst_5 : f32 to vector<512x128xf32>
    %7 = arith.cmpf oge, %5, %6 : vector<512x128xf32>
    %cst_6 = arith.constant 2.000000e-01 : f32
    %8 = vector.broadcast %cst_6 : f32 to vector<512x128xf32>
    %9 = arith.mulf %8, %5 : vector<512x128xf32>
    %10 = arith.select %7, %5, %9 : vector<512x128xi1>, vector<512x128xf32>
    %11 = arith.truncf %10 : vector<512x128xf32> to vector<512x128xbf16>
    %c0_7 = arith.constant 0 : index
    %c0_8 = arith.constant 0 : index
    %12 = vector.load %arg4[%c0_7, %c0_8] : memref<512x128xbf16, #tpu.memory_space<vmem>>, vector<512x128xbf16>
    tpu.vector_store %arg4[%c0_7, %c0_8], %11 {strides = array<i32>} : memref<512x128xbf16, #tpu.memory_space<vmem>>, vector<512x128xbf16>,
    return
  }
  func.func @transform_0(%arg0: i32) -> (i32, i32) {
    %c0_i32 = arith.constant 0 : i32
    %c0_i32_0 = arith.constant 0 : i32
    return %arg0, %c0_i32 : i32, i32
  }
  func.func @transform_1(%arg0: i32) -> (i32, i32) {
    %c0_i32 = arith.constant 0 : i32
    %c0_i32_0 = arith.constant 0 : i32
    %c0_i32_1 = arith.constant 0 : i32
    return %c0_i32, %c0_i32_0 : i32, i32
  }
  func.func @transform_2(%arg0: i32) -> (i32, i32) {
    %c0_i32 = arith.constant 0 : i32
    %c0_i32_0 = arith.constant 0 : i32
    %c0_i32_1 = arith.constant 0 : i32
    return %c0_i32, %c0_i32_0 : i32, i32
  }
  func.func @transform_3(%arg0: i32) -> (i32, i32) {
    %c0_i32 = arith.constant 0 : i32
    %c0_i32_0 = arith.constant 0 : i32
    return %arg0, %c0_i32 : i32, i32
  }
}

module attributes {stable_mosaic.version = 11 : i64} {
  func.func @conv_single_k_kernel(%arg0: i32, %arg1: memref<128x1024xbf16, #tpu.memory_space<vmem>>, %arg2: memref<1024x128xbf16, #tpu.memory_space<vmem>>, %arg3: memref<1x128xf32, #tpu.memory_space<vmem>>, %arg4: memref<128x128xbf16, #tpu.memory_space<vmem>>) attributes {dimension_semantics = [#tpu.dimension_semantics<parallel>], iteration_bounds = array<i64: 1>, scalar_prefetch = 0 : i64, scratch_operands = 0 : i64, tpu.core_type = #tpu.core_type<tc>, window_params = [{transform_indices = @transform_0, window_bounds = array<i64: 128, 1024>}, {pipeline_mode = #tpu.pipeline_mode<synchronous>, transform_indices = @transform_1, window_bounds = array<i64: 1024, 128>}, {pipeline_mode = #tpu.pipeline_mode<synchronous>, transform_indices = @transform_2, window_bounds = array<i64: 1, 128>}, {transform_indices = @transform_3, window_bounds = array<i64: 128, 128>}]} {
    %c0 = arith.constant 0 : index
    %c0_0 = arith.constant 0 : index
    %0 = vector.load %arg1[%c0, %c0_0] : memref<128x1024xbf16, #tpu.memory_space<vmem>>, vector<128x1024xbf16>
    %c0_1 = arith.constant 0 : index
    %c0_2 = arith.constant 0 : index
    %1 = vector.load %arg2[%c0_1, %c0_2] : memref<1024x128xbf16, #tpu.memory_space<vmem>>, vector<1024x128xbf16>
    %cst = arith.constant dense<0.000000e+00> : vector<128x128xf32>
    %2 = tpu.matmul %0, %1, %cst {dimension_numbers = #tpu.dot_dimension_numbers<[1], [0], [0], [1], [0, 0, 1, 1], [], []>} : vector<128x1024xbf16>, vector<1024x128xbf16>, vector<128x128xf32> -> vector<128x128xf32>
    %c0_3 = arith.constant 0 : index
    %c0_4 = arith.constant 0 : index
    %3 = vector.load %arg3[%c0_3, %c0_4] : memref<1x128xf32, #tpu.memory_space<vmem>>, vector<1x128xf32>
    %4 = vector.broadcast %3 : vector<1x128xf32> to vector<128x128xf32>
    %5 = arith.addf %2, %4 : vector<128x128xf32>
    %cst_5 = arith.constant 0.000000e+00 : f32
    %6 = vector.broadcast %cst_5 : f32 to vector<128x128xf32>
    %7 = arith.cmpf oge, %5, %6 : vector<128x128xf32>
    %cst_6 = arith.constant 2.000000e-01 : f32
    %8 = vector.broadcast %cst_6 : f32 to vector<128x128xf32>
    %9 = arith.mulf %8, %5 : vector<128x128xf32>
    %10 = arith.select %7, %5, %9 : vector<128x128xi1>, vector<128x128xf32>
    %11 = arith.truncf %10 : vector<128x128xf32> to vector<128x128xbf16>
    %c0_7 = arith.constant 0 : index
    %c0_8 = arith.constant 0 : index
    %12 = vector.load %arg4[%c0_7, %c0_8] : memref<128x128xbf16, #tpu.memory_space<vmem>>, vector<128x128xbf16>
    tpu.vector_store %arg4[%c0_7, %c0_8], %11 {strides = array<i32>} : memref<128x128xbf16, #tpu.memory_space<vmem>>, vector<128x128xbf16>,
    return
  }
  func.func @transform_0(%arg0: i32) -> (i32, i32) {
    %c0_i32 = arith.constant 0 : i32
    %c0_i32_0 = arith.constant 0 : i32
    return %arg0, %c0_i32 : i32, i32
  }
  func.func @transform_1(%arg0: i32) -> (i32, i32) {
    %c0_i32 = arith.constant 0 : i32
    %c0_i32_0 = arith.constant 0 : i32
    %c0_i32_1 = arith.constant 0 : i32
    return %c0_i32, %c0_i32_0 : i32, i32
  }
  func.func @transform_2(%arg0: i32) -> (i32, i32) {
    %c0_i32 = arith.constant 0 : i32
    %c0_i32_0 = arith.constant 0 : i32
    %c0_i32_1 = arith.constant 0 : i32
    return %c0_i32, %c0_i32_0 : i32, i32
  }
  func.func @transform_3(%arg0: i32) -> (i32, i32) {
    %c0_i32 = arith.constant 0 : i32
    %c0_i32_0 = arith.constant 0 : i32
    return %arg0, %c0_i32 : i32, i32
  }
}

module attributes {stable_mosaic.version = 11 : i64} {
  func.func @conv_single_k_kernel(%arg0: i32, %arg1: memref<32x2048xbf16, #tpu.memory_space<vmem>>, %arg2: memref<2048x256xbf16, #tpu.memory_space<vmem>>, %arg3: memref<1x256xf32, #tpu.memory_space<vmem>>, %arg4: memref<32x256xbf16, #tpu.memory_space<vmem>>) attributes {dimension_semantics = [#tpu.dimension_semantics<parallel>], iteration_bounds = array<i64: 1>, scalar_prefetch = 0 : i64, scratch_operands = 0 : i64, tpu.core_type = #tpu.core_type<tc>, window_params = [{transform_indices = @transform_0, window_bounds = array<i64: 32, 2048>}, {pipeline_mode = #tpu.pipeline_mode<synchronous>, transform_indices = @transform_1, window_bounds = array<i64: 2048, 256>}, {pipeline_mode = #tpu.pipeline_mode<synchronous>, transform_indices = @transform_2, window_bounds = array<i64: 1, 256>}, {transform_indices = @transform_3, window_bounds = array<i64: 32, 256>}]} {
    %c0 = arith.constant 0 : index
    %c0_0 = arith.constant 0 : index
    %0 = vector.load %arg1[%c0, %c0_0] : memref<32x2048xbf16, #tpu.memory_space<vmem>>, vector<32x2048xbf16>
    %c0_1 = arith.constant 0 : index
    %c0_2 = arith.constant 0 : index
    %1 = vector.load %arg2[%c0_1, %c0_2] : memref<2048x256xbf16, #tpu.memory_space<vmem>>, vector<2048x256xbf16>
    %cst = arith.constant dense<0.000000e+00> : vector<32x256xf32>
    %2 = tpu.matmul %0, %1, %cst {dimension_numbers = #tpu.dot_dimension_numbers<[1], [0], [0], [1], [0, 0, 1, 1], [], []>} : vector<32x2048xbf16>, vector<2048x256xbf16>, vector<32x256xf32> -> vector<32x256xf32>
    %c0_3 = arith.constant 0 : index
    %c0_4 = arith.constant 0 : index
    %3 = vector.load %arg3[%c0_3, %c0_4] : memref<1x256xf32, #tpu.memory_space<vmem>>, vector<1x256xf32>
    %4 = vector.broadcast %3 : vector<1x256xf32> to vector<32x256xf32>
    %5 = arith.addf %2, %4 : vector<32x256xf32>
    %cst_5 = arith.constant 0.000000e+00 : f32
    %6 = vector.broadcast %cst_5 : f32 to vector<32x256xf32>
    %7 = arith.cmpf oge, %5, %6 : vector<32x256xf32>
    %cst_6 = arith.constant 2.000000e-01 : f32
    %8 = vector.broadcast %cst_6 : f32 to vector<32x256xf32>
    %9 = arith.mulf %8, %5 : vector<32x256xf32>
    %10 = arith.select %7, %5, %9 : vector<32x256xi1>, vector<32x256xf32>
    %11 = arith.truncf %10 : vector<32x256xf32> to vector<32x256xbf16>
    %c0_7 = arith.constant 0 : index
    %c0_8 = arith.constant 0 : index
    %12 = vector.load %arg4[%c0_7, %c0_8] : memref<32x256xbf16, #tpu.memory_space<vmem>>, vector<32x256xbf16>
    tpu.vector_store %arg4[%c0_7, %c0_8], %11 {strides = array<i32>} : memref<32x256xbf16, #tpu.memory_space<vmem>>, vector<32x256xbf16>,
    return
  }
  func.func @transform_0(%arg0: i32) -> (i32, i32) {
    %c0_i32 = arith.constant 0 : i32
    %c0_i32_0 = arith.constant 0 : i32
    return %arg0, %c0_i32 : i32, i32
  }
  func.func @transform_1(%arg0: i32) -> (i32, i32) {
    %c0_i32 = arith.constant 0 : i32
    %c0_i32_0 = arith.constant 0 : i32
    %c0_i32_1 = arith.constant 0 : i32
    return %c0_i32, %c0_i32_0 : i32, i32
  }
  func.func @transform_2(%arg0: i32) -> (i32, i32) {
    %c0_i32 = arith.constant 0 : i32
    %c0_i32_0 = arith.constant 0 : i32
    %c0_i32_1 = arith.constant 0 : i32
    return %c0_i32, %c0_i32_0 : i32, i32
  }
  func.func @transform_3(%arg0: i32) -> (i32, i32) {
    %c0_i32 = arith.constant 0 : i32
    %c0_i32_0 = arith.constant 0 : i32
    return %arg0, %c0_i32 : i32, i32
  }
}

module attributes {stable_mosaic.version = 11 : i64} {
  func.func @conv_tiled_k_kernel(%arg0: i32, %arg1: i32, %arg2: memref<24x2048xbf16, #tpu.memory_space<vmem>>, %arg3: memref<2048x512xbf16, #tpu.memory_space<vmem>>, %arg4: memref<1x512xf32, #tpu.memory_space<vmem>>, %arg5: memref<24x512xbf16, #tpu.memory_space<vmem>>, %arg6: memref<24x512xf32, #tpu.memory_space<vmem>>) attributes {dimension_semantics = [#tpu.dimension_semantics<parallel>, #tpu.dimension_semantics<arbitrary>], iteration_bounds = array<i64: 1, 2>, scalar_prefetch = 0 : i64, scratch_operands = 1 : i64, tpu.core_type = #tpu.core_type<tc>, window_params = [{transform_indices = @transform_0, window_bounds = array<i64: 24, 2048>}, {transform_indices = @transform_1, window_bounds = array<i64: 2048, 512>}, {pipeline_mode = #tpu.pipeline_mode<synchronous>, transform_indices = @transform_2, window_bounds = array<i64: 1, 512>}, {transform_indices = @transform_3, window_bounds = array<i64: 24, 512>}]} {
    %c0_i32 = arith.constant 0 : i32
    %0 = arith.cmpi eq, %arg1, %c0_i32 : i32
    %1 = arith.extui %0 : i1 to i32
    %c0_i32_0 = arith.constant 0 : i32
    %2 = arith.cmpi ne, %1, %c0_i32_0 : i32
    scf.if %2 {
      %cst_9 = arith.constant 0.000000e+00 : f32
      %12 = vector.broadcast %cst_9 : f32 to vector<24x512xf32>
      %c0_10 = arith.constant 0 : index
      %c0_11 = arith.constant 0 : index
      %13 = vector.load %arg6[%c0_10, %c0_11] : memref<24x512xf32, #tpu.memory_space<vmem>>, vector<24x512xf32>
      tpu.vector_store %arg6[%c0_10, %c0_11], %12 {strides = array<i32>} : memref<24x512xf32, #tpu.memory_space<vmem>>, vector<24x512xf32>,
    } else {
    }
    %c0 = arith.constant 0 : index
    %c0_1 = arith.constant 0 : index
    %3 = vector.load %arg6[%c0, %c0_1] : memref<24x512xf32, #tpu.memory_space<vmem>>, vector<24x512xf32>
    %c0_2 = arith.constant 0 : index
    %c0_3 = arith.constant 0 : index
    %4 = vector.load %arg2[%c0_2, %c0_3] : memref<24x2048xbf16, #tpu.memory_space<vmem>>, vector<24x2048xbf16>
    %c0_4 = arith.constant 0 : index
    %c0_5 = arith.constant 0 : index
    %5 = vector.load %arg3[%c0_4, %c0_5] : memref<2048x512xbf16, #tpu.memory_space<vmem>>, vector<2048x512xbf16>
    %cst = arith.constant dense<0.000000e+00> : vector<24x512xf32>
    %6 = tpu.matmul %4, %5, %cst {dimension_numbers = #tpu.dot_dimension_numbers<[1], [0], [0], [1], [0, 0, 1, 1], [], []>} : vector<24x2048xbf16>, vector<2048x512xbf16>, vector<24x512xf32> -> vector<24x512xf32>
    %7 = arith.addf %3, %6 : vector<24x512xf32>
    %c0_6 = arith.constant 0 : index
    %c0_7 = arith.constant 0 : index
    %8 = vector.load %arg6[%c0_6, %c0_7] : memref<24x512xf32, #tpu.memory_space<vmem>>, vector<24x512xf32>
    tpu.vector_store %arg6[%c0_6, %c0_7], %7 {strides = array<i32>} : memref<24x512xf32, #tpu.memory_space<vmem>>, vector<24x512xf32>,
    %c1_i32 = arith.constant 1 : i32
    %9 = arith.cmpi eq, %arg1, %c1_i32 : i32
    %10 = arith.extui %9 : i1 to i32
    %c0_i32_8 = arith.constant 0 : i32
    %11 = arith.cmpi ne, %10, %c0_i32_8 : i32
    scf.if %11 {
      %c0_9 = arith.constant 0 : index
      %c0_10 = arith.constant 0 : index
      %12 = vector.load %arg6[%c0_9, %c0_10] : memref<24x512xf32, #tpu.memory_space<vmem>>, vector<24x512xf32>
      %c0_11 = arith.constant 0 : index
      %c0_12 = arith.constant 0 : index
      %13 = vector.load %arg4[%c0_11, %c0_12] : memref<1x512xf32, #tpu.memory_space<vmem>>, vector<1x512xf32>
      %14 = vector.broadcast %13 : vector<1x512xf32> to vector<24x512xf32>
      %15 = arith.addf %12, %14 : vector<24x512xf32>
      %cst_13 = arith.constant 0.000000e+00 : f32
      %16 = vector.broadcast %cst_13 : f32 to vector<24x512xf32>
      %17 = arith.cmpf oge, %15, %16 : vector<24x512xf32>
      %cst_14 = arith.constant 2.000000e-01 : f32
      %18 = vector.broadcast %cst_14 : f32 to vector<24x512xf32>
      %19 = arith.mulf %18, %15 : vector<24x512xf32>
      %20 = arith.select %17, %15, %19 : vector<24x512xi1>, vector<24x512xf32>
      %21 = arith.truncf %20 : vector<24x512xf32> to vector<24x512xbf16>
      %c0_15 = arith.constant 0 : index
      %c0_16 = arith.constant 0 : index
      %22 = vector.load %arg5[%c0_15, %c0_16] : memref<24x512xbf16, #tpu.memory_space<vmem>>, vector<24x512xbf16>
      tpu.vector_store %arg5[%c0_15, %c0_16], %21 {strides = array<i32>} : memref<24x512xbf16, #tpu.memory_space<vmem>>, vector<24x512xbf16>,
    } else {
    }
    return
  }
  func.func @transform_0(%arg0: i32, %arg1: i32) -> (i32, i32) {
    %c0_i32 = arith.constant 0 : i32
    return %arg0, %arg1 : i32, i32
  }
  func.func @transform_1(%arg0: i32, %arg1: i32) -> (i32, i32) {
    %c0_i32 = arith.constant 0 : i32
    %c0_i32_0 = arith.constant 0 : i32
    return %arg1, %c0_i32 : i32, i32
  }
  func.func @transform_2(%arg0: i32, %arg1: i32) -> (i32, i32) {
    %c0_i32 = arith.constant 0 : i32
    %c0_i32_0 = arith.constant 0 : i32
    %c0_i32_1 = arith.constant 0 : i32
    return %c0_i32, %c0_i32_0 : i32, i32
  }
  func.func @transform_3(%arg0: i32, %arg1: i32) -> (i32, i32) {
    %c0_i32 = arith.constant 0 : i32
    %c0_i32_0 = arith.constant 0 : i32
    return %arg0, %c0_i32 : i32, i32
  }
}

module attributes {stable_mosaic.version = 11 : i64} {
  func.func @conv_tiled_k_kernel(%arg0: i32, %arg1: i32, %arg2: memref<8x2048xbf16, #tpu.memory_space<vmem>>, %arg3: memref<2048x128xbf16, #tpu.memory_space<vmem>>, %arg4: memref<1x128xf32, #tpu.memory_space<vmem>>, %arg5: memref<8x128xf32, #tpu.memory_space<vmem>>, %arg6: memref<8x128xf32, #tpu.memory_space<vmem>>) attributes {dimension_semantics = [#tpu.dimension_semantics<parallel>, #tpu.dimension_semantics<arbitrary>], iteration_bounds = array<i64: 1, 4>, scalar_prefetch = 0 : i64, scratch_operands = 1 : i64, tpu.core_type = #tpu.core_type<tc>, window_params = [{transform_indices = @transform_0, window_bounds = array<i64: 8, 2048>}, {transform_indices = @transform_1, window_bounds = array<i64: 2048, 128>}, {pipeline_mode = #tpu.pipeline_mode<synchronous>, transform_indices = @transform_2, window_bounds = array<i64: 1, 128>}, {transform_indices = @transform_3, window_bounds = array<i64: 8, 128>}]} {
    %c0_i32 = arith.constant 0 : i32
    %0 = arith.cmpi eq, %arg1, %c0_i32 : i32
    %1 = arith.extui %0 : i1 to i32
    %c0_i32_0 = arith.constant 0 : i32
    %2 = arith.cmpi ne, %1, %c0_i32_0 : i32
    scf.if %2 {
      %cst_9 = arith.constant 0.000000e+00 : f32
      %12 = vector.broadcast %cst_9 : f32 to vector<8x128xf32>
      %c0_10 = arith.constant 0 : index
      %c0_11 = arith.constant 0 : index
      %13 = vector.load %arg6[%c0_10, %c0_11] : memref<8x128xf32, #tpu.memory_space<vmem>>, vector<8x128xf32>
      tpu.vector_store %arg6[%c0_10, %c0_11], %12 {strides = array<i32>} : memref<8x128xf32, #tpu.memory_space<vmem>>, vector<8x128xf32>,
    } else {
    }
    %c0 = arith.constant 0 : index
    %c0_1 = arith.constant 0 : index
    %3 = vector.load %arg6[%c0, %c0_1] : memref<8x128xf32, #tpu.memory_space<vmem>>, vector<8x128xf32>
    %c0_2 = arith.constant 0 : index
    %c0_3 = arith.constant 0 : index
    %4 = vector.load %arg2[%c0_2, %c0_3] : memref<8x2048xbf16, #tpu.memory_space<vmem>>, vector<8x2048xbf16>
    %c0_4 = arith.constant 0 : index
    %c0_5 = arith.constant 0 : index
    %5 = vector.load %arg3[%c0_4, %c0_5] : memref<2048x128xbf16, #tpu.memory_space<vmem>>, vector<2048x128xbf16>
    %cst = arith.constant dense<0.000000e+00> : vector<8x128xf32>
    %6 = tpu.matmul %4, %5, %cst {dimension_numbers = #tpu.dot_dimension_numbers<[1], [0], [0], [1], [0, 0, 1, 1], [], []>} : vector<8x2048xbf16>, vector<2048x128xbf16>, vector<8x128xf32> -> vector<8x128xf32>
    %7 = arith.addf %3, %6 : vector<8x128xf32>
    %c0_6 = arith.constant 0 : index
    %c0_7 = arith.constant 0 : index
    %8 = vector.load %arg6[%c0_6, %c0_7] : memref<8x128xf32, #tpu.memory_space<vmem>>, vector<8x128xf32>
    tpu.vector_store %arg6[%c0_6, %c0_7], %7 {strides = array<i32>} : memref<8x128xf32, #tpu.memory_space<vmem>>, vector<8x128xf32>,
    %c3_i32 = arith.constant 3 : i32
    %9 = arith.cmpi eq, %arg1, %c3_i32 : i32
    %10 = arith.extui %9 : i1 to i32
    %c0_i32_8 = arith.constant 0 : i32
    %11 = arith.cmpi ne, %10, %c0_i32_8 : i32
    scf.if %11 {
      %c0_9 = arith.constant 0 : index
      %c0_10 = arith.constant 0 : index
      %12 = vector.load %arg6[%c0_9, %c0_10] : memref<8x128xf32, #tpu.memory_space<vmem>>, vector<8x128xf32>
      %c0_11 = arith.constant 0 : index
      %c0_12 = arith.constant 0 : index
      %13 = vector.load %arg4[%c0_11, %c0_12] : memref<1x128xf32, #tpu.memory_space<vmem>>, vector<1x128xf32>
      %14 = vector.broadcast %13 : vector<1x128xf32> to vector<8x128xf32>
      %15 = arith.addf %12, %14 : vector<8x128xf32>
      %c0_13 = arith.constant 0 : index
      %c0_14 = arith.constant 0 : index
      %16 = vector.load %arg5[%c0_13, %c0_14] : memref<8x128xf32, #tpu.memory_space<vmem>>, vector<8x128xf32>
      tpu.vector_store %arg5[%c0_13, %c0_14], %15 {strides = array<i32>} : memref<8x128xf32, #tpu.memory_space<vmem>>, vector<8x128xf32>,
    } else {
    }
    return
  }
  func.func @transform_0(%arg0: i32, %arg1: i32) -> (i32, i32) {
    %c0_i32 = arith.constant 0 : i32
    return %arg0, %arg1 : i32, i32
  }
  func.func @transform_1(%arg0: i32, %arg1: i32) -> (i32, i32) {
    %c0_i32 = arith.constant 0 : i32
    %c0_i32_0 = arith.constant 0 : i32
    return %arg1, %c0_i32 : i32, i32
  }
  func.func @transform_2(%arg0: i32, %arg1: i32) -> (i32, i32) {
    %c0_i32 = arith.constant 0 : i32
    %c0_i32_0 = arith.constant 0 : i32
    %c0_i32_1 = arith.constant 0 : i32
    return %c0_i32, %c0_i32_0 : i32, i32
  }
  func.func @transform_3(%arg0: i32, %arg1: i32) -> (i32, i32) {
    %c0_i32 = arith.constant 0 : i32
    %c0_i32_0 = arith.constant 0 : i32
    return %arg0, %c0_i32 : i32, i32
  }
}

</mosaic_0001>

<bundles_post_ra>
// kernel: _lambda_.5
= control target key start
LH: loop header
LB: loop body
LE: loop exit
PB: predicated region body
PF: predicated region fallthrough
CT: control target
= control target key end

     0   :  { %s1997_s1 = inlined_call_operand.vmem [shape: bf16[128,128], index: 1, kind: input, shape index: {}]   ;;  %s1998_s0 = inlined_call_operand.vmem [shape: bf16[512,128], index: 0, kind: input, shape index: {}]   ;;  %s1999_s2 = inlined_call_operand.vmem [shape: f32[1,128], index: 2, kind: input, shape index: {}]   ;;  %s2000_s3 = inlined_call_operand.vmem [shape: bf16[512,128], index: 3, kind: output, shape index: {}]  }
   0x1   :  { %v1643_v0 = vld [vmem:[%s1997_s1] sm:$0xff]   ;;  %v1644_v1 = vld [vmem:[%s1997_s1 + $0x8] sm:$0xff]   ;;  %v1645_v2 = vld [vmem:[%s1997_s1 + $0x10] sm:$0xff]  }
   0x2   :  { %1547 = vmatprep.subr.bf16.mxu0 %v1643_v0  ;;  %1627 = vmatprep.subr.bf16.mxu1 %v1643_v0  ;;  %v1646_v3 = vld [vmem:[%s1997_s1 + $0x18] sm:$0xff]   ;;  %v1651_v4 = vld [vmem:[%s1998_s0] sm:$0xff]   ;;  %v1648_v7 = vld [vmem:[%s1997_s1 + $0x28] sm:$0xff]  }
   0x3   :  { %1548 = vmatpush3.bf16.msra.mxu0 %v1643_v0  ;;  %1635 = vmatpush3.bf16.msra.mxu1 %v1643_v0  ;;  %v1652_v5 = vld [vmem:[%s1998_s0 + $0x80] sm:$0xff]   ;;  %v1649_v8 = vld [vmem:[%s1997_s1 + $0x30] sm:$0xff]   ;;  %v1650_v9 = vld [vmem:[%s1997_s1 + $0x38] sm:$0xff]  }
   0x4   :  { %1549 = vmatprep.subr.bf16.mxu0 %v1644_v1  ;;  %1628 = vmatprep.subr.bf16.mxu1 %v1644_v1  ;;  %v1647_v6 = vld [vmem:[%s1997_s1 + $0x20] sm:$0xff]   ;;  %v1653_v10 = vld [vmem:[%s1998_s0 + $0x8] sm:$0xff]   ;;  %v1655_v12 = vld [vmem:[%s1998_s0 + $0x10] sm:$0xff]  }
   0x5   :  { %1563 = vmatprep.mubr.bf16.mxu0 %v1651_v4  ;;  %1595 = vmatprep.mubr.bf16.mxu1 %v1652_v5  ;;  %v1654_v11 = vld [vmem:[%s1998_s0 + $0x88] sm:$0xff]   ;;  %v1656_v13 = vld [vmem:[%s1998_s0 + $0x90] sm:$0xff]   ;;  %v1657_v14 = vld [vmem:[%s1998_s0 + $0x18] sm:$0xff]  }
   0x6   :  { %v1658_v15 = vld [vmem:[%s1998_s0 + $0x98] sm:$0xff]   ;;  %v1659_v16 = vld [vmem:[%s1998_s0 + $0x20] sm:$0xff]   ;;  %v1661_v18 = vld [vmem:[%s1998_s0 + $0x28] sm:$0xff]  }
   0x7   :  { %1550 = vmatpush3.bf16.msra.mxu0 %v1644_v1  ;;  %1636 = vmatpush3.bf16.msra.mxu1 %v1644_v1  ;;  %v1660_v17 = vld [vmem:[%s1998_s0 + $0xa0] sm:$0xff]   ;;  %v1662_v19 = vld [vmem:[%s1998_s0 + $0xa8] sm:$0xff]   ;;  %v1663_v20 = vld [vmem:[%s1998_s0 + $0x30] sm:$0xff]  }
   0x8   :  { %1551 = vmatprep.subr.bf16.mxu0 %v1645_v2  ;;  %1629 = vmatprep.subr.bf16.mxu1 %v1645_v2  ;;  %v1664_v21 = vld [vmem:[%s1998_s0 + $0xb0] sm:$0xff]   ;;  %v1665_v22 = vld [vmem:[%s1998_s0 + $0x38] sm:$0xff]   ;;  %v1667_v24 = vld [vmem:[%s1998_s0 + $0x40] sm:$0xff]  }
   0x9   :  { %v1666_v23 = vld [vmem:[%s1998_s0 + $0xb8] sm:$0xff]   ;;  %v1668_v25 = vld [vmem:[%s1998_s0 + $0xc0] sm:$0xff]   ;;  %v1669_v26 = vld [vmem:[%s1998_s0 + $0x48] sm:$0xff]  }
   0xa   :  { %v1670_v27 = vld [vmem:[%s1998_s0 + $0xc8] sm:$0xff]   ;;  %v1671_v28 = vld [vmem:[%s1998_s0 + $0x50] sm:$0xff]   ;;  %v1673_v30 = vld [vmem:[%s1998_s0 + $0x58] sm:$0xff]  }
   0xb   :  { %1552 = vmatpush3.bf16.msra.mxu0 %v1645_v2  ;;  %1637 = vmatpush3.bf16.msra.mxu1 %v1645_v2  ;;  %v1672_v29 = vld [vmem:[%s1998_s0 + $0xd0] sm:$0xff]   ;;  %v1674_v31 = vld [vmem:[%s1998_s0 + $0xd8] sm:$0xff]   ;;  %v1675_v32 = vld [vmem:[%s1998_s0 + $0x60] sm:$0xff]  }
   0xc   :  { %1553 = vmatprep.subr.bf16.mxu0 %v1646_v3  ;;  %1630 = vmatprep.subr.bf16.mxu1 %v1646_v3  ;;  %v1676_v33 = vld [vmem:[%s1998_s0 + $0xe0] sm:$0xff]   ;;  %v1677_v34 = vld [vmem:[%s1998_s0 + $0x68] sm:$0xff]   ;;  %v1679_v36 = vld [vmem:[%s1998_s0 + $0x70] sm:$0xff]  }
   0xd   :  { %v1678_v35 = vld [vmem:[%s1998_s0 + $0xe8] sm:$0xff]   ;;  %v1680_v37 = vld [vmem:[%s1998_s0 + $0xf0] sm:$0xff]   ;;  %v1681_v38 = vld [vmem:[%s1998_s0 + $0x78] sm:$0xff]  }
   0xe   :  { %v1682_v39 = vld [vmem:[%s1998_s0 + $0xf8] sm:$0xff]   ;;  %v1826_v40 = vld [vmem:[%s1999_s2] ss:$0 sm:$0xff] }
   0xf   :  { %1554 = vmatpush3.bf16.msra.mxu0 %v1646_v3  ;;  %1638 = vmatpush3.bf16.msra.mxu1 %v1646_v3 }
  0x10   :  { %1555 = vmatprep.subr.bf16.mxu0 %v1647_v6  ;;  %1631 = vmatprep.subr.bf16.mxu1 %v1647_v6 }
  0x13   :  { %1556 = vmatpush3.bf16.msra.mxu0 %v1647_v6  ;;  %1639 = vmatpush3.bf16.msra.mxu1 %v1647_v6 }
  0x14   :  { %1557 = vmatprep.subr.bf16.mxu0 %v1648_v7  ;;  %1632 = vmatprep.subr.bf16.mxu1 %v1648_v7 }
  0x17   :  { %1558 = vmatpush3.bf16.msra.mxu0 %v1648_v7  ;;  %1640 = vmatpush3.bf16.msra.mxu1 %v1648_v7 }
  0x18   :  { %1559 = vmatprep.subr.bf16.mxu0 %v1649_v8  ;;  %1633 = vmatprep.subr.bf16.mxu1 %v1649_v8 }
  0x1b   :  { %1560 = vmatpush3.bf16.msra.mxu0 %v1649_v8  ;;  %1641 = vmatpush3.bf16.msra.mxu1 %v1649_v8 }
  0x1c   :  { %1561 = vmatprep.subr.bf16.mxu0 %v1650_v9  ;;  %1634 = vmatprep.subr.bf16.mxu1 %v1650_v9 }
  0x1f   :  { %1562 = vmatpush3.bf16.msra.mxu0 %v1650_v9  ;;  %1642 = vmatpush3.bf16.msra.mxu1 %v1650_v9 }
  0x22   :  { %1564 = vmatmul.mubr.bf16.vlgmr.msra.gmra.mrb[0].mxu0 %v1653_v10  ;;  %1596 = vmatmul.mubr.bf16.vlgmr.msra.gmra.mrb[0].mxu1 %v1654_v11 }
  0x23   :  { %1567 = vmatprep.mubr.bf16.mxu0 %v1655_v12  ;;  %1599 = vmatprep.mubr.bf16.mxu1 %v1656_v13 }
  0x2a   :  { %1568 = vmatmul.mubr.bf16.gmra.mrb[4].mxu0 %v1657_v14  ;;  %1600 = vmatmul.mubr.bf16.gmra.mrb[4].mxu1 %v1658_v15 }
  0x2b   :  { %1571 = vmatprep.mubr.bf16.mxu0 %v1659_v16  ;;  %1603 = vmatprep.mubr.bf16.mxu1 %v1660_v17 }
  0x32   :  { %1572 = vmatmul.mubr.bf16.gmra.mrb[8].mxu0 %v1661_v18  ;;  %1604 = vmatmul.mubr.bf16.gmra.mrb[8].mxu1 %v1662_v19 }
  0x33   :  { %1575 = vmatprep.mubr.bf16.mxu0 %v1663_v20  ;;  %1607 = vmatprep.mubr.bf16.mxu1 %v1664_v21 }
  0x3a   :  { %1576 = vmatmul.mubr.bf16.gmra.mrb[12].mxu0 %v1665_v22  ;;  %1608 = vmatmul.mubr.bf16.gmra.mrb[12].mxu1 %v1666_v23 }
  0x3b   :  { %1579 = vmatprep.mubr.bf16.mxu0 %v1667_v24  ;;  %1611 = vmatprep.mubr.bf16.mxu1 %v1668_v25 }
  0x42   :  { %1580 = vmatmul.mubr.bf16.gmra.mrb[16].mxu0 %v1669_v26  ;;  %1612 = vmatmul.mubr.bf16.gmra.mrb[16].mxu1 %v1670_v27 }
  0x43   :  { %1583 = vmatprep.mubr.bf16.mxu0 %v1671_v28  ;;  %1615 = vmatprep.mubr.bf16.mxu1 %v1672_v29 }
  0x4a   :  { %1584 = vmatmul.mubr.bf16.gmra.mrb[20].mxu0 %v1673_v30  ;;  %1616 = vmatmul.mubr.bf16.gmra.mrb[20].mxu1 %v1674_v31 }
  0x4b   :  { %1587 = vmatprep.mubr.bf16.mxu0 %v1675_v32  ;;  %1619 = vmatprep.mubr.bf16.mxu1 %v1676_v33 }
  0x52   :  { %1588 = vmatmul.mubr.bf16.gmra.mrb[24].mxu0 %v1677_v34  ;;  %1620 = vmatmul.mubr.bf16.gmra.mrb[24].mxu1 %v1678_v35 }
  0x53   :  { %1591 = vmatprep.mubr.bf16.mxu0 %v1679_v36  ;;  %1623 = vmatprep.mubr.bf16.mxu1 %v1680_v37 }
  0x5a   :  { %1592 = vmatmul.mubr.bf16.gmra.mrb[28].mxu0 %v1681_v38  ;;  %1624 = vmatmul.mubr.bf16.gmra.mrb[28].mxu1 %v1682_v39 }
  0xf5   :  { %v1565_v41 = vpop.f32.mrb[0].mxu0  ;;  %v1597_v42 = vpop.f32.mrb[0].mxu1 }
  0xf6   :  { %v385_v43 = vadd.f32 %v1565_v41, %v1826_v40  ;;  %v513_v44 = vadd.f32 %v1597_v42, %v1826_v40  ;;  %v376_v45 = vpop.f32.mrb[1].mxu0  ;;  %v504_v46 = vpop.f32.mrb[1].mxu1 }
  0xf7   :  { %v377_v47 = vadd.f32 %v1826_v40, %v376_v45  ;;  %v505_v48 = vadd.f32 %v1826_v40, %v504_v46  ;;  %v1566_v49 = vpop.f32.mrb[2].mxu0  ;;  %v1598_v50 = vpop.f32.mrb[2].mxu1 }
  0xf8   :  { %vm633_vm0 = vcmp.ge.f32.partialorder %v385_v43, 0.0  ;;  %v697_v51 = vmul.f32 0.2, %v385_v43  ;;  %vm665_vm1 = vcmp.ge.f32.partialorder %v513_v44, 0.0  ;;  %v729_v52 = vmul.f32 0.2, %v513_v44 }
  0xf9   :  { %vm631_vm2 = vcmp.ge.f32.partialorder %v377_v47, 0.0  ;;  %v695_v53 = vmul.f32 0.2, %v377_v47  ;;  %vm663_vm3 = vcmp.ge.f32.partialorder %v505_v48, 0.0  ;;  %v727_v54 = vmul.f32 0.2, %v505_v48 }
  0xfa   :  { %v388_v55 = vadd.f32 %v1566_v49, %v1826_v40  ;;  %v516_v56 = vadd.f32 %v1598_v50, %v1826_v40  ;;  %v379_v57 = vpop.f32.mrb[3].mxu0  ;;  %v507_v58 = vpop.f32.mrb[3].mxu1  ;;  %v761_v59 = vsel %vm633_vm0, %v385_v43, %v697_v51  ;;  %v793_v60 = vsel %vm665_vm1, %v513_v44, %v729_v52 }
  0xfb   :  { %v380_v61 = vadd.f32 %v1826_v40, %v379_v57  ;;  %v508_v62 = vadd.f32 %v1826_v40, %v507_v58  ;;  %v759_v3 = vsel %vm631_vm2, %v377_v47, %v695_v53  ;;  %v791_v4 = vsel %vm663_vm3, %v505_v48, %v727_v54 }
  0xfc   :  { %vm634_vm4 = vcmp.ge.f32.partialorder %v388_v55, 0.0  ;;  %v698_v63 = vmul.f32 0.2, %v388_v55  ;;  %vm666_vm5 = vcmp.ge.f32.partialorder %v516_v56, 0.0  ;;  %v730_v0 = vmul.f32 0.2, %v516_v56 }
  0xfd   :  { %vm632_vm6 = vcmp.ge.f32.partialorder %v380_v61, 0.0  ;;  %v696_v1 = vmul.f32 0.2, %v380_v61  ;;  %vm664_vm7 = vcmp.ge.f32.partialorder %v508_v62, 0.0  ;;  %v728_v2 = vmul.f32 0.2, %v508_v62 }
  0xfe   :  { %v762_v5 = vsel %vm634_vm4, %v388_v55, %v698_v63  ;;  %v794_v6 = vsel %vm666_vm5, %v516_v56, %v730_v0  ;;  %v1569_v7 = vpop.f32.mrb[4].mxu0  ;;  %v1601_v8 = vpop.f32.mrb[4].mxu1 }
  0xff   :  { %v1324_v9 = vpack.c.bf16 %v762_v5, %v761_v59  ;;  %v1404_v10 = vpack.c.bf16 %v794_v6, %v793_v60  ;;  %v760_v11 = vsel %vm632_vm6, %v380_v61, %v696_v1  ;;  %v792_v12 = vsel %vm664_vm7, %v508_v62, %v728_v2  ;;  %v392_v13 = vpop.f32.mrb[5].mxu0  ;;  %v520_v14 = vpop.f32.mrb[5].mxu1 }
 0x100   :  { %v1319_v15 = vpack.c.bf16 %v760_v11, %v759_v3  ;;  %v1399_v16 = vpack.c.bf16 %v792_v12, %v791_v4  ;;  %v401_v17 = vadd.f32 %v1569_v7, %v1826_v40  ;;  %v529_v18 = vadd.f32 %v1601_v8, %v1826_v40  ;;  %v1570_v19 = vpop.f32.mrb[6].mxu0  ;;  %v1602_v20 = vpop.f32.mrb[6].mxu1 }
 0x101   :  { %1476 = vst [vmem:[%s2000_s3 + $0x8] sm:$0xff] %v1324_v9   ;;  %1492 = vst [vmem:[%s2000_s3 + $0x88] sm:$0xff] %v1404_v10   ;;  %v393_v21 = vadd.f32 %v1826_v40, %v392_v13  ;;  %v521_v22 = vadd.f32 %v1826_v40, %v520_v14  ;;  %v404_v23 = vadd.f32 %v1570_v19, %v1826_v40  ;;  %v395_v25 = vpop.f32.mrb[7].mxu0  ;;  %v523_v26 = vpop.f32.mrb[7].mxu1 }
 0x102   :  { %v532_v24 = vadd.f32 %v1602_v20, %v1826_v40  ;;  %1320 = vst [vmem:[%s2000_s3] sm:$0xff] %v1319_v15   ;;  %1491 = vst [vmem:[%s2000_s3 + $0x80] sm:$0xff] %v1399_v16   ;;  %vm637_vm8 = vcmp.ge.f32.partialorder %v401_v17, 0.0  ;;  %v701_v27 = vmul.f32 0.2, %v401_v17  ;;  %vm669_vm9 = vcmp.ge.f32.partialorder %v529_v18, 0.0 }
 0x103   :  { %v733_v28 = vmul.f32 0.2, %v529_v18  ;;  %vm635_vm10 = vcmp.ge.f32.partialorder %v393_v21, 0.0  ;;  %v699_v29 = vmul.f32 0.2, %v393_v21  ;;  %vm667_vm11 = vcmp.ge.f32.partialorder %v521_v22, 0.0 }
 0x104   :  { %v731_v30 = vmul.f32 0.2, %v521_v22  ;;  %v765_v31 = vsel %vm637_vm8, %v401_v17, %v701_v27  ;;  %vm638_vm12 = vcmp.ge.f32.partialorder %v404_v23, 0.0  ;;  %v702_v33 = vmul.f32 0.2, %v404_v23 }
 0x105   :  { %v797_v32 = vsel %vm669_vm9, %v529_v18, %v733_v28  ;;  %v763_v34 = vsel %vm635_vm10, %v393_v21, %v699_v29  ;;  %vm670_vm13 = vcmp.ge.f32.partialorder %v532_v24, 0.0  ;;  %v734_v36 = vmul.f32 0.2, %v532_v24  ;;  %v1573_v37 = vpop.f32.mrb[8].mxu0  ;;  %v1605_v38 = vpop.f32.mrb[8].mxu1 }
 0x106   :  { %v795_v35 = vsel %vm667_vm11, %v521_v22, %v731_v30  ;;  %v766_v39 = vsel %vm638_vm12, %v404_v23, %v702_v33  ;;  %v396_v41 = vadd.f32 %v1826_v40, %v395_v25  ;;  %v524_v42 = vadd.f32 %v1826_v40, %v523_v26  ;;  %v408_v44 = vpop.f32.mrb[9].mxu0  ;;  %v536_v45 = vpop.f32.mrb[9].mxu1 }
 0x107   :  { %v417_v43 = vadd.f32 %v1573_v37, %v1826_v40  ;;  %v1334_v46 = vpack.c.bf16 %v766_v39, %v765_v31  ;;  %v798_v47 = vsel %vm670_vm13, %v532_v24, %v734_v36  ;;  %v545_v48 = vadd.f32 %v1605_v38, %v1826_v40  ;;  %v1574_v50 = vpop.f32.mrb[10].mxu0  ;;  %v1606_v51 = vpop.f32.mrb[10].mxu1 }
 0x108   :  { %v409_v49 = vadd.f32 %v1826_v40, %v408_v44  ;;  %v1414_v52 = vpack.c.bf16 %v798_v47, %v797_v32  ;;  %vm636_vm14 = vcmp.ge.f32.partialorder %v396_v41, 0.0  ;;  %v700_v53 = vmul.f32 0.2, %v396_v41  ;;  %v411_v54 = vpop.f32.mrb[11].mxu0  ;;  %v539_v55 = vpop.f32.mrb[11].mxu1 }
 0x109   :  { %vm668_vm15 = vcmp.ge.f32.partialorder %v524_v42, 0.0  ;;  %1478 = vst [vmem:[%s2000_s3 + $0x18] sm:$0xff] %v1334_v46   ;;  %v732_v56 = vmul.f32 0.2, %v524_v42  ;;  %vm641_vm0 = vcmp.ge.f32.partialorder %v417_v43, 0.0  ;;  %vm673_vm1 = vcmp.ge.f32.partialorder %v545_v48, 0.0 }
 0x10a   :  { %v705_v57 = vmul.f32 0.2, %v417_v43  ;;  %1494 = vst [vmem:[%s2000_s3 + $0x98] sm:$0xff] %v1414_v52   ;;  %v764_v58 = vsel %vm636_vm14, %v396_v41, %v700_v53  ;;  %v737_v59 = vmul.f32 0.2, %v545_v48  ;;  %vm639_vm2 = vcmp.ge.f32.partialorder %v409_v49, 0.0 }
 0x10b   :  { %v703_v60 = vmul.f32 0.2, %v409_v49  ;;  %v1329_v61 = vpack.c.bf16 %v764_v58, %v763_v34  ;;  %v796_v62 = vsel %vm668_vm15, %v524_v42, %v732_v56  ;;  %v537_v0 = vadd.f32 %v1826_v40, %v536_v45 }
 0x10c   :  { %v769_v63 = vsel %vm641_vm0, %v417_v43, %v705_v57  ;;  %v1409_v1 = vpack.c.bf16 %v796_v62, %v795_v35  ;;  %v801_v2 = vsel %vm673_vm1, %v545_v48, %v737_v59  ;;  %v420_v4 = vadd.f32 %v1574_v50, %v1826_v40 }
 0x10d   :  { %v767_v3 = vsel %vm639_vm2, %v409_v49, %v703_v60  ;;  %1477 = vst [vmem:[%s2000_s3 + $0x10] sm:$0xff] %v1329_v61   ;;  %vm671_vm3 = vcmp.ge.f32.partialorder %v537_v0, 0.0  ;;  %v735_v5 = vmul.f32 0.2, %v537_v0  ;;  %v548_v6 = vadd.f32 %v1606_v51, %v1826_v40  ;;  %v1577_v8 = vpop.f32.mrb[12].mxu0  ;;  %v1609_v9 = vpop.f32.mrb[12].mxu1 }
 0x10e   :  { %v412_v7 = vadd.f32 %v1826_v40, %v411_v54  ;;  %1493 = vst [vmem:[%s2000_s3 + $0x90] sm:$0xff] %v1409_v1   ;;  %vm642_vm4 = vcmp.ge.f32.partialorder %v420_v4, 0.0  ;;  %v706_v10 = vmul.f32 0.2, %v420_v4  ;;  %v540_v11 = vadd.f32 %v1826_v40, %v539_v55  ;;  %v424_v13 = vpop.f32.mrb[13].mxu0  ;;  %v552_v14 = vpop.f32.mrb[13].mxu1 }
 0x10f   :  { %v433_v12 = vadd.f32 %v1577_v8, %v1826_v40  ;;  %v799_v15 = vsel %vm671_vm3, %v537_v0, %v735_v5  ;;  %vm674_vm5 = vcmp.ge.f32.partialorder %v548_v6, 0.0  ;;  %v738_v16 = vmul.f32 0.2, %v548_v6  ;;  %v1578_v17 = vpop.f32.mrb[14].mxu0  ;;  %v1610_v18 = vpop.f32.mrb[14].mxu1 }
 0x110   :  { %vm640_vm6 = vcmp.ge.f32.partialorder %v412_v7, 0.0  ;;  %v770_v19 = vsel %vm642_vm4, %v420_v4, %v706_v10  ;;  %v704_v20 = vmul.f32 0.2, %v412_v7  ;;  %vm672_vm7 = vcmp.ge.f32.partialorder %v540_v11, 0.0  ;;  %v427_v22 = vpop.f32.mrb[15].mxu0  ;;  %v555_v26 = vpop.f32.mrb[15].mxu1 }
 0x111   :  { %v736_v21 = vmul.f32 0.2, %v540_v11  ;;  %v1344_v23 = vpack.c.bf16 %v770_v19, %v769_v63  ;;  %v802_v24 = vsel %vm674_vm5, %v548_v6, %v738_v16  ;;  %vm645_vm8 = vcmp.ge.f32.partialorder %v433_v12, 0.0 }
 0x112   :  { %v709_v25 = vmul.f32 0.2, %v433_v12  ;;  %v1424_v27 = vpack.c.bf16 %v802_v24, %v801_v2  ;;  %v768_v28 = vsel %vm640_vm6, %v412_v7, %v704_v20  ;;  %v561_v30 = vadd.f32 %v1609_v9, %v1826_v40 }
 0x113   :  { %v800_v29 = vsel %vm672_vm7, %v540_v11, %v736_v21  ;;  %1480 = vst [vmem:[%s2000_s3 + $0x28] sm:$0xff] %v1344_v23   ;;  %v1339_v31 = vpack.c.bf16 %v768_v28, %v767_v3  ;;  %v425_v34 = vadd.f32 %v1826_v40, %v424_v13  ;;  %v553_v36 = vadd.f32 %v1826_v40, %v552_v14 }
 0x114   :  { %v1419_v32 = vpack.c.bf16 %v800_v29, %v799_v15  ;;  %v773_v33 = vsel %vm645_vm8, %v433_v12, %v709_v25  ;;  %1496 = vst [vmem:[%s2000_s3 + $0xa8] sm:$0xff] %v1424_v27   ;;  %vm677_vm9 = vcmp.ge.f32.partialorder %v561_v30, 0.0  ;;  %v741_v35 = vmul.f32 0.2, %v561_v30 }
 0x115   :  { %v436_v37 = vadd.f32 %v1578_v17, %v1826_v40  ;;  %1479 = vst [vmem:[%s2000_s3 + $0x20] sm:$0xff] %v1339_v31   ;;  %vm643_vm10 = vcmp.ge.f32.partialorder %v425_v34, 0.0  ;;  %v707_v38 = vmul.f32 0.2, %v425_v34  ;;  %v564_v39 = vadd.f32 %v1610_v18, %v1826_v40  ;;  %v1581_v42 = vpop.f32.mrb[16].mxu0  ;;  %v1613_v43 = vpop.f32.mrb[16].mxu1 }
 0x116   :  { %1495 = vst [vmem:[%s2000_s3 + $0xa0] sm:$0xff] %v1419_v32   ;;  %v428_v41 = vadd.f32 %v1826_v40, %v427_v22  ;;  %v805_v44 = vsel %vm677_vm9, %v561_v30, %v741_v35  ;;  %vm675_vm11 = vcmp.ge.f32.partialorder %v553_v36, 0.0  ;;  %v739_v45 = vmul.f32 0.2, %v553_v36  ;;  %v440_v46 = vpop.f32.mrb[17].mxu0  ;;  %v568_v47 = vpop.f32.mrb[17].mxu1 }
 0x117   :  { %vm646_vm12 = vcmp.ge.f32.partialorder %v436_v37, 0.0  ;;  %v771_v48 = vsel %vm643_vm10, %v425_v34, %v707_v38  ;;  %v710_v49 = vmul.f32 0.2, %v436_v37  ;;  %vm678_vm13 = vcmp.ge.f32.partialorder %v564_v39, 0.0  ;;  %v1582_v51 = vpop.f32.mrb[18].mxu0  ;;  %v1614_v55 = vpop.f32.mrb[18].mxu1 }
 0x118   :  { %v742_v50 = vmul.f32 0.2, %v564_v39  ;;  %v803_v52 = vsel %vm675_vm11, %v553_v36, %v739_v45  ;;  %vm644_vm14 = vcmp.ge.f32.partialorder %v428_v41, 0.0  ;;  %v708_v53 = vmul.f32 0.2, %v428_v41  ;;  %v443_v56 = vpop.f32.mrb[19].mxu0 }
 0x119   :  { %v556_v54 = vadd.f32 %v1826_v40, %v555_v26  ;;  %v774_v57 = vsel %vm646_vm12, %v436_v37, %v710_v49  ;;  %v449_v59 = vadd.f32 %v1581_v42, %v1826_v40  ;;  %v577_v60 = vadd.f32 %v1613_v43, %v1826_v40  ;;  %v571_v61 = vpop.f32.mrb[19].mxu1 }
 0x11a   :  { %v806_v58 = vsel %vm678_vm13, %v564_v39, %v742_v50  ;;  %v1354_v62 = vpack.c.bf16 %v774_v57, %v773_v33  ;;  %v772_v0 = vsel %vm644_vm14, %v428_v41, %v708_v53  ;;  %v441_v5 = vadd.f32 %v1826_v40, %v440_v46 }
 0x11b   :  { %v1434_v63 = vpack.c.bf16 %v806_v58, %v805_v44  ;;  %vm676_vm15 = vcmp.ge.f32.partialorder %v556_v54, 0.0  ;;  %v1349_v1 = vpack.c.bf16 %v772_v0, %v771_v48  ;;  %v740_v2 = vmul.f32 0.2, %v556_v54 }
 0x11c   :  { %vm649_vm0 = vcmp.ge.f32.partialorder %v449_v59, 0.0  ;;  %v713_v3 = vmul.f32 0.2, %v449_v59  ;;  %1482 = vst [vmem:[%s2000_s3 + $0x38] sm:$0xff] %v1354_v62   ;;  %vm681_vm1 = vcmp.ge.f32.partialorder %v577_v60, 0.0  ;;  %v569_v6 = vadd.f32 %v1826_v40, %v568_v47 }
 0x11d   :  { %1498 = vst [vmem:[%s2000_s3 + $0xb8] sm:$0xff] %v1434_v63   ;;  %v745_v4 = vmul.f32 0.2, %v577_v60  ;;  %1481 = vst [vmem:[%s2000_s3 + $0x30] sm:$0xff] %v1349_v1   ;;  %v804_v7 = vsel %vm676_vm15, %v556_v54, %v740_v2  ;;  %v452_v9 = vadd.f32 %v1582_v51, %v1826_v40  ;;  %v580_v10 = vadd.f32 %v1614_v55, %v1826_v40  ;;  %v1585_v11 = vpop.f32.mrb[20].mxu0  ;;  %v1617_v12 = vpop.f32.mrb[20].mxu1 }
 0x11e   :  { %v777_v8 = vsel %vm649_vm0, %v449_v59, %v713_v3  ;;  %v1429_v13 = vpack.c.bf16 %v804_v7, %v803_v52  ;;  %vm647_vm2 = vcmp.ge.f32.partialorder %v441_v5, 0.0  ;;  %v711_v15 = vmul.f32 0.2, %v441_v5  ;;  %v456_v16 = vpop.f32.mrb[21].mxu0  ;;  %v584_v17 = vpop.f32.mrb[21].mxu1 }
 0x11f   :  { %v809_v14 = vsel %vm681_vm1, %v577_v60, %v745_v4  ;;  %vm679_vm3 = vcmp.ge.f32.partialorder %v569_v6, 0.0  ;;  %v743_v18 = vmul.f32 0.2, %v569_v6  ;;  %vm650_vm4 = vcmp.ge.f32.partialorder %v452_v9, 0.0  ;;  %v1586_v23 = vpop.f32.mrb[22].mxu0  ;;  %v1618_v24 = vpop.f32.mrb[22].mxu1 }
 0x120   :  { %v714_v19 = vmul.f32 0.2, %v452_v9  ;;  %1497 = vst [vmem:[%s2000_s3 + $0xb0] sm:$0xff] %v1429_v13   ;;  %v775_v20 = vsel %vm647_vm2, %v441_v5, %v711_v15  ;;  %vm682_vm5 = vcmp.ge.f32.partialorder %v580_v10, 0.0  ;;  %v746_v21 = vmul.f32 0.2, %v580_v10 }
 0x121   :  { %v444_v22 = vadd.f32 %v1826_v40, %v443_v56  ;;  %v807_v25 = vsel %vm679_vm3, %v569_v6, %v743_v18  ;;  %v572_v27 = vadd.f32 %v1826_v40, %v571_v61  ;;  %v465_v28 = vadd.f32 %v1585_v11, %v1826_v40  ;;  %v459_v29 = vpop.f32.mrb[23].mxu0  ;;  %v587_v30 = vpop.f32.mrb[23].mxu1 }
 0x122   :  { %v778_v26 = vsel %vm650_vm4, %v452_v9, %v714_v19  ;;  %v810_v32 = vsel %vm682_vm5, %v580_v10, %v746_v21  ;;  %v593_v38 = vadd.f32 %v1617_v12, %v1826_v40  ;;  %v457_v39 = vadd.f32 %v1826_v40, %v456_v16 }
 0x123   :  { %v1364_v31 = vpack.c.bf16 %v778_v26, %v777_v8  ;;  %vm648_vm6 = vcmp.ge.f32.partialorder %v444_v22, 0.0  ;;  %v712_v33 = vmul.f32 0.2, %v444_v22  ;;  %v1444_v34 = vpack.c.bf16 %v810_v32, %v809_v14 }
 0x124   :  { %vm680_vm7 = vcmp.ge.f32.partialorder %v572_v27, 0.0  ;;  %v744_v35 = vmul.f32 0.2, %v572_v27  ;;  %vm653_vm8 = vcmp.ge.f32.partialorder %v465_v28, 0.0  ;;  %v717_v37 = vmul.f32 0.2, %v465_v28 }
 0x125   :  { %1484 = vst [vmem:[%s2000_s3 + $0x48] sm:$0xff] %v1364_v31   ;;  %v776_v36 = vsel %vm648_vm6, %v444_v22, %v712_v33  ;;  %1500 = vst [vmem:[%s2000_s3 + $0xc8] sm:$0xff] %v1444_v34   ;;  %v585_v43 = vadd.f32 %v1826_v40, %v584_v17  ;;  %v468_v44 = vadd.f32 %v1586_v23, %v1826_v40  ;;  %v1589_v45 = vpop.f32.mrb[24].mxu0  ;;  %v1621_v46 = vpop.f32.mrb[24].mxu1  ;;  %vm685_vm9 = vcmp.ge.f32.partialorder %v593_v38, 0.0 }
 0x126   :  { %v1359_v41 = vpack.c.bf16 %v776_v36, %v775_v20  ;;  %v808_v42 = vsel %vm680_vm7, %v572_v27, %v744_v35  ;;  %v749_v48 = vmul.f32 0.2, %v593_v38  ;;  %v472_v49 = vpop.f32.mrb[25].mxu0  ;;  %v600_v50 = vpop.f32.mrb[25].mxu1  ;;  %v781_v51 = vsel %vm653_vm8, %v465_v28, %v717_v37 }
 0x127   :  { %v1439_v47 = vpack.c.bf16 %v808_v42, %v807_v25  ;;  %vm651_vm10 = vcmp.ge.f32.partialorder %v457_v39, 0.0  ;;  %v715_v52 = vmul.f32 0.2, %v457_v39  ;;  %v747_v53 = vmul.f32 0.2, %v585_v43  ;;  %v1590_v56 = vpop.f32.mrb[26].mxu0 }
 0x128   :  { %1483 = vst [vmem:[%s2000_s3 + $0x40] sm:$0xff] %v1359_v41   ;;  %vm683_vm11 = vcmp.ge.f32.partialorder %v585_v43, 0.0  ;;  %vm654_vm12 = vcmp.ge.f32.partialorder %v468_v44, 0.0  ;;  %v718_v54 = vmul.f32 0.2, %v468_v44  ;;  %v596_v55 = vadd.f32 %v1618_v24, %v1826_v40  ;;  %v1622_v57 = vpop.f32.mrb[26].mxu1 }
 0x129   :  { %1499 = vst [vmem:[%s2000_s3 + $0xc0] sm:$0xff] %v1439_v47   ;;  %v813_v58 = vsel %vm685_vm9, %v593_v38, %v749_v48  ;;  %v779_v59 = vsel %vm651_vm10, %v457_v39, %v715_v52  ;;  %v460_v60 = vadd.f32 %v1826_v40, %v459_v29  ;;  %v588_v61 = vadd.f32 %v1826_v40, %v587_v30  ;;  %v475_v62 = vpop.f32.mrb[27].mxu0  ;;  %v603_v63 = vpop.f32.mrb[27].mxu1 }
 0x12a   :  { %v782_v0 = vsel %vm654_vm12, %v468_v44, %v718_v54  ;;  %vm686_vm13 = vcmp.ge.f32.partialorder %v596_v55, 0.0  ;;  %v750_v1 = vmul.f32 0.2, %v596_v55  ;;  %v481_v2 = vadd.f32 %v1589_v45, %v1826_v40 }
 0x12b   :  { %v1374_v3 = vpack.c.bf16 %v782_v0, %v781_v51  ;;  %vm652_vm14 = vcmp.ge.f32.partialorder %v460_v60, 0.0  ;;  %v716_v4 = vmul.f32 0.2, %v460_v60  ;;  %vm684_vm15 = vcmp.ge.f32.partialorder %v588_v61, 0.0 }
 0x12c   :  { %v814_v5 = vsel %vm686_vm13, %v596_v55, %v750_v1  ;;  %v748_v6 = vmul.f32 0.2, %v588_v61  ;;  %vm657_vm0 = vcmp.ge.f32.partialorder %v481_v2, 0.0  ;;  %v721_v7 = vmul.f32 0.2, %v481_v2 }
 0x12d   :  { %1486 = vst [vmem:[%s2000_s3 + $0x58] sm:$0xff] %v1374_v3   ;;  %v1454_v8 = vpack.c.bf16 %v814_v5, %v813_v58  ;;  %v780_v9 = vsel %vm652_vm14, %v460_v60, %v716_v4  ;;  %v609_v10 = vadd.f32 %v1621_v46, %v1826_v40  ;;  %v473_v11 = vadd.f32 %v1826_v40, %v472_v49  ;;  %v1593_v12 = vpop.f32.mrb[28].mxu0  ;;  %v1625_v13 = vpop.f32.mrb[28].mxu1 }
 0x12e   :  { %v811_v14 = vsel %vm683_vm11, %v585_v43, %v747_v53  ;;  %v1369_v15 = vpack.c.bf16 %v780_v9, %v779_v59  ;;  %v812_v16 = vsel %vm684_vm15, %v588_v61, %v748_v6  ;;  %v601_v17 = vadd.f32 %v1826_v40, %v600_v50  ;;  %v488_v18 = vpop.f32.mrb[29].mxu0  ;;  %v616_v19 = vpop.f32.mrb[29].mxu1 }
 0x12f   :  { %1502 = vst [vmem:[%s2000_s3 + $0xd8] sm:$0xff] %v1454_v8   ;;  %v1449_v20 = vpack.c.bf16 %v812_v16, %v811_v14  ;;  %vm689_vm1 = vcmp.ge.f32.partialorder %v609_v10, 0.0  ;;  %v753_v21 = vmul.f32 0.2, %v609_v10  ;;  %vm655_vm2 = vcmp.ge.f32.partialorder %v473_v11, 0.0  ;;  %v1594_v22 = vpop.f32.mrb[30].mxu0 }
 0x130   :  { %v1626_v23 = vpop.f32.mrb[30].mxu1  ;;  %1485 = vst [vmem:[%s2000_s3 + $0x50] sm:$0xff] %v1369_v15   ;;  %v785_v24 = vsel %vm657_vm0, %v481_v2, %v721_v7  ;;  %v719_v25 = vmul.f32 0.2, %v473_v11  ;;  %vm687_vm3 = vcmp.ge.f32.partialorder %v601_v17, 0.0  ;;  %v484_v26 = vadd.f32 %v1590_v56, %v1826_v40  ;;  %v491_v27 = vpop.f32.mrb[31].mxu0 }
 0x131   :  { %1501 = vst [vmem:[%s2000_s3 + $0xd0] sm:$0xff] %v1449_v20   ;;  %v751_v28 = vmul.f32 0.2, %v601_v17  ;;  %v612_v29 = vadd.f32 %v1622_v57, %v1826_v40  ;;  %v476_v30 = vadd.f32 %v1826_v40, %v475_v62  ;;  %v604_v31 = vadd.f32 %v1826_v40, %v603_v63  ;;  %v619_v32 = vpop.f32.mrb[31].mxu1 }
 0x132   :  { %v817_v33 = vsel %vm689_vm1, %v609_v10, %v753_v21  ;;  %v783_v34 = vsel %vm655_vm2, %v473_v11, %v719_v25  ;;  %vm658_vm4 = vcmp.ge.f32.partialorder %v484_v26, 0.0  ;;  %v722_v35 = vmul.f32 0.2, %v484_v26 }
 0x133   :  { %vm690_vm5 = vcmp.ge.f32.partialorder %v612_v29, 0.0  ;;  %v754_v36 = vmul.f32 0.2, %v612_v29  ;;  %vm656_vm6 = vcmp.ge.f32.partialorder %v476_v30, 0.0  ;;  %v720_v37 = vmul.f32 0.2, %v476_v30 }
 0x134   :  { %v786_v38 = vsel %vm658_vm4, %v484_v26, %v722_v35  ;;  %vm688_vm7 = vcmp.ge.f32.partialorder %v604_v31, 0.0  ;;  %v752_v39 = vmul.f32 0.2, %v604_v31  ;;  %v497_v41 = vadd.f32 %v1593_v12, %v1826_v40 }
 0x135   :  { %v1384_v42 = vpack.c.bf16 %v786_v38, %v785_v24  ;;  %v818_v43 = vsel %vm690_vm5, %v612_v29, %v754_v36  ;;  %v784_v44 = vsel %vm656_vm6, %v476_v30, %v720_v37  ;;  %v625_v45 = vadd.f32 %v1625_v13, %v1826_v40 }
 0x136   :  { %v815_v46 = vsel %vm687_vm3, %v601_v17, %v751_v28  ;;  %v1464_v47 = vpack.c.bf16 %v818_v43, %v817_v33  ;;  %v1379_v48 = vpack.c.bf16 %v784_v44, %v783_v34  ;;  %v816_v49 = vsel %vm688_vm7, %v604_v31, %v752_v39 }
 0x137   :  { %1488 = vst [vmem:[%s2000_s3 + $0x68] sm:$0xff] %v1384_v42   ;;  %v1459_v50 = vpack.c.bf16 %v816_v49, %v815_v46  ;;  %vm661_vm8 = vcmp.ge.f32.partialorder %v497_v41, 0.0  ;;  %v725_v51 = vmul.f32 0.2, %v497_v41  ;;  %v757_v52 = vmul.f32 0.2, %v625_v45 }
 0x138   :  { %1504 = vst [vmem:[%s2000_s3 + $0xe8] sm:$0xff] %v1464_v47   ;;  %1487 = vst [vmem:[%s2000_s3 + $0x60] sm:$0xff] %v1379_v48   ;;  %v489_v53 = vadd.f32 %v1826_v40, %v488_v18  ;;  %v617_v54 = vadd.f32 %v1826_v40, %v616_v19  ;;  %v500_v55 = vadd.f32 %v1594_v22, %v1826_v40  ;;  %vm693_vm9 = vcmp.ge.f32.partialorder %v625_v45, 0.0 }
 0x139   :  { %v628_v56 = vadd.f32 %v1626_v23, %v1826_v40  ;;  %1503 = vst [vmem:[%s2000_s3 + $0xe0] sm:$0xff] %v1459_v50   ;;  %v492_v57 = vadd.f32 %v1826_v40, %v491_v27  ;;  %v620_v58 = vadd.f32 %v1826_v40, %v619_v32  ;;  %v789_v59 = vsel %vm661_vm8, %v497_v41, %v725_v51 }
 0x13a   :  { %vm659_vm10 = vcmp.ge.f32.partialorder %v489_v53, 0.0  ;;  %v723_v60 = vmul.f32 0.2, %v489_v53  ;;  %v755_v61 = vmul.f32 0.2, %v617_v54  ;;  %vm662_vm11 = vcmp.ge.f32.partialorder %v500_v55, 0.0 }
 0x13b   :  { %v726_v62 = vmul.f32 0.2, %v500_v55  ;;  %vm694_vm12 = vcmp.ge.f32.partialorder %v628_v56, 0.0  ;;  %v758_v63 = vmul.f32 0.2, %v628_v56  ;;  %v821_v0 = vsel %vm693_vm9, %v625_v45, %v757_v52 }
 0x13c   :  { %vm691_vm13 = vcmp.ge.f32.partialorder %v617_v54, 0.0  ;;  %vm660_vm14 = vcmp.ge.f32.partialorder %v492_v57, 0.0  ;;  %v724_v1 = vmul.f32 0.2, %v492_v57  ;;  %vm692_vm15 = vcmp.ge.f32.partialorder %v620_v58, 0.0 }
 0x13d   :  { %v790_v2 = vsel %vm662_vm11, %v500_v55, %v726_v62  ;;  %v822_v3 = vsel %vm694_vm12, %v628_v56, %v758_v63  ;;  %v756_v4 = vmul.f32 0.2, %v620_v58  ;;  %v787_v5 = vsel %vm659_vm10, %v489_v53, %v723_v60 }
 0x13e   :  { %v1394_v6 = vpack.c.bf16 %v790_v2, %v789_v59  ;;  %v1474_v7 = vpack.c.bf16 %v822_v3, %v821_v0  ;;  %v788_v40 = vsel %vm660_vm14, %v492_v57, %v724_v1  ;;  %v819_v8 = vsel %vm691_vm13, %v617_v54, %v755_v61 }
 0x13f   :  { %v1389_v9 = vpack.c.bf16 %v788_v40, %v787_v5  ;;  %v820_v10 = vsel %vm692_vm15, %v620_v58, %v756_v4 }
 0x140   :  { %1490 = vst [vmem:[%s2000_s3 + $0x78] sm:$0xff] %v1394_v6   ;;  %1506 = vst [vmem:[%s2000_s3 + $0xf8] sm:$0xff] %v1474_v7   ;;  %v1469_v11 = vpack.c.bf16 %v820_v10, %v819_v8 }
 0x141   :  { %1489 = vst [vmem:[%s2000_s3 + $0x70] sm:$0xff] %v1389_v9  }
 0x142   :  { %1505 = vst [vmem:[%s2000_s3 + $0xf0] sm:$0xff] %v1469_v11  }

// kernel: _lambda_.6
= control target key start
LH: loop header
LB: loop body
LE: loop exit
PB: predicated region body
PF: predicated region fallthrough
CT: control target
= control target key end

     0   :  { %s2463_s1 = inlined_call_operand.vmem [shape: bf16[1024,128], index: 1, kind: input, shape index: {}]   ;;  %s2464_s0 = inlined_call_operand.vmem [shape: bf16[128,1024], index: 0, kind: input, shape index: {}]   ;;  %s2465_s2 = inlined_call_operand.vmem [shape: f32[1,128], index: 2, kind: input, shape index: {}]   ;;  %s2466_s3 = inlined_call_operand.vmem [shape: bf16[128,128], index: 3, kind: output, shape index: {}]  }
   0x1   :  { %v1902_v0 = vld [vmem:[%s2463_s1 + $0x40] sm:$0xff]   ;;  %v1906_v4 = vld [vmem:[%s2463_s1 + $0x48] sm:$0xff]   ;;  %v1910_v8 = vld [vmem:[%s2463_s1 + $0x50] sm:$0xff]  }
   0x2   :  { %v1903_v1 = vld [vmem:[%s2463_s1 + $0xc0] sm:$0xff]   ;;  %1646 = vmatprep.subr.bf16.mxu0 %v1902_v0  ;;  %v1907_v5 = vld [vmem:[%s2463_s1 + $0xc8] sm:$0xff]   ;;  %v1911_v9 = vld [vmem:[%s2463_s1 + $0xd0] sm:$0xff]  }
   0x3   :  { %v1904_v2 = vld [vmem:[%s2463_s1] sm:$0xff]   ;;  %1710 = vmatprep.subr.bf16.mxu1 %v1903_v1  ;;  %v1908_v6 = vld [vmem:[%s2463_s1 + $0x8] sm:$0xff]   ;;  %v1912_v10 = vld [vmem:[%s2463_s1 + $0x10] sm:$0xff]  }
   0x4   :  { %v1905_v3 = vld [vmem:[%s2463_s1 + $0x80] sm:$0xff]   ;;  %1647 = vmatpush3.bf16.msra.mxu0 %v1904_v2  ;;  %v1909_v7 = vld [vmem:[%s2463_s1 + $0x88] sm:$0xff]   ;;  %v1913_v11 = vld [vmem:[%s2463_s1 + $0x90] sm:$0xff]  }
   0x5   :  { %1711 = vmatpush3.bf16.msra.mxu1 %v1905_v3  ;;  %1648 = vmatprep.subr.bf16.mxu0 %v1906_v4  ;;  %v1914_v12 = vld [vmem:[%s2463_s1 + $0x58] sm:$0xff]   ;;  %v1918_v16 = vld [vmem:[%s2463_s1 + $0x60] sm:$0xff]   ;;  %v1922_v20 = vld [vmem:[%s2463_s1 + $0x68] sm:$0xff]  }
   0x6   :  { %1712 = vmatprep.subr.bf16.mxu1 %v1907_v5  ;;  %v1915_v13 = vld [vmem:[%s2463_s1 + $0xd8] sm:$0xff]   ;;  %v1919_v17 = vld [vmem:[%s2463_s1 + $0xe0] sm:$0xff]   ;;  %v1923_v21 = vld [vmem:[%s2463_s1 + $0xe8] sm:$0xff]  }
   0x7   :  { %v1916_v14 = vld [vmem:[%s2463_s1 + $0x18] sm:$0xff]   ;;  %v1920_v18 = vld [vmem:[%s2463_s1 + $0x20] sm:$0xff]   ;;  %v1924_v22 = vld [vmem:[%s2463_s1 + $0x28] sm:$0xff]  }
   0x8   :  { %1649 = vmatpush3.bf16.msra.mxu0 %v1908_v6  ;;  %v1917_v15 = vld [vmem:[%s2463_s1 + $0x98] sm:$0xff]   ;;  %v1921_v19 = vld [vmem:[%s2463_s1 + $0xa0] sm:$0xff]   ;;  %v1925_v23 = vld [vmem:[%s2463_s1 + $0xa8] sm:$0xff]  }
   0x9   :  { %1713 = vmatpush3.bf16.msra.mxu1 %v1909_v7  ;;  %1650 = vmatprep.subr.bf16.mxu0 %v1910_v8  ;;  %v1926_v24 = vld [vmem:[%s2463_s1 + $0x70] sm:$0xff]   ;;  %v1930_v28 = vld [vmem:[%s2463_s1 + $0x78] sm:$0xff]   ;;  %v15_v32 = vld [vmem:[%s2464_s0] sm:$0xff] }
   0xa   :  { %1714 = vmatprep.subr.bf16.mxu1 %v1911_v9  ;;  %v1927_v25 = vld [vmem:[%s2463_s1 + $0xf0] sm:$0xff]   ;;  %v1931_v29 = vld [vmem:[%s2463_s1 + $0xf8] sm:$0xff]   ;;  %v19_v33 = vld [vmem:[%s2464_s0 + $0x20] sm:$0xff] }
   0xb   :  { %v1928_v26 = vld [vmem:[%s2463_s1 + $0x30] sm:$0xff]   ;;  %v1932_v30 = vld [vmem:[%s2463_s1 + $0x38] sm:$0xff]   ;;  %v16_v34 = vld [vmem:[%s2464_s0 + $0x8] sm:$0xff]  ;;  %v1439_v35 = vcombine.low %v15_v32, %v19_v33  ;;  %v1440_v36 = vcombine.high %v15_v32, %v19_v33 }
   0xc   :  { %1651 = vmatpush3.bf16.msra.mxu0 %v1912_v10  ;;  %v1929_v27 = vld [vmem:[%s2463_s1 + $0xb0] sm:$0xff]   ;;  %v1933_v31 = vld [vmem:[%s2463_s1 + $0xb8] sm:$0xff]   ;;  %v20_v37 = vld [vmem:[%s2464_s0 + $0x28] sm:$0xff] }
   0xd   :  { %1715 = vmatpush3.bf16.msra.mxu1 %v1913_v11  ;;  %1652 = vmatprep.subr.bf16.mxu0 %v1914_v12  ;;  %v1441_v38 = vcombine.low %v16_v34, %v20_v37  ;;  %v1442_v39 = vcombine.high %v16_v34, %v20_v37  ;;  %v1934_v40 = vld [vmem:[%s2463_s1 + $0x140] sm:$0xff]   ;;  %v24_v47 = vld [vmem:[%s2464_s0 + $0x48] sm:$0xff]  ;;  %v1942_v62 = vld [vmem:[%s2463_s1 + $0x150] sm:$0xff]  }
   0xe   :  { %1716 = vmatprep.subr.bf16.mxu1 %v1915_v13  ;;  %950 = vmatprep.mubr.bf16.mxu0 %v1440_v36  ;;  %v1935_v41 = vld [vmem:[%s2463_s1 + $0x100] sm:$0xff]   ;;  %v28_v48 = vld [vmem:[%s2464_s0 + $0x68] sm:$0xff]  ;;  %v1943_v63 = vld [vmem:[%s2463_s1 + $0x110] sm:$0xff]  }
   0xf   :  { %1047 = vmatprep.mubr.bf16.mxu1 %v1442_v39  ;;  %v1936_v42 = vld [vmem:[%s2463_s1 + $0x1c0] sm:$0xff]   ;;  %v1450_v49 = vcombine.high %v24_v47, %v28_v48  ;;  %v1938_v50 = vld [vmem:[%s2463_s1 + $0x148] sm:$0xff]   ;;  %v1449_v53 = vcombine.low %v24_v47, %v28_v48  ;;  %v1944_v0 = vld [vmem:[%s2463_s1 + $0x1d0] sm:$0xff]  }
  0x10   :  { %1653 = vmatpush3.bf16.msra.mxu0 %v1916_v14  ;;  %v1937_v43 = vld [vmem:[%s2463_s1 + $0x180] sm:$0xff]   ;;  %v1939_v52 = vld [vmem:[%s2463_s1 + $0x108] sm:$0xff]   ;;  %v1945_v1 = vld [vmem:[%s2463_s1 + $0x190] sm:$0xff]  }
  0x11   :  { %1717 = vmatpush3.bf16.msra.mxu1 %v1917_v15  ;;  %1654 = vmatprep.subr.bf16.mxu0 %v1918_v16  ;;  %v23_v44 = vld [vmem:[%s2464_s0 + $0x40] sm:$0xff]  ;;  %v1940_v54 = vld [vmem:[%s2463_s1 + $0x1c8] sm:$0xff]   ;;  %v1946_v10 = vld [vmem:[%s2463_s1 + $0x158] sm:$0xff]  }
  0x12   :  { %1718 = vmatprep.subr.bf16.mxu1 %v1919_v17  ;;  %v27_v45 = vld [vmem:[%s2464_s0 + $0x60] sm:$0xff]  ;;  %v1941_v55 = vld [vmem:[%s2463_s1 + $0x188] sm:$0xff]   ;;  %v1947_v11 = vld [vmem:[%s2463_s1 + $0x118] sm:$0xff]  }
  0x13   :  { %v1448_v46 = vcombine.high %v23_v44, %v27_v45  ;;  %v1447_v51 = vcombine.low %v23_v44, %v27_v45  ;;  %v31_v56 = vld [vmem:[%s2464_s0 + $0x80] sm:$0xff]  ;;  %v32_v58 = vld [vmem:[%s2464_s0 + $0x88] sm:$0xff]  ;;  %v1948_v12 = vld [vmem:[%s2463_s1 + $0x1d8] sm:$0xff]  }
  0x14   :  { %1655 = vmatpush3.bf16.msra.mxu0 %v1920_v18  ;;  %v35_v57 = vld [vmem:[%s2464_s0 + $0xa0] sm:$0xff]  ;;  %v36_v59 = vld [vmem:[%s2464_s0 + $0xa8] sm:$0xff]  ;;  %v1949_v13 = vld [vmem:[%s2463_s1 + $0x198] sm:$0xff]  }
  0x15   :  { %1719 = vmatpush3.bf16.msra.mxu1 %v1921_v19  ;;  %1656 = vmatprep.subr.bf16.mxu0 %v1922_v20  ;;  %v1456_v60 = vcombine.high %v31_v56, %v35_v57  ;;  %v1458_v61 = vcombine.high %v32_v58, %v36_v59  ;;  %v1455_v2 = vcombine.low %v31_v56, %v35_v57  ;;  %v39_v3 = vld [vmem:[%s2464_s0 + $0xc0] sm:$0xff]  ;;  %v40_v5 = vld [vmem:[%s2464_s0 + $0xc8] sm:$0xff]  ;;  %v1959_v39 = vld [vmem:[%s2463_s1 + $0x130] sm:$0xff]  }
  0x16   :  { %1720 = vmatprep.subr.bf16.mxu1 %v1923_v21  ;;  %v43_v4 = vld [vmem:[%s2464_s0 + $0xe0] sm:$0xff]  ;;  %v1457_v6 = vcombine.low %v32_v58, %v36_v59  ;;  %v44_v8 = vld [vmem:[%s2464_s0 + $0xe8] sm:$0xff]  ;;  %v1963_v48 = vld [vmem:[%s2463_s1 + $0x138] sm:$0xff]  }
  0x17   :  { %v1464_v7 = vcombine.high %v39_v3, %v43_v4  ;;  %v1466_v9 = vcombine.high %v40_v5, %v44_v8  ;;  %v47_v14 = vld [vmem:[%s2464_s0 + $0x100] sm:$0xff]  ;;  %v48_v16 = vld [vmem:[%s2464_s0 + $0x108] sm:$0xff]  ;;  %v1463_v19 = vcombine.low %v39_v3, %v43_v4  ;;  %v1465_v21 = vcombine.low %v40_v5, %v44_v8  ;;  %v26_v8 = vld [vmem:[%s2464_s0 + $0x58] sm:$0xff] }
  0x18   :  { %1657 = vmatpush3.bf16.msra.mxu0 %v1924_v22  ;;  %v51_v15 = vld [vmem:[%s2464_s0 + $0x120] sm:$0xff]  ;;  %v52_v17 = vld [vmem:[%s2464_s0 + $0x128] sm:$0xff] }
  0x19   :  { %1721 = vmatpush3.bf16.msra.mxu1 %v1925_v23  ;;  %1658 = vmatprep.subr.bf16.mxu0 %v1926_v24  ;;  %v1950_v18 = vld [vmem:[%s2463_s1 + $0x160] sm:$0xff]   ;;  %v1472_v22 = vcombine.high %v47_v14, %v51_v15  ;;  %v1474_v24 = vcombine.high %v48_v16, %v52_v17  ;;  %v1956_v32 = vld [vmem:[%s2463_s1 + $0x1e8] sm:$0xff]   ;;  %v1471_v34 = vcombine.low %v47_v14, %v51_v15  ;;  %v33_v14 = vld [vmem:[%s2464_s0 + $0x90] sm:$0xff] }
  0x1a   :  { %1722 = vmatprep.subr.bf16.mxu1 %v1927_v25  ;;  %v1951_v20 = vld [vmem:[%s2463_s1 + $0x120] sm:$0xff]   ;;  %v1957_v33 = vld [vmem:[%s2463_s1 + $0x1a8] sm:$0xff]   ;;  %v37_v15 = vld [vmem:[%s2464_s0 + $0xb0] sm:$0xff] }
  0x1b   :  { %v1952_v23 = vld [vmem:[%s2463_s1 + $0x1e0] sm:$0xff]   ;;  %v64_v44 = vld [vmem:[%s2464_s0 + $0x188] sm:$0xff] }
  0x1c   :  { %1659 = vmatpush3.bf16.msra.mxu0 %v1928_v26  ;;  %v1953_v25 = vld [vmem:[%s2463_s1 + $0x1a0] sm:$0xff]   ;;  %v68_v45 = vld [vmem:[%s2464_s0 + $0x1a8] sm:$0xff] }
  0x1d   :  { %1723 = vmatpush3.bf16.msra.mxu1 %v1929_v27  ;;  %1660 = vmatprep.subr.bf16.mxu0 %v1930_v28  ;;  %v55_v26 = vld [vmem:[%s2464_s0 + $0x140] sm:$0xff]  ;;  %v1954_v28 = vld [vmem:[%s2463_s1 + $0x168] sm:$0xff]   ;;  %v1489_v59 = vcombine.low %v64_v44, %v68_v45 }
  0x1e   :  { %1724 = vmatprep.subr.bf16.mxu1 %v1931_v29  ;;  %v59_v27 = vld [vmem:[%s2464_s0 + $0x160] sm:$0xff]  ;;  %v56_v29 = vld [vmem:[%s2464_s0 + $0x148] sm:$0xff] }
  0x1f   :  { %v1480_v36 = vcombine.high %v55_v26, %v59_v27  ;;  %v1479_v47 = vcombine.low %v55_v26, %v59_v27  ;;  %v72_v56 = vld [vmem:[%s2464_s0 + $0x1c8] sm:$0xff]  ;;  %v1459_v26 = vcombine.low %v33_v14, %v37_v15 }
  0x20   :  { %1661 = vmatpush3.bf16.msra.mxu0 %v1932_v30  ;;  %v60_v30 = vld [vmem:[%s2464_s0 + $0x168] sm:$0xff] }
  0x21   :  { %1725 = vmatpush3.bf16.msra.mxu1 %v1933_v31  ;;  %1774 = vmatprep.subr.bf16.mxu0 %v1934_v40  ;;  %v1955_v31 = vld [vmem:[%s2463_s1 + $0x128] sm:$0xff]   ;;  %v1482_v37 = vcombine.high %v56_v29, %v60_v30  ;;  %v1960_v40 = vld [vmem:[%s2463_s1 + $0x1f0] sm:$0xff]  }
  0x22   :  { %1838 = vmatprep.subr.bf16.mxu1 %v1936_v42  ;;  %v67_v42 = vld [vmem:[%s2464_s0 + $0x1a0] sm:$0xff]  ;;  %v76_v57 = vld [vmem:[%s2464_s0 + $0x1e8] sm:$0xff] }
  0x23   :  { %951 = vmatmul.mubr.bf16.vlgmr.msra.gmra.mrb[0].mxu0 %v1439_v35  ;;  %v1473_v35 = vcombine.low %v48_v16, %v52_v17  ;;  %v1497_v3 = vcombine.low %v72_v56, %v76_v57  ;;  %v34_v16 = vld [vmem:[%s2464_s0 + $0x98] sm:$0xff] }
  0x24   :  { %1048 = vmatmul.mubr.bf16.vlgmr.msra.gmra.mrb[0].mxu1 %v1441_v38  ;;  %1775 = vmatpush3.bf16.msra.mxu0 %v1935_v41  ;;  %v1958_v38 = vld [vmem:[%s2463_s1 + $0x170] sm:$0xff]   ;;  %v63_v41 = vld [vmem:[%s2464_s0 + $0x180] sm:$0xff]  ;;  %v38_v17 = vld [vmem:[%s2464_s0 + $0xb8] sm:$0xff] }
  0x25   :  { %1839 = vmatpush3.bf16.msra.mxu1 %v1937_v43  ;;  %958 = vmatprep.mubr.bf16.mxu0 %v1448_v46  ;;  %v1961_v43 = vld [vmem:[%s2463_s1 + $0x1b0] sm:$0xff]   ;;  %v1962_v46 = vld [vmem:[%s2463_s1 + $0x178] sm:$0xff]   ;;  %v1487_v58 = vcombine.low %v63_v41, %v67_v42  ;;  %v1461_v27 = vcombine.low %v34_v16, %v38_v17 }
  0x26   :  { %1055 = vmatprep.mubr.bf16.mxu1 %v1450_v49  ;;  %1776 = vmatprep.subr.bf16.mxu0 %v1938_v50  ;;  %v1481_v49 = vcombine.low %v56_v29, %v60_v30  ;;  %v1488_v50 = vcombine.high %v63_v41, %v67_v42  ;;  %v49_v30 = vld [vmem:[%s2464_s0 + $0x110] sm:$0xff]  ;;  %v62_v41 = vld [vmem:[%s2464_s0 + $0x178] sm:$0xff] }
  0x27   :  { %1840 = vmatprep.subr.bf16.mxu1 %v1940_v54  ;;  %v71_v54 = vld [vmem:[%s2464_s0 + $0x1c0] sm:$0xff] }
  0x28   :  { %1777 = vmatpush3.bf16.msra.mxu0 %v1939_v52  ;;  %v1490_v52 = vcombine.high %v64_v44, %v68_v45 }
  0x29   :  { %1841 = vmatpush3.bf16.msra.mxu1 %v1941_v55  ;;  %1778 = vmatprep.subr.bf16.mxu0 %v1942_v62  ;;  %v75_v55 = vld [vmem:[%s2464_s0 + $0x1e0] sm:$0xff]  ;;  %v17_v62 = vld [vmem:[%s2464_s0 + $0x10] sm:$0xff] }
  0x2a   :  { %1842 = vmatprep.subr.bf16.mxu1 %v1944_v0  ;;  %v18_v0 = vld [vmem:[%s2464_s0 + $0x18] sm:$0xff] }
  0x2b   :  { %959 = vmatmul.mubr.bf16.gmra.mrb[4].mxu0 %v1447_v51  ;;  %v1964_v51 = vld [vmem:[%s2463_s1 + $0x1f8] sm:$0xff]  }
  0x2c   :  { %1056 = vmatmul.mubr.bf16.gmra.mrb[4].mxu1 %v1449_v53  ;;  %966 = vmatprep.mubr.bf16.mxu0 %v1456_v60  ;;  %v1965_v53 = vld [vmem:[%s2463_s1 + $0x1b8] sm:$0xff]   ;;  %v1496_v60 = vcombine.high %v71_v54, %v75_v55 }
  0x2d   :  { %1063 = vmatprep.mubr.bf16.mxu1 %v1458_v61  ;;  %1779 = vmatpush3.bf16.msra.mxu0 %v1943_v63  ;;  %v1498_v61 = vcombine.high %v72_v56, %v76_v57  ;;  %v21_v63 = vld [vmem:[%s2464_s0 + $0x30] sm:$0xff]  ;;  %v74_v56 = vld [vmem:[%s2464_s0 + $0x1d8] sm:$0xff] }
  0x2e   :  { %1843 = vmatpush3.bf16.msra.mxu1 %v1945_v1  ;;  %1780 = vmatprep.subr.bf16.mxu0 %v1946_v10  ;;  %v22_v1 = vld [vmem:[%s2464_s0 + $0x38] sm:$0xff]  ;;  %v1444_v4 = vcombine.high %v17_v62, %v21_v63  ;;  %v1443_v10 = vcombine.low %v17_v62, %v21_v63 }
  0x2f   :  { %1844 = vmatprep.subr.bf16.mxu1 %v1948_v12  ;;  %v1446_v5 = vcombine.high %v18_v0, %v22_v1  ;;  %v78_v57 = vld [vmem:[%s2464_s0 + $0x1f8] sm:$0xff] }
  0x30   :  { %v1501_v63 = vcombine.low %v74_v56, %v78_v57 }
  0x31   :  { %1781 = vmatpush3.bf16.msra.mxu0 %v1947_v11  ;;  %v1445_v11 = vcombine.low %v18_v0, %v22_v1 }
  0x32   :  { %1845 = vmatpush3.bf16.msra.mxu1 %v1949_v13  ;;  %1782 = vmatprep.subr.bf16.mxu0 %v1950_v18 }
  0x33   :  { %967 = vmatmul.mubr.bf16.gmra.mrb[8].mxu0 %v1455_v2  ;;  %1846 = vmatprep.subr.bf16.mxu1 %v1952_v23  ;;  %v1495_v2 = vcombine.low %v71_v54, %v75_v55  ;;  %v45_v23 = vld [vmem:[%s2464_s0 + $0xf0] sm:$0xff] }
  0x34   :  { %1064 = vmatmul.mubr.bf16.gmra.mrb[8].mxu1 %v1457_v6  ;;  %974 = vmatprep.mubr.bf16.mxu0 %v1464_v7  ;;  %v25_v6 = vld [vmem:[%s2464_s0 + $0x50] sm:$0xff] }
  0x35   :  { %1071 = vmatprep.mubr.bf16.mxu1 %v1466_v9  ;;  %1783 = vmatpush3.bf16.msra.mxu0 %v1951_v20  ;;  %v29_v7 = vld [vmem:[%s2464_s0 + $0x70] sm:$0xff]  ;;  %v30_v9 = vld [vmem:[%s2464_s0 + $0x78] sm:$0xff]  ;;  %v1460_v20 = vcombine.high %v33_v14, %v37_v15 }
  0x36   :  { %1847 = vmatpush3.bf16.msra.mxu1 %v1953_v25  ;;  %1784 = vmatprep.subr.bf16.mxu0 %v1954_v28  ;;  %v1452_v12 = vcombine.high %v25_v6, %v29_v7  ;;  %v1454_v13 = vcombine.high %v26_v8, %v30_v9  ;;  %v1451_v18 = vcombine.low %v25_v6, %v29_v7  ;;  %v46_v25 = vld [vmem:[%s2464_s0 + $0xf8] sm:$0xff]  ;;  %v73_v54 = vld [vmem:[%s2464_s0 + $0x1d0] sm:$0xff] }
  0x37   :  { %1848 = vmatprep.subr.bf16.mxu1 %v1956_v32  ;;  %v50_v32 = vld [vmem:[%s2464_s0 + $0x118] sm:$0xff]  ;;  %v77_v55 = vld [vmem:[%s2464_s0 + $0x1f0] sm:$0xff] }
  0x38   :  { %v1499_v62 = vcombine.low %v73_v54, %v77_v55 }
  0x39   :  { %1785 = vmatpush3.bf16.msra.mxu0 %v1955_v31  ;;  %v53_v31 = vld [vmem:[%s2464_s0 + $0x130] sm:$0xff] }
  0x3a   :  { %1849 = vmatpush3.bf16.msra.mxu1 %v1957_v33  ;;  %1786 = vmatprep.subr.bf16.mxu0 %v1958_v38  ;;  %v54_v33 = vld [vmem:[%s2464_s0 + $0x138] sm:$0xff]  ;;  %v57_v38 = vld [vmem:[%s2464_s0 + $0x150] sm:$0xff]  ;;  %v1475_v42 = vcombine.low %v49_v30, %v53_v31 }
  0x3b   :  { %975 = vmatmul.mubr.bf16.gmra.mrb[12].mxu0 %v1463_v19  ;;  %1850 = vmatprep.subr.bf16.mxu1 %v1960_v40  ;;  %v1453_v19 = vcombine.low %v26_v8, %v30_v9  ;;  %v58_v40 = vld [vmem:[%s2464_s0 + $0x158] sm:$0xff] }
  0x3c   :  { %1072 = vmatmul.mubr.bf16.gmra.mrb[12].mxu1 %v1465_v21  ;;  %982 = vmatprep.mubr.bf16.mxu0 %v1472_v22  ;;  %v1462_v21 = vcombine.high %v34_v16, %v38_v17  ;;  %v41_v22 = vld [vmem:[%s2464_s0 + $0xd0] sm:$0xff]  ;;  %v1486_v45 = vcombine.high %v58_v40, %v62_v41 }
  0x3d   :  { %1079 = vmatprep.mubr.bf16.mxu1 %v1474_v24  ;;  %1787 = vmatpush3.bf16.msra.mxu0 %v1959_v39  ;;  %v42_v24 = vld [vmem:[%s2464_s0 + $0xd8] sm:$0xff]  ;;  %v1468_v28 = vcombine.high %v41_v22, %v45_v23  ;;  %v61_v39 = vld [vmem:[%s2464_s0 + $0x170] sm:$0xff] }
  0x3e   :  { %1851 = vmatpush3.bf16.msra.mxu1 %v1961_v43  ;;  %1788 = vmatprep.subr.bf16.mxu0 %v1962_v46  ;;  %v1470_v29 = vcombine.high %v42_v24, %v46_v25  ;;  %v1477_v43 = vcombine.low %v50_v32, %v54_v33  ;;  %v1484_v44 = vcombine.high %v57_v38, %v61_v39  ;;  %v65_v46 = vld [vmem:[%s2464_s0 + $0x190] sm:$0xff] }
  0x3f   :  { %1852 = vmatprep.subr.bf16.mxu1 %v1964_v51  ;;  %v1485_v51 = vcombine.low %v58_v40, %v62_v41 }
  0x41   :  { %1789 = vmatpush3.bf16.msra.mxu0 %v1963_v48  ;;  %v66_v48 = vld [vmem:[%s2464_s0 + $0x198] sm:$0xff] }
  0x42   :  { %1853 = vmatpush3.bf16.msra.mxu1 %v1965_v53 }
  0x43   :  { %983 = vmatmul.mubr.bf16.gmra.mrb[16].mxu0 %v1471_v34  ;;  %v1467_v34 = vcombine.low %v41_v22, %v45_v23 }
  0x44   :  { %1080 = vmatmul.mubr.bf16.gmra.mrb[16].mxu1 %v1473_v35  ;;  %990 = vmatprep.mubr.bf16.mxu0 %v1480_v36  ;;  %v1469_v35 = vcombine.low %v42_v24, %v46_v25  ;;  %v1476_v36 = vcombine.high %v49_v30, %v53_v31 }
  0x45   :  { %1087 = vmatprep.mubr.bf16.mxu1 %v1482_v37  ;;  %v1478_v37 = vcombine.high %v50_v32, %v54_v33 }
  0x4b   :  { %991 = vmatmul.mubr.bf16.gmra.mrb[20].mxu0 %v1479_v47  ;;  %v69_v47 = vld [vmem:[%s2464_s0 + $0x1b0] sm:$0xff] }
  0x4c   :  { %1088 = vmatmul.mubr.bf16.gmra.mrb[20].mxu1 %v1481_v49  ;;  %998 = vmatprep.mubr.bf16.mxu0 %v1488_v50  ;;  %v70_v49 = vld [vmem:[%s2464_s0 + $0x1b8] sm:$0xff]  ;;  %v1483_v50 = vcombine.low %v57_v38, %v61_v39 }
  0x4d   :  { %1095 = vmatprep.mubr.bf16.mxu1 %v1490_v52  ;;  %v1492_v52 = vcombine.high %v65_v46, %v69_v47  ;;  %v1494_v53 = vcombine.high %v66_v48, %v70_v49 }
  0x53   :  { %999 = vmatmul.mubr.bf16.gmra.mrb[24].mxu0 %v1487_v58  ;;  %v1491_v58 = vcombine.low %v65_v46, %v69_v47 }
  0x54   :  { %1096 = vmatmul.mubr.bf16.gmra.mrb[24].mxu1 %v1489_v59  ;;  %1006 = vmatprep.mubr.bf16.mxu0 %v1496_v60  ;;  %v1493_v59 = vcombine.low %v66_v48, %v70_v49  ;;  %v1500_v60 = vcombine.high %v73_v54, %v77_v55 }
  0x55   :  { %1103 = vmatprep.mubr.bf16.mxu1 %v1498_v61  ;;  %v1502_v61 = vcombine.high %v74_v56, %v78_v57 }
  0x5b   :  { %1007 = vmatmul.mubr.bf16.gmra.mrb[28].mxu0 %v1495_v2  ;;  %v2373_v2 = vld [vmem:[%s2465_s2] ss:$0 sm:$0xff] }
  0x5c   :  { %1104 = vmatmul.mubr.bf16.gmra.mrb[28].mxu1 %v1497_v3  ;;  %1144 = vmatprep.mubr.bf16.mxu0 %v1444_v4 }
  0x5d   :  { %1241 = vmatprep.mubr.bf16.mxu1 %v1446_v5 }
  0x63   :  { %1145 = vmatmul.mubr.bf16.vlgmr.msra.gmra.mrb[32].mxu0 %v1443_v10 }
  0x64   :  { %1242 = vmatmul.mubr.bf16.vlgmr.msra.gmra.mrb[32].mxu1 %v1445_v11  ;;  %1152 = vmatprep.mubr.bf16.mxu0 %v1452_v12 }
  0x65   :  { %1249 = vmatprep.mubr.bf16.mxu1 %v1454_v13 }
  0x6b   :  { %1153 = vmatmul.mubr.bf16.gmra.mrb[36].mxu0 %v1451_v18 }
  0x6c   :  { %1250 = vmatmul.mubr.bf16.gmra.mrb[36].mxu1 %v1453_v19  ;;  %1160 = vmatprep.mubr.bf16.mxu0 %v1460_v20 }
  0x6d   :  { %1257 = vmatprep.mubr.bf16.mxu1 %v1462_v21 }
  0x73   :  { %1161 = vmatmul.mubr.bf16.gmra.mrb[40].mxu0 %v1459_v26 }
  0x74   :  { %1258 = vmatmul.mubr.bf16.gmra.mrb[40].mxu1 %v1461_v27  ;;  %1168 = vmatprep.mubr.bf16.mxu0 %v1468_v28 }
  0x75   :  { %1265 = vmatprep.mubr.bf16.mxu1 %v1470_v29 }
  0x7b   :  { %1169 = vmatmul.mubr.bf16.gmra.mrb[44].mxu0 %v1467_v34 }
  0x7c   :  { %1266 = vmatmul.mubr.bf16.gmra.mrb[44].mxu1 %v1469_v35  ;;  %1176 = vmatprep.mubr.bf16.mxu0 %v1476_v36 }
  0x7d   :  { %1273 = vmatprep.mubr.bf16.mxu1 %v1478_v37 }
  0x83   :  { %1177 = vmatmul.mubr.bf16.gmra.mrb[48].mxu0 %v1475_v42 }
  0x84   :  { %1274 = vmatmul.mubr.bf16.gmra.mrb[48].mxu1 %v1477_v43  ;;  %1184 = vmatprep.mubr.bf16.mxu0 %v1484_v44 }
  0x85   :  { %1281 = vmatprep.mubr.bf16.mxu1 %v1486_v45 }
  0x8b   :  { %1185 = vmatmul.mubr.bf16.gmra.mrb[52].mxu0 %v1483_v50 }
  0x8c   :  { %1282 = vmatmul.mubr.bf16.gmra.mrb[52].mxu1 %v1485_v51  ;;  %1192 = vmatprep.mubr.bf16.mxu0 %v1492_v52 }
  0x8d   :  { %1289 = vmatprep.mubr.bf16.mxu1 %v1494_v53 }
  0x93   :  { %1193 = vmatmul.mubr.bf16.gmra.mrb[56].mxu0 %v1491_v58 }
  0x94   :  { %1290 = vmatmul.mubr.bf16.gmra.mrb[56].mxu1 %v1493_v59  ;;  %1200 = vmatprep.mubr.bf16.mxu0 %v1500_v60 }
  0x95   :  { %1297 = vmatprep.mubr.bf16.mxu1 %v1502_v61 }
  0x9b   :  { %1201 = vmatmul.mubr.bf16.gmra.mrb[60].mxu0 %v1499_v62 }
  0x9c   :  { %1298 = vmatmul.mubr.bf16.gmra.mrb[60].mxu1 %v1501_v63 }
  0xf6   :  { %v1662_v0 = vpop.f32.mrb[0].mxu0 }
  0xf7   :  { %v1726_v1 = vpop.f32.mrb[0].mxu1  ;;  %v1663_v3 = vpop.f32.mrb[1].mxu0 }
  0xf8   :  { %v1664_v4 = vadd.f32 %v1663_v3, %v1662_v0  ;;  %v1727_v5 = vpop.f32.mrb[1].mxu1  ;;  %v1665_v6 = vpop.f32.mrb[2].mxu0 }
  0xf9   :  { %v1728_v7 = vadd.f32 %v1727_v5, %v1726_v1  ;;  %v1729_v8 = vpop.f32.mrb[2].mxu1  ;;  %v1666_v9 = vpop.f32.mrb[3].mxu0 }
  0xfa   :  { %v953_v10 = vadd.f32 %v1664_v4, %v2373_v2  ;;  %v1667_v11 = vadd.f32 %v1666_v9, %v1665_v6  ;;  %v1730_v12 = vpop.f32.mrb[3].mxu1 }
  0xfb   :  { %v1731_v13 = vadd.f32 %v1730_v12, %v1729_v8 }
  0xfc   :  { %v2376_v14 = vadd.f32 %v1728_v7, %v953_v10  ;;  %v956_v15 = vadd.f32 %v1667_v11, %v2373_v2 }
  0xfe   :  { %v2379_v16 = vadd.f32 %v1731_v13, %v956_v15  ;;  %v1668_v17 = vpop.f32.mrb[4].mxu0 }
  0xff   :  { %v1732_v18 = vpop.f32.mrb[4].mxu1  ;;  %v1669_v19 = vpop.f32.mrb[5].mxu0 }
 0x100   :  { %v1670_v20 = vadd.f32 %v1669_v19, %v1668_v17  ;;  %v1733_v21 = vpop.f32.mrb[5].mxu1  ;;  %v1671_v22 = vpop.f32.mrb[6].mxu0 }
 0x101   :  { %v1734_v23 = vadd.f32 %v1733_v21, %v1732_v18  ;;  %v1735_v24 = vpop.f32.mrb[6].mxu1  ;;  %v1672_v25 = vpop.f32.mrb[7].mxu0 }
 0x102   :  { %v961_v26 = vadd.f32 %v1670_v20, %v2373_v2  ;;  %v1673_v27 = vadd.f32 %v1672_v25, %v1671_v22  ;;  %v1736_v28 = vpop.f32.mrb[7].mxu1 }
 0x103   :  { %v1737_v29 = vadd.f32 %v1736_v28, %v1735_v24 }
 0x104   :  { %v2382_v30 = vadd.f32 %v1734_v23, %v961_v26  ;;  %v964_v31 = vadd.f32 %v1673_v27, %v2373_v2 }
 0x106   :  { %v2385_v32 = vadd.f32 %v1737_v29, %v964_v31  ;;  %v1674_v33 = vpop.f32.mrb[8].mxu0 }
 0x107   :  { %v1738_v34 = vpop.f32.mrb[8].mxu1  ;;  %v1675_v35 = vpop.f32.mrb[9].mxu0 }
 0x108   :  { %v1676_v36 = vadd.f32 %v1675_v35, %v1674_v33  ;;  %v1739_v37 = vpop.f32.mrb[9].mxu1  ;;  %v1677_v38 = vpop.f32.mrb[10].mxu0 }
 0x109   :  { %v1740_v39 = vadd.f32 %v1739_v37, %v1738_v34  ;;  %v1741_v40 = vpop.f32.mrb[10].mxu1  ;;  %v1678_v41 = vpop.f32.mrb[11].mxu0 }
 0x10a   :  { %v969_v42 = vadd.f32 %v1676_v36, %v2373_v2  ;;  %v1679_v43 = vadd.f32 %v1678_v41, %v1677_v38  ;;  %v1742_v44 = vpop.f32.mrb[11].mxu1 }
 0x10b   :  { %v1743_v45 = vadd.f32 %v1742_v44, %v1741_v40 }
 0x10c   :  { %v2388_v46 = vadd.f32 %v1740_v39, %v969_v42  ;;  %v972_v47 = vadd.f32 %v1679_v43, %v2373_v2 }
 0x10e   :  { %v2391_v48 = vadd.f32 %v1743_v45, %v972_v47  ;;  %v1680_v49 = vpop.f32.mrb[12].mxu0 }
 0x10f   :  { %v1744_v50 = vpop.f32.mrb[12].mxu1  ;;  %v1681_v51 = vpop.f32.mrb[13].mxu0 }
 0x110   :  { %v1682_v52 = vadd.f32 %v1681_v51, %v1680_v49  ;;  %v1745_v53 = vpop.f32.mrb[13].mxu1  ;;  %v1683_v54 = vpop.f32.mrb[14].mxu0 }
 0x111   :  { %v1746_v55 = vadd.f32 %v1745_v53, %v1744_v50  ;;  %v1747_v56 = vpop.f32.mrb[14].mxu1  ;;  %v1684_v57 = vpop.f32.mrb[15].mxu0 }
 0x112   :  { %v977_v58 = vadd.f32 %v1682_v52, %v2373_v2  ;;  %v1685_v59 = vadd.f32 %v1684_v57, %v1683_v54  ;;  %v1748_v60 = vpop.f32.mrb[15].mxu1 }
 0x113   :  { %v1749_v61 = vadd.f32 %v1748_v60, %v1747_v56 }
 0x114   :  { %v2394_v62 = vadd.f32 %v1746_v55, %v977_v58  ;;  %v980_v63 = vadd.f32 %v1685_v59, %v2373_v2 }
 0x116   :  { %v2397_v0 = vadd.f32 %v1749_v61, %v980_v63  ;;  %v1686_v1 = vpop.f32.mrb[16].mxu0 }
 0x117   :  { %v1750_v3 = vpop.f32.mrb[16].mxu1  ;;  %v1687_v4 = vpop.f32.mrb[17].mxu0 }
 0x118   :  { %v1688_v5 = vadd.f32 %v1687_v4, %v1686_v1  ;;  %v1751_v6 = vpop.f32.mrb[17].mxu1  ;;  %v1689_v7 = vpop.f32.mrb[18].mxu0 }
 0x119   :  { %v1752_v8 = vadd.f32 %v1751_v6, %v1750_v3  ;;  %v1753_v9 = vpop.f32.mrb[18].mxu1  ;;  %v1690_v10 = vpop.f32.mrb[19].mxu0 }
 0x11a   :  { %v985_v11 = vadd.f32 %v1688_v5, %v2373_v2  ;;  %v1691_v12 = vadd.f32 %v1690_v10, %v1689_v7  ;;  %v1754_v13 = vpop.f32.mrb[19].mxu1 }
 0x11b   :  { %v1755_v15 = vadd.f32 %v1754_v13, %v1753_v9 }
 0x11c   :  { %v2400_v17 = vadd.f32 %v1752_v8, %v985_v11  ;;  %v988_v18 = vadd.f32 %v1691_v12, %v2373_v2 }
 0x11e   :  { %v2403_v19 = vadd.f32 %v1755_v15, %v988_v18  ;;  %v1692_v20 = vpop.f32.mrb[20].mxu0 }
 0x11f   :  { %v1756_v21 = vpop.f32.mrb[20].mxu1  ;;  %v1693_v22 = vpop.f32.mrb[21].mxu0 }
 0x120   :  { %v1694_v23 = vadd.f32 %v1693_v22, %v1692_v20  ;;  %v1757_v24 = vpop.f32.mrb[21].mxu1  ;;  %v1695_v25 = vpop.f32.mrb[22].mxu0 }
 0x121   :  { %v1758_v26 = vadd.f32 %v1757_v24, %v1756_v21  ;;  %v1759_v27 = vpop.f32.mrb[22].mxu1  ;;  %v1696_v28 = vpop.f32.mrb[23].mxu0 }
 0x122   :  { %v993_v29 = vadd.f32 %v1694_v23, %v2373_v2  ;;  %v1697_v31 = vadd.f32 %v1696_v28, %v1695_v25  ;;  %v1760_v33 = vpop.f32.mrb[23].mxu1 }
 0x123   :  { %v1761_v34 = vadd.f32 %v1760_v33, %v1759_v27 }
 0x124   :  { %v2406_v35 = vadd.f32 %v1758_v26, %v993_v29  ;;  %v996_v36 = vadd.f32 %v1697_v31, %v2373_v2 }
 0x126   :  { %v2409_v37 = vadd.f32 %v1761_v34, %v996_v36  ;;  %v1698_v38 = vpop.f32.mrb[24].mxu0 }
 0x127   :  { %v1762_v39 = vpop.f32.mrb[24].mxu1  ;;  %v1699_v40 = vpop.f32.mrb[25].mxu0 }
 0x128   :  { %v1700_v41 = vadd.f32 %v1699_v40, %v1698_v38  ;;  %v1763_v42 = vpop.f32.mrb[25].mxu1  ;;  %v1701_v43 = vpop.f32.mrb[26].mxu0 }
 0x129   :  { %v1764_v44 = vadd.f32 %v1763_v42, %v1762_v39  ;;  %v1765_v45 = vpop.f32.mrb[26].mxu1  ;;  %v1702_v47 = vpop.f32.mrb[27].mxu0 }
 0x12a   :  { %v1001_v49 = vadd.f32 %v1700_v41, %v2373_v2  ;;  %v1703_v50 = vadd.f32 %v1702_v47, %v1701_v43  ;;  %v1766_v51 = vpop.f32.mrb[27].mxu1 }
 0x12b   :  { %v1767_v52 = vadd.f32 %v1766_v51, %v1765_v45 }
 0x12c   :  { %v2412_v53 = vadd.f32 %v1764_v44, %v1001_v49  ;;  %v1004_v54 = vadd.f32 %v1703_v50, %v2373_v2 }
 0x12e   :  { %v2415_v55 = vadd.f32 %v1767_v52, %v1004_v54  ;;  %v1704_v56 = vpop.f32.mrb[28].mxu0 }
 0x12f   :  { %v1768_v57 = vpop.f32.mrb[28].mxu1  ;;  %v1705_v58 = vpop.f32.mrb[29].mxu0 }
 0x130   :  { %v1706_v59 = vadd.f32 %v1705_v58, %v1704_v56  ;;  %v1769_v60 = vpop.f32.mrb[29].mxu1  ;;  %v1707_v61 = vpop.f32.mrb[30].mxu0 }
 0x131   :  { %v1770_v63 = vadd.f32 %v1769_v60, %v1768_v57  ;;  %v1771_v1 = vpop.f32.mrb[30].mxu1  ;;  %v1708_v3 = vpop.f32.mrb[31].mxu0 }
 0x132   :  { %v1009_v4 = vadd.f32 %v1706_v59, %v2373_v2  ;;  %v1709_v5 = vadd.f32 %v1708_v3, %v1707_v61  ;;  %v1772_v6 = vpop.f32.mrb[31].mxu1 }
 0x133   :  { %v1773_v7 = vadd.f32 %v1772_v6, %v1771_v1 }
 0x134   :  { %v2418_v8 = vadd.f32 %v1770_v63, %v1009_v4  ;;  %v1012_v9 = vadd.f32 %v1709_v5, %v2373_v2 }
 0x136   :  { %v2421_v10 = vadd.f32 %v1773_v7, %v1012_v9  ;;  %v1790_v11 = vpop.f32.mrb[32].mxu0 }
 0x137   :  { %v1854_v12 = vpop.f32.mrb[32].mxu1  ;;  %v1791_v13 = vpop.f32.mrb[33].mxu0 }
 0x138   :  { %v1792_v15 = vadd.f32 %v1791_v13, %v1790_v11  ;;  %v1855_v18 = vpop.f32.mrb[33].mxu1  ;;  %v1793_v20 = vpop.f32.mrb[34].mxu0 }
 0x139   :  { %v1856_v21 = vadd.f32 %v1855_v18, %v1854_v12  ;;  %v1857_v22 = vpop.f32.mrb[34].mxu1  ;;  %v1794_v23 = vpop.f32.mrb[35].mxu0 }
 0x13a   :  { %v1147_v24 = vadd.f32 %v1792_v15, %v2376_v14  ;;  %v1795_v25 = vadd.f32 %v1794_v23, %v1793_v20  ;;  %v1858_v26 = vpop.f32.mrb[35].mxu1 }
 0x13b   :  { %v1859_v27 = vadd.f32 %v1858_v26, %v1857_v22 }
 0x13c   :  { %v1244_v28 = vadd.f32 %v1856_v21, %v1147_v24  ;;  %v1150_v29 = vadd.f32 %v1795_v25, %v2379_v16 }
 0x13e   :  { %v1322_v2 = vmul.f32 0.2, %v1244_v28  ;;  %v1247_v31 = vadd.f32 %v1859_v27, %v1150_v29  ;;  %v1796_v33 = vpop.f32.mrb[36].mxu0  ;;  %vm1306_vm0 = vcmp.ge.f32.partialorder %v1244_v28, 0.0 }
 0x13f   :  { %v1860_v34 = vpop.f32.mrb[36].mxu1  ;;  %v1797_v36 = vpop.f32.mrb[37].mxu0 }
 0x140   :  { %vm1307_vm1 = vcmp.ge.f32.partialorder %v1247_v31, 0.0  ;;  %v1323_v38 = vmul.f32 0.2, %v1247_v31  ;;  %v1798_v39 = vadd.f32 %v1797_v36, %v1796_v33  ;;  %v1861_v40 = vpop.f32.mrb[37].mxu1  ;;  %v1799_v41 = vpop.f32.mrb[38].mxu0  ;;  %v1338_v44 = vsel %vm1306_vm0, %v1244_v28, %v1322_v2 }
 0x141   :  { %v1862_v42 = vadd.f32 %v1861_v40, %v1860_v34  ;;  %v1863_v43 = vpop.f32.mrb[38].mxu1  ;;  %v1800_v14 = vpop.f32.mrb[39].mxu0 }
 0x142   :  { %v1339_v45 = vsel %vm1307_vm1, %v1247_v31, %v1323_v38  ;;  %v1155_v47 = vadd.f32 %v1798_v39, %v2382_v30  ;;  %v1801_v49 = vadd.f32 %v1800_v14, %v1799_v41  ;;  %v1864_v16 = vpop.f32.mrb[39].mxu1 }
 0x143   :  { %v1602_v50 = vpack.c.bf16 %v1339_v45, %v1338_v44  ;;  %v1865_v51 = vadd.f32 %v1864_v16, %v1863_v43 }
 0x144   :  { %v1252_v52 = vadd.f32 %v1862_v42, %v1155_v47  ;;  %v1158_v54 = vadd.f32 %v1801_v49, %v2385_v32 }
 0x145   :  { %1603 = vst [vmem:[%s2466_s3] sm:$0xff] %v1602_v50  }
 0x146   :  { %v1324_v56 = vmul.f32 0.2, %v1252_v52  ;;  %v1255_v57 = vadd.f32 %v1865_v51, %v1158_v54  ;;  %v1802_v58 = vpop.f32.mrb[40].mxu0  ;;  %vm1308_vm2 = vcmp.ge.f32.partialorder %v1252_v52, 0.0 }
 0x147   :  { %v1866_v59 = vpop.f32.mrb[40].mxu1  ;;  %v1803_v60 = vpop.f32.mrb[41].mxu0 }
 0x148   :  { %vm1309_vm3 = vcmp.ge.f32.partialorder %v1255_v57, 0.0  ;;  %v1325_v61 = vmul.f32 0.2, %v1255_v57  ;;  %v1804_v30 = vadd.f32 %v1803_v60, %v1802_v58  ;;  %v1867_v63 = vpop.f32.mrb[41].mxu1  ;;  %v1805_v1 = vpop.f32.mrb[42].mxu0  ;;  %v1340_v6 = vsel %vm1308_vm2, %v1252_v52, %v1324_v56 }
 0x149   :  { %v1868_v3 = vadd.f32 %v1867_v63, %v1866_v59  ;;  %v1869_v4 = vpop.f32.mrb[42].mxu1  ;;  %v1806_v5 = vpop.f32.mrb[43].mxu0 }
 0x14a   :  { %v1341_v32 = vsel %vm1309_vm3, %v1255_v57, %v1325_v61  ;;  %v1163_v7 = vadd.f32 %v1804_v30, %v2388_v46  ;;  %v1807_v9 = vadd.f32 %v1806_v5, %v1805_v1  ;;  %v1870_v11 = vpop.f32.mrb[43].mxu1 }
 0x14b   :  { %v1607_v12 = vpack.c.bf16 %v1341_v32, %v1340_v6  ;;  %v1871_v13 = vadd.f32 %v1870_v11, %v1869_v4 }
 0x14c   :  { %v1260_v15 = vadd.f32 %v1868_v3, %v1163_v7  ;;  %v1166_v18 = vadd.f32 %v1807_v9, %v2391_v48 }
 0x14d   :  { %1639 = vst [vmem:[%s2466_s3 + $0x8] sm:$0xff] %v1607_v12  }
 0x14e   :  { %v1326_v20 = vmul.f32 0.2, %v1260_v15  ;;  %v1263_v21 = vadd.f32 %v1871_v13, %v1166_v18  ;;  %v1808_v22 = vpop.f32.mrb[44].mxu0  ;;  %vm1310_vm4 = vcmp.ge.f32.partialorder %v1260_v15, 0.0 }
 0x14f   :  { %v1872_v23 = vpop.f32.mrb[44].mxu1  ;;  %v1809_v24 = vpop.f32.mrb[45].mxu0 }
 0x150   :  { %vm1311_vm5 = vcmp.ge.f32.partialorder %v1263_v21, 0.0  ;;  %v1327_v25 = vmul.f32 0.2, %v1263_v21  ;;  %v1810_v46 = vadd.f32 %v1809_v24, %v1808_v22  ;;  %v1873_v26 = vpop.f32.mrb[45].mxu1  ;;  %v1811_v27 = vpop.f32.mrb[46].mxu0  ;;  %v1342_v31 = vsel %vm1310_vm4, %v1260_v15, %v1326_v20 }
 0x151   :  { %v1874_v28 = vadd.f32 %v1873_v26, %v1872_v23  ;;  %v1875_v29 = vpop.f32.mrb[46].mxu1  ;;  %v1812_v2 = vpop.f32.mrb[47].mxu0 }
 0x152   :  { %v1343_v48 = vsel %vm1311_vm5, %v1263_v21, %v1327_v25  ;;  %v1171_v33 = vadd.f32 %v1810_v46, %v2394_v62  ;;  %v1813_v34 = vadd.f32 %v1812_v2, %v1811_v27  ;;  %v1876_v36 = vpop.f32.mrb[47].mxu1 }
 0x153   :  { %v1612_v38 = vpack.c.bf16 %v1343_v48, %v1342_v31  ;;  %v1877_v39 = vadd.f32 %v1876_v36, %v1875_v29 }
 0x154   :  { %v1268_v40 = vadd.f32 %v1874_v28, %v1171_v33  ;;  %v1174_v41 = vadd.f32 %v1813_v34, %v2397_v0 }
 0x155   :  { %1640 = vst [vmem:[%s2466_s3 + $0x10] sm:$0xff] %v1612_v38  }
 0x156   :  { %v1328_v42 = vmul.f32 0.2, %v1268_v40  ;;  %v1271_v43 = vadd.f32 %v1877_v39, %v1174_v41  ;;  %v1814_v14 = vpop.f32.mrb[48].mxu0  ;;  %vm1312_vm6 = vcmp.ge.f32.partialorder %v1268_v40, 0.0 }
 0x157   :  { %v1878_v44 = vpop.f32.mrb[48].mxu1  ;;  %v1815_v45 = vpop.f32.mrb[49].mxu0 }
 0x158   :  { %vm1313_vm7 = vcmp.ge.f32.partialorder %v1271_v43, 0.0  ;;  %v1329_v47 = vmul.f32 0.2, %v1271_v43  ;;  %v1816_v62 = vadd.f32 %v1815_v45, %v1814_v14  ;;  %v1879_v49 = vpop.f32.mrb[49].mxu1  ;;  %v1817_v16 = vpop.f32.mrb[50].mxu0  ;;  %v1344_v54 = vsel %vm1312_vm6, %v1268_v40, %v1328_v42 }
 0x159   :  { %v1880_v50 = vadd.f32 %v1879_v49, %v1878_v44  ;;  %v1881_v51 = vpop.f32.mrb[50].mxu1  ;;  %v1818_v52 = vpop.f32.mrb[51].mxu0 }
 0x15a   :  { %v1345_v0 = vsel %vm1313_vm7, %v1271_v43, %v1329_v47  ;;  %v1179_v56 = vadd.f32 %v1816_v62, %v2400_v17  ;;  %v1819_v57 = vadd.f32 %v1818_v52, %v1817_v16  ;;  %v1882_v58 = vpop.f32.mrb[51].mxu1 }
 0x15b   :  { %v1617_v59 = vpack.c.bf16 %v1345_v0, %v1344_v54  ;;  %v1883_v60 = vadd.f32 %v1882_v58, %v1881_v51 }
 0x15c   :  { %v1276_v61 = vadd.f32 %v1880_v50, %v1179_v56  ;;  %v1182_v30 = vadd.f32 %v1819_v57, %v2403_v19 }
 0x15d   :  { %1641 = vst [vmem:[%s2466_s3 + $0x18] sm:$0xff] %v1617_v59  }
 0x15e   :  { %v1330_v63 = vmul.f32 0.2, %v1276_v61  ;;  %v1279_v1 = vadd.f32 %v1883_v60, %v1182_v30  ;;  %v1820_v3 = vpop.f32.mrb[52].mxu0  ;;  %vm1314_vm8 = vcmp.ge.f32.partialorder %v1276_v61, 0.0 }
 0x15f   :  { %v1884_v4 = vpop.f32.mrb[52].mxu1  ;;  %v1821_v5 = vpop.f32.mrb[53].mxu0 }
 0x160   :  { %vm1315_vm9 = vcmp.ge.f32.partialorder %v1279_v1, 0.0  ;;  %v1331_v6 = vmul.f32 0.2, %v1279_v1  ;;  %v1822_v17 = vadd.f32 %v1821_v5, %v1820_v3  ;;  %v1885_v32 = vpop.f32.mrb[53].mxu1  ;;  %v1823_v7 = vpop.f32.mrb[54].mxu0  ;;  %v1346_v13 = vsel %vm1314_vm8, %v1276_v61, %v1330_v63 }
 0x161   :  { %v1886_v9 = vadd.f32 %v1885_v32, %v1884_v4  ;;  %v1887_v11 = vpop.f32.mrb[54].mxu1  ;;  %v1824_v12 = vpop.f32.mrb[55].mxu0 }
 0x162   :  { %v1347_v19 = vsel %vm1315_vm9, %v1279_v1, %v1331_v6  ;;  %v1187_v15 = vadd.f32 %v1822_v17, %v2406_v35  ;;  %v1825_v18 = vadd.f32 %v1824_v12, %v1823_v7  ;;  %v1888_v20 = vpop.f32.mrb[55].mxu1 }
 0x163   :  { %v1622_v21 = vpack.c.bf16 %v1347_v19, %v1346_v13  ;;  %v1889_v22 = vadd.f32 %v1888_v20, %v1887_v11 }
 0x164   :  { %v1284_v23 = vadd.f32 %v1886_v9, %v1187_v15  ;;  %v1190_v24 = vadd.f32 %v1825_v18, %v2409_v37 }
 0x165   :  { %1642 = vst [vmem:[%s2466_s3 + $0x20] sm:$0xff] %v1622_v21  }
 0x166   :  { %v1332_v25 = vmul.f32 0.2, %v1284_v23  ;;  %v1287_v46 = vadd.f32 %v1889_v22, %v1190_v24  ;;  %v1826_v26 = vpop.f32.mrb[56].mxu0  ;;  %vm1316_vm10 = vcmp.ge.f32.partialorder %v1284_v23, 0.0 }
 0x167   :  { %v1890_v27 = vpop.f32.mrb[56].mxu1  ;;  %v1827_v28 = vpop.f32.mrb[57].mxu0 }
 0x168   :  { %vm1317_vm11 = vcmp.ge.f32.partialorder %v1287_v46, 0.0  ;;  %v1333_v29 = vmul.f32 0.2, %v1287_v46  ;;  %v1828_v35 = vadd.f32 %v1827_v28, %v1826_v26  ;;  %v1891_v2 = vpop.f32.mrb[57].mxu1  ;;  %v1829_v31 = vpop.f32.mrb[58].mxu0  ;;  %v1348_v36 = vsel %vm1316_vm10, %v1284_v23, %v1332_v25 }
 0x169   :  { %v1892_v48 = vadd.f32 %v1891_v2, %v1890_v27  ;;  %v1893_v33 = vpop.f32.mrb[58].mxu1  ;;  %v1830_v34 = vpop.f32.mrb[59].mxu0 }
 0x16a   :  { %v1349_v37 = vsel %vm1317_vm11, %v1287_v46, %v1333_v29  ;;  %v1195_v38 = vadd.f32 %v1828_v35, %v2412_v53  ;;  %v1831_v39 = vadd.f32 %v1830_v34, %v1829_v31  ;;  %v1894_v40 = vpop.f32.mrb[59].mxu1 }
 0x16b   :  { %v1627_v41 = vpack.c.bf16 %v1349_v37, %v1348_v36  ;;  %v1895_v42 = vadd.f32 %v1894_v40, %v1893_v33 }
 0x16c   :  { %v1292_v43 = vadd.f32 %v1892_v48, %v1195_v38  ;;  %v1198_v14 = vadd.f32 %v1831_v39, %v2415_v55 }
 0x16d   :  { %1643 = vst [vmem:[%s2466_s3 + $0x28] sm:$0xff] %v1627_v41  }
 0x16e   :  { %v1334_v44 = vmul.f32 0.2, %v1292_v43  ;;  %v1295_v45 = vadd.f32 %v1895_v42, %v1198_v14  ;;  %v1832_v47 = vpop.f32.mrb[60].mxu0  ;;  %vm1318_vm12 = vcmp.ge.f32.partialorder %v1292_v43, 0.0 }
 0x16f   :  { %v1896_v62 = vpop.f32.mrb[60].mxu1  ;;  %v1833_v49 = vpop.f32.mrb[61].mxu0 }
 0x170   :  { %vm1319_vm13 = vcmp.ge.f32.partialorder %v1295_v45, 0.0  ;;  %v1335_v16 = vmul.f32 0.2, %v1295_v45  ;;  %v1834_v53 = vadd.f32 %v1833_v49, %v1832_v47  ;;  %v1897_v50 = vpop.f32.mrb[61].mxu1  ;;  %v1835_v51 = vpop.f32.mrb[62].mxu0  ;;  %v1350_v56 = vsel %vm1318_vm12, %v1292_v43, %v1334_v44 }
 0x171   :  { %v1898_v52 = vadd.f32 %v1897_v50, %v1896_v62  ;;  %v1899_v54 = vpop.f32.mrb[62].mxu1  ;;  %v1836_v0 = vpop.f32.mrb[63].mxu0 }
 0x172   :  { %v1351_v55 = vsel %vm1319_vm13, %v1295_v45, %v1335_v16  ;;  %v1203_v57 = vadd.f32 %v1834_v53, %v2418_v8  ;;  %v1837_v58 = vadd.f32 %v1836_v0, %v1835_v51  ;;  %v1900_v59 = vpop.f32.mrb[63].mxu1 }
 0x173   :  { %v1632_v60 = vpack.c.bf16 %v1351_v55, %v1350_v56  ;;  %v1901_v61 = vadd.f32 %v1900_v59, %v1899_v54 }
 0x174   :  { %v1300_v30 = vadd.f32 %v1898_v52, %v1203_v57  ;;  %v1206_v63 = vadd.f32 %v1837_v58, %v2421_v10 }
 0x175   :  { %1644 = vst [vmem:[%s2466_s3 + $0x30] sm:$0xff] %v1632_v60  }
 0x176   :  { %v1336_v1 = vmul.f32 0.2, %v1300_v30  ;;  %v1303_v3 = vadd.f32 %v1901_v61, %v1206_v63  ;;  %vm1320_vm14 = vcmp.ge.f32.partialorder %v1300_v30, 0.0 }
 0x178   :  { %vm1321_vm15 = vcmp.ge.f32.partialorder %v1303_v3, 0.0  ;;  %v1337_v4 = vmul.f32 0.2, %v1303_v3  ;;  %v1352_v5 = vsel %vm1320_vm14, %v1300_v30, %v1336_v1 }
 0x17a   :  { %v1353_v6 = vsel %vm1321_vm15, %v1303_v3, %v1337_v4 }
 0x17b   :  { %v1637_v17 = vpack.c.bf16 %v1353_v6, %v1352_v5 }
 0x17d   :  { %1645 = vst [vmem:[%s2466_s3 + $0x38] sm:$0xff] %v1637_v17  }

// kernel: _lambda_.7
= control target key start
LH: loop header
LB: loop body
LE: loop exit
PB: predicated region body
PF: predicated region fallthrough
CT: control target
= control target key end

     0   :  { %s3925_s1 = inlined_call_operand.vmem [shape: bf16[2048,256], index: 1, kind: input, shape index: {}]   ;;  %s3926_s0 = inlined_call_operand.vmem [shape: bf16[32,2048], index: 0, kind: input, shape index: {}]   ;;  %s3927_s2 = inlined_call_operand.vmem [shape: f32[1,256], index: 2, kind: input, shape index: {}]   ;;  %s3928_s3 = inlined_call_operand.vmem [shape: bf16[32,256], index: 3, kind: output, shape index: {}]  }
   0x1   :  { %v2594_v0 = vld [vmem:[%s3925_s1 + $0x4] ss:$8 sps:$4 sm:$0xff]   ;;  %v2598_v2 = vld [vmem:[%s3925_s1] ss:$8 sps:$4 sm:$0xff]   ;;  %v2600_v4 = vld [vmem:[%s3925_s1 + $0x14] ss:$8 sps:$4 sm:$0xff]  }
   0x2   :  { %v2596_v1 = vld [vmem:[%s3925_s1 + $0x404] ss:$8 sps:$4 sm:$0xff]   ;;  %1754 = vmatprep.subr.bf16.mxu1 %v2594_v0  ;;  %v2599_v3 = vld [vmem:[%s3925_s1 + $0x400] ss:$8 sps:$4 sm:$0xff]   ;;  %v2602_v5 = vld [vmem:[%s3925_s1 + $0x414] ss:$8 sps:$4 sm:$0xff]  }
   0x3   :  { %1966 = vmatprep.subr.bf16.mxu0 %v2596_v1  ;;  %1755 = vmatpush1.bf16.msra.mxu1 %v2598_v2  ;;  %v2604_v6 = vld [vmem:[%s3925_s1 + $0x10] ss:$8 sps:$4 sm:$0xff]   ;;  %v2606_v8 = vld [vmem:[%s3925_s1 + $0x24] ss:$8 sps:$4 sm:$0xff]   ;;  %v2610_v10 = vld [vmem:[%s3925_s1 + $0x20] ss:$8 sps:$4 sm:$0xff]  }
   0x4   :  { %1967 = vmatpush1.bf16.msra.mxu0 %v2599_v3  ;;  %1756 = vmatprep.subr.bf16.mxu1 %v2600_v4  ;;  %v2605_v7 = vld [vmem:[%s3925_s1 + $0x410] ss:$8 sps:$4 sm:$0xff]   ;;  %v2608_v9 = vld [vmem:[%s3925_s1 + $0x424] ss:$8 sps:$4 sm:$0xff]   ;;  %v2611_v11 = vld [vmem:[%s3925_s1 + $0x420] ss:$8 sps:$4 sm:$0xff]  }
   0x5   :  { %1968 = vmatprep.subr.bf16.mxu0 %v2602_v5  ;;  %v2612_v12 = vld [vmem:[%s3925_s1 + $0x34] ss:$8 sps:$4 sm:$0xff]   ;;  %v2616_v14 = vld [vmem:[%s3925_s1 + $0x30] ss:$8 sps:$4 sm:$0xff]   ;;  %v2618_v16 = vld [vmem:[%s3925_s1 + $0x44] ss:$8 sps:$4 sm:$0xff]  }
   0x6   :  { %v2614_v13 = vld [vmem:[%s3925_s1 + $0x434] ss:$8 sps:$4 sm:$0xff]   ;;  %v2617_v15 = vld [vmem:[%s3925_s1 + $0x430] ss:$8 sps:$4 sm:$0xff]   ;;  %v2620_v17 = vld [vmem:[%s3925_s1 + $0x444] ss:$8 sps:$4 sm:$0xff]  }
   0x7   :  { %1757 = vmatpush1.bf16.msra.mxu1 %v2604_v6  ;;  %v2622_v18 = vld [vmem:[%s3925_s1 + $0x40] ss:$8 sps:$4 sm:$0xff]   ;;  %v2624_v20 = vld [vmem:[%s3925_s1 + $0x54] ss:$8 sps:$4 sm:$0xff]   ;;  %v2628_v22 = vld [vmem:[%s3925_s1 + $0x50] ss:$8 sps:$4 sm:$0xff]  }
   0x8   :  { %1969 = vmatpush1.bf16.msra.mxu0 %v2605_v7  ;;  %1758 = vmatprep.subr.bf16.mxu1 %v2606_v8  ;;  %v2623_v19 = vld [vmem:[%s3925_s1 + $0x440] ss:$8 sps:$4 sm:$0xff]   ;;  %v2626_v21 = vld [vmem:[%s3925_s1 + $0x454] ss:$8 sps:$4 sm:$0xff]   ;;  %v2629_v23 = vld [vmem:[%s3925_s1 + $0x450] ss:$8 sps:$4 sm:$0xff]  }
   0x9   :  { %1970 = vmatprep.subr.bf16.mxu0 %v2608_v9  ;;  %v2630_v24 = vld [vmem:[%s3925_s1 + $0x64] ss:$8 sps:$4 sm:$0xff]   ;;  %v2634_v26 = vld [vmem:[%s3925_s1 + $0x60] ss:$8 sps:$4 sm:$0xff]   ;;  %v2636_v28 = vld [vmem:[%s3925_s1 + $0x74] ss:$8 sps:$4 sm:$0xff]  }
   0xa   :  { %v2632_v25 = vld [vmem:[%s3925_s1 + $0x464] ss:$8 sps:$4 sm:$0xff]   ;;  %v2635_v27 = vld [vmem:[%s3925_s1 + $0x460] ss:$8 sps:$4 sm:$0xff]   ;;  %v2638_v29 = vld [vmem:[%s3925_s1 + $0x474] ss:$8 sps:$4 sm:$0xff]  }
   0xb   :  { %1759 = vmatpush1.bf16.msra.mxu1 %v2610_v10  ;;  %v2640_v30 = vld [vmem:[%s3925_s1 + $0x70] ss:$8 sps:$4 sm:$0xff]   ;;  %v2642_v32 = vld [vmem:[%s3925_s1 + $0x84] ss:$8 sps:$4 sm:$0xff]   ;;  %v2646_v34 = vld [vmem:[%s3925_s1 + $0x80] ss:$8 sps:$4 sm:$0xff]  }
   0xc   :  { %1971 = vmatpush1.bf16.msra.mxu0 %v2611_v11  ;;  %1760 = vmatprep.subr.bf16.mxu1 %v2612_v12  ;;  %v2641_v31 = vld [vmem:[%s3925_s1 + $0x470] ss:$8 sps:$4 sm:$0xff]   ;;  %v2644_v33 = vld [vmem:[%s3925_s1 + $0x484] ss:$8 sps:$4 sm:$0xff]   ;;  %v2647_v35 = vld [vmem:[%s3925_s1 + $0x480] ss:$8 sps:$4 sm:$0xff]  }
   0xd   :  { %1972 = vmatprep.subr.bf16.mxu0 %v2614_v13  ;;  %v2648_v36 = vld [vmem:[%s3925_s1 + $0x94] ss:$8 sps:$4 sm:$0xff]   ;;  %v2652_v38 = vld [vmem:[%s3925_s1 + $0x90] ss:$8 sps:$4 sm:$0xff]   ;;  %v2654_v40 = vld [vmem:[%s3925_s1 + $0xa4] ss:$8 sps:$4 sm:$0xff]  }
   0xe   :  { %v2650_v37 = vld [vmem:[%s3925_s1 + $0x494] ss:$8 sps:$4 sm:$0xff]   ;;  %v2653_v39 = vld [vmem:[%s3925_s1 + $0x490] ss:$8 sps:$4 sm:$0xff]   ;;  %v2656_v41 = vld [vmem:[%s3925_s1 + $0x4a4] ss:$8 sps:$4 sm:$0xff]  }
   0xf   :  { %1761 = vmatpush1.bf16.msra.mxu1 %v2616_v14  ;;  %v2658_v42 = vld [vmem:[%s3925_s1 + $0xa0] ss:$8 sps:$4 sm:$0xff]   ;;  %v2660_v44 = vld [vmem:[%s3925_s1 + $0xb4] ss:$8 sps:$4 sm:$0xff]   ;;  %v2664_v46 = vld [vmem:[%s3925_s1 + $0xb0] ss:$8 sps:$4 sm:$0xff]  }
  0x10   :  { %1973 = vmatpush1.bf16.msra.mxu0 %v2617_v15  ;;  %1762 = vmatprep.subr.bf16.mxu1 %v2618_v16  ;;  %v2659_v43 = vld [vmem:[%s3925_s1 + $0x4a0] ss:$8 sps:$4 sm:$0xff]   ;;  %v2662_v45 = vld [vmem:[%s3925_s1 + $0x4b4] ss:$8 sps:$4 sm:$0xff]   ;;  %v2665_v47 = vld [vmem:[%s3925_s1 + $0x4b0] ss:$8 sps:$4 sm:$0xff]  }
  0x11   :  { %1974 = vmatprep.subr.bf16.mxu0 %v2620_v17  ;;  %v14_v48 = vld [vmem:[%s3926_s0] sm:$0xff]  ;;  %v2672_v58 = vld [vmem:[%s3925_s1 + $0xd4] ss:$8 sps:$4 sm:$0xff]   ;;  %v2676_v60 = vld [vmem:[%s3925_s1 + $0xd0] ss:$8 sps:$4 sm:$0xff]  }
  0x12   :  { %v22_v49 = vld [vmem:[%s3926_s0 + $0x40] sm:$0xff]  ;;  %v2674_v59 = vld [vmem:[%s3925_s1 + $0x4d4] ss:$8 sps:$4 sm:$0xff]   ;;  %v2677_v61 = vld [vmem:[%s3925_s1 + $0x4d0] ss:$8 sps:$4 sm:$0xff]  }
  0x13   :  { %1763 = vmatpush1.bf16.msra.mxu1 %v2622_v18  ;;  %v2666_v50 = vld [vmem:[%s3925_s1 + $0xc4] ss:$8 sps:$4 sm:$0xff]   ;;  %v2235_v52 = vcombine.high %v14_v48, %v22_v49  ;;  %v2670_v56 = vld [vmem:[%s3925_s1 + $0xc0] ss:$8 sps:$4 sm:$0xff]   ;;  %v2684_v2 = vld [vmem:[%s3925_s1 + $0xf4] ss:$8 sps:$4 sm:$0xff]   ;;  %v2234_v8 = vcombine.low %v14_v48, %v22_v49 }
  0x14   :  { %1975 = vmatpush1.bf16.msra.mxu0 %v2623_v19  ;;  %1764 = vmatprep.subr.bf16.mxu1 %v2624_v20  ;;  %v2668_v51 = vld [vmem:[%s3925_s1 + $0x4c4] ss:$8 sps:$4 sm:$0xff]   ;;  %v2671_v57 = vld [vmem:[%s3925_s1 + $0x4c0] ss:$8 sps:$4 sm:$0xff]   ;;  %v2686_v3 = vld [vmem:[%s3925_s1 + $0x4f4] ss:$8 sps:$4 sm:$0xff]  }
  0x15   :  { %1976 = vmatprep.subr.bf16.mxu0 %v2626_v21  ;;  %v18_v53 = vld [vmem:[%s3926_s0 + $0x20] sm:$0xff]  ;;  %1786 = vmatprep.mubr.bf16.mxu1 %v2235_v52  ;;  %v2688_v4 = vld [vmem:[%s3925_s1 + $0xf0] ss:$8 sps:$4 sm:$0xff]   ;;  %v2698_v12 = vld [vmem:[%s3925_s1 + $0x114] ss:$8 sps:$4 sm:$0xff]  }
  0x16   :  { %v26_v54 = vld [vmem:[%s3926_s0 + $0x60] sm:$0xff]  ;;  %v2689_v5 = vld [vmem:[%s3925_s1 + $0x4f0] ss:$8 sps:$4 sm:$0xff]   ;;  %v2701_v13 = vld [vmem:[%s3925_s1 + $0x514] ss:$8 sps:$4 sm:$0xff]  }
  0x17   :  { %1765 = vmatpush1.bf16.msra.mxu1 %v2628_v22  ;;  %v2243_v55 = vcombine.high %v18_v53, %v26_v54  ;;  %v2678_v62 = vld [vmem:[%s3925_s1 + $0xe4] ss:$8 sps:$4 sm:$0xff]   ;;  %v2682_v0 = vld [vmem:[%s3925_s1 + $0xe0] ss:$8 sps:$4 sm:$0xff]   ;;  %v2242_v10 = vcombine.low %v18_v53, %v26_v54  ;;  %v2696_v14 = vld [vmem:[%s3925_s1 + $0x110] ss:$8 sps:$4 sm:$0xff]  }
  0x18   :  { %1977 = vmatpush1.bf16.msra.mxu0 %v2629_v23  ;;  %1766 = vmatprep.subr.bf16.mxu1 %v2630_v24  ;;  %v2680_v63 = vld [vmem:[%s3925_s1 + $0x4e4] ss:$8 sps:$4 sm:$0xff]   ;;  %v2683_v1 = vld [vmem:[%s3925_s1 + $0x4e0] ss:$8 sps:$4 sm:$0xff]   ;;  %v2699_v15 = vld [vmem:[%s3925_s1 + $0x510] ss:$8 sps:$4 sm:$0xff]  }
  0x19   :  { %1978 = vmatprep.subr.bf16.mxu0 %v2632_v25  ;;  %1998 = vmatprep.mubr.bf16.mxu0 %v2243_v55  ;;  %v2692_v6 = vld [vmem:[%s3925_s1 + $0x104] ss:$8 sps:$4 sm:$0xff]   ;;  %v2690_v9 = vld [vmem:[%s3925_s1 + $0x100] ss:$8 sps:$4 sm:$0xff]   ;;  %v2710_v20 = vld [vmem:[%s3925_s1 + $0x134] ss:$8 sps:$4 sm:$0xff]  }
  0x1a   :  { %v2695_v7 = vld [vmem:[%s3925_s1 + $0x504] ss:$8 sps:$4 sm:$0xff]   ;;  %v2693_v11 = vld [vmem:[%s3925_s1 + $0x500] ss:$8 sps:$4 sm:$0xff]   ;;  %v2713_v21 = vld [vmem:[%s3925_s1 + $0x534] ss:$8 sps:$4 sm:$0xff]  }
  0x1b   :  { %1767 = vmatpush1.bf16.msra.mxu1 %v2634_v26  ;;  %v2704_v16 = vld [vmem:[%s3925_s1 + $0x124] ss:$8 sps:$4 sm:$0xff]   ;;  %v2702_v18 = vld [vmem:[%s3925_s1 + $0x120] ss:$8 sps:$4 sm:$0xff]   ;;  %v2708_v22 = vld [vmem:[%s3925_s1 + $0x130] ss:$8 sps:$4 sm:$0xff]  }
  0x1c   :  { %1979 = vmatpush1.bf16.msra.mxu0 %v2635_v27  ;;  %1768 = vmatprep.subr.bf16.mxu1 %v2636_v28  ;;  %v2707_v17 = vld [vmem:[%s3925_s1 + $0x524] ss:$8 sps:$4 sm:$0xff]   ;;  %v2705_v19 = vld [vmem:[%s3925_s1 + $0x520] ss:$8 sps:$4 sm:$0xff]   ;;  %v2711_v23 = vld [vmem:[%s3925_s1 + $0x530] ss:$8 sps:$4 sm:$0xff]  }
  0x1d   :  { %1980 = vmatprep.subr.bf16.mxu0 %v2638_v29  ;;  %v2716_v24 = vld [vmem:[%s3925_s1 + $0x144] ss:$8 sps:$4 sm:$0xff]   ;;  %v2714_v26 = vld [vmem:[%s3925_s1 + $0x140] ss:$8 sps:$4 sm:$0xff]   ;;  %v2722_v28 = vld [vmem:[%s3925_s1 + $0x154] ss:$8 sps:$4 sm:$0xff]  }
  0x1e   :  { %v2719_v25 = vld [vmem:[%s3925_s1 + $0x544] ss:$8 sps:$4 sm:$0xff]   ;;  %v2717_v27 = vld [vmem:[%s3925_s1 + $0x540] ss:$8 sps:$4 sm:$0xff]   ;;  %v2725_v29 = vld [vmem:[%s3925_s1 + $0x554] ss:$8 sps:$4 sm:$0xff]  }
  0x1f   :  { %1769 = vmatpush1.bf16.msra.mxu1 %v2640_v30  ;;  %v30_v30 = vld [vmem:[%s3926_s0 + $0x80] sm:$0xff]  ;;  %v3319_v49 = vld [vmem:[%s3926_s0 + $0x28] sm:$0xff]  ;;  %v2735_v52 = vld [vmem:[%s3925_s1 + $0x570] ss:$8 sps:$4 sm:$0xff]  }
  0x20   :  { %1981 = vmatpush1.bf16.msra.mxu0 %v2641_v31  ;;  %1770 = vmatprep.subr.bf16.mxu1 %v2642_v32  ;;  %v38_v31 = vld [vmem:[%s3926_s0 + $0xc0] sm:$0xff]  ;;  %v2720_v32 = vld [vmem:[%s3925_s1 + $0x150] ss:$8 sps:$4 sm:$0xff]  }
  0x21   :  { %1982 = vmatprep.subr.bf16.mxu0 %v2644_v33  ;;  %v2251_v33 = vcombine.high %v30_v30, %v38_v31  ;;  %v2740_v54 = vld [vmem:[%s3925_s1 + $0x184] ss:$8 sps:$4 sm:$0xff]  }
  0x22   :  { %v2743_v55 = vld [vmem:[%s3925_s1 + $0x584] ss:$8 sps:$4 sm:$0xff]  }
  0x23   :  { %1771 = vmatpush1.bf16.msra.mxu1 %v2646_v34  ;;  %v2723_v34 = vld [vmem:[%s3925_s1 + $0x550] ss:$8 sps:$4 sm:$0xff]  }
  0x24   :  { %1983 = vmatpush1.bf16.msra.mxu0 %v2647_v35  ;;  %1772 = vmatprep.subr.bf16.mxu1 %v2648_v36  ;;  %v34_v35 = vld [vmem:[%s3926_s0 + $0xa0] sm:$0xff] }
  0x25   :  { %1984 = vmatprep.subr.bf16.mxu0 %v2650_v37  ;;  %v42_v36 = vld [vmem:[%s3926_s0 + $0xe0] sm:$0xff]  ;;  %v2250_v37 = vcombine.low %v30_v30, %v38_v31  ;;  %v2794_v30 = vld [vmem:[%s3925_s1 + $0x214] ss:$8 sps:$4 sm:$0xff]  }
  0x26   :  { %v2797_v31 = vld [vmem:[%s3925_s1 + $0x614] ss:$8 sps:$4 sm:$0xff]  }
  0x27   :  { %1773 = vmatpush1.bf16.msra.mxu1 %v2652_v38  ;;  %v2728_v38 = vld [vmem:[%s3925_s1 + $0x164] ss:$8 sps:$4 sm:$0xff]  }
  0x28   :  { %1985 = vmatpush1.bf16.msra.mxu0 %v2653_v39  ;;  %1774 = vmatprep.subr.bf16.mxu1 %v2654_v40  ;;  %v2259_v39 = vcombine.high %v34_v35, %v42_v36  ;;  %v2258_v40 = vcombine.low %v34_v35, %v42_v36  ;;  %v2792_v36 = vld [vmem:[%s3925_s1 + $0x210] ss:$8 sps:$4 sm:$0xff]  }
  0x29   :  { %1986 = vmatprep.subr.bf16.mxu0 %v2656_v41  ;;  %v2731_v41 = vld [vmem:[%s3925_s1 + $0x564] ss:$8 sps:$4 sm:$0xff]  }
  0x2b   :  { %1775 = vmatpush1.bf16.msra.mxu1 %v2658_v42  ;;  %v2726_v42 = vld [vmem:[%s3925_s1 + $0x160] ss:$8 sps:$4 sm:$0xff]  }
  0x2c   :  { %1987 = vmatpush1.bf16.msra.mxu0 %v2659_v43  ;;  %1776 = vmatprep.subr.bf16.mxu1 %v2660_v44  ;;  %v2729_v43 = vld [vmem:[%s3925_s1 + $0x560] ss:$8 sps:$4 sm:$0xff]  }
  0x2d   :  { %1988 = vmatprep.subr.bf16.mxu0 %v2662_v45  ;;  %v3301_v44 = vld [vmem:[%s3926_s0 + $0x8] sm:$0xff] }
  0x2e   :  { %v3306_v45 = vld [vmem:[%s3926_s0 + $0x48] sm:$0xff] }
  0x2f   :  { %1777 = vmatpush1.bf16.msra.mxu1 %v2664_v46  ;;  %v2734_v46 = vld [vmem:[%s3925_s1 + $0x174] ss:$8 sps:$4 sm:$0xff]   ;;  %v2237_v48 = vcombine.high %v3301_v44, %v3306_v45 }
  0x30   :  { %1989 = vmatpush1.bf16.msra.mxu0 %v2665_v47  ;;  %1778 = vmatprep.subr.bf16.mxu1 %v2666_v50  ;;  %v2737_v47 = vld [vmem:[%s3925_s1 + $0x574] ss:$8 sps:$4 sm:$0xff]   ;;  %v3324_v50 = vld [vmem:[%s3926_s0 + $0x68] sm:$0xff] }
  0x31   :  { %1990 = vmatprep.subr.bf16.mxu0 %v2668_v51  ;;  %v2732_v51 = vld [vmem:[%s3925_s1 + $0x170] ss:$8 sps:$4 sm:$0xff]   ;;  %v2245_v53 = vcombine.high %v3319_v49, %v3324_v50 }
  0x33   :  { %1779 = vmatpush1.bf16.msra.mxu1 %v2670_v56  ;;  %v2738_v56 = vld [vmem:[%s3925_s1 + $0x180] ss:$8 sps:$4 sm:$0xff]  }
  0x34   :  { %1991 = vmatpush1.bf16.msra.mxu0 %v2671_v57  ;;  %1780 = vmatprep.subr.bf16.mxu1 %v2672_v58  ;;  %v2741_v57 = vld [vmem:[%s3925_s1 + $0x580] ss:$8 sps:$4 sm:$0xff]   ;;  %v2746_v58 = vld [vmem:[%s3925_s1 + $0x194] ss:$8 sps:$4 sm:$0xff]  }
  0x35   :  { %1992 = vmatprep.subr.bf16.mxu0 %v2674_v59  ;;  %v2749_v59 = vld [vmem:[%s3925_s1 + $0x594] ss:$8 sps:$4 sm:$0xff]  }
  0x37   :  { %1781 = vmatpush1.bf16.msra.mxu1 %v2676_v60  ;;  %v2744_v60 = vld [vmem:[%s3925_s1 + $0x190] ss:$8 sps:$4 sm:$0xff]  }
  0x38   :  { %1993 = vmatpush1.bf16.msra.mxu0 %v2677_v61  ;;  %1782 = vmatprep.subr.bf16.mxu1 %v2678_v62  ;;  %v2747_v61 = vld [vmem:[%s3925_s1 + $0x590] ss:$8 sps:$4 sm:$0xff]   ;;  %v2752_v62 = vld [vmem:[%s3925_s1 + $0x1a4] ss:$8 sps:$4 sm:$0xff]  }
  0x39   :  { %1994 = vmatprep.subr.bf16.mxu0 %v2680_v63  ;;  %v2755_v63 = vld [vmem:[%s3925_s1 + $0x5a4] ss:$8 sps:$4 sm:$0xff]  }
  0x3b   :  { %1783 = vmatpush1.bf16.msra.mxu1 %v2682_v0  ;;  %v2750_v0 = vld [vmem:[%s3925_s1 + $0x1a0] ss:$8 sps:$4 sm:$0xff]  }
  0x3c   :  { %1995 = vmatpush1.bf16.msra.mxu0 %v2683_v1  ;;  %1784 = vmatprep.subr.bf16.mxu1 %v2684_v2  ;;  %v2753_v1 = vld [vmem:[%s3925_s1 + $0x5a0] ss:$8 sps:$4 sm:$0xff]   ;;  %v2758_v2 = vld [vmem:[%s3925_s1 + $0x1b4] ss:$8 sps:$4 sm:$0xff]  }
  0x3d   :  { %1996 = vmatprep.subr.bf16.mxu0 %v2686_v3  ;;  %v2761_v3 = vld [vmem:[%s3925_s1 + $0x5b4] ss:$8 sps:$4 sm:$0xff]  }
  0x3f   :  { %1785 = vmatpush1.bf16.msra.mxu1 %v2688_v4  ;;  %v2756_v4 = vld [vmem:[%s3925_s1 + $0x1b0] ss:$8 sps:$4 sm:$0xff]  }
  0x40   :  { %1997 = vmatpush1.bf16.msra.mxu0 %v2689_v5  ;;  %1807 = vmatprep.subr.bf16.mxu1 %v2692_v6  ;;  %v2759_v5 = vld [vmem:[%s3925_s1 + $0x5b0] ss:$8 sps:$4 sm:$0xff]   ;;  %v2764_v6 = vld [vmem:[%s3925_s1 + $0x1c4] ss:$8 sps:$4 sm:$0xff]  }
  0x41   :  { %2019 = vmatprep.subr.bf16.mxu0 %v2695_v7  ;;  %v2767_v7 = vld [vmem:[%s3925_s1 + $0x5c4] ss:$8 sps:$4 sm:$0xff]  }
  0x42   :  { %1787 = vmatmul.mubr.bf16.vlgmr.msra.gmra.mrb[0].mxu1 %v2234_v8  ;;  %v2762_v8 = vld [vmem:[%s3925_s1 + $0x1c0] ss:$8 sps:$4 sm:$0xff]  }
  0x43   :  { %1999 = vmatmul.mubr.bf16.vlgmr.msra.gmra.mrb[0].mxu0 %v2242_v10  ;;  %1808 = vmatpush1.bf16.msra.mxu1 %v2690_v9  ;;  %v2765_v9 = vld [vmem:[%s3925_s1 + $0x5c0] ss:$8 sps:$4 sm:$0xff]   ;;  %v2770_v10 = vld [vmem:[%s3925_s1 + $0x1d4] ss:$8 sps:$4 sm:$0xff]  }
  0x44   :  { %2020 = vmatpush1.bf16.msra.mxu0 %v2693_v11  ;;  %1809 = vmatprep.subr.bf16.mxu1 %v2698_v12  ;;  %v2773_v11 = vld [vmem:[%s3925_s1 + $0x5d4] ss:$8 sps:$4 sm:$0xff]   ;;  %v2768_v12 = vld [vmem:[%s3925_s1 + $0x1d0] ss:$8 sps:$4 sm:$0xff]  }
  0x45   :  { %2021 = vmatprep.subr.bf16.mxu0 %v2701_v13  ;;  %1796 = vmatprep.mubr.bf16.mxu1 %v2251_v33  ;;  %v2771_v13 = vld [vmem:[%s3925_s1 + $0x5d0] ss:$8 sps:$4 sm:$0xff]   ;;  %v43_v33 = vld [vmem:[%s3926_s0 + $0xe8] sm:$0xff] }
  0x46   :  { %2008 = vmatprep.mubr.bf16.mxu0 %v2259_v39  ;;  %v2803_v39 = vld [vmem:[%s3925_s1 + $0x624] ss:$8 sps:$4 sm:$0xff]  }
  0x47   :  { %1810 = vmatpush1.bf16.msra.mxu1 %v2696_v14  ;;  %v2776_v14 = vld [vmem:[%s3925_s1 + $0x1e4] ss:$8 sps:$4 sm:$0xff]  }
  0x48   :  { %2022 = vmatpush1.bf16.msra.mxu0 %v2699_v15  ;;  %1811 = vmatprep.subr.bf16.mxu1 %v2704_v16  ;;  %v2779_v15 = vld [vmem:[%s3925_s1 + $0x5e4] ss:$8 sps:$4 sm:$0xff]   ;;  %v2774_v16 = vld [vmem:[%s3925_s1 + $0x1e0] ss:$8 sps:$4 sm:$0xff]  }
  0x49   :  { %2023 = vmatprep.subr.bf16.mxu0 %v2707_v17  ;;  %v2777_v17 = vld [vmem:[%s3925_s1 + $0x5e0] ss:$8 sps:$4 sm:$0xff]  }
  0x4a   :  { %1797 = vmatmul.mubr.bf16.gmra.mrb[4].mxu1 %v2250_v37  ;;  %v2795_v37 = vld [vmem:[%s3925_s1 + $0x610] ss:$8 sps:$4 sm:$0xff]  }
  0x4b   :  { %1812 = vmatpush1.bf16.msra.mxu1 %v2702_v18  ;;  %2009 = vmatmul.mubr.bf16.gmra.mrb[4].mxu0 %v2258_v40  ;;  %v2782_v18 = vld [vmem:[%s3925_s1 + $0x1f4] ss:$8 sps:$4 sm:$0xff]   ;;  %v2798_v40 = vld [vmem:[%s3925_s1 + $0x220] ss:$8 sps:$4 sm:$0xff]  }
  0x4c   :  { %2024 = vmatpush1.bf16.msra.mxu0 %v2705_v19  ;;  %1813 = vmatprep.subr.bf16.mxu1 %v2710_v20  ;;  %v2785_v19 = vld [vmem:[%s3925_s1 + $0x5f4] ss:$8 sps:$4 sm:$0xff]   ;;  %v2780_v20 = vld [vmem:[%s3925_s1 + $0x1f0] ss:$8 sps:$4 sm:$0xff]  }
  0x4d   :  { %2025 = vmatprep.subr.bf16.mxu0 %v2713_v21  ;;  %1839 = vmatprep.mubr.bf16.mxu1 %v2237_v48  ;;  %v2783_v21 = vld [vmem:[%s3925_s1 + $0x5f0] ss:$8 sps:$4 sm:$0xff]   ;;  %v2806_v48 = vld [vmem:[%s3925_s1 + $0x234] ss:$8 sps:$4 sm:$0xff]  }
  0x4e   :  { %2051 = vmatprep.mubr.bf16.mxu0 %v2245_v53  ;;  %v2807_v53 = vld [vmem:[%s3925_s1 + $0x630] ss:$8 sps:$4 sm:$0xff]  }
  0x4f   :  { %1814 = vmatpush1.bf16.msra.mxu1 %v2708_v22  ;;  %v2788_v22 = vld [vmem:[%s3925_s1 + $0x204] ss:$8 sps:$4 sm:$0xff]  }
  0x50   :  { %2026 = vmatpush1.bf16.msra.mxu0 %v2711_v23  ;;  %1815 = vmatprep.subr.bf16.mxu1 %v2716_v24  ;;  %v2791_v23 = vld [vmem:[%s3925_s1 + $0x604] ss:$8 sps:$4 sm:$0xff]   ;;  %v2786_v24 = vld [vmem:[%s3925_s1 + $0x200] ss:$8 sps:$4 sm:$0xff]  }
  0x51   :  { %2027 = vmatprep.subr.bf16.mxu0 %v2719_v25  ;;  %v2789_v25 = vld [vmem:[%s3925_s1 + $0x600] ss:$8 sps:$4 sm:$0xff]  }
  0x53   :  { %1816 = vmatpush1.bf16.msra.mxu1 %v2714_v26  ;;  %v31_v26 = vld [vmem:[%s3926_s0 + $0x88] sm:$0xff] }
  0x54   :  { %2028 = vmatpush1.bf16.msra.mxu0 %v2717_v27  ;;  %1817 = vmatprep.subr.bf16.mxu1 %v2722_v28  ;;  %v2236_v27 = vcombine.low %v3301_v44, %v3306_v45  ;;  %v2244_v28 = vcombine.low %v3319_v49, %v3324_v50  ;;  %v3490_v45 = vld [vmem:[%s3926_s0 + $0x50] sm:$0xff] }
  0x55   :  { %2029 = vmatprep.subr.bf16.mxu0 %v2725_v29  ;;  %v39_v29 = vld [vmem:[%s3926_s0 + $0xc8] sm:$0xff]  ;;  %v2809_v49 = vld [vmem:[%s3925_s1 + $0x634] ss:$8 sps:$4 sm:$0xff]  }
  0x57   :  { %1818 = vmatpush1.bf16.msra.mxu1 %v2720_v32  ;;  %v35_v32 = vld [vmem:[%s3926_s0 + $0xa8] sm:$0xff] }
  0x58   :  { %2030 = vmatpush1.bf16.msra.mxu0 %v2723_v34  ;;  %1819 = vmatprep.subr.bf16.mxu1 %v2728_v38  ;;  %v2253_v34 = vcombine.high %v31_v26, %v39_v29  ;;  %v2261_v35 = vcombine.high %v35_v32, %v43_v33  ;;  %v2800_v38 = vld [vmem:[%s3925_s1 + $0x224] ss:$8 sps:$4 sm:$0xff]   ;;  %v2260_v44 = vcombine.low %v35_v32, %v43_v33  ;;  %v2870_v32 = vld [vmem:[%s3925_s1 + $0x2e0] ss:$8 sps:$4 sm:$0xff]  }
  0x59   :  { %2031 = vmatprep.subr.bf16.mxu0 %v2731_v41  ;;  %v2801_v41 = vld [vmem:[%s3925_s1 + $0x620] ss:$8 sps:$4 sm:$0xff]  }
  0x5a   :  { %v2873_v33 = vld [vmem:[%s3925_s1 + $0x6e0] ss:$8 sps:$4 sm:$0xff]  }
  0x5b   :  { %1820 = vmatpush1.bf16.msra.mxu1 %v2726_v42  ;;  %v3485_v42 = vld [vmem:[%s3926_s0 + $0x10] sm:$0xff] }
  0x5c   :  { %2032 = vmatpush1.bf16.msra.mxu0 %v2729_v43  ;;  %1821 = vmatprep.subr.bf16.mxu1 %v2734_v46  ;;  %v2252_v43 = vcombine.low %v31_v26, %v39_v29  ;;  %v3495_v46 = vld [vmem:[%s3926_s0 + $0x30] sm:$0xff]  ;;  %v2239_v50 = vcombine.high %v3485_v42, %v3490_v45 }
  0x5d   :  { %2033 = vmatprep.subr.bf16.mxu0 %v2737_v47  ;;  %v3500_v47 = vld [vmem:[%s3926_s0 + $0x70] sm:$0xff] }
  0x5e   :  { %v2866_v26 = vld [vmem:[%s3925_s1 + $0x2d4] ss:$8 sps:$4 sm:$0xff]   ;;  %v2867_v29 = vld [vmem:[%s3925_s1 + $0x6d0] ss:$8 sps:$4 sm:$0xff]  }
  0x5f   :  { %1822 = vmatpush1.bf16.msra.mxu1 %v2732_v51  ;;  %v2247_v51 = vcombine.high %v3495_v46, %v3500_v47 }
  0x60   :  { %2034 = vmatpush1.bf16.msra.mxu0 %v2735_v52  ;;  %1823 = vmatprep.subr.bf16.mxu1 %v2740_v54  ;;  %v2804_v52 = vld [vmem:[%s3925_s1 + $0x230] ss:$8 sps:$4 sm:$0xff]   ;;  %v2812_v54 = vld [vmem:[%s3925_s1 + $0x244] ss:$8 sps:$4 sm:$0xff]  }
  0x61   :  { %2035 = vmatprep.subr.bf16.mxu0 %v2743_v55  ;;  %v2815_v55 = vld [vmem:[%s3925_s1 + $0x644] ss:$8 sps:$4 sm:$0xff]  }
  0x63   :  { %1824 = vmatpush1.bf16.msra.mxu1 %v2738_v56  ;;  %v2810_v56 = vld [vmem:[%s3925_s1 + $0x240] ss:$8 sps:$4 sm:$0xff]  }
  0x64   :  { %2036 = vmatpush1.bf16.msra.mxu0 %v2741_v57  ;;  %1825 = vmatprep.subr.bf16.mxu1 %v2746_v58  ;;  %v2813_v57 = vld [vmem:[%s3925_s1 + $0x640] ss:$8 sps:$4 sm:$0xff]   ;;  %v2818_v58 = vld [vmem:[%s3925_s1 + $0x254] ss:$8 sps:$4 sm:$0xff]  }
  0x65   :  { %2037 = vmatprep.subr.bf16.mxu0 %v2749_v59  ;;  %v2821_v59 = vld [vmem:[%s3925_s1 + $0x654] ss:$8 sps:$4 sm:$0xff]  }
  0x67   :  { %1826 = vmatpush1.bf16.msra.mxu1 %v2744_v60  ;;  %v2816_v60 = vld [vmem:[%s3925_s1 + $0x250] ss:$8 sps:$4 sm:$0xff]  }
  0x68   :  { %2038 = vmatpush1.bf16.msra.mxu0 %v2747_v61  ;;  %1827 = vmatprep.subr.bf16.mxu1 %v2752_v62  ;;  %v2819_v61 = vld [vmem:[%s3925_s1 + $0x650] ss:$8 sps:$4 sm:$0xff]   ;;  %v2824_v62 = vld [vmem:[%s3925_s1 + $0x264] ss:$8 sps:$4 sm:$0xff]  }
  0x69   :  { %2039 = vmatprep.subr.bf16.mxu0 %v2755_v63  ;;  %v2827_v63 = vld [vmem:[%s3925_s1 + $0x664] ss:$8 sps:$4 sm:$0xff]  }
  0x6b   :  { %1828 = vmatpush1.bf16.msra.mxu1 %v2750_v0  ;;  %v2822_v0 = vld [vmem:[%s3925_s1 + $0x260] ss:$8 sps:$4 sm:$0xff]  }
  0x6c   :  { %2040 = vmatpush1.bf16.msra.mxu0 %v2753_v1  ;;  %1829 = vmatprep.subr.bf16.mxu1 %v2758_v2  ;;  %v2825_v1 = vld [vmem:[%s3925_s1 + $0x660] ss:$8 sps:$4 sm:$0xff]   ;;  %v2830_v2 = vld [vmem:[%s3925_s1 + $0x274] ss:$8 sps:$4 sm:$0xff]  }
  0x6d   :  { %2041 = vmatprep.subr.bf16.mxu0 %v2761_v3  ;;  %v2833_v3 = vld [vmem:[%s3925_s1 + $0x674] ss:$8 sps:$4 sm:$0xff]  }
  0x6f   :  { %1830 = vmatpush1.bf16.msra.mxu1 %v2756_v4  ;;  %v2828_v4 = vld [vmem:[%s3925_s1 + $0x270] ss:$8 sps:$4 sm:$0xff]  }
  0x70   :  { %2042 = vmatpush1.bf16.msra.mxu0 %v2759_v5  ;;  %1831 = vmatprep.subr.bf16.mxu1 %v2764_v6  ;;  %v2831_v5 = vld [vmem:[%s3925_s1 + $0x670] ss:$8 sps:$4 sm:$0xff]   ;;  %v2836_v6 = vld [vmem:[%s3925_s1 + $0x284] ss:$8 sps:$4 sm:$0xff]  }
  0x71   :  { %2043 = vmatprep.subr.bf16.mxu0 %v2767_v7  ;;  %v2839_v7 = vld [vmem:[%s3925_s1 + $0x684] ss:$8 sps:$4 sm:$0xff]  }
  0x73   :  { %1832 = vmatpush1.bf16.msra.mxu1 %v2762_v8  ;;  %v2834_v8 = vld [vmem:[%s3925_s1 + $0x280] ss:$8 sps:$4 sm:$0xff]  }
  0x74   :  { %2044 = vmatpush1.bf16.msra.mxu0 %v2765_v9  ;;  %1833 = vmatprep.subr.bf16.mxu1 %v2770_v10  ;;  %v2837_v9 = vld [vmem:[%s3925_s1 + $0x680] ss:$8 sps:$4 sm:$0xff]   ;;  %v2842_v10 = vld [vmem:[%s3925_s1 + $0x294] ss:$8 sps:$4 sm:$0xff]  }
  0x75   :  { %2045 = vmatprep.subr.bf16.mxu0 %v2773_v11  ;;  %v2845_v11 = vld [vmem:[%s3925_s1 + $0x694] ss:$8 sps:$4 sm:$0xff]  }
  0x77   :  { %1834 = vmatpush1.bf16.msra.mxu1 %v2768_v12  ;;  %v2840_v12 = vld [vmem:[%s3925_s1 + $0x290] ss:$8 sps:$4 sm:$0xff]  }
  0x78   :  { %2046 = vmatpush1.bf16.msra.mxu0 %v2771_v13  ;;  %1835 = vmatprep.subr.bf16.mxu1 %v2776_v14  ;;  %v2843_v13 = vld [vmem:[%s3925_s1 + $0x690] ss:$8 sps:$4 sm:$0xff]   ;;  %v2848_v14 = vld [vmem:[%s3925_s1 + $0x2a4] ss:$8 sps:$4 sm:$0xff]  }
  0x79   :  { %2047 = vmatprep.subr.bf16.mxu0 %v2779_v15  ;;  %v2851_v15 = vld [vmem:[%s3925_s1 + $0x6a4] ss:$8 sps:$4 sm:$0xff]  }
  0x7b   :  { %1836 = vmatpush1.bf16.msra.mxu1 %v2774_v16  ;;  %v2846_v16 = vld [vmem:[%s3925_s1 + $0x2a0] ss:$8 sps:$4 sm:$0xff]  }
  0x7c   :  { %2048 = vmatpush1.bf16.msra.mxu0 %v2777_v17  ;;  %1837 = vmatprep.subr.bf16.mxu1 %v2782_v18  ;;  %v2849_v17 = vld [vmem:[%s3925_s1 + $0x6a0] ss:$8 sps:$4 sm:$0xff]   ;;  %v2854_v18 = vld [vmem:[%s3925_s1 + $0x2b4] ss:$8 sps:$4 sm:$0xff]  }
  0x7d   :  { %2049 = vmatprep.subr.bf16.mxu0 %v2785_v19  ;;  %v2857_v19 = vld [vmem:[%s3925_s1 + $0x6b4] ss:$8 sps:$4 sm:$0xff]  }
  0x7f   :  { %1838 = vmatpush1.bf16.msra.mxu1 %v2780_v20  ;;  %v2852_v20 = vld [vmem:[%s3925_s1 + $0x2b0] ss:$8 sps:$4 sm:$0xff]  }
  0x80   :  { %2050 = vmatpush1.bf16.msra.mxu0 %v2783_v21  ;;  %1860 = vmatprep.subr.bf16.mxu1 %v2788_v22  ;;  %v2855_v21 = vld [vmem:[%s3925_s1 + $0x6b0] ss:$8 sps:$4 sm:$0xff]   ;;  %v2860_v22 = vld [vmem:[%s3925_s1 + $0x2c4] ss:$8 sps:$4 sm:$0xff]  }
  0x81   :  { %2072 = vmatprep.subr.bf16.mxu0 %v2791_v23  ;;  %v2863_v23 = vld [vmem:[%s3925_s1 + $0x6c4] ss:$8 sps:$4 sm:$0xff]  }
  0x82   :  { %1840 = vmatmul.mubr.bf16.vlgmr.msra.gmra.mrb[0].mxu1 %v2236_v27  ;;  %v2869_v27 = vld [vmem:[%s3925_s1 + $0x6d4] ss:$8 sps:$4 sm:$0xff]  }
  0x83   :  { %2052 = vmatmul.mubr.bf16.vlgmr.msra.gmra.mrb[0].mxu0 %v2244_v28  ;;  %1861 = vmatpush1.bf16.msra.mxu1 %v2786_v24  ;;  %v2858_v24 = vld [vmem:[%s3925_s1 + $0x2c0] ss:$8 sps:$4 sm:$0xff]   ;;  %v2864_v28 = vld [vmem:[%s3925_s1 + $0x2d0] ss:$8 sps:$4 sm:$0xff]  }
  0x84   :  { %2073 = vmatpush1.bf16.msra.mxu0 %v2789_v25  ;;  %1862 = vmatprep.subr.bf16.mxu1 %v2794_v30  ;;  %v2861_v25 = vld [vmem:[%s3925_s1 + $0x6c0] ss:$8 sps:$4 sm:$0xff]   ;;  %v2872_v30 = vld [vmem:[%s3925_s1 + $0x2e4] ss:$8 sps:$4 sm:$0xff]  }
  0x85   :  { %2074 = vmatprep.subr.bf16.mxu0 %v2797_v31  ;;  %1849 = vmatprep.mubr.bf16.mxu1 %v2253_v34  ;;  %v2875_v31 = vld [vmem:[%s3925_s1 + $0x6e4] ss:$8 sps:$4 sm:$0xff]   ;;  %v2878_v34 = vld [vmem:[%s3925_s1 + $0x2f4] ss:$8 sps:$4 sm:$0xff]  }
  0x86   :  { %2061 = vmatprep.mubr.bf16.mxu0 %v2261_v35  ;;  %v2881_v35 = vld [vmem:[%s3925_s1 + $0x6f4] ss:$8 sps:$4 sm:$0xff]  }
  0x87   :  { %1863 = vmatpush1.bf16.msra.mxu1 %v2792_v36  ;;  %v2876_v36 = vld [vmem:[%s3925_s1 + $0x2f0] ss:$8 sps:$4 sm:$0xff]  }
  0x88   :  { %2075 = vmatpush1.bf16.msra.mxu0 %v2795_v37  ;;  %1864 = vmatprep.subr.bf16.mxu1 %v2800_v38  ;;  %v2879_v37 = vld [vmem:[%s3925_s1 + $0x6f0] ss:$8 sps:$4 sm:$0xff]   ;;  %v2884_v38 = vld [vmem:[%s3925_s1 + $0x304] ss:$8 sps:$4 sm:$0xff]  }
  0x89   :  { %2076 = vmatprep.subr.bf16.mxu0 %v2803_v39  ;;  %v2887_v39 = vld [vmem:[%s3925_s1 + $0x704] ss:$8 sps:$4 sm:$0xff]  }
  0x8a   :  { %1850 = vmatmul.mubr.bf16.gmra.mrb[4].mxu1 %v2252_v43  ;;  %v2246_v43 = vcombine.low %v3495_v46, %v3500_v47  ;;  %v2890_v46 = vld [vmem:[%s3925_s1 + $0x314] ss:$8 sps:$4 sm:$0xff]  }
  0x8b   :  { %2062 = vmatmul.mubr.bf16.gmra.mrb[4].mxu0 %v2260_v44  ;;  %1865 = vmatpush1.bf16.msra.mxu1 %v2798_v40  ;;  %v32_v40 = vld [vmem:[%s3926_s0 + $0x90] sm:$0xff] }
  0x8c   :  { %2077 = vmatpush1.bf16.msra.mxu0 %v2801_v41  ;;  %1866 = vmatprep.subr.bf16.mxu1 %v2806_v48  ;;  %v2238_v41 = vcombine.low %v3485_v42, %v3490_v45  ;;  %v40_v44 = vld [vmem:[%s3926_s0 + $0xd0] sm:$0xff]  ;;  %v2882_v42 = vld [vmem:[%s3925_s1 + $0x300] ss:$8 sps:$4 sm:$0xff]  }
  0x8d   :  { %2078 = vmatprep.subr.bf16.mxu0 %v2809_v49  ;;  %1892 = vmatprep.mubr.bf16.mxu1 %v2239_v50  ;;  %v36_v48 = vld [vmem:[%s3926_s0 + $0xb0] sm:$0xff]  ;;  %v2885_v45 = vld [vmem:[%s3925_s1 + $0x700] ss:$8 sps:$4 sm:$0xff]   ;;  %v2255_v50 = vcombine.high %v32_v40, %v40_v44 }
  0x8e   :  { %2104 = vmatprep.mubr.bf16.mxu0 %v2247_v51  ;;  %v44_v49 = vld [vmem:[%s3926_s0 + $0xf0] sm:$0xff] }
  0x8f   :  { %1867 = vmatpush1.bf16.msra.mxu1 %v2804_v52  ;;  %v2893_v47 = vld [vmem:[%s3925_s1 + $0x714] ss:$8 sps:$4 sm:$0xff]   ;;  %v2263_v51 = vcombine.high %v36_v48, %v44_v49  ;;  %v2888_v52 = vld [vmem:[%s3925_s1 + $0x310] ss:$8 sps:$4 sm:$0xff]  }
  0x90   :  { %2079 = vmatpush1.bf16.msra.mxu0 %v2807_v53  ;;  %1868 = vmatprep.subr.bf16.mxu1 %v2812_v54  ;;  %v2891_v53 = vld [vmem:[%s3925_s1 + $0x710] ss:$8 sps:$4 sm:$0xff]   ;;  %v2896_v54 = vld [vmem:[%s3925_s1 + $0x324] ss:$8 sps:$4 sm:$0xff]  }
  0x91   :  { %2080 = vmatprep.subr.bf16.mxu0 %v2815_v55  ;;  %v2899_v55 = vld [vmem:[%s3925_s1 + $0x724] ss:$8 sps:$4 sm:$0xff]  }
  0x93   :  { %1869 = vmatpush1.bf16.msra.mxu1 %v2810_v56  ;;  %v3711_v56 = vld [vmem:[%s3926_s0 + $0x18] sm:$0xff] }
  0x94   :  { %2081 = vmatpush1.bf16.msra.mxu0 %v2813_v57  ;;  %1870 = vmatprep.subr.bf16.mxu1 %v2818_v58  ;;  %v2254_v57 = vcombine.low %v32_v40, %v40_v44  ;;  %v2262_v58 = vcombine.low %v36_v48, %v44_v49  ;;  %v2954_v40 = vld [vmem:[%s3925_s1 + $0x3c0] ss:$8 sps:$4 sm:$0xff]   ;;  %v2965_v44 = vld [vmem:[%s3925_s1 + $0x7d4] ss:$8 sps:$4 sm:$0xff]   ;;  %v2960_v48 = vld [vmem:[%s3925_s1 + $0x3d0] ss:$8 sps:$4 sm:$0xff]  }
  0x95   :  { %2082 = vmatprep.subr.bf16.mxu0 %v2821_v59  ;;  %v3716_v59 = vld [vmem:[%s3926_s0 + $0x58] sm:$0xff] }
  0x96   :  { %v2963_v49 = vld [vmem:[%s3925_s1 + $0x7d0] ss:$8 sps:$4 sm:$0xff]  }
  0x97   :  { %1871 = vmatpush1.bf16.msra.mxu1 %v2816_v60  ;;  %v3721_v60 = vld [vmem:[%s3926_s0 + $0x38] sm:$0xff] }
  0x98   :  { %2083 = vmatpush1.bf16.msra.mxu0 %v2819_v61  ;;  %1872 = vmatprep.subr.bf16.mxu1 %v2824_v62  ;;  %v3726_v61 = vld [vmem:[%s3926_s0 + $0x78] sm:$0xff]  ;;  %v2894_v62 = vld [vmem:[%s3925_s1 + $0x320] ss:$8 sps:$4 sm:$0xff]  }
  0x99   :  { %2084 = vmatprep.subr.bf16.mxu0 %v2827_v63  ;;  %v2897_v63 = vld [vmem:[%s3925_s1 + $0x720] ss:$8 sps:$4 sm:$0xff]  }
  0x9b   :  { %1873 = vmatpush1.bf16.msra.mxu1 %v2822_v0  ;;  %v2902_v0 = vld [vmem:[%s3925_s1 + $0x334] ss:$8 sps:$4 sm:$0xff]  }
  0x9c   :  { %2085 = vmatpush1.bf16.msra.mxu0 %v2825_v1  ;;  %1874 = vmatprep.subr.bf16.mxu1 %v2830_v2  ;;  %v2905_v1 = vld [vmem:[%s3925_s1 + $0x734] ss:$8 sps:$4 sm:$0xff]   ;;  %v2241_v2 = vcombine.high %v3711_v56, %v3716_v59 }
  0x9d   :  { %2086 = vmatprep.subr.bf16.mxu0 %v2833_v3  ;;  %v2249_v3 = vcombine.high %v3721_v60, %v3726_v61 }
  0x9f   :  { %1875 = vmatpush1.bf16.msra.mxu1 %v2828_v4  ;;  %v2900_v4 = vld [vmem:[%s3925_s1 + $0x330] ss:$8 sps:$4 sm:$0xff]  }
  0xa0   :  { %2087 = vmatpush1.bf16.msra.mxu0 %v2831_v5  ;;  %1876 = vmatprep.subr.bf16.mxu1 %v2836_v6  ;;  %v2903_v5 = vld [vmem:[%s3925_s1 + $0x730] ss:$8 sps:$4 sm:$0xff]   ;;  %v2908_v6 = vld [vmem:[%s3925_s1 + $0x344] ss:$8 sps:$4 sm:$0xff]  }
  0xa1   :  { %2088 = vmatprep.subr.bf16.mxu0 %v2839_v7  ;;  %v2911_v7 = vld [vmem:[%s3925_s1 + $0x744] ss:$8 sps:$4 sm:$0xff]  }
  0xa3   :  { %1877 = vmatpush1.bf16.msra.mxu1 %v2834_v8  ;;  %v2906_v8 = vld [vmem:[%s3925_s1 + $0x340] ss:$8 sps:$4 sm:$0xff]  }
  0xa4   :  { %2089 = vmatpush1.bf16.msra.mxu0 %v2837_v9  ;;  %1878 = vmatprep.subr.bf16.mxu1 %v2842_v10  ;;  %v2909_v9 = vld [vmem:[%s3925_s1 + $0x740] ss:$8 sps:$4 sm:$0xff]   ;;  %v2914_v10 = vld [vmem:[%s3925_s1 + $0x354] ss:$8 sps:$4 sm:$0xff]  }
  0xa5   :  { %2090 = vmatprep.subr.bf16.mxu0 %v2845_v11  ;;  %v2917_v11 = vld [vmem:[%s3925_s1 + $0x754] ss:$8 sps:$4 sm:$0xff]  }
  0xa7   :  { %1879 = vmatpush1.bf16.msra.mxu1 %v2840_v12  ;;  %v2912_v12 = vld [vmem:[%s3925_s1 + $0x350] ss:$8 sps:$4 sm:$0xff]  }
  0xa8   :  { %2091 = vmatpush1.bf16.msra.mxu0 %v2843_v13  ;;  %1880 = vmatprep.subr.bf16.mxu1 %v2848_v14  ;;  %v2915_v13 = vld [vmem:[%s3925_s1 + $0x750] ss:$8 sps:$4 sm:$0xff]   ;;  %v2920_v14 = vld [vmem:[%s3925_s1 + $0x364] ss:$8 sps:$4 sm:$0xff]  }
  0xa9   :  { %2092 = vmatprep.subr.bf16.mxu0 %v2851_v15  ;;  %v2923_v15 = vld [vmem:[%s3925_s1 + $0x764] ss:$8 sps:$4 sm:$0xff]  }
  0xab   :  { %1881 = vmatpush1.bf16.msra.mxu1 %v2846_v16  ;;  %v2918_v16 = vld [vmem:[%s3925_s1 + $0x360] ss:$8 sps:$4 sm:$0xff]  }
  0xac   :  { %2093 = vmatpush1.bf16.msra.mxu0 %v2849_v17  ;;  %1882 = vmatprep.subr.bf16.mxu1 %v2854_v18  ;;  %v2921_v17 = vld [vmem:[%s3925_s1 + $0x760] ss:$8 sps:$4 sm:$0xff]   ;;  %v2926_v18 = vld [vmem:[%s3925_s1 + $0x374] ss:$8 sps:$4 sm:$0xff]  }
  0xad   :  { %2094 = vmatprep.subr.bf16.mxu0 %v2857_v19  ;;  %v2929_v19 = vld [vmem:[%s3925_s1 + $0x774] ss:$8 sps:$4 sm:$0xff]  }
  0xaf   :  { %1883 = vmatpush1.bf16.msra.mxu1 %v2852_v20  ;;  %v2924_v20 = vld [vmem:[%s3925_s1 + $0x370] ss:$8 sps:$4 sm:$0xff]  }
  0xb0   :  { %2095 = vmatpush1.bf16.msra.mxu0 %v2855_v21  ;;  %1884 = vmatprep.subr.bf16.mxu1 %v2860_v22  ;;  %v2927_v21 = vld [vmem:[%s3925_s1 + $0x770] ss:$8 sps:$4 sm:$0xff]   ;;  %v2932_v22 = vld [vmem:[%s3925_s1 + $0x384] ss:$8 sps:$4 sm:$0xff]  }
  0xb1   :  { %2096 = vmatprep.subr.bf16.mxu0 %v2863_v23  ;;  %v2935_v23 = vld [vmem:[%s3925_s1 + $0x784] ss:$8 sps:$4 sm:$0xff]  }
  0xb3   :  { %1885 = vmatpush1.bf16.msra.mxu1 %v2858_v24  ;;  %v2930_v24 = vld [vmem:[%s3925_s1 + $0x380] ss:$8 sps:$4 sm:$0xff]  }
  0xb4   :  { %2097 = vmatpush1.bf16.msra.mxu0 %v2861_v25  ;;  %1886 = vmatprep.subr.bf16.mxu1 %v2866_v26  ;;  %v2933_v25 = vld [vmem:[%s3925_s1 + $0x780] ss:$8 sps:$4 sm:$0xff]   ;;  %v2938_v26 = vld [vmem:[%s3925_s1 + $0x394] ss:$8 sps:$4 sm:$0xff]  }
  0xb5   :  { %2098 = vmatprep.subr.bf16.mxu0 %v2869_v27  ;;  %v2941_v27 = vld [vmem:[%s3925_s1 + $0x794] ss:$8 sps:$4 sm:$0xff]  }
  0xb7   :  { %1887 = vmatpush1.bf16.msra.mxu1 %v2864_v28  ;;  %v2936_v28 = vld [vmem:[%s3925_s1 + $0x390] ss:$8 sps:$4 sm:$0xff]  }
  0xb8   :  { %2099 = vmatpush1.bf16.msra.mxu0 %v2867_v29  ;;  %1888 = vmatprep.subr.bf16.mxu1 %v2872_v30  ;;  %v2939_v29 = vld [vmem:[%s3925_s1 + $0x790] ss:$8 sps:$4 sm:$0xff]   ;;  %v2944_v30 = vld [vmem:[%s3925_s1 + $0x3a4] ss:$8 sps:$4 sm:$0xff]  }
  0xb9   :  { %2100 = vmatprep.subr.bf16.mxu0 %v2875_v31  ;;  %v2947_v31 = vld [vmem:[%s3925_s1 + $0x7a4] ss:$8 sps:$4 sm:$0xff]  }
  0xbb   :  { %1889 = vmatpush1.bf16.msra.mxu1 %v2870_v32  ;;  %v2942_v32 = vld [vmem:[%s3925_s1 + $0x3a0] ss:$8 sps:$4 sm:$0xff]  }
  0xbc   :  { %2101 = vmatpush1.bf16.msra.mxu0 %v2873_v33  ;;  %1890 = vmatprep.subr.bf16.mxu1 %v2878_v34  ;;  %v2945_v33 = vld [vmem:[%s3925_s1 + $0x7a0] ss:$8 sps:$4 sm:$0xff]   ;;  %v2950_v34 = vld [vmem:[%s3925_s1 + $0x3b4] ss:$8 sps:$4 sm:$0xff]  }
  0xbd   :  { %2102 = vmatprep.subr.bf16.mxu0 %v2881_v35  ;;  %v2953_v35 = vld [vmem:[%s3925_s1 + $0x7b4] ss:$8 sps:$4 sm:$0xff]  }
  0xbf   :  { %1891 = vmatpush1.bf16.msra.mxu1 %v2876_v36  ;;  %v2948_v36 = vld [vmem:[%s3925_s1 + $0x3b0] ss:$8 sps:$4 sm:$0xff]  }
  0xc0   :  { %2103 = vmatpush1.bf16.msra.mxu0 %v2879_v37  ;;  %1913 = vmatprep.subr.bf16.mxu1 %v2884_v38  ;;  %v2951_v37 = vld [vmem:[%s3925_s1 + $0x7b0] ss:$8 sps:$4 sm:$0xff]   ;;  %v2956_v38 = vld [vmem:[%s3925_s1 + $0x3c4] ss:$8 sps:$4 sm:$0xff]  }
  0xc1   :  { %2125 = vmatprep.subr.bf16.mxu0 %v2887_v39  ;;  %v2959_v39 = vld [vmem:[%s3925_s1 + $0x7c4] ss:$8 sps:$4 sm:$0xff]  }
  0xc2   :  { %1893 = vmatmul.mubr.bf16.vlgmr.msra.gmra.mrb[0].mxu1 %v2238_v41  ;;  %v2957_v41 = vld [vmem:[%s3925_s1 + $0x7c0] ss:$8 sps:$4 sm:$0xff]  }
  0xc3   :  { %2105 = vmatmul.mubr.bf16.vlgmr.msra.gmra.mrb[0].mxu0 %v2246_v43  ;;  %1914 = vmatpush1.bf16.msra.mxu1 %v2882_v42  ;;  %v2962_v43 = vld [vmem:[%s3925_s1 + $0x3d4] ss:$8 sps:$4 sm:$0xff]   ;;  %v2968_v42 = vld [vmem:[%s3925_s1 + $0x3e4] ss:$8 sps:$4 sm:$0xff]  }
  0xc4   :  { %2126 = vmatpush1.bf16.msra.mxu0 %v2885_v45  ;;  %1915 = vmatprep.subr.bf16.mxu1 %v2890_v46  ;;  %v2971_v45 = vld [vmem:[%s3925_s1 + $0x7e4] ss:$8 sps:$4 sm:$0xff]   ;;  %v2966_v46 = vld [vmem:[%s3925_s1 + $0x3e0] ss:$8 sps:$4 sm:$0xff]  }
  0xc5   :  { %2127 = vmatprep.subr.bf16.mxu0 %v2893_v47  ;;  %1902 = vmatprep.mubr.bf16.mxu1 %v2255_v50  ;;  %v2969_v47 = vld [vmem:[%s3925_s1 + $0x7e0] ss:$8 sps:$4 sm:$0xff]   ;;  %v2974_v50 = vld [vmem:[%s3925_s1 + $0x3f4] ss:$8 sps:$4 sm:$0xff]  }
  0xc6   :  { %2114 = vmatprep.mubr.bf16.mxu0 %v2263_v51  ;;  %v2977_v51 = vld [vmem:[%s3925_s1 + $0x7f4] ss:$8 sps:$4 sm:$0xff]  }
  0xc7   :  { %1916 = vmatpush1.bf16.msra.mxu1 %v2888_v52  ;;  %v2972_v52 = vld [vmem:[%s3925_s1 + $0x3f0] ss:$8 sps:$4 sm:$0xff]  }
  0xc8   :  { %2128 = vmatpush1.bf16.msra.mxu0 %v2891_v53  ;;  %1917 = vmatprep.subr.bf16.mxu1 %v2896_v54  ;;  %v2975_v53 = vld [vmem:[%s3925_s1 + $0x7f0] ss:$8 sps:$4 sm:$0xff]  }
  0xc9   :  { %2129 = vmatprep.subr.bf16.mxu0 %v2899_v55  ;;  %v33_v54 = vld [vmem:[%s3926_s0 + $0x98] sm:$0xff] }
  0xca   :  { %1903 = vmatmul.mubr.bf16.gmra.mrb[4].mxu1 %v2254_v57  ;;  %v41_v55 = vld [vmem:[%s3926_s0 + $0xd8] sm:$0xff] }
  0xcb   :  { %2115 = vmatmul.mubr.bf16.gmra.mrb[4].mxu0 %v2262_v58  ;;  %1918 = vmatpush1.bf16.msra.mxu1 %v2894_v62  ;;  %v37_v57 = vld [vmem:[%s3926_s0 + $0xb8] sm:$0xff]  ;;  %v2240_v62 = vcombine.low %v3711_v56, %v3716_v59  ;;  %v302_v56 = vld [vmem:[%s3927_s2] sm:$0x3] }
  0xcc   :  { %2130 = vmatpush1.bf16.msra.mxu0 %v2897_v63  ;;  %1919 = vmatprep.subr.bf16.mxu1 %v2902_v0  ;;  %v45_v58 = vld [vmem:[%s3926_s0 + $0xf8] sm:$0xff]  ;;  %v2248_v63 = vcombine.low %v3721_v60, %v3726_v61  ;;  %v2257_v0 = vcombine.high %v33_v54, %v41_v55 }
  0xcd   :  { %2131 = vmatprep.subr.bf16.mxu0 %v2905_v1  ;;  %1945 = vmatprep.mubr.bf16.mxu1 %v2241_v2  ;;  %v2265_v1 = vcombine.high %v37_v57, %v45_v58  ;;  %v2256_v2 = vcombine.low %v33_v54, %v41_v55 }
  0xce   :  { %2157 = vmatprep.mubr.bf16.mxu0 %v2249_v3  ;;  %v2264_v3 = vcombine.low %v37_v57, %v45_v58 }
  0xcf   :  { %1920 = vmatpush1.bf16.msra.mxu1 %v2900_v4  ;;  %v304_v4 = vlaneseq }
  0xd0   :  { %2132 = vmatpush1.bf16.msra.mxu0 %v2903_v5  ;;  %1921 = vmatprep.subr.bf16.mxu1 %v2908_v6 }
  0xd1   :  { %2133 = vmatprep.subr.bf16.mxu0 %v2911_v7  ;;  %v305_v5 = vshrl.u32 %v304_v4, 7 }
  0xd3   :  { %1922 = vmatpush1.bf16.msra.mxu1 %v2906_v8  ;;  %v306_v6 = vsub.s32 0, %v305_v5  ;;  %v310_v59 = vsub.s32 1, %v305_v5 }
  0xd4   :  { %2134 = vmatpush1.bf16.msra.mxu0 %v2909_v9  ;;  %1923 = vmatprep.subr.bf16.mxu1 %v2914_v10 }
  0xd5   :  { %2135 = vmatprep.subr.bf16.mxu0 %v2917_v11  ;;  %v307_v60 = vrot.slane %v302_v56, %v306_v6  ;;  %v311_v61 = vrot.slane %v302_v56, %v310_v59 }
  0xd7   :  { %1924 = vmatpush1.bf16.msra.mxu1 %v2912_v12 }
  0xd8   :  { %2136 = vmatpush1.bf16.msra.mxu0 %v2915_v13  ;;  %1925 = vmatprep.subr.bf16.mxu1 %v2920_v14 }
  0xd9   :  { %2137 = vmatprep.subr.bf16.mxu0 %v2923_v15 }
  0xdb   :  { %1926 = vmatpush1.bf16.msra.mxu1 %v2918_v16 }
  0xdc   :  { %2138 = vmatpush1.bf16.msra.mxu0 %v2921_v17  ;;  %1927 = vmatprep.subr.bf16.mxu1 %v2926_v18 }
  0xdd   :  { %2139 = vmatprep.subr.bf16.mxu0 %v2929_v19 }
  0xdf   :  { %1928 = vmatpush1.bf16.msra.mxu1 %v2924_v20 }
  0xe0   :  { %2140 = vmatpush1.bf16.msra.mxu0 %v2927_v21  ;;  %1929 = vmatprep.subr.bf16.mxu1 %v2932_v22 }
  0xe1   :  { %2141 = vmatprep.subr.bf16.mxu0 %v2935_v23 }
  0xe3   :  { %1930 = vmatpush1.bf16.msra.mxu1 %v2930_v24 }
  0xe4   :  { %2142 = vmatpush1.bf16.msra.mxu0 %v2933_v25  ;;  %1931 = vmatprep.subr.bf16.mxu1 %v2938_v26 }
  0xe5   :  { %2143 = vmatprep.subr.bf16.mxu0 %v2941_v27 }
  0xe7   :  { %1932 = vmatpush1.bf16.msra.mxu1 %v2936_v28 }
  0xe8   :  { %2144 = vmatpush1.bf16.msra.mxu0 %v2939_v29  ;;  %1933 = vmatprep.subr.bf16.mxu1 %v2944_v30 }
  0xe9   :  { %2145 = vmatprep.subr.bf16.mxu0 %v2947_v31 }
  0xeb   :  { %1934 = vmatpush1.bf16.msra.mxu1 %v2942_v32 }
  0xec   :  { %2146 = vmatpush1.bf16.msra.mxu0 %v2945_v33  ;;  %1935 = vmatprep.subr.bf16.mxu1 %v2950_v34 }
  0xed   :  { %2147 = vmatprep.subr.bf16.mxu0 %v2953_v35 }
  0xef   :  { %1936 = vmatpush1.bf16.msra.mxu1 %v2948_v36 }
  0xf0   :  { %2148 = vmatpush1.bf16.msra.mxu0 %v2951_v37  ;;  %1937 = vmatprep.subr.bf16.mxu1 %v2956_v38 }
  0xf1   :  { %2149 = vmatprep.subr.bf16.mxu0 %v2959_v39 }
  0xf3   :  { %1938 = vmatpush1.bf16.msra.mxu1 %v2954_v40 }
  0xf4   :  { %2150 = vmatpush1.bf16.msra.mxu0 %v2957_v41  ;;  %1939 = vmatprep.subr.bf16.mxu1 %v2962_v43 }
  0xf5   :  { %2151 = vmatprep.subr.bf16.mxu0 %v2965_v44 }
  0xf7   :  { %1940 = vmatpush1.bf16.msra.mxu1 %v2960_v48 }
  0xf8   :  { %2152 = vmatpush1.bf16.msra.mxu0 %v2963_v49  ;;  %1941 = vmatprep.subr.bf16.mxu1 %v2968_v42 }
  0xf9   :  { %2153 = vmatprep.subr.bf16.mxu0 %v2971_v45 }
  0xfb   :  { %1942 = vmatpush1.bf16.msra.mxu1 %v2966_v46 }
  0xfc   :  { %2154 = vmatpush1.bf16.msra.mxu0 %v2969_v47  ;;  %1943 = vmatprep.subr.bf16.mxu1 %v2974_v50 }
  0xfd   :  { %2155 = vmatprep.subr.bf16.mxu0 %v2977_v51 }
  0xff   :  { %1944 = vmatpush1.bf16.msra.mxu1 %v2972_v52 }
 0x100   :  { %2156 = vmatpush1.bf16.msra.mxu0 %v2975_v53 }
 0x102   :  { %1946 = vmatmul.mubr.bf16.vlgmr.msra.gmra.mrb[0].mxu1 %v2240_v62 }
 0x103   :  { %2158 = vmatmul.mubr.bf16.vlgmr.msra.gmra.mrb[0].mxu0 %v2248_v63  ;;  %1955 = vmatprep.mubr.bf16.mxu1 %v2257_v0 }
 0x104   :  { %2167 = vmatprep.mubr.bf16.mxu0 %v2265_v1 }
 0x10a   :  { %1956 = vmatmul.mubr.bf16.gmra.mrb[4].mxu1 %v2256_v2 }
 0x10b   :  { %2168 = vmatmul.mubr.bf16.gmra.mrb[4].mxu0 %v2264_v3 }
 0x1d5   :  { %v1947_v7 = vpop.f32.mrb[0].mxu1 }
 0x1d6   :  { %v2159_v8 = vpop.f32.mrb[0].mxu0  ;;  %v2530_v9 = vadd.f32 %v1947_v7, %v307_v60  ;;  %v1949_v10 = vpop.f32.mrb[1].mxu1 }
 0x1d7   :  { %v2161_v11 = vpop.f32.mrb[1].mxu0  ;;  %v2532_v12 = vadd.f32 %v1949_v10, %v311_v61  ;;  %v1951_v13 = vpop.f32.mrb[2].mxu1 }
 0x1d8   :  { %v2163_v14 = vpop.f32.mrb[2].mxu0  ;;  %v2531_v15 = vadd.f32 %v2530_v9, %v2159_v8  ;;  %v2534_v16 = vadd.f32 %v1951_v13, %v307_v60  ;;  %v1953_v17 = vpop.f32.mrb[3].mxu1 }
 0x1d9   :  { %v2165_v18 = vpop.f32.mrb[3].mxu0  ;;  %v2533_v19 = vadd.f32 %v2532_v12, %v2161_v11  ;;  %v2536_v20 = vadd.f32 %v1953_v17, %v311_v61 }
 0x1da   :  { %vm2178_vm0 = vcmp.ge.f32.partialorder %v2531_v15, 0.0  ;;  %v2186_v21 = vmul.f32 0.2, %v2531_v15  ;;  %v2535_v22 = vadd.f32 %v2534_v16, %v2163_v14 }
 0x1db   :  { %vm2179_vm1 = vcmp.ge.f32.partialorder %v2533_v19, 0.0  ;;  %v2187_v23 = vmul.f32 0.2, %v2533_v19  ;;  %v2537_v24 = vadd.f32 %v2536_v20, %v2165_v18 }
 0x1dc   :  { %v2194_v25 = vsel %vm2178_vm0, %v2531_v15, %v2186_v21  ;;  %vm2180_vm2 = vcmp.ge.f32.partialorder %v2535_v22, 0.0  ;;  %v2188_v26 = vmul.f32 0.2, %v2535_v22 }
 0x1dd   :  { %v2195_v27 = vsel %vm2179_vm1, %v2533_v19, %v2187_v23  ;;  %vm2181_vm3 = vcmp.ge.f32.partialorder %v2537_v24, 0.0  ;;  %v2189_v28 = vmul.f32 0.2, %v2537_v24  ;;  %v1957_v29 = vpop.f32.mrb[4].mxu1 }
 0x1de   :  { %v2169_v30 = vpop.f32.mrb[4].mxu0  ;;  %v2526_v31 = vpack.c.bf16 %v2195_v27, %v2194_v25  ;;  %v2196_v32 = vsel %vm2180_vm2, %v2535_v22, %v2188_v26  ;;  %v2538_v33 = vadd.f32 %v1957_v29, %v307_v60  ;;  %v1959_v34 = vpop.f32.mrb[5].mxu1 }
 0x1df   :  { %v2171_v35 = vpop.f32.mrb[5].mxu0  ;;  %v2197_v36 = vsel %vm2181_vm3, %v2537_v24, %v2189_v28  ;;  %v2540_v37 = vadd.f32 %v1959_v34, %v311_v61  ;;  %v1961_v38 = vpop.f32.mrb[6].mxu1 }
 0x1e0   :  { %v2173_v39 = vpop.f32.mrb[6].mxu0  ;;  %2226 = vst [vmem:[%s3928_s3] sm:$0xff] %v2526_v31  ;;  %v2527_v40 = vpack.c.bf16 %v2197_v36, %v2196_v32  ;;  %v2539_v41 = vadd.f32 %v2538_v33, %v2169_v30  ;;  %v2542_v43 = vadd.f32 %v1961_v38, %v307_v60  ;;  %v1963_v44 = vpop.f32.mrb[7].mxu1 }
 0x1e1   :  { %v2175_v48 = vpop.f32.mrb[7].mxu0  ;;  %v2541_v49 = vadd.f32 %v2540_v37, %v2171_v35  ;;  %v2544_v42 = vadd.f32 %v1963_v44, %v311_v61 }
 0x1e2   :  { %2227 = vst [vmem:[%s3928_s3 + $0x8] sm:$0xff] %v2527_v40  ;;  %vm2182_vm4 = vcmp.ge.f32.partialorder %v2539_v41, 0.0  ;;  %v2190_v45 = vmul.f32 0.2, %v2539_v41  ;;  %v2543_v46 = vadd.f32 %v2542_v43, %v2173_v39 }
 0x1e3   :  { %vm2183_vm5 = vcmp.ge.f32.partialorder %v2541_v49, 0.0  ;;  %v2191_v47 = vmul.f32 0.2, %v2541_v49  ;;  %v2545_v50 = vadd.f32 %v2544_v42, %v2175_v48 }
 0x1e4   :  { %v2198_v51 = vsel %vm2182_vm4, %v2539_v41, %v2190_v45  ;;  %vm2184_vm6 = vcmp.ge.f32.partialorder %v2543_v46, 0.0  ;;  %v2192_v52 = vmul.f32 0.2, %v2543_v46 }
 0x1e5   :  { %v2199_v53 = vsel %vm2183_vm5, %v2541_v49, %v2191_v47  ;;  %vm2185_vm7 = vcmp.ge.f32.partialorder %v2545_v50, 0.0  ;;  %v2193_v54 = vmul.f32 0.2, %v2545_v50 }
 0x1e6   :  { %v2528_v55 = vpack.c.bf16 %v2199_v53, %v2198_v51  ;;  %v2200_v57 = vsel %vm2184_vm6, %v2543_v46, %v2192_v52 }
 0x1e7   :  { %v2201_v58 = vsel %vm2185_vm7, %v2545_v50, %v2193_v54 }
 0x1e8   :  { %2228 = vst [vmem:[%s3928_s3 + $0x10] sm:$0xff] %v2528_v55  ;;  %v2529_v62 = vpack.c.bf16 %v2201_v58, %v2200_v57 }
 0x1ea   :  { %2229 = vst [vmem:[%s3928_s3 + $0x18] sm:$0xff] %v2529_v62 }

// kernel: _lambda_.8
= control target key start
LH: loop header
LB: loop body
LE: loop exit
PB: predicated region body
PF: predicated region fallthrough
CT: control target
= control target key end

     0   :  { %s6118_s12 = smov 0   ;;  %s6120_s13 = smov 0   ;;  %s6903_s0 = inlined_call_operand.vmem [shape: bf16[24,4096], index: 0, kind: input, shape index: {}]   ;;  %s6904_s1 = inlined_call_operand.vmem [shape: bf16[4096,512], index: 1, kind: input, shape index: {}]   ;;  %s6905_s2 = inlined_call_operand.vmem [shape: f32[1,512], index: 2, kind: input, shape index: {}]   ;;  %s6906_s3 = inlined_call_operand.vmem [shape: bf16[24,512], index: 3, kind: output, shape index: {}]  }
   0x1   :  { %s6122_s14 = smov 0   ;;  %s6124_s15 = smov 0  }
   0x2   :  { %s6126_s16 = smov 0  }
   0x3 LB: > { %s22_s17 = sadd.s32 1, %s6091_s15  ;;  %p41_p1 = scmp.ne.s32.totalorder %s6083_s13, %s6079_s12  ;;  %s6095_s16 = sphi %s6126_s16, %s13_s16   ;;  %s6091_s15 = sphi %s6124_s15, %s6910_s15   ;;  %s6087_s14 = sphi %s6122_s14, %s6909_s14   ;;  %s6083_s13 = sphi %s6120_s13, %s6908_s13   ;;  %s6079_s12 = sphi %s6118_s12, %s6907_s12  }
   0x4   : > { %p23_p0 = scmp.ge.s32.totalorder %s22_s17, 2  ;;  %p42_p2 = scmp.eq.s32.totalorder %s6095_s16, 0 }
   0x5   : > { %s34_s19 = sadd.s32 1, %s6083_s13  ;;  %p4603_p5 = scmp.ge.s32.totalorder %s6095_s16, 2 }
   0x6   : > { %s6912_s17 = smov (%p23_p0, %s22_s17), 0  ;;  %p43_p3 = por %p42_p2, %p41_p1 }
   0x7   : > { %s30_s18 = ssub.s32 %s6091_s15, %s6912_s17  ;;  %143 = sbr.rel (%p4603_p5) target bundleno = 31 (0x1f), region = 20 }
   0x8   : > { %p32_p4 = scmp.eq.s32.totalorder %s30_s18, 0 }
   0xa   : > { %s6153_s20 = scalar_select %p32_p4, %s6083_s13, %s34_s19  }
   0xe   : > { %146 = sbr.rel (!%p43_p3) target bundleno = 31 (0x1f), region = 24  ;;  %s148_s21 = sand.u32 (%p43_p3), 1, %s6083_s13  }
   0xf   : > { %s5166_s22 = sshll.u32 (%p43_p3), %s6091_s15, 6  ;;  %s5230_s23 = smul.u32 (%p43_p3), 192, %s148_s21 }
  0x10   : > { %s6161_s26 = scalar_lea.vmem (%p43_p3), %s6903_s0, %s5166_s22 }
  0x11   : > { %v169_v0 = vld [vmem:[%s6161_s26] sm:$0xff] (%p43_p3)  ;;  %v171_v1 = vld [vmem:[%s6161_s26 + $0x8] sm:$0xff] (%p43_p3)  ;;  %v173_v2 = vld [vmem:[%s6161_s26 + $0x10] sm:$0xff] (%p43_p3)  ;;  %s6169_s27 = scalar_lea.vmem (%p43_p3), [#allocation3], %s5230_s23 }
  0x12   : > { %v175_v3 = vld [vmem:[%s6161_s26 + $0x18] sm:$0xff] (%p43_p3)  ;;  %v177_v4 = vld [vmem:[%s6161_s26 + $0x20] sm:$0xff] (%p43_p3)  ;;  %v179_v5 = vld [vmem:[%s6161_s26 + $0x28] sm:$0xff] (%p43_p3)  ;;  %170 = vst [vmem:[%s6169_s27] sm:$0xff] (%p43_p3), %v169_v0 }
  0x13   : > { %172 = vst [vmem:[%s6169_s27 + $0x8] sm:$0xff] (%p43_p3), %v171_v1  ;;  %174 = vst [vmem:[%s6169_s27 + $0x10] sm:$0xff] (%p43_p3), %v173_v2  ;;  %v181_v6 = vld [vmem:[%s6161_s26 + $0x30] sm:$0xff] (%p43_p3)  ;;  %v183_v7 = vld [vmem:[%s6161_s26 + $0x38] sm:$0xff] (%p43_p3) }
  0x14   : > { %176 = vst [vmem:[%s6169_s27 + $0x18] sm:$0xff] (%p43_p3), %v175_v3  ;;  %178 = vst [vmem:[%s6169_s27 + $0x20] sm:$0xff] (%p43_p3), %v177_v4  ;;  %v185_v8 = vld [vmem:[%s6161_s26 + $0x80] sm:$0xff] (%p43_p3)  ;;  %v187_v9 = vld [vmem:[%s6161_s26 + $0x88] sm:$0xff] (%p43_p3) }
  0x15   : > { %180 = vst [vmem:[%s6169_s27 + $0x28] sm:$0xff] %v179_v5  ;;  %182 = vst [vmem:[%s6169_s27 + $0x30] sm:$0xff] %v181_v6  ;;  %v189_v10 = vld [vmem:[%s6161_s26 + $0x90] sm:$0xff]  ;;  %v191_v11 = vld [vmem:[%s6161_s26 + $0x98] sm:$0xff] }
  0x16   : > { %184 = vst [vmem:[%s6169_s27 + $0x38] sm:$0xff] %v183_v7  ;;  %186 = vst [vmem:[%s6169_s27 + $0x40] sm:$0xff] %v185_v8  ;;  %v193_v12 = vld [vmem:[%s6161_s26 + $0xa0] sm:$0xff]  ;;  %v195_v13 = vld [vmem:[%s6161_s26 + $0xa8] sm:$0xff] }
  0x17   : > { %188 = vst [vmem:[%s6169_s27 + $0x48] sm:$0xff] %v187_v9  ;;  %190 = vst [vmem:[%s6169_s27 + $0x50] sm:$0xff] %v189_v10  ;;  %v197_v14 = vld [vmem:[%s6161_s26 + $0xb0] sm:$0xff]  ;;  %v199_v15 = vld [vmem:[%s6161_s26 + $0xb8] sm:$0xff] }
  0x18   : > { %192 = vst [vmem:[%s6169_s27 + $0x58] sm:$0xff] %v191_v11  ;;  %194 = vst [vmem:[%s6169_s27 + $0x60] sm:$0xff] %v193_v12  ;;  %v201_v16 = vld [vmem:[%s6161_s26 + $0x100] sm:$0xff]  ;;  %v203_v17 = vld [vmem:[%s6161_s26 + $0x108] sm:$0xff] }
  0x19   : > { %196 = vst [vmem:[%s6169_s27 + $0x68] sm:$0xff] %v195_v13  ;;  %198 = vst [vmem:[%s6169_s27 + $0x70] sm:$0xff] %v197_v14  ;;  %v205_v18 = vld [vmem:[%s6161_s26 + $0x110] sm:$0xff]  ;;  %v207_v19 = vld [vmem:[%s6161_s26 + $0x118] sm:$0xff] }
  0x1a   : > { %200 = vst [vmem:[%s6169_s27 + $0x78] sm:$0xff] %v199_v15  ;;  %202 = vst [vmem:[%s6169_s27 + $0x80] sm:$0xff] %v201_v16  ;;  %v209_v20 = vld [vmem:[%s6161_s26 + $0x120] sm:$0xff]  ;;  %v211_v21 = vld [vmem:[%s6161_s26 + $0x128] sm:$0xff] }
  0x1b   : > { %204 = vst [vmem:[%s6169_s27 + $0x88] sm:$0xff] %v203_v17  ;;  %206 = vst [vmem:[%s6169_s27 + $0x90] sm:$0xff] %v205_v18  ;;  %v213_v22 = vld [vmem:[%s6161_s26 + $0x130] sm:$0xff]  ;;  %v215_v23 = vld [vmem:[%s6161_s26 + $0x138] sm:$0xff] }
  0x1c   : > { %208 = vst [vmem:[%s6169_s27 + $0x98] sm:$0xff] %v207_v19  ;;  %210 = vst [vmem:[%s6169_s27 + $0xa0] sm:$0xff] %v209_v20 }
  0x1d   : > { %212 = vst [vmem:[%s6169_s27 + $0xa8] sm:$0xff] %v211_v21  ;;  %214 = vst [vmem:[%s6169_s27 + $0xb0] sm:$0xff] %v213_v22 }
  0x1e   : > { %216 = vst [vmem:[%s6169_s27 + $0xb8] sm:$0xff] %v215_v23 }
  0x1f PF: > { %p4606_p6 = scmp.ge.s32.totalorder %s6095_s16, 1  ;;  %p231_p7 = scmp.lt.s32.totalorder %s6095_s16, 3 }
  0x21   : > { %p232_p8 = pnand %p4606_p6, %p231_p7 }
  0x22   : > { %s238_s28 = sand.u32 (!%p232_p8), 1, %s6079_s12   ;;  %s4607_s29 = sshll.u32 (!%p232_p8), %s6087_s14, 8 }
  0x23   : > { %235 = sbr.rel (%p232_p8) target bundleno = 805 (0x325), region = 51  ;;  %p271_p9 = scmp.lt.s32.totalorder (!%p232_p8), %s4607_s29, 511 }
  0x24   : > { %s5231_s30 = smul.u32 (!%p232_p8), 192, %s238_s28  ;;  %p4610_p10 = scmp.ne.s32.totalorder (!%p232_p8), %s6087_s14, 0 }
  0x26   : > { %s6222_s8 = scalar_lea.vmem (!%p232_p8), [#allocation3], %s5231_s30 }
  0x2a   : > { %s6914_s29 = smov (!%p271_p9, %s4607_s29), 511  ;;  %287 = sbr.rel (%p4610_p10) target bundleno = 50 (0x32), region = 59 }
  0x2b   : > { %s5167_s4 = sshll.u32 %s6914_s29, 4  ;;  %v6097_v24 = vmov (!%p4610_p10), 0.0  }
  0x2c   : > { %s6220_s7 = scalar_lea.vmem %s6904_s1, %s5167_s4  ;;  %288 = vst [vmem:[#allocation2] sm:$0xff] (!%p4610_p10), %v6097_v24  ;;  %289 = vst [vmem:[#allocation2 + $0x8] sm:$0xff] (!%p4610_p10), %v6097_v24 }
  0x2d   : > { %290 = vst [vmem:[#allocation2 + $0x10] sm:$0xff] (!%p4610_p10), %v6097_v24  ;;  %291 = vst [vmem:[#allocation2 + $0x18] sm:$0xff] (!%p4610_p10), %v6097_v24 }
  0x2e   : > { %292 = vst [vmem:[#allocation2 + $0x20] sm:$0xff] (!%p4610_p10), %v6097_v24  ;;  %293 = vst [vmem:[#allocation2 + $0x28] sm:$0xff] (!%p4610_p10), %v6097_v24 }
  0x2f   : > { %294 = vst [vmem:[#allocation2 + $0x30] sm:$0xff] (!%p4610_p10), %v6097_v24  ;;  %295 = vst [vmem:[#allocation2 + $0x38] sm:$0xff] (!%p4610_p10), %v6097_v24 }
  0x30   : > { %296 = vst [vmem:[#allocation2 + $0x40] sm:$0xff] (!%p4610_p10), %v6097_v24  ;;  %297 = vst [vmem:[#allocation2 + $0x48] sm:$0xff] (!%p4610_p10), %v6097_v24 }
  0x31   : > { %298 = vst [vmem:[#allocation2 + $0x50] sm:$0xff] %v6097_v24  ;;  %299 = vst [vmem:[#allocation2 + $0x58] sm:$0xff] %v6097_v24 }
  0x32 PF: > { %v5273_v25 = vld [vmem:[%s6220_s7 + $0x4] ss:$16 sps:$4 sm:$0xff]   ;;  %v5275_v26 = vld [vmem:[%s6220_s7 + $0xc] ss:$16 sps:$4 sm:$0xff]   ;;  %v5277_v27 = vld [vmem:[%s6220_s7] ss:$16 sps:$4 sm:$0xff]  }
  0x33   : > { %3544 = vmatprep.subr.bf16.mxu0 %v5273_v25  ;;  %v5278_v28 = vld [vmem:[%s6220_s7 + $0x8] ss:$16 sps:$4 sm:$0xff]   ;;  %3952 = vmatprep.subr.bf16.mxu1 %v5275_v26  ;;  %v5279_v29 = vld [vmem:[%s6220_s7 + $0x24] ss:$16 sps:$4 sm:$0xff]   ;;  %v5281_v30 = vld [vmem:[%s6220_s7 + $0x2c] ss:$16 sps:$4 sm:$0xff]  }
  0x34   : > { %3545 = vmatpush1.bf16.msra.mxu0 %v5277_v27  ;;  %3953 = vmatpush1.bf16.msra.mxu1 %v5278_v28  ;;  %v5283_v31 = vld [vmem:[%s6220_s7 + $0x20] ss:$16 sps:$4 sm:$0xff]   ;;  %v5284_v32 = vld [vmem:[%s6220_s7 + $0x28] ss:$16 sps:$4 sm:$0xff]   ;;  %v5285_v33 = vld [vmem:[%s6220_s7 + $0x44] ss:$16 sps:$4 sm:$0xff]  }
  0x35   : > { %3546 = vmatprep.subr.bf16.mxu0 %v5279_v29  ;;  %3954 = vmatprep.subr.bf16.mxu1 %v5281_v30  ;;  %v5287_v34 = vld [vmem:[%s6220_s7 + $0x4c] ss:$16 sps:$4 sm:$0xff]   ;;  %v5289_v35 = vld [vmem:[%s6220_s7 + $0x40] ss:$16 sps:$4 sm:$0xff]   ;;  %v5290_v36 = vld [vmem:[%s6220_s7 + $0x48] ss:$16 sps:$4 sm:$0xff]  }
  0x36   : > { %v5291_v37 = vld [vmem:[%s6220_s7 + $0x64] ss:$16 sps:$4 sm:$0xff]   ;;  %v5293_v38 = vld [vmem:[%s6220_s7 + $0x6c] ss:$16 sps:$4 sm:$0xff]   ;;  %v5295_v39 = vld [vmem:[%s6220_s7 + $0x60] ss:$16 sps:$4 sm:$0xff]  }
  0x37   : > { %v5296_v40 = vld [vmem:[%s6220_s7 + $0x68] ss:$16 sps:$4 sm:$0xff]   ;;  %v5297_v41 = vld [vmem:[%s6220_s7 + $0x84] ss:$16 sps:$4 sm:$0xff]   ;;  %v5299_v42 = vld [vmem:[%s6220_s7 + $0x8c] ss:$16 sps:$4 sm:$0xff]  }
  0x38   : > { %3547 = vmatpush1.bf16.msra.mxu0 %v5283_v31  ;;  %3955 = vmatpush1.bf16.msra.mxu1 %v5284_v32  ;;  %v5301_v43 = vld [vmem:[%s6220_s7 + $0x80] ss:$16 sps:$4 sm:$0xff]   ;;  %v5302_v44 = vld [vmem:[%s6220_s7 + $0x88] ss:$16 sps:$4 sm:$0xff]   ;;  %v5303_v45 = vld [vmem:[%s6220_s7 + $0xa4] ss:$16 sps:$4 sm:$0xff]  }
  0x39   : > { %3548 = vmatprep.subr.bf16.mxu0 %v5285_v33  ;;  %3956 = vmatprep.subr.bf16.mxu1 %v5287_v34  ;;  %v5305_v46 = vld [vmem:[%s6220_s7 + $0xac] ss:$16 sps:$4 sm:$0xff]   ;;  %v5307_v47 = vld [vmem:[%s6220_s7 + $0xa0] ss:$16 sps:$4 sm:$0xff]   ;;  %v5308_v48 = vld [vmem:[%s6220_s7 + $0xa8] ss:$16 sps:$4 sm:$0xff]  }
  0x3a   : > { %v5309_v49 = vld [vmem:[%s6220_s7 + $0xc4] ss:$16 sps:$4 sm:$0xff]   ;;  %v5311_v50 = vld [vmem:[%s6220_s7 + $0xcc] ss:$16 sps:$4 sm:$0xff]   ;;  %v5313_v51 = vld [vmem:[%s6220_s7 + $0xc0] ss:$16 sps:$4 sm:$0xff]  }
  0x3b   : > { %v5314_v52 = vld [vmem:[%s6220_s7 + $0xc8] ss:$16 sps:$4 sm:$0xff]   ;;  %v5315_v53 = vld [vmem:[%s6220_s7 + $0xe4] ss:$16 sps:$4 sm:$0xff]   ;;  %v5317_v54 = vld [vmem:[%s6220_s7 + $0xec] ss:$16 sps:$4 sm:$0xff]  }
  0x3c   : > { %3549 = vmatpush1.bf16.msra.mxu0 %v5289_v35  ;;  %3957 = vmatpush1.bf16.msra.mxu1 %v5290_v36  ;;  %v5319_v55 = vld [vmem:[%s6220_s7 + $0xe0] ss:$16 sps:$4 sm:$0xff]   ;;  %v5320_v56 = vld [vmem:[%s6220_s7 + $0xe8] ss:$16 sps:$4 sm:$0xff]   ;;  %v5321_v57 = vld [vmem:[%s6220_s7 + $0x104] ss:$16 sps:$4 sm:$0xff]  }
  0x3d   : > { %3550 = vmatprep.subr.bf16.mxu0 %v5291_v37  ;;  %3958 = vmatprep.subr.bf16.mxu1 %v5293_v38  ;;  %v5323_v58 = vld [vmem:[%s6220_s7 + $0x10c] ss:$16 sps:$4 sm:$0xff]   ;;  %v5325_v59 = vld [vmem:[%s6220_s7 + $0x100] ss:$16 sps:$4 sm:$0xff]   ;;  %v5326_v60 = vld [vmem:[%s6220_s7 + $0x108] ss:$16 sps:$4 sm:$0xff]  }
  0x3e   : > { %v5327_v61 = vld [vmem:[%s6220_s7 + $0x124] ss:$16 sps:$4 sm:$0xff]   ;;  %v5329_v62 = vld [vmem:[%s6220_s7 + $0x12c] ss:$16 sps:$4 sm:$0xff]   ;;  %v5331_v63 = vld [vmem:[%s6220_s7 + $0x120] ss:$16 sps:$4 sm:$0xff]  }
  0x3f   : > { %v5332_v0 = vld [vmem:[%s6220_s7 + $0x128] ss:$16 sps:$4 sm:$0xff]   ;;  %v5333_v1 = vld [vmem:[%s6220_s7 + $0x144] ss:$16 sps:$4 sm:$0xff]   ;;  %v5335_v2 = vld [vmem:[%s6220_s7 + $0x14c] ss:$16 sps:$4 sm:$0xff]  }
  0x40   : > { %3551 = vmatpush1.bf16.msra.mxu0 %v5295_v39  ;;  %3959 = vmatpush1.bf16.msra.mxu1 %v5296_v40  ;;  %v5337_v3 = vld [vmem:[%s6220_s7 + $0x140] ss:$16 sps:$4 sm:$0xff]   ;;  %v5338_v4 = vld [vmem:[%s6220_s7 + $0x148] ss:$16 sps:$4 sm:$0xff]   ;;  %v5339_v5 = vld [vmem:[%s6220_s7 + $0x164] ss:$16 sps:$4 sm:$0xff]  }
  0x41   : > { %3552 = vmatprep.subr.bf16.mxu0 %v5297_v41  ;;  %3960 = vmatprep.subr.bf16.mxu1 %v5299_v42  ;;  %v5341_v6 = vld [vmem:[%s6220_s7 + $0x16c] ss:$16 sps:$4 sm:$0xff]   ;;  %v312_v7 = vld [vmem:[%s6222_s8] sm:$0xff]  ;;  %v5344_v10 = vld [vmem:[%s6220_s7 + $0x168] ss:$16 sps:$4 sm:$0xff]   ;;  %p5155_p11 = scmp.ne.s32.totalorder %s6087_s14, 1 }
  0x42   : > { %v320_v8 = vld [vmem:[%s6222_s8 + $0x40] sm:$0xff]  ;;  %v5347_v13 = vld [vmem:[%s6220_s7 + $0x18c] ss:$16 sps:$4 sm:$0xff]   ;;  %v5350_v15 = vld [vmem:[%s6220_s7 + $0x188] ss:$16 sps:$4 sm:$0xff]  }
  0x43   : > { %v5343_v9 = vld [vmem:[%s6220_s7 + $0x160] ss:$16 sps:$4 sm:$0xff]   ;;  %v4612_v11 = vcombine.high %v312_v7, %v320_v8  ;;  %v5345_v12 = vld [vmem:[%s6220_s7 + $0x184] ss:$16 sps:$4 sm:$0xff]   ;;  %v5353_v17 = vld [vmem:[%s6220_s7 + $0x1ac] ss:$16 sps:$4 sm:$0xff]   ;;  %v4611_v30 = vcombine.low %v312_v7, %v320_v8 }
  0x44   : > { %3553 = vmatpush1.bf16.msra.mxu0 %v5301_v43  ;;  %3961 = vmatpush1.bf16.msra.mxu1 %v5302_v44  ;;  %v5349_v14 = vld [vmem:[%s6220_s7 + $0x180] ss:$16 sps:$4 sm:$0xff]   ;;  %v5351_v16 = vld [vmem:[%s6220_s7 + $0x1a4] ss:$16 sps:$4 sm:$0xff]   ;;  %v5356_v19 = vld [vmem:[%s6220_s7 + $0x1a8] ss:$16 sps:$4 sm:$0xff]  }
  0x45   : > { %3554 = vmatprep.subr.bf16.mxu0 %v5303_v45  ;;  %3962 = vmatprep.subr.bf16.mxu1 %v5305_v46  ;;  %v5355_v18 = vld [vmem:[%s6220_s7 + $0x1a0] ss:$16 sps:$4 sm:$0xff]   ;;  %v5357_v20 = vld [vmem:[%s6220_s7 + $0x1c4] ss:$16 sps:$4 sm:$0xff]   ;;  %v5359_v21 = vld [vmem:[%s6220_s7 + $0x1cc] ss:$16 sps:$4 sm:$0xff]  }
  0x46   : > { %3576 = vmatprep.mubr.bf16.mxu0 %v4612_v11  ;;  %3984 = vmatprep.mubr.bf16.mxu1 %v4612_v11  ;;  %v5361_v22 = vld [vmem:[%s6220_s7 + $0x1c0] ss:$16 sps:$4 sm:$0xff]   ;;  %v5362_v23 = vld [vmem:[%s6220_s7 + $0x1c8] ss:$16 sps:$4 sm:$0xff]   ;;  %v5363_v24 = vld [vmem:[%s6220_s7 + $0x1e4] ss:$16 sps:$4 sm:$0xff]  }
  0x47   : > { %v5365_v25 = vld [vmem:[%s6220_s7 + $0x1ec] ss:$16 sps:$4 sm:$0xff]   ;;  %v5367_v26 = vld [vmem:[%s6220_s7 + $0x1e0] ss:$16 sps:$4 sm:$0xff]   ;;  %v5368_v27 = vld [vmem:[%s6220_s7 + $0x1e8] ss:$16 sps:$4 sm:$0xff]  }
  0x48   : > { %3555 = vmatpush1.bf16.msra.mxu0 %v5307_v47  ;;  %3963 = vmatpush1.bf16.msra.mxu1 %v5308_v48  ;;  %v5371_v28 = vld [vmem:[%s6220_s7 + $0x204] ss:$16 sps:$4 sm:$0xff]   ;;  %v5374_v29 = vld [vmem:[%s6220_s7 + $0x20c] ss:$16 sps:$4 sm:$0xff]   ;;  %v5369_v31 = vld [vmem:[%s6220_s7 + $0x200] ss:$16 sps:$4 sm:$0xff]  }
  0x49   : > { %3556 = vmatprep.subr.bf16.mxu0 %v5309_v49  ;;  %3964 = vmatprep.subr.bf16.mxu1 %v5311_v50  ;;  %v5372_v32 = vld [vmem:[%s6220_s7 + $0x208] ss:$16 sps:$4 sm:$0xff]   ;;  %v5377_v33 = vld [vmem:[%s6220_s7 + $0x224] ss:$16 sps:$4 sm:$0xff]   ;;  %v5380_v34 = vld [vmem:[%s6220_s7 + $0x22c] ss:$16 sps:$4 sm:$0xff]  }
  0x4a   : > { %v5375_v35 = vld [vmem:[%s6220_s7 + $0x220] ss:$16 sps:$4 sm:$0xff]   ;;  %v5378_v36 = vld [vmem:[%s6220_s7 + $0x228] ss:$16 sps:$4 sm:$0xff]   ;;  %v5383_v37 = vld [vmem:[%s6220_s7 + $0x244] ss:$16 sps:$4 sm:$0xff]  }
  0x4b   : > { %v5386_v38 = vld [vmem:[%s6220_s7 + $0x24c] ss:$16 sps:$4 sm:$0xff]   ;;  %v5381_v39 = vld [vmem:[%s6220_s7 + $0x240] ss:$16 sps:$4 sm:$0xff]   ;;  %v5384_v40 = vld [vmem:[%s6220_s7 + $0x248] ss:$16 sps:$4 sm:$0xff]  }
  0x4c   : > { %3557 = vmatpush1.bf16.msra.mxu0 %v5313_v51  ;;  %3965 = vmatpush1.bf16.msra.mxu1 %v5314_v52  ;;  %v5389_v41 = vld [vmem:[%s6220_s7 + $0x264] ss:$16 sps:$4 sm:$0xff]   ;;  %v5392_v42 = vld [vmem:[%s6220_s7 + $0x26c] ss:$16 sps:$4 sm:$0xff]   ;;  %v5387_v43 = vld [vmem:[%s6220_s7 + $0x260] ss:$16 sps:$4 sm:$0xff]  }
  0x4d   : > { %3558 = vmatprep.subr.bf16.mxu0 %v5315_v53  ;;  %3966 = vmatprep.subr.bf16.mxu1 %v5317_v54  ;;  %v5390_v44 = vld [vmem:[%s6220_s7 + $0x268] ss:$16 sps:$4 sm:$0xff]   ;;  %v5395_v45 = vld [vmem:[%s6220_s7 + $0x284] ss:$16 sps:$4 sm:$0xff]   ;;  %v5398_v46 = vld [vmem:[%s6220_s7 + $0x28c] ss:$16 sps:$4 sm:$0xff]  }
  0x4e   : > { %v5393_v47 = vld [vmem:[%s6220_s7 + $0x280] ss:$16 sps:$4 sm:$0xff]   ;;  %v5396_v48 = vld [vmem:[%s6220_s7 + $0x288] ss:$16 sps:$4 sm:$0xff]   ;;  %v5401_v49 = vld [vmem:[%s6220_s7 + $0x2a4] ss:$16 sps:$4 sm:$0xff]  }
  0x4f   : > { %v328_v50 = vld [vmem:[%s6222_s8 + $0x80] sm:$0xff]  ;;  %v5404_v51 = vld [vmem:[%s6220_s7 + $0x2ac] ss:$16 sps:$4 sm:$0xff]  }
  0x50   : > { %3559 = vmatpush1.bf16.msra.mxu0 %v5319_v55  ;;  %3967 = vmatpush1.bf16.msra.mxu1 %v5320_v56  ;;  %v4628_v52 = vcombine.high %v328_v50, %v328_v50  ;;  %v4627_v53 = vcombine.low %v328_v50, %v328_v50  ;;  %v5399_v54 = vld [vmem:[%s6220_s7 + $0x2a0] ss:$16 sps:$4 sm:$0xff]   ;;  %v5402_v55 = vld [vmem:[%s6220_s7 + $0x2a8] ss:$16 sps:$4 sm:$0xff]   ;;  %v5407_v56 = vld [vmem:[%s6220_s7 + $0x2c4] ss:$16 sps:$4 sm:$0xff]  }
  0x51   : > { %3560 = vmatprep.subr.bf16.mxu0 %v5321_v57  ;;  %3968 = vmatprep.subr.bf16.mxu1 %v5323_v58  ;;  %v5410_v57 = vld [vmem:[%s6220_s7 + $0x2cc] ss:$16 sps:$4 sm:$0xff]   ;;  %v5425_v7 = vld [vmem:[%s6220_s7 + $0x324] ss:$16 sps:$4 sm:$0xff]  }
  0x52   : > { %v6319_v58 = vld [vmem:[%s6222_s8 + $0x8] sm:$0xff]  ;;  %v5431_v11 = vld [vmem:[%s6220_s7 + $0x344] ss:$16 sps:$4 sm:$0xff]  }
  0x53   : > { %v5428_v8 = vld [vmem:[%s6220_s7 + $0x32c] ss:$16 sps:$4 sm:$0xff]   ;;  %v6379_v50 = vld [vmem:[%s6222_s8 + $0x10] sm:$0xff] }
  0x54   : > { %3561 = vmatpush1.bf16.msra.mxu0 %v5325_v59  ;;  %3969 = vmatpush1.bf16.msra.mxu1 %v5326_v60  ;;  %v6322_v59 = vld [vmem:[%s6222_s8 + $0x48] sm:$0xff]  ;;  %v5405_v60 = vld [vmem:[%s6220_s7 + $0x2c0] ss:$16 sps:$4 sm:$0xff]  }
  0x55   : > { %3562 = vmatprep.subr.bf16.mxu0 %v5327_v61  ;;  %3970 = vmatprep.subr.bf16.mxu1 %v5329_v62  ;;  %v4614_v61 = vcombine.high %v6319_v58, %v6322_v59  ;;  %v5408_v62 = vld [vmem:[%s6220_s7 + $0x2c8] ss:$16 sps:$4 sm:$0xff]  }
  0x58   : > { %3563 = vmatpush1.bf16.msra.mxu0 %v5331_v63  ;;  %3971 = vmatpush1.bf16.msra.mxu1 %v5332_v0  ;;  %v5413_v63 = vld [vmem:[%s6220_s7 + $0x2e4] ss:$16 sps:$4 sm:$0xff]   ;;  %v5416_v0 = vld [vmem:[%s6220_s7 + $0x2ec] ss:$16 sps:$4 sm:$0xff]  }
  0x59   : > { %3564 = vmatprep.subr.bf16.mxu0 %v5333_v1  ;;  %3972 = vmatprep.subr.bf16.mxu1 %v5335_v2  ;;  %v5411_v1 = vld [vmem:[%s6220_s7 + $0x2e0] ss:$16 sps:$4 sm:$0xff]   ;;  %v5414_v2 = vld [vmem:[%s6220_s7 + $0x2e8] ss:$16 sps:$4 sm:$0xff]  }
  0x5c   : > { %3565 = vmatpush1.bf16.msra.mxu0 %v5337_v3  ;;  %3973 = vmatpush1.bf16.msra.mxu1 %v5338_v4  ;;  %v5419_v3 = vld [vmem:[%s6220_s7 + $0x304] ss:$16 sps:$4 sm:$0xff]   ;;  %v5422_v4 = vld [vmem:[%s6220_s7 + $0x30c] ss:$16 sps:$4 sm:$0xff]  }
  0x5d   : > { %3566 = vmatprep.subr.bf16.mxu0 %v5339_v5  ;;  %3974 = vmatprep.subr.bf16.mxu1 %v5341_v6  ;;  %v5417_v5 = vld [vmem:[%s6220_s7 + $0x300] ss:$16 sps:$4 sm:$0xff]   ;;  %v5420_v6 = vld [vmem:[%s6220_s7 + $0x308] ss:$16 sps:$4 sm:$0xff]  }
  0x60   : > { %3567 = vmatpush1.bf16.msra.mxu0 %v5343_v9  ;;  %3975 = vmatpush1.bf16.msra.mxu1 %v5344_v10  ;;  %v5423_v9 = vld [vmem:[%s6220_s7 + $0x320] ss:$16 sps:$4 sm:$0xff]   ;;  %v5426_v10 = vld [vmem:[%s6220_s7 + $0x328] ss:$16 sps:$4 sm:$0xff]  }
  0x61   : > { %3568 = vmatprep.subr.bf16.mxu0 %v5345_v12  ;;  %3976 = vmatprep.subr.bf16.mxu1 %v5347_v13  ;;  %v5434_v12 = vld [vmem:[%s6220_s7 + $0x34c] ss:$16 sps:$4 sm:$0xff]   ;;  %v5429_v13 = vld [vmem:[%s6220_s7 + $0x340] ss:$16 sps:$4 sm:$0xff]  }
  0x64   : > { %3569 = vmatpush1.bf16.msra.mxu0 %v5349_v14  ;;  %3977 = vmatpush1.bf16.msra.mxu1 %v5350_v15  ;;  %v5432_v14 = vld [vmem:[%s6220_s7 + $0x348] ss:$16 sps:$4 sm:$0xff]   ;;  %v5437_v15 = vld [vmem:[%s6220_s7 + $0x364] ss:$16 sps:$4 sm:$0xff]  }
  0x65   : > { %3570 = vmatprep.subr.bf16.mxu0 %v5351_v16  ;;  %3978 = vmatprep.subr.bf16.mxu1 %v5353_v17  ;;  %v5440_v16 = vld [vmem:[%s6220_s7 + $0x36c] ss:$16 sps:$4 sm:$0xff]   ;;  %v5435_v17 = vld [vmem:[%s6220_s7 + $0x360] ss:$16 sps:$4 sm:$0xff]  }
  0x68   : > { %3571 = vmatpush1.bf16.msra.mxu0 %v5355_v18  ;;  %3979 = vmatpush1.bf16.msra.mxu1 %v5356_v19  ;;  %v5438_v18 = vld [vmem:[%s6220_s7 + $0x368] ss:$16 sps:$4 sm:$0xff]   ;;  %v5443_v19 = vld [vmem:[%s6220_s7 + $0x384] ss:$16 sps:$4 sm:$0xff]  }
  0x69   : > { %3572 = vmatprep.subr.bf16.mxu0 %v5357_v20  ;;  %3980 = vmatprep.subr.bf16.mxu1 %v5359_v21  ;;  %v5446_v20 = vld [vmem:[%s6220_s7 + $0x38c] ss:$16 sps:$4 sm:$0xff]   ;;  %v5441_v21 = vld [vmem:[%s6220_s7 + $0x380] ss:$16 sps:$4 sm:$0xff]  }
  0x6c   : > { %3573 = vmatpush1.bf16.msra.mxu0 %v5361_v22  ;;  %3981 = vmatpush1.bf16.msra.mxu1 %v5362_v23  ;;  %v5444_v22 = vld [vmem:[%s6220_s7 + $0x388] ss:$16 sps:$4 sm:$0xff]   ;;  %v5449_v23 = vld [vmem:[%s6220_s7 + $0x3a4] ss:$16 sps:$4 sm:$0xff]  }
  0x6d   : > { %3574 = vmatprep.subr.bf16.mxu0 %v5363_v24  ;;  %3982 = vmatprep.subr.bf16.mxu1 %v5365_v25  ;;  %v5452_v24 = vld [vmem:[%s6220_s7 + $0x3ac] ss:$16 sps:$4 sm:$0xff]   ;;  %v5447_v25 = vld [vmem:[%s6220_s7 + $0x3a0] ss:$16 sps:$4 sm:$0xff]  }
  0x70   : > { %3575 = vmatpush1.bf16.msra.mxu0 %v5367_v26  ;;  %3983 = vmatpush1.bf16.msra.mxu1 %v5368_v27  ;;  %v5450_v26 = vld [vmem:[%s6220_s7 + $0x3a8] ss:$16 sps:$4 sm:$0xff]   ;;  %v5457_v27 = vld [vmem:[%s6220_s7 + $0x3c4] ss:$16 sps:$4 sm:$0xff]  }
  0x71   : > { %3595 = vmatprep.subr.bf16.mxu0 %v5371_v28  ;;  %4003 = vmatprep.subr.bf16.mxu1 %v5374_v29  ;;  %v5460_v28 = vld [vmem:[%s6220_s7 + $0x3cc] ss:$16 sps:$4 sm:$0xff]   ;;  %v5455_v29 = vld [vmem:[%s6220_s7 + $0x3c0] ss:$16 sps:$4 sm:$0xff]  }
  0x73   : > { %3577 = vmatmul.mubr.bf16.vlgmr.msra.gmra.mrb[0].mxu0 %v4611_v30  ;;  %3985 = vmatmul.mubr.bf16.vlgmr.msra.gmra.mrb[0].mxu1 %v4611_v30  ;;  %v5458_v30 = vld [vmem:[%s6220_s7 + $0x3c8] ss:$16 sps:$4 sm:$0xff]  }
  0x74   : > { %3596 = vmatpush1.bf16.msra.mxu0 %v5369_v31  ;;  %4004 = vmatpush1.bf16.msra.mxu1 %v5372_v32  ;;  %v5463_v31 = vld [vmem:[%s6220_s7 + $0x3e4] ss:$16 sps:$4 sm:$0xff]   ;;  %v5466_v32 = vld [vmem:[%s6220_s7 + $0x3ec] ss:$16 sps:$4 sm:$0xff]  }
  0x75   : > { %3597 = vmatprep.subr.bf16.mxu0 %v5377_v33  ;;  %4005 = vmatprep.subr.bf16.mxu1 %v5380_v34  ;;  %v5461_v33 = vld [vmem:[%s6220_s7 + $0x3e0] ss:$16 sps:$4 sm:$0xff]   ;;  %v5464_v34 = vld [vmem:[%s6220_s7 + $0x3e8] ss:$16 sps:$4 sm:$0xff]  }
  0x76   : > { %3586 = vmatprep.mubr.bf16.mxu0 %v4628_v52  ;;  %3994 = vmatprep.mubr.bf16.mxu1 %v4628_v52  ;;  %v5484_v52 = vld [vmem:[%s6220_s7 + $0x448] ss:$16 sps:$4 sm:$0xff]  }
  0x78   : > { %3598 = vmatpush1.bf16.msra.mxu0 %v5375_v35  ;;  %4006 = vmatpush1.bf16.msra.mxu1 %v5378_v36  ;;  %v5469_v35 = vld [vmem:[%s6220_s7 + $0x404] ss:$16 sps:$4 sm:$0xff]   ;;  %v5472_v36 = vld [vmem:[%s6220_s7 + $0x40c] ss:$16 sps:$4 sm:$0xff]  }
  0x79   : > { %3599 = vmatprep.subr.bf16.mxu0 %v5383_v37  ;;  %4007 = vmatprep.subr.bf16.mxu1 %v5386_v38  ;;  %v4613_v37 = vcombine.low %v6319_v58, %v6322_v59  ;;  %v329_v38 = vld [vmem:[%s6222_s8 + $0x88] sm:$0xff]  ;;  %v5495_v58 = vld [vmem:[%s6220_s7 + $0x484] ss:$16 sps:$4 sm:$0xff]  }
  0x7a   : > { %v5498_v59 = vld [vmem:[%s6220_s7 + $0x48c] ss:$16 sps:$4 sm:$0xff]  }
  0x7b   : > { %3587 = vmatmul.mubr.bf16.gmra.mrb[4].mxu0 %v4627_v53  ;;  %3995 = vmatmul.mubr.bf16.gmra.mrb[4].mxu1 %v4627_v53  ;;  %v5489_v53 = vld [vmem:[%s6220_s7 + $0x464] ss:$16 sps:$4 sm:$0xff]  }
  0x7c   : > { %3600 = vmatpush1.bf16.msra.mxu0 %v5381_v39  ;;  %4008 = vmatpush1.bf16.msra.mxu1 %v5384_v40  ;;  %v5467_v39 = vld [vmem:[%s6220_s7 + $0x400] ss:$16 sps:$4 sm:$0xff]   ;;  %v5470_v40 = vld [vmem:[%s6220_s7 + $0x408] ss:$16 sps:$4 sm:$0xff]  }
  0x7d   : > { %3601 = vmatprep.subr.bf16.mxu0 %v5389_v41  ;;  %4009 = vmatprep.subr.bf16.mxu1 %v5392_v42  ;;  %v5475_v41 = vld [vmem:[%s6220_s7 + $0x424] ss:$16 sps:$4 sm:$0xff]   ;;  %v5478_v42 = vld [vmem:[%s6220_s7 + $0x42c] ss:$16 sps:$4 sm:$0xff]  }
  0x7e   : > { %3627 = vmatprep.mubr.bf16.mxu0 %v4614_v61  ;;  %4035 = vmatprep.mubr.bf16.mxu1 %v4614_v61  ;;  %v5496_v61 = vld [vmem:[%s6220_s7 + $0x488] ss:$16 sps:$4 sm:$0xff]  }
  0x80   : > { %3602 = vmatpush1.bf16.msra.mxu0 %v5387_v43  ;;  %4010 = vmatpush1.bf16.msra.mxu1 %v5390_v44  ;;  %v4630_v43 = vcombine.high %v329_v38, %v329_v38  ;;  %v5473_v44 = vld [vmem:[%s6220_s7 + $0x420] ss:$16 sps:$4 sm:$0xff]  }
  0x81   : > { %3603 = vmatprep.subr.bf16.mxu0 %v5395_v45  ;;  %4011 = vmatprep.subr.bf16.mxu1 %v5398_v46  ;;  %v5476_v45 = vld [vmem:[%s6220_s7 + $0x428] ss:$16 sps:$4 sm:$0xff]   ;;  %v5483_v46 = vld [vmem:[%s6220_s7 + $0x444] ss:$16 sps:$4 sm:$0xff]  }
  0x84   : > { %3604 = vmatpush1.bf16.msra.mxu0 %v5393_v47  ;;  %4012 = vmatpush1.bf16.msra.mxu1 %v5396_v48  ;;  %v5486_v47 = vld [vmem:[%s6220_s7 + $0x44c] ss:$16 sps:$4 sm:$0xff]   ;;  %v5481_v48 = vld [vmem:[%s6220_s7 + $0x440] ss:$16 sps:$4 sm:$0xff]  }
  0x85   : > { %3605 = vmatprep.subr.bf16.mxu0 %v5401_v49  ;;  %4013 = vmatprep.subr.bf16.mxu1 %v5404_v51  ;;  %v4629_v49 = vcombine.low %v329_v38, %v329_v38  ;;  %v6382_v51 = vld [vmem:[%s6222_s8 + $0x50] sm:$0xff] }
  0x86   : > { %v5561_v38 = vld [vmem:[%s6220_s7 + $0x5e4] ss:$16 sps:$4 sm:$0xff]  }
  0x88   : > { %3606 = vmatpush1.bf16.msra.mxu0 %v5399_v54  ;;  %4014 = vmatpush1.bf16.msra.mxu1 %v5402_v55  ;;  %v5492_v54 = vld [vmem:[%s6220_s7 + $0x46c] ss:$16 sps:$4 sm:$0xff]   ;;  %v4616_v55 = vcombine.high %v6379_v50, %v6382_v51 }
  0x89   : > { %3607 = vmatprep.subr.bf16.mxu0 %v5407_v56  ;;  %4015 = vmatprep.subr.bf16.mxu1 %v5410_v57  ;;  %v5487_v56 = vld [vmem:[%s6220_s7 + $0x460] ss:$16 sps:$4 sm:$0xff]   ;;  %v5490_v57 = vld [vmem:[%s6220_s7 + $0x468] ss:$16 sps:$4 sm:$0xff]  }
  0x8c   : > { %3608 = vmatpush1.bf16.msra.mxu0 %v5405_v60  ;;  %4016 = vmatpush1.bf16.msra.mxu1 %v5408_v62  ;;  %v5493_v60 = vld [vmem:[%s6220_s7 + $0x480] ss:$16 sps:$4 sm:$0xff]   ;;  %v5501_v62 = vld [vmem:[%s6220_s7 + $0x4a4] ss:$16 sps:$4 sm:$0xff]  }
  0x8d   : > { %3609 = vmatprep.subr.bf16.mxu0 %v5413_v63  ;;  %4017 = vmatprep.subr.bf16.mxu1 %v5416_v0  ;;  %v5504_v63 = vld [vmem:[%s6220_s7 + $0x4ac] ss:$16 sps:$4 sm:$0xff]   ;;  %v5499_v0 = vld [vmem:[%s6220_s7 + $0x4a0] ss:$16 sps:$4 sm:$0xff]  }
  0x90   : > { %3610 = vmatpush1.bf16.msra.mxu0 %v5411_v1  ;;  %4018 = vmatpush1.bf16.msra.mxu1 %v5414_v2  ;;  %v5502_v1 = vld [vmem:[%s6220_s7 + $0x4a8] ss:$16 sps:$4 sm:$0xff]   ;;  %v5507_v2 = vld [vmem:[%s6220_s7 + $0x4c4] ss:$16 sps:$4 sm:$0xff]  }
  0x91   : > { %3611 = vmatprep.subr.bf16.mxu0 %v5419_v3  ;;  %4019 = vmatprep.subr.bf16.mxu1 %v5422_v4  ;;  %v5510_v3 = vld [vmem:[%s6220_s7 + $0x4cc] ss:$16 sps:$4 sm:$0xff]   ;;  %v5505_v4 = vld [vmem:[%s6220_s7 + $0x4c0] ss:$16 sps:$4 sm:$0xff]  }
  0x94   : > { %3612 = vmatpush1.bf16.msra.mxu0 %v5417_v5  ;;  %4020 = vmatpush1.bf16.msra.mxu1 %v5420_v6  ;;  %v5508_v5 = vld [vmem:[%s6220_s7 + $0x4c8] ss:$16 sps:$4 sm:$0xff]   ;;  %v5513_v6 = vld [vmem:[%s6220_s7 + $0x4e4] ss:$16 sps:$4 sm:$0xff]  }
  0x95   : > { %3613 = vmatprep.subr.bf16.mxu0 %v5425_v7  ;;  %4021 = vmatprep.subr.bf16.mxu1 %v5428_v8  ;;  %v5516_v7 = vld [vmem:[%s6220_s7 + $0x4ec] ss:$16 sps:$4 sm:$0xff]   ;;  %v5511_v8 = vld [vmem:[%s6220_s7 + $0x4e0] ss:$16 sps:$4 sm:$0xff]  }
  0x98   : > { %3614 = vmatpush1.bf16.msra.mxu0 %v5423_v9  ;;  %4022 = vmatpush1.bf16.msra.mxu1 %v5426_v10  ;;  %v5514_v9 = vld [vmem:[%s6220_s7 + $0x4e8] ss:$16 sps:$4 sm:$0xff]   ;;  %v5519_v10 = vld [vmem:[%s6220_s7 + $0x504] ss:$16 sps:$4 sm:$0xff]  }
  0x99   : > { %3615 = vmatprep.subr.bf16.mxu0 %v5431_v11  ;;  %4023 = vmatprep.subr.bf16.mxu1 %v5434_v12  ;;  %v5522_v11 = vld [vmem:[%s6220_s7 + $0x50c] ss:$16 sps:$4 sm:$0xff]   ;;  %v5517_v12 = vld [vmem:[%s6220_s7 + $0x500] ss:$16 sps:$4 sm:$0xff]  }
  0x9c   : > { %3616 = vmatpush1.bf16.msra.mxu0 %v5429_v13  ;;  %4024 = vmatpush1.bf16.msra.mxu1 %v5432_v14  ;;  %v5520_v13 = vld [vmem:[%s6220_s7 + $0x508] ss:$16 sps:$4 sm:$0xff]   ;;  %v5525_v14 = vld [vmem:[%s6220_s7 + $0x524] ss:$16 sps:$4 sm:$0xff]  }
  0x9d   : > { %3617 = vmatprep.subr.bf16.mxu0 %v5437_v15  ;;  %4025 = vmatprep.subr.bf16.mxu1 %v5440_v16  ;;  %v5528_v15 = vld [vmem:[%s6220_s7 + $0x52c] ss:$16 sps:$4 sm:$0xff]   ;;  %v5523_v16 = vld [vmem:[%s6220_s7 + $0x520] ss:$16 sps:$4 sm:$0xff]  }
  0xa0   : > { %3618 = vmatpush1.bf16.msra.mxu0 %v5435_v17  ;;  %4026 = vmatpush1.bf16.msra.mxu1 %v5438_v18  ;;  %v5526_v17 = vld [vmem:[%s6220_s7 + $0x528] ss:$16 sps:$4 sm:$0xff]   ;;  %v5531_v18 = vld [vmem:[%s6220_s7 + $0x544] ss:$16 sps:$4 sm:$0xff]  }
  0xa1   : > { %3619 = vmatprep.subr.bf16.mxu0 %v5443_v19  ;;  %4027 = vmatprep.subr.bf16.mxu1 %v5446_v20  ;;  %v5534_v19 = vld [vmem:[%s6220_s7 + $0x54c] ss:$16 sps:$4 sm:$0xff]   ;;  %v5529_v20 = vld [vmem:[%s6220_s7 + $0x540] ss:$16 sps:$4 sm:$0xff]  }
  0xa4   : > { %3620 = vmatpush1.bf16.msra.mxu0 %v5441_v21  ;;  %4028 = vmatpush1.bf16.msra.mxu1 %v5444_v22  ;;  %v5532_v21 = vld [vmem:[%s6220_s7 + $0x548] ss:$16 sps:$4 sm:$0xff]   ;;  %v5537_v22 = vld [vmem:[%s6220_s7 + $0x564] ss:$16 sps:$4 sm:$0xff]  }
  0xa5   : > { %3621 = vmatprep.subr.bf16.mxu0 %v5449_v23  ;;  %4029 = vmatprep.subr.bf16.mxu1 %v5452_v24  ;;  %v5540_v23 = vld [vmem:[%s6220_s7 + $0x56c] ss:$16 sps:$4 sm:$0xff]   ;;  %v5535_v24 = vld [vmem:[%s6220_s7 + $0x560] ss:$16 sps:$4 sm:$0xff]  }
  0xa8   : > { %3622 = vmatpush1.bf16.msra.mxu0 %v5447_v25  ;;  %4030 = vmatpush1.bf16.msra.mxu1 %v5450_v26  ;;  %v5538_v25 = vld [vmem:[%s6220_s7 + $0x568] ss:$16 sps:$4 sm:$0xff]   ;;  %v5543_v26 = vld [vmem:[%s6220_s7 + $0x584] ss:$16 sps:$4 sm:$0xff]  }
  0xa9   : > { %3623 = vmatprep.subr.bf16.mxu0 %v5457_v27  ;;  %4031 = vmatprep.subr.bf16.mxu1 %v5460_v28  ;;  %v5546_v27 = vld [vmem:[%s6220_s7 + $0x58c] ss:$16 sps:$4 sm:$0xff]   ;;  %v5541_v28 = vld [vmem:[%s6220_s7 + $0x580] ss:$16 sps:$4 sm:$0xff]  }
  0xac   : > { %3624 = vmatpush1.bf16.msra.mxu0 %v5455_v29  ;;  %4032 = vmatpush1.bf16.msra.mxu1 %v5458_v30  ;;  %v5544_v29 = vld [vmem:[%s6220_s7 + $0x588] ss:$16 sps:$4 sm:$0xff]   ;;  %v5549_v30 = vld [vmem:[%s6220_s7 + $0x5a4] ss:$16 sps:$4 sm:$0xff]  }
  0xad   : > { %3625 = vmatprep.subr.bf16.mxu0 %v5463_v31  ;;  %4033 = vmatprep.subr.bf16.mxu1 %v5466_v32  ;;  %v5552_v31 = vld [vmem:[%s6220_s7 + $0x5ac] ss:$16 sps:$4 sm:$0xff]   ;;  %v5547_v32 = vld [vmem:[%s6220_s7 + $0x5a0] ss:$16 sps:$4 sm:$0xff]  }
  0xb0   : > { %3626 = vmatpush1.bf16.msra.mxu0 %v5461_v33  ;;  %4034 = vmatpush1.bf16.msra.mxu1 %v5464_v34  ;;  %v5550_v33 = vld [vmem:[%s6220_s7 + $0x5a8] ss:$16 sps:$4 sm:$0xff]   ;;  %v5555_v34 = vld [vmem:[%s6220_s7 + $0x5c4] ss:$16 sps:$4 sm:$0xff]  }
  0xb1   : > { %3646 = vmatprep.subr.bf16.mxu0 %v5469_v35  ;;  %4054 = vmatprep.subr.bf16.mxu1 %v5472_v36  ;;  %v5558_v35 = vld [vmem:[%s6220_s7 + $0x5cc] ss:$16 sps:$4 sm:$0xff]   ;;  %v5553_v36 = vld [vmem:[%s6220_s7 + $0x5c0] ss:$16 sps:$4 sm:$0xff]  }
  0xb3   : > { %3628 = vmatmul.mubr.bf16.vlgmr.msra.gmra.mrb[0].mxu0 %v4613_v37  ;;  %4036 = vmatmul.mubr.bf16.vlgmr.msra.gmra.mrb[0].mxu1 %v4613_v37  ;;  %v5556_v37 = vld [vmem:[%s6220_s7 + $0x5c8] ss:$16 sps:$4 sm:$0xff]  }
  0xb4   : > { %3647 = vmatpush1.bf16.msra.mxu0 %v5467_v39  ;;  %4055 = vmatpush1.bf16.msra.mxu1 %v5470_v40  ;;  %v5564_v39 = vld [vmem:[%s6220_s7 + $0x5ec] ss:$16 sps:$4 sm:$0xff]   ;;  %v5559_v40 = vld [vmem:[%s6220_s7 + $0x5e0] ss:$16 sps:$4 sm:$0xff]  }
  0xb5   : > { %3648 = vmatprep.subr.bf16.mxu0 %v5475_v41  ;;  %4056 = vmatprep.subr.bf16.mxu1 %v5478_v42  ;;  %v5562_v41 = vld [vmem:[%s6220_s7 + $0x5e8] ss:$16 sps:$4 sm:$0xff]   ;;  %v5567_v42 = vld [vmem:[%s6220_s7 + $0x604] ss:$16 sps:$4 sm:$0xff]  }
  0xb6   : > { %3637 = vmatprep.mubr.bf16.mxu0 %v4630_v43  ;;  %4045 = vmatprep.mubr.bf16.mxu1 %v4630_v43  ;;  %v5570_v43 = vld [vmem:[%s6220_s7 + $0x60c] ss:$16 sps:$4 sm:$0xff]  }
  0xb8   : > { %3649 = vmatpush1.bf16.msra.mxu0 %v5473_v44  ;;  %4057 = vmatpush1.bf16.msra.mxu1 %v5476_v45  ;;  %v5565_v44 = vld [vmem:[%s6220_s7 + $0x600] ss:$16 sps:$4 sm:$0xff]   ;;  %v4615_v45 = vcombine.low %v6379_v50, %v6382_v51  ;;  %v5581_v50 = vld [vmem:[%s6220_s7 + $0x644] ss:$16 sps:$4 sm:$0xff]   ;;  %v5584_v51 = vld [vmem:[%s6220_s7 + $0x64c] ss:$16 sps:$4 sm:$0xff]  }
  0xb9   : > { %3650 = vmatprep.subr.bf16.mxu0 %v5483_v46  ;;  %4058 = vmatprep.subr.bf16.mxu1 %v5486_v47  ;;  %v5568_v46 = vld [vmem:[%s6220_s7 + $0x608] ss:$16 sps:$4 sm:$0xff]   ;;  %v330_v47 = vld [vmem:[%s6222_s8 + $0x90] sm:$0xff] }
  0xbb   : > { %3638 = vmatmul.mubr.bf16.gmra.mrb[8].mxu0 %v4629_v49  ;;  %4046 = vmatmul.mubr.bf16.gmra.mrb[8].mxu1 %v4629_v49  ;;  %v5576_v49 = vld [vmem:[%s6220_s7 + $0x62c] ss:$16 sps:$4 sm:$0xff]  }
  0xbc   : > { %3651 = vmatpush1.bf16.msra.mxu0 %v5481_v48  ;;  %4059 = vmatpush1.bf16.msra.mxu1 %v5484_v52  ;;  %v5573_v48 = vld [vmem:[%s6220_s7 + $0x624] ss:$16 sps:$4 sm:$0xff]   ;;  %v4632_v52 = vcombine.high %v330_v47, %v330_v47 }
  0xbd   : > { %3652 = vmatprep.subr.bf16.mxu0 %v5489_v53  ;;  %4060 = vmatprep.subr.bf16.mxu1 %v5492_v54  ;;  %v5571_v53 = vld [vmem:[%s6220_s7 + $0x620] ss:$16 sps:$4 sm:$0xff]   ;;  %v5574_v54 = vld [vmem:[%s6220_s7 + $0x628] ss:$16 sps:$4 sm:$0xff]  }
  0xbe   : > { %3678 = vmatprep.mubr.bf16.mxu0 %v4616_v55  ;;  %4086 = vmatprep.mubr.bf16.mxu1 %v4616_v55  ;;  %v5579_v55 = vld [vmem:[%s6220_s7 + $0x640] ss:$16 sps:$4 sm:$0xff]  }
  0xc0   : > { %3653 = vmatpush1.bf16.msra.mxu0 %v5487_v56  ;;  %4061 = vmatpush1.bf16.msra.mxu1 %v5490_v57  ;;  %v5582_v56 = vld [vmem:[%s6220_s7 + $0x648] ss:$16 sps:$4 sm:$0xff]   ;;  %v4631_v57 = vcombine.low %v330_v47, %v330_v47  ;;  %v5657_v47 = vld [vmem:[%s6220_s7 + $0x7e0] ss:$16 sps:$4 sm:$0xff]  }
  0xc1   : > { %3654 = vmatprep.subr.bf16.mxu0 %v5495_v58  ;;  %4062 = vmatprep.subr.bf16.mxu1 %v5498_v59  ;;  %v6455_v58 = vld [vmem:[%s6222_s8 + $0x18] sm:$0xff] }
  0xc2   : > { %v6458_v59 = vld [vmem:[%s6222_s8 + $0x58] sm:$0xff] }
  0xc4   : > { %3655 = vmatpush1.bf16.msra.mxu0 %v5493_v60  ;;  %4063 = vmatpush1.bf16.msra.mxu1 %v5496_v61  ;;  %v5587_v60 = vld [vmem:[%s6220_s7 + $0x664] ss:$16 sps:$4 sm:$0xff]   ;;  %v5590_v61 = vld [vmem:[%s6220_s7 + $0x66c] ss:$16 sps:$4 sm:$0xff]  }
  0xc5   : > { %3656 = vmatprep.subr.bf16.mxu0 %v5501_v62  ;;  %4064 = vmatprep.subr.bf16.mxu1 %v5504_v63  ;;  %v4618_v62 = vcombine.high %v6455_v58, %v6458_v59  ;;  %v5585_v63 = vld [vmem:[%s6220_s7 + $0x660] ss:$16 sps:$4 sm:$0xff]  }
  0xc8   : > { %3657 = vmatpush1.bf16.msra.mxu0 %v5499_v0  ;;  %4065 = vmatpush1.bf16.msra.mxu1 %v5502_v1  ;;  %v5588_v0 = vld [vmem:[%s6220_s7 + $0x668] ss:$16 sps:$4 sm:$0xff]   ;;  %v5593_v1 = vld [vmem:[%s6220_s7 + $0x684] ss:$16 sps:$4 sm:$0xff]  }
  0xc9   : > { %3658 = vmatprep.subr.bf16.mxu0 %v5507_v2  ;;  %4066 = vmatprep.subr.bf16.mxu1 %v5510_v3  ;;  %v5596_v2 = vld [vmem:[%s6220_s7 + $0x68c] ss:$16 sps:$4 sm:$0xff]   ;;  %v5591_v3 = vld [vmem:[%s6220_s7 + $0x680] ss:$16 sps:$4 sm:$0xff]  }
  0xcc   : > { %3659 = vmatpush1.bf16.msra.mxu0 %v5505_v4  ;;  %4067 = vmatpush1.bf16.msra.mxu1 %v5508_v5  ;;  %v5594_v4 = vld [vmem:[%s6220_s7 + $0x688] ss:$16 sps:$4 sm:$0xff]   ;;  %v5599_v5 = vld [vmem:[%s6220_s7 + $0x6a4] ss:$16 sps:$4 sm:$0xff]  }
  0xcd   : > { %3660 = vmatprep.subr.bf16.mxu0 %v5513_v6  ;;  %4068 = vmatprep.subr.bf16.mxu1 %v5516_v7  ;;  %v5602_v6 = vld [vmem:[%s6220_s7 + $0x6ac] ss:$16 sps:$4 sm:$0xff]   ;;  %v5597_v7 = vld [vmem:[%s6220_s7 + $0x6a0] ss:$16 sps:$4 sm:$0xff]  }
  0xd0   : > { %3661 = vmatpush1.bf16.msra.mxu0 %v5511_v8  ;;  %4069 = vmatpush1.bf16.msra.mxu1 %v5514_v9  ;;  %v5600_v8 = vld [vmem:[%s6220_s7 + $0x6a8] ss:$16 sps:$4 sm:$0xff]   ;;  %v5605_v9 = vld [vmem:[%s6220_s7 + $0x6c4] ss:$16 sps:$4 sm:$0xff]  }
  0xd1   : > { %3662 = vmatprep.subr.bf16.mxu0 %v5519_v10  ;;  %4070 = vmatprep.subr.bf16.mxu1 %v5522_v11  ;;  %v5608_v10 = vld [vmem:[%s6220_s7 + $0x6cc] ss:$16 sps:$4 sm:$0xff]   ;;  %v5603_v11 = vld [vmem:[%s6220_s7 + $0x6c0] ss:$16 sps:$4 sm:$0xff]  }
  0xd4   : > { %3663 = vmatpush1.bf16.msra.mxu0 %v5517_v12  ;;  %4071 = vmatpush1.bf16.msra.mxu1 %v5520_v13  ;;  %v5606_v12 = vld [vmem:[%s6220_s7 + $0x6c8] ss:$16 sps:$4 sm:$0xff]   ;;  %v5611_v13 = vld [vmem:[%s6220_s7 + $0x6e4] ss:$16 sps:$4 sm:$0xff]  }
  0xd5   : > { %3664 = vmatprep.subr.bf16.mxu0 %v5525_v14  ;;  %4072 = vmatprep.subr.bf16.mxu1 %v5528_v15  ;;  %v5614_v14 = vld [vmem:[%s6220_s7 + $0x6ec] ss:$16 sps:$4 sm:$0xff]   ;;  %v5609_v15 = vld [vmem:[%s6220_s7 + $0x6e0] ss:$16 sps:$4 sm:$0xff]  }
  0xd8   : > { %3665 = vmatpush1.bf16.msra.mxu0 %v5523_v16  ;;  %4073 = vmatpush1.bf16.msra.mxu1 %v5526_v17  ;;  %v5612_v16 = vld [vmem:[%s6220_s7 + $0x6e8] ss:$16 sps:$4 sm:$0xff]   ;;  %v5617_v17 = vld [vmem:[%s6220_s7 + $0x704] ss:$16 sps:$4 sm:$0xff]  }
  0xd9   : > { %3666 = vmatprep.subr.bf16.mxu0 %v5531_v18  ;;  %4074 = vmatprep.subr.bf16.mxu1 %v5534_v19  ;;  %v5620_v18 = vld [vmem:[%s6220_s7 + $0x70c] ss:$16 sps:$4 sm:$0xff]   ;;  %v5615_v19 = vld [vmem:[%s6220_s7 + $0x700] ss:$16 sps:$4 sm:$0xff]  }
  0xdc   : > { %3667 = vmatpush1.bf16.msra.mxu0 %v5529_v20  ;;  %4075 = vmatpush1.bf16.msra.mxu1 %v5532_v21  ;;  %v5618_v20 = vld [vmem:[%s6220_s7 + $0x708] ss:$16 sps:$4 sm:$0xff]   ;;  %v5623_v21 = vld [vmem:[%s6220_s7 + $0x724] ss:$16 sps:$4 sm:$0xff]  }
  0xdd   : > { %3668 = vmatprep.subr.bf16.mxu0 %v5537_v22  ;;  %4076 = vmatprep.subr.bf16.mxu1 %v5540_v23  ;;  %v5626_v22 = vld [vmem:[%s6220_s7 + $0x72c] ss:$16 sps:$4 sm:$0xff]   ;;  %v5621_v23 = vld [vmem:[%s6220_s7 + $0x720] ss:$16 sps:$4 sm:$0xff]  }
  0xe0   : > { %3669 = vmatpush1.bf16.msra.mxu0 %v5535_v24  ;;  %4077 = vmatpush1.bf16.msra.mxu1 %v5538_v25  ;;  %v5624_v24 = vld [vmem:[%s6220_s7 + $0x728] ss:$16 sps:$4 sm:$0xff]   ;;  %v5629_v25 = vld [vmem:[%s6220_s7 + $0x744] ss:$16 sps:$4 sm:$0xff]  }
  0xe1   : > { %3670 = vmatprep.subr.bf16.mxu0 %v5543_v26  ;;  %4078 = vmatprep.subr.bf16.mxu1 %v5546_v27  ;;  %v5632_v26 = vld [vmem:[%s6220_s7 + $0x74c] ss:$16 sps:$4 sm:$0xff]   ;;  %v5627_v27 = vld [vmem:[%s6220_s7 + $0x740] ss:$16 sps:$4 sm:$0xff]  }
  0xe4   : > { %3671 = vmatpush1.bf16.msra.mxu0 %v5541_v28  ;;  %4079 = vmatpush1.bf16.msra.mxu1 %v5544_v29  ;;  %v5630_v28 = vld [vmem:[%s6220_s7 + $0x748] ss:$16 sps:$4 sm:$0xff]   ;;  %v5635_v29 = vld [vmem:[%s6220_s7 + $0x764] ss:$16 sps:$4 sm:$0xff]  }
  0xe5   : > { %3672 = vmatprep.subr.bf16.mxu0 %v5549_v30  ;;  %4080 = vmatprep.subr.bf16.mxu1 %v5552_v31  ;;  %v5638_v30 = vld [vmem:[%s6220_s7 + $0x76c] ss:$16 sps:$4 sm:$0xff]   ;;  %v5633_v31 = vld [vmem:[%s6220_s7 + $0x760] ss:$16 sps:$4 sm:$0xff]  }
  0xe8   : > { %3673 = vmatpush1.bf16.msra.mxu0 %v5547_v32  ;;  %4081 = vmatpush1.bf16.msra.mxu1 %v5550_v33  ;;  %v5636_v32 = vld [vmem:[%s6220_s7 + $0x768] ss:$16 sps:$4 sm:$0xff]   ;;  %v5641_v33 = vld [vmem:[%s6220_s7 + $0x784] ss:$16 sps:$4 sm:$0xff]  }
  0xe9   : > { %3674 = vmatprep.subr.bf16.mxu0 %v5555_v34  ;;  %4082 = vmatprep.subr.bf16.mxu1 %v5558_v35  ;;  %v5644_v34 = vld [vmem:[%s6220_s7 + $0x78c] ss:$16 sps:$4 sm:$0xff]   ;;  %v5639_v35 = vld [vmem:[%s6220_s7 + $0x780] ss:$16 sps:$4 sm:$0xff]  }
  0xec   : > { %3675 = vmatpush1.bf16.msra.mxu0 %v5553_v36  ;;  %4083 = vmatpush1.bf16.msra.mxu1 %v5556_v37  ;;  %v5642_v36 = vld [vmem:[%s6220_s7 + $0x788] ss:$16 sps:$4 sm:$0xff]   ;;  %v5647_v37 = vld [vmem:[%s6220_s7 + $0x7a4] ss:$16 sps:$4 sm:$0xff]  }
  0xed   : > { %3676 = vmatprep.subr.bf16.mxu0 %v5561_v38  ;;  %4084 = vmatprep.subr.bf16.mxu1 %v5564_v39  ;;  %v5650_v38 = vld [vmem:[%s6220_s7 + $0x7ac] ss:$16 sps:$4 sm:$0xff]   ;;  %v5645_v39 = vld [vmem:[%s6220_s7 + $0x7a0] ss:$16 sps:$4 sm:$0xff]  }
  0xf0   : > { %3677 = vmatpush1.bf16.msra.mxu0 %v5559_v40  ;;  %4085 = vmatpush1.bf16.msra.mxu1 %v5562_v41  ;;  %v5648_v40 = vld [vmem:[%s6220_s7 + $0x7a8] ss:$16 sps:$4 sm:$0xff]   ;;  %v5653_v41 = vld [vmem:[%s6220_s7 + $0x7c4] ss:$16 sps:$4 sm:$0xff]  }
  0xf1   : > { %3697 = vmatprep.subr.bf16.mxu0 %v5567_v42  ;;  %4105 = vmatprep.subr.bf16.mxu1 %v5570_v43  ;;  %v5656_v42 = vld [vmem:[%s6220_s7 + $0x7cc] ss:$16 sps:$4 sm:$0xff]   ;;  %v5651_v43 = vld [vmem:[%s6220_s7 + $0x7c0] ss:$16 sps:$4 sm:$0xff]  }
  0xf3   : > { %3679 = vmatmul.mubr.bf16.vlgmr.msra.gmra.mrb[0].mxu0 %v4615_v45  ;;  %4087 = vmatmul.mubr.bf16.vlgmr.msra.gmra.mrb[0].mxu1 %v4615_v45  ;;  %v5659_v45 = vld [vmem:[%s6220_s7 + $0x7e4] ss:$16 sps:$4 sm:$0xff]  }
  0xf4   : > { %3698 = vmatpush1.bf16.msra.mxu0 %v5565_v44  ;;  %4106 = vmatpush1.bf16.msra.mxu1 %v5568_v46  ;;  %v5654_v44 = vld [vmem:[%s6220_s7 + $0x7c8] ss:$16 sps:$4 sm:$0xff]   ;;  %v5662_v46 = vld [vmem:[%s6220_s7 + $0x7ec] ss:$16 sps:$4 sm:$0xff]  }
  0xf5   : > { %3699 = vmatprep.subr.bf16.mxu0 %v5573_v48  ;;  %4107 = vmatprep.subr.bf16.mxu1 %v5576_v49  ;;  %v5660_v48 = vld [vmem:[%s6220_s7 + $0x7e8] ss:$16 sps:$4 sm:$0xff]   ;;  %v5665_v49 = vld [vmem:[%s6220_s7 + $0x804] ss:$16 sps:$4 sm:$0xff]  }
  0xf6   : > { %3688 = vmatprep.mubr.bf16.mxu0 %v4632_v52  ;;  %4096 = vmatprep.mubr.bf16.mxu1 %v4632_v52  ;;  %v5668_v52 = vld [vmem:[%s6220_s7 + $0x80c] ss:$16 sps:$4 sm:$0xff]  }
  0xf8   : > { %3700 = vmatpush1.bf16.msra.mxu0 %v5571_v53  ;;  %4108 = vmatpush1.bf16.msra.mxu1 %v5574_v54  ;;  %v4617_v53 = vcombine.low %v6455_v58, %v6458_v59  ;;  %v5663_v54 = vld [vmem:[%s6220_s7 + $0x800] ss:$16 sps:$4 sm:$0xff]   ;;  %v5672_v59 = vld [vmem:[%s6220_s7 + $0x828] ss:$16 sps:$4 sm:$0xff]  }
  0xf9   : > { %3701 = vmatprep.subr.bf16.mxu0 %v5581_v50  ;;  %4109 = vmatprep.subr.bf16.mxu1 %v5584_v51  ;;  %v331_v50 = vld [vmem:[%s6222_s8 + $0x98] sm:$0xff]  ;;  %v5669_v58 = vld [vmem:[%s6220_s7 + $0x820] ss:$16 sps:$4 sm:$0xff]  }
  0xfa   : > { %v5666_v51 = vld [vmem:[%s6220_s7 + $0x808] ss:$16 sps:$4 sm:$0xff]  }
  0xfb   : > { %3689 = vmatmul.mubr.bf16.gmra.mrb[12].mxu0 %v4631_v57  ;;  %4097 = vmatmul.mubr.bf16.gmra.mrb[12].mxu1 %v4631_v57  ;;  %v4634_v57 = vcombine.high %v331_v50, %v331_v50 }
  0xfc   : > { %3702 = vmatpush1.bf16.msra.mxu0 %v5579_v55  ;;  %4110 = vmatpush1.bf16.msra.mxu1 %v5582_v56  ;;  %v5671_v55 = vld [vmem:[%s6220_s7 + $0x824] ss:$16 sps:$4 sm:$0xff]   ;;  %v5674_v56 = vld [vmem:[%s6220_s7 + $0x82c] ss:$16 sps:$4 sm:$0xff]  }
  0xfd   : > { %3703 = vmatprep.subr.bf16.mxu0 %v5587_v60  ;;  %4111 = vmatprep.subr.bf16.mxu1 %v5590_v61  ;;  %v5679_v60 = vld [vmem:[%s6220_s7 + $0x844] ss:$16 sps:$4 sm:$0xff]   ;;  %v5682_v61 = vld [vmem:[%s6220_s7 + $0x84c] ss:$16 sps:$4 sm:$0xff]  }
  0xfe   : > { %3729 = vmatprep.mubr.bf16.mxu0 %v4618_v62  ;;  %4137 = vmatprep.mubr.bf16.mxu1 %v4618_v62  ;;  %v5677_v62 = vld [vmem:[%s6220_s7 + $0x840] ss:$16 sps:$4 sm:$0xff]  }
 0x100   : > { %3704 = vmatpush1.bf16.msra.mxu0 %v5585_v63  ;;  %4112 = vmatpush1.bf16.msra.mxu1 %v5588_v0  ;;  %v6529_v63 = vld [vmem:[%s6222_s8 + $0x20] sm:$0xff]  ;;  %v4633_v0 = vcombine.low %v331_v50, %v331_v50  ;;  %v5748_v50 = vld [vmem:[%s6220_s7 + $0x9ac] ss:$16 sps:$4 sm:$0xff]  }
 0x101   : > { %3705 = vmatprep.subr.bf16.mxu0 %v5593_v1  ;;  %4113 = vmatprep.subr.bf16.mxu1 %v5596_v2  ;;  %v6532_v1 = vld [vmem:[%s6222_s8 + $0x60] sm:$0xff]  ;;  %v5680_v2 = vld [vmem:[%s6220_s7 + $0x848] ss:$16 sps:$4 sm:$0xff]  }
 0x104   : > { %3706 = vmatpush1.bf16.msra.mxu0 %v5591_v3  ;;  %4114 = vmatpush1.bf16.msra.mxu1 %v5594_v4  ;;  %v5685_v3 = vld [vmem:[%s6220_s7 + $0x864] ss:$16 sps:$4 sm:$0xff]   ;;  %v5688_v4 = vld [vmem:[%s6220_s7 + $0x86c] ss:$16 sps:$4 sm:$0xff]  }
 0x105   : > { %3707 = vmatprep.subr.bf16.mxu0 %v5599_v5  ;;  %4115 = vmatprep.subr.bf16.mxu1 %v5602_v6  ;;  %v4620_v5 = vcombine.high %v6529_v63, %v6532_v1  ;;  %v5683_v6 = vld [vmem:[%s6220_s7 + $0x860] ss:$16 sps:$4 sm:$0xff]  }
 0x108   : > { %3708 = vmatpush1.bf16.msra.mxu0 %v5597_v7  ;;  %4116 = vmatpush1.bf16.msra.mxu1 %v5600_v8  ;;  %v5686_v7 = vld [vmem:[%s6220_s7 + $0x868] ss:$16 sps:$4 sm:$0xff]   ;;  %v5691_v8 = vld [vmem:[%s6220_s7 + $0x884] ss:$16 sps:$4 sm:$0xff]  }
 0x109   : > { %3709 = vmatprep.subr.bf16.mxu0 %v5605_v9  ;;  %4117 = vmatprep.subr.bf16.mxu1 %v5608_v10  ;;  %v5694_v9 = vld [vmem:[%s6220_s7 + $0x88c] ss:$16 sps:$4 sm:$0xff]   ;;  %v5689_v10 = vld [vmem:[%s6220_s7 + $0x880] ss:$16 sps:$4 sm:$0xff]  }
 0x10c   : > { %3710 = vmatpush1.bf16.msra.mxu0 %v5603_v11  ;;  %4118 = vmatpush1.bf16.msra.mxu1 %v5606_v12  ;;  %v5692_v11 = vld [vmem:[%s6220_s7 + $0x888] ss:$16 sps:$4 sm:$0xff]   ;;  %v5697_v12 = vld [vmem:[%s6220_s7 + $0x8a4] ss:$16 sps:$4 sm:$0xff]  }
 0x10d   : > { %3711 = vmatprep.subr.bf16.mxu0 %v5611_v13  ;;  %4119 = vmatprep.subr.bf16.mxu1 %v5614_v14  ;;  %v5700_v13 = vld [vmem:[%s6220_s7 + $0x8ac] ss:$16 sps:$4 sm:$0xff]   ;;  %v5695_v14 = vld [vmem:[%s6220_s7 + $0x8a0] ss:$16 sps:$4 sm:$0xff]  }
 0x110   : > { %3712 = vmatpush1.bf16.msra.mxu0 %v5609_v15  ;;  %4120 = vmatpush1.bf16.msra.mxu1 %v5612_v16  ;;  %v5698_v15 = vld [vmem:[%s6220_s7 + $0x8a8] ss:$16 sps:$4 sm:$0xff]   ;;  %v5703_v16 = vld [vmem:[%s6220_s7 + $0x8c4] ss:$16 sps:$4 sm:$0xff]  }
 0x111   : > { %3713 = vmatprep.subr.bf16.mxu0 %v5617_v17  ;;  %4121 = vmatprep.subr.bf16.mxu1 %v5620_v18  ;;  %v5706_v17 = vld [vmem:[%s6220_s7 + $0x8cc] ss:$16 sps:$4 sm:$0xff]   ;;  %v5701_v18 = vld [vmem:[%s6220_s7 + $0x8c0] ss:$16 sps:$4 sm:$0xff]  }
 0x114   : > { %3714 = vmatpush1.bf16.msra.mxu0 %v5615_v19  ;;  %4122 = vmatpush1.bf16.msra.mxu1 %v5618_v20  ;;  %v5704_v19 = vld [vmem:[%s6220_s7 + $0x8c8] ss:$16 sps:$4 sm:$0xff]   ;;  %v5709_v20 = vld [vmem:[%s6220_s7 + $0x8e4] ss:$16 sps:$4 sm:$0xff]  }
 0x115   : > { %3715 = vmatprep.subr.bf16.mxu0 %v5623_v21  ;;  %4123 = vmatprep.subr.bf16.mxu1 %v5626_v22  ;;  %v5712_v21 = vld [vmem:[%s6220_s7 + $0x8ec] ss:$16 sps:$4 sm:$0xff]   ;;  %v5707_v22 = vld [vmem:[%s6220_s7 + $0x8e0] ss:$16 sps:$4 sm:$0xff]  }
 0x118   : > { %3716 = vmatpush1.bf16.msra.mxu0 %v5621_v23  ;;  %4124 = vmatpush1.bf16.msra.mxu1 %v5624_v24  ;;  %v5710_v23 = vld [vmem:[%s6220_s7 + $0x8e8] ss:$16 sps:$4 sm:$0xff]   ;;  %v5715_v24 = vld [vmem:[%s6220_s7 + $0x904] ss:$16 sps:$4 sm:$0xff]  }
 0x119   : > { %3717 = vmatprep.subr.bf16.mxu0 %v5629_v25  ;;  %4125 = vmatprep.subr.bf16.mxu1 %v5632_v26  ;;  %v5718_v25 = vld [vmem:[%s6220_s7 + $0x90c] ss:$16 sps:$4 sm:$0xff]   ;;  %v5713_v26 = vld [vmem:[%s6220_s7 + $0x900] ss:$16 sps:$4 sm:$0xff]  }
 0x11c   : > { %3718 = vmatpush1.bf16.msra.mxu0 %v5627_v27  ;;  %4126 = vmatpush1.bf16.msra.mxu1 %v5630_v28  ;;  %v5716_v27 = vld [vmem:[%s6220_s7 + $0x908] ss:$16 sps:$4 sm:$0xff]   ;;  %v5721_v28 = vld [vmem:[%s6220_s7 + $0x924] ss:$16 sps:$4 sm:$0xff]  }
 0x11d   : > { %3719 = vmatprep.subr.bf16.mxu0 %v5635_v29  ;;  %4127 = vmatprep.subr.bf16.mxu1 %v5638_v30  ;;  %v5724_v29 = vld [vmem:[%s6220_s7 + $0x92c] ss:$16 sps:$4 sm:$0xff]   ;;  %v5719_v30 = vld [vmem:[%s6220_s7 + $0x920] ss:$16 sps:$4 sm:$0xff]  }
 0x120   : > { %3720 = vmatpush1.bf16.msra.mxu0 %v5633_v31  ;;  %4128 = vmatpush1.bf16.msra.mxu1 %v5636_v32  ;;  %v5722_v31 = vld [vmem:[%s6220_s7 + $0x928] ss:$16 sps:$4 sm:$0xff]   ;;  %v5727_v32 = vld [vmem:[%s6220_s7 + $0x944] ss:$16 sps:$4 sm:$0xff]  }
 0x121   : > { %3721 = vmatprep.subr.bf16.mxu0 %v5641_v33  ;;  %4129 = vmatprep.subr.bf16.mxu1 %v5644_v34  ;;  %v5730_v33 = vld [vmem:[%s6220_s7 + $0x94c] ss:$16 sps:$4 sm:$0xff]   ;;  %v5725_v34 = vld [vmem:[%s6220_s7 + $0x940] ss:$16 sps:$4 sm:$0xff]  }
 0x124   : > { %3722 = vmatpush1.bf16.msra.mxu0 %v5639_v35  ;;  %4130 = vmatpush1.bf16.msra.mxu1 %v5642_v36  ;;  %v5728_v35 = vld [vmem:[%s6220_s7 + $0x948] ss:$16 sps:$4 sm:$0xff]   ;;  %v5733_v36 = vld [vmem:[%s6220_s7 + $0x964] ss:$16 sps:$4 sm:$0xff]  }
 0x125   : > { %3723 = vmatprep.subr.bf16.mxu0 %v5647_v37  ;;  %4131 = vmatprep.subr.bf16.mxu1 %v5650_v38  ;;  %v5736_v37 = vld [vmem:[%s6220_s7 + $0x96c] ss:$16 sps:$4 sm:$0xff]  }
 0x128   : > { %3724 = vmatpush1.bf16.msra.mxu0 %v5645_v39  ;;  %4132 = vmatpush1.bf16.msra.mxu1 %v5648_v40 }
 0x129   : > { %3725 = vmatprep.subr.bf16.mxu0 %v5653_v41  ;;  %4133 = vmatprep.subr.bf16.mxu1 %v5656_v42 }
 0x12c   : > { %3726 = vmatpush1.bf16.msra.mxu0 %v5651_v43  ;;  %4134 = vmatpush1.bf16.msra.mxu1 %v5654_v44  ;;  %v5731_v44 = vld [vmem:[%s6220_s7 + $0x960] ss:$16 sps:$4 sm:$0xff]  }
 0x12d   : > { %3727 = vmatprep.subr.bf16.mxu0 %v5659_v45  ;;  %4135 = vmatprep.subr.bf16.mxu1 %v5662_v46  ;;  %v5734_v45 = vld [vmem:[%s6220_s7 + $0x968] ss:$16 sps:$4 sm:$0xff]  }
 0x130   : > { %3728 = vmatpush1.bf16.msra.mxu0 %v5657_v47  ;;  %4136 = vmatpush1.bf16.msra.mxu1 %v5660_v48  ;;  %v5739_v48 = vld [vmem:[%s6220_s7 + $0x984] ss:$16 sps:$4 sm:$0xff]  }
 0x131   : > { %3748 = vmatprep.subr.bf16.mxu0 %v5665_v49  ;;  %4156 = vmatprep.subr.bf16.mxu1 %v5668_v52  ;;  %v5742_v49 = vld [vmem:[%s6220_s7 + $0x98c] ss:$16 sps:$4 sm:$0xff]   ;;  %v5737_v52 = vld [vmem:[%s6220_s7 + $0x980] ss:$16 sps:$4 sm:$0xff]  }
 0x133   : > { %3730 = vmatmul.mubr.bf16.vlgmr.msra.gmra.mrb[0].mxu0 %v4617_v53  ;;  %4138 = vmatmul.mubr.bf16.vlgmr.msra.gmra.mrb[0].mxu1 %v4617_v53  ;;  %v5740_v53 = vld [vmem:[%s6220_s7 + $0x988] ss:$16 sps:$4 sm:$0xff]  }
 0x134   : > { %3749 = vmatpush1.bf16.msra.mxu0 %v5663_v54  ;;  %4157 = vmatpush1.bf16.msra.mxu1 %v5666_v51  ;;  %v5745_v54 = vld [vmem:[%s6220_s7 + $0x9a4] ss:$16 sps:$4 sm:$0xff]   ;;  %v5743_v51 = vld [vmem:[%s6220_s7 + $0x9a0] ss:$16 sps:$4 sm:$0xff]  }
 0x135   : > { %3750 = vmatprep.subr.bf16.mxu0 %v5671_v55  ;;  %4158 = vmatprep.subr.bf16.mxu1 %v5674_v56  ;;  %v5746_v55 = vld [vmem:[%s6220_s7 + $0x9a8] ss:$16 sps:$4 sm:$0xff]   ;;  %v5751_v56 = vld [vmem:[%s6220_s7 + $0x9c4] ss:$16 sps:$4 sm:$0xff]  }
 0x136   : > { %3739 = vmatprep.mubr.bf16.mxu0 %v4634_v57  ;;  %4147 = vmatprep.mubr.bf16.mxu1 %v4634_v57  ;;  %v5754_v57 = vld [vmem:[%s6220_s7 + $0x9cc] ss:$16 sps:$4 sm:$0xff]  }
 0x138   : > { %3751 = vmatpush1.bf16.msra.mxu0 %v5669_v58  ;;  %4159 = vmatpush1.bf16.msra.mxu1 %v5672_v59  ;;  %v5749_v58 = vld [vmem:[%s6220_s7 + $0x9c0] ss:$16 sps:$4 sm:$0xff]   ;;  %v5752_v59 = vld [vmem:[%s6220_s7 + $0x9c8] ss:$16 sps:$4 sm:$0xff]  }
 0x139   : > { %3752 = vmatprep.subr.bf16.mxu0 %v5679_v60  ;;  %4160 = vmatprep.subr.bf16.mxu1 %v5682_v61  ;;  %v5757_v60 = vld [vmem:[%s6220_s7 + $0x9e4] ss:$16 sps:$4 sm:$0xff]   ;;  %v5760_v61 = vld [vmem:[%s6220_s7 + $0x9ec] ss:$16 sps:$4 sm:$0xff]  }
 0x13b   : > { %3740 = vmatmul.mubr.bf16.gmra.mrb[16].mxu0 %v4633_v0  ;;  %4148 = vmatmul.mubr.bf16.gmra.mrb[16].mxu1 %v4633_v0  ;;  %v5758_v0 = vld [vmem:[%s6220_s7 + $0x9e8] ss:$16 sps:$4 sm:$0xff]  }
 0x13c   : > { %3753 = vmatpush1.bf16.msra.mxu0 %v5677_v62  ;;  %4161 = vmatpush1.bf16.msra.mxu1 %v5680_v2  ;;  %v5755_v62 = vld [vmem:[%s6220_s7 + $0x9e0] ss:$16 sps:$4 sm:$0xff]   ;;  %v5763_v2 = vld [vmem:[%s6220_s7 + $0xa04] ss:$16 sps:$4 sm:$0xff]  }
 0x13d   : > { %3754 = vmatprep.subr.bf16.mxu0 %v5685_v3  ;;  %4162 = vmatprep.subr.bf16.mxu1 %v5688_v4  ;;  %v5766_v3 = vld [vmem:[%s6220_s7 + $0xa0c] ss:$16 sps:$4 sm:$0xff]   ;;  %v5761_v4 = vld [vmem:[%s6220_s7 + $0xa00] ss:$16 sps:$4 sm:$0xff]  }
 0x13e   : > { %3780 = vmatprep.mubr.bf16.mxu0 %v4620_v5  ;;  %4188 = vmatprep.mubr.bf16.mxu1 %v4620_v5  ;;  %v4619_v5 = vcombine.low %v6529_v63, %v6532_v1  ;;  %v5770_v63 = vld [vmem:[%s6220_s7 + $0xa28] ss:$16 sps:$4 sm:$0xff]   ;;  %v5777_v1 = vld [vmem:[%s6220_s7 + $0xa44] ss:$16 sps:$4 sm:$0xff]  }
 0x140   : > { %3755 = vmatpush1.bf16.msra.mxu0 %v5683_v6  ;;  %4163 = vmatpush1.bf16.msra.mxu1 %v5686_v7  ;;  %v5764_v6 = vld [vmem:[%s6220_s7 + $0xa08] ss:$16 sps:$4 sm:$0xff]   ;;  %v332_v7 = vld [vmem:[%s6222_s8 + $0xa0] sm:$0xff] }
 0x141   : > { %3756 = vmatprep.subr.bf16.mxu0 %v5691_v8  ;;  %4164 = vmatprep.subr.bf16.mxu1 %v5694_v9  ;;  %v5769_v8 = vld [vmem:[%s6220_s7 + $0xa24] ss:$16 sps:$4 sm:$0xff]   ;;  %v5772_v9 = vld [vmem:[%s6220_s7 + $0xa2c] ss:$16 sps:$4 sm:$0xff]  }
 0x144   : > { %3757 = vmatpush1.bf16.msra.mxu0 %v5689_v10  ;;  %4165 = vmatpush1.bf16.msra.mxu1 %v5692_v11  ;;  %v5767_v10 = vld [vmem:[%s6220_s7 + $0xa20] ss:$16 sps:$4 sm:$0xff]   ;;  %v4636_v11 = vcombine.high %v332_v7, %v332_v7 }
 0x145   : > { %3758 = vmatprep.subr.bf16.mxu0 %v5697_v12  ;;  %4166 = vmatprep.subr.bf16.mxu1 %v5700_v13  ;;  %v5780_v12 = vld [vmem:[%s6220_s7 + $0xa4c] ss:$16 sps:$4 sm:$0xff]  }
 0x146   : > { %v6611_v13 = vld [vmem:[%s6222_s8 + $0x28] sm:$0xff] }
 0x148   : > { %3759 = vmatpush1.bf16.msra.mxu0 %v5695_v14  ;;  %4167 = vmatpush1.bf16.msra.mxu1 %v5698_v15  ;;  %v5775_v14 = vld [vmem:[%s6220_s7 + $0xa40] ss:$16 sps:$4 sm:$0xff]   ;;  %v5778_v15 = vld [vmem:[%s6220_s7 + $0xa48] ss:$16 sps:$4 sm:$0xff]  }
 0x149   : > { %3760 = vmatprep.subr.bf16.mxu0 %v5703_v16  ;;  %4168 = vmatprep.subr.bf16.mxu1 %v5706_v17  ;;  %v4635_v16 = vcombine.low %v332_v7, %v332_v7  ;;  %v6616_v17 = vld [vmem:[%s6222_s8 + $0x68] sm:$0xff]  ;;  %v5835_v7 = vld [vmem:[%s6220_s7 + $0xb80] ss:$16 sps:$4 sm:$0xff]  }
 0x14c   : > { %3761 = vmatpush1.bf16.msra.mxu0 %v5701_v18  ;;  %4169 = vmatpush1.bf16.msra.mxu1 %v5704_v19  ;;  %v5783_v18 = vld [vmem:[%s6220_s7 + $0xa64] ss:$16 sps:$4 sm:$0xff]   ;;  %v5786_v19 = vld [vmem:[%s6220_s7 + $0xa6c] ss:$16 sps:$4 sm:$0xff]  }
 0x14d   : > { %3762 = vmatprep.subr.bf16.mxu0 %v5709_v20  ;;  %4170 = vmatprep.subr.bf16.mxu1 %v5712_v21  ;;  %v4622_v20 = vcombine.high %v6611_v13, %v6616_v17  ;;  %v5781_v21 = vld [vmem:[%s6220_s7 + $0xa60] ss:$16 sps:$4 sm:$0xff]  }
 0x14e   : > { %v6571_v38 = vpop.f32.mrb[4].mxu0  ;;  %v6573_v39 = vpop.f32.mrb[4].mxu1 }
 0x14f   : > { %v6575_v40 = vpop.f32.mrb[5].mxu0  ;;  %v6577_v41 = vpop.f32.mrb[5].mxu1 }
 0x150   : > { %3763 = vmatpush1.bf16.msra.mxu0 %v5707_v22  ;;  %4171 = vmatpush1.bf16.msra.mxu1 %v5710_v23  ;;  %v3592_v42 = vpop.f32.mrb[6].mxu0  ;;  %v4000_v43 = vpop.f32.mrb[6].mxu1  ;;  %v5784_v22 = vld [vmem:[%s6220_s7 + $0xa68] ss:$16 sps:$4 sm:$0xff]   ;;  %v5789_v23 = vld [vmem:[%s6220_s7 + $0xa84] ss:$16 sps:$4 sm:$0xff]  }
 0x151   : > { %3764 = vmatprep.subr.bf16.mxu0 %v5715_v24  ;;  %4172 = vmatprep.subr.bf16.mxu1 %v5718_v25  ;;  %v3593_v46 = vpop.f32.mrb[7].mxu0  ;;  %v4001_v47 = vpop.f32.mrb[7].mxu1  ;;  %v5792_v24 = vld [vmem:[%s6220_s7 + $0xa8c] ss:$16 sps:$4 sm:$0xff]   ;;  %v5787_v25 = vld [vmem:[%s6220_s7 + $0xa80] ss:$16 sps:$4 sm:$0xff]  }
 0x152   : > { %v5808_v42 = vld [vmem:[%s6220_s7 + $0xae8] ss:$16 sps:$4 sm:$0xff]   ;;  %v5813_v43 = vld [vmem:[%s6220_s7 + $0xb04] ss:$16 sps:$4 sm:$0xff]  }
 0x154   : > { %3765 = vmatpush1.bf16.msra.mxu0 %v5713_v26  ;;  %4173 = vmatpush1.bf16.msra.mxu1 %v5716_v27  ;;  %v5790_v26 = vld [vmem:[%s6220_s7 + $0xa88] ss:$16 sps:$4 sm:$0xff]   ;;  %v5795_v27 = vld [vmem:[%s6220_s7 + $0xaa4] ss:$16 sps:$4 sm:$0xff]  }
 0x155   : > { %3766 = vmatprep.subr.bf16.mxu0 %v5721_v28  ;;  %4174 = vmatprep.subr.bf16.mxu1 %v5724_v29  ;;  %v5798_v28 = vld [vmem:[%s6220_s7 + $0xaac] ss:$16 sps:$4 sm:$0xff]   ;;  %v5793_v29 = vld [vmem:[%s6220_s7 + $0xaa0] ss:$16 sps:$4 sm:$0xff]  }
 0x158   : > { %3767 = vmatpush1.bf16.msra.mxu0 %v5719_v30  ;;  %4175 = vmatpush1.bf16.msra.mxu1 %v5722_v31  ;;  %v5796_v30 = vld [vmem:[%s6220_s7 + $0xaa8] ss:$16 sps:$4 sm:$0xff]   ;;  %v5801_v31 = vld [vmem:[%s6220_s7 + $0xac4] ss:$16 sps:$4 sm:$0xff]  }
 0x159   : > { %3768 = vmatprep.subr.bf16.mxu0 %v5727_v32  ;;  %4176 = vmatprep.subr.bf16.mxu1 %v5730_v33  ;;  %v5804_v32 = vld [vmem:[%s6220_s7 + $0xacc] ss:$16 sps:$4 sm:$0xff]   ;;  %v5799_v33 = vld [vmem:[%s6220_s7 + $0xac0] ss:$16 sps:$4 sm:$0xff]  }
 0x15c   : > { %3769 = vmatpush1.bf16.msra.mxu0 %v5725_v34  ;;  %4177 = vmatpush1.bf16.msra.mxu1 %v5728_v35  ;;  %v5802_v34 = vld [vmem:[%s6220_s7 + $0xac8] ss:$16 sps:$4 sm:$0xff]   ;;  %v5807_v35 = vld [vmem:[%s6220_s7 + $0xae4] ss:$16 sps:$4 sm:$0xff]  }
 0x15d   : > { %3770 = vmatprep.subr.bf16.mxu0 %v5733_v36  ;;  %4178 = vmatprep.subr.bf16.mxu1 %v5736_v37  ;;  %v5810_v36 = vld [vmem:[%s6220_s7 + $0xaec] ss:$16 sps:$4 sm:$0xff]   ;;  %v5805_v37 = vld [vmem:[%s6220_s7 + $0xae0] ss:$16 sps:$4 sm:$0xff]  }
 0x160   : > { %3771 = vmatpush1.bf16.msra.mxu0 %v5731_v44  ;;  %4179 = vmatpush1.bf16.msra.mxu1 %v5734_v45  ;;  %v5816_v44 = vld [vmem:[%s6220_s7 + $0xb0c] ss:$16 sps:$4 sm:$0xff]  }
 0x161   : > { %3772 = vmatprep.subr.bf16.mxu0 %v5739_v48  ;;  %4180 = vmatprep.subr.bf16.mxu1 %v5742_v49 }
 0x164   : > { %3773 = vmatpush1.bf16.msra.mxu0 %v5737_v52  ;;  %4181 = vmatpush1.bf16.msra.mxu1 %v5740_v53 }
 0x165   : > { %3774 = vmatprep.subr.bf16.mxu0 %v5745_v54  ;;  %4182 = vmatprep.subr.bf16.mxu1 %v5748_v50  ;;  %v5811_v50 = vld [vmem:[%s6220_s7 + $0xb00] ss:$16 sps:$4 sm:$0xff]  }
 0x168   : > { %3775 = vmatpush1.bf16.msra.mxu0 %v5743_v51  ;;  %4183 = vmatpush1.bf16.msra.mxu1 %v5746_v55  ;;  %v5814_v51 = vld [vmem:[%s6220_s7 + $0xb08] ss:$16 sps:$4 sm:$0xff]  }
 0x169   : > { %3776 = vmatprep.subr.bf16.mxu0 %v5751_v56  ;;  %4184 = vmatprep.subr.bf16.mxu1 %v5754_v57 }
 0x16c   : > { %3777 = vmatpush1.bf16.msra.mxu0 %v5749_v58  ;;  %4185 = vmatpush1.bf16.msra.mxu1 %v5752_v59  ;;  %v5820_v58 = vld [vmem:[%s6220_s7 + $0xb28] ss:$16 sps:$4 sm:$0xff]   ;;  %v5825_v59 = vld [vmem:[%s6220_s7 + $0xb44] ss:$16 sps:$4 sm:$0xff]  }
 0x16d   : > { %3778 = vmatprep.subr.bf16.mxu0 %v5757_v60  ;;  %4186 = vmatprep.subr.bf16.mxu1 %v5760_v61  ;;  %v5828_v60 = vld [vmem:[%s6220_s7 + $0xb4c] ss:$16 sps:$4 sm:$0xff]   ;;  %v5823_v61 = vld [vmem:[%s6220_s7 + $0xb40] ss:$16 sps:$4 sm:$0xff]  }
 0x170   : > { %3779 = vmatpush1.bf16.msra.mxu0 %v5755_v62  ;;  %4187 = vmatpush1.bf16.msra.mxu1 %v5758_v0  ;;  %v5826_v62 = vld [vmem:[%s6220_s7 + $0xb48] ss:$16 sps:$4 sm:$0xff]   ;;  %v5831_v0 = vld [vmem:[%s6220_s7 + $0xb64] ss:$16 sps:$4 sm:$0xff]  }
 0x171   : > { %3799 = vmatprep.subr.bf16.mxu0 %v5763_v2  ;;  %4207 = vmatprep.subr.bf16.mxu1 %v5766_v3  ;;  %v5834_v2 = vld [vmem:[%s6220_s7 + $0xb6c] ss:$16 sps:$4 sm:$0xff]   ;;  %v5829_v3 = vld [vmem:[%s6220_s7 + $0xb60] ss:$16 sps:$4 sm:$0xff]  }
 0x173   : > { %3781 = vmatmul.mubr.bf16.vlgmr.msra.gmra.mrb[0].mxu0 %v4619_v5  ;;  %4189 = vmatmul.mubr.bf16.vlgmr.msra.gmra.mrb[0].mxu1 %v4619_v5  ;;  %v5837_v5 = vld [vmem:[%s6220_s7 + $0xb84] ss:$16 sps:$4 sm:$0xff]  }
 0x174   : > { %3800 = vmatpush1.bf16.msra.mxu0 %v5761_v4  ;;  %4208 = vmatpush1.bf16.msra.mxu1 %v5764_v6  ;;  %v5832_v4 = vld [vmem:[%s6220_s7 + $0xb68] ss:$16 sps:$4 sm:$0xff]   ;;  %v5840_v6 = vld [vmem:[%s6220_s7 + $0xb8c] ss:$16 sps:$4 sm:$0xff]  }
 0x175   : > { %3801 = vmatprep.subr.bf16.mxu0 %v5769_v8  ;;  %4209 = vmatprep.subr.bf16.mxu1 %v5772_v9  ;;  %v5838_v8 = vld [vmem:[%s6220_s7 + $0xb88] ss:$16 sps:$4 sm:$0xff]   ;;  %v5843_v9 = vld [vmem:[%s6220_s7 + $0xba4] ss:$16 sps:$4 sm:$0xff]  }
 0x176   : > { %3790 = vmatprep.mubr.bf16.mxu0 %v4636_v11  ;;  %4198 = vmatprep.mubr.bf16.mxu1 %v4636_v11  ;;  %v5841_v11 = vld [vmem:[%s6220_s7 + $0xba0] ss:$16 sps:$4 sm:$0xff]  }
 0x178   : > { %3802 = vmatpush1.bf16.msra.mxu0 %v5767_v10  ;;  %4210 = vmatpush1.bf16.msra.mxu1 %v5770_v63  ;;  %v5846_v10 = vld [vmem:[%s6220_s7 + $0xbac] ss:$16 sps:$4 sm:$0xff]   ;;  %v5844_v63 = vld [vmem:[%s6220_s7 + $0xba8] ss:$16 sps:$4 sm:$0xff]  }
 0x179   : > { %3803 = vmatprep.subr.bf16.mxu0 %v5777_v1  ;;  %4211 = vmatprep.subr.bf16.mxu1 %v5780_v12  ;;  %v5849_v1 = vld [vmem:[%s6220_s7 + $0xbc4] ss:$16 sps:$4 sm:$0xff]   ;;  %v5852_v12 = vld [vmem:[%s6220_s7 + $0xbcc] ss:$16 sps:$4 sm:$0xff]  }
 0x17b   : > { %3791 = vmatmul.mubr.bf16.gmra.mrb[20].mxu0 %v4635_v16  ;;  %4199 = vmatmul.mubr.bf16.gmra.mrb[20].mxu1 %v4635_v16  ;;  %v5855_v16 = vld [vmem:[%s6220_s7 + $0xbe4] ss:$16 sps:$4 sm:$0xff]  }
 0x17c   : > { %3804 = vmatpush1.bf16.msra.mxu0 %v5775_v14  ;;  %4212 = vmatpush1.bf16.msra.mxu1 %v5778_v15  ;;  %v5847_v14 = vld [vmem:[%s6220_s7 + $0xbc0] ss:$16 sps:$4 sm:$0xff]   ;;  %v5850_v15 = vld [vmem:[%s6220_s7 + $0xbc8] ss:$16 sps:$4 sm:$0xff]  }
 0x17d   : > { %3805 = vmatprep.subr.bf16.mxu0 %v5783_v18  ;;  %4213 = vmatprep.subr.bf16.mxu1 %v5786_v19  ;;  %v5858_v18 = vld [vmem:[%s6220_s7 + $0xbec] ss:$16 sps:$4 sm:$0xff]   ;;  %v5853_v19 = vld [vmem:[%s6220_s7 + $0xbe0] ss:$16 sps:$4 sm:$0xff]  }
 0x17e   : > { %3831 = vmatprep.mubr.bf16.mxu0 %v4622_v20  ;;  %4239 = vmatprep.mubr.bf16.mxu1 %v4622_v20  ;;  %v5856_v20 = vld [vmem:[%s6220_s7 + $0xbe8] ss:$16 sps:$4 sm:$0xff]  }
 0x180   : > { %3806 = vmatpush1.bf16.msra.mxu0 %v5781_v21  ;;  %4214 = vmatpush1.bf16.msra.mxu1 %v5784_v22  ;;  %v5861_v21 = vld [vmem:[%s6220_s7 + $0xc04] ss:$16 sps:$4 sm:$0xff]   ;;  %v5864_v22 = vld [vmem:[%s6220_s7 + $0xc0c] ss:$16 sps:$4 sm:$0xff]  }
 0x181   : > { %3807 = vmatprep.subr.bf16.mxu0 %v5789_v23  ;;  %4215 = vmatprep.subr.bf16.mxu1 %v5792_v24  ;;  %v4621_v23 = vcombine.low %v6611_v13, %v6616_v17  ;;  %v333_v24 = vld [vmem:[%s6222_s8 + $0xa8] sm:$0xff]  ;;  %v5865_v13 = vld [vmem:[%s6220_s7 + $0xc20] ss:$16 sps:$4 sm:$0xff]  }
 0x182   : > { %v5868_v17 = vld [vmem:[%s6220_s7 + $0xc28] ss:$16 sps:$4 sm:$0xff]  }
 0x184   : > { %3808 = vmatpush1.bf16.msra.mxu0 %v5787_v25  ;;  %4216 = vmatpush1.bf16.msra.mxu1 %v5790_v26  ;;  %v5859_v25 = vld [vmem:[%s6220_s7 + $0xc00] ss:$16 sps:$4 sm:$0xff]   ;;  %v5862_v26 = vld [vmem:[%s6220_s7 + $0xc08] ss:$16 sps:$4 sm:$0xff]  }
 0x185   : > { %3809 = vmatprep.subr.bf16.mxu0 %v5795_v27  ;;  %4217 = vmatprep.subr.bf16.mxu1 %v5798_v28  ;;  %v5867_v27 = vld [vmem:[%s6220_s7 + $0xc24] ss:$16 sps:$4 sm:$0xff]   ;;  %v5870_v28 = vld [vmem:[%s6220_s7 + $0xc2c] ss:$16 sps:$4 sm:$0xff]  }
 0x188   : > { %3810 = vmatpush1.bf16.msra.mxu0 %v5793_v29  ;;  %4218 = vmatpush1.bf16.msra.mxu1 %v5796_v30  ;;  %v4638_v29 = vcombine.high %v333_v24, %v333_v24  ;;  %v5875_v30 = vld [vmem:[%s6220_s7 + $0xc44] ss:$16 sps:$4 sm:$0xff]  }
 0x189   : > { %3811 = vmatprep.subr.bf16.mxu0 %v5801_v31  ;;  %4219 = vmatprep.subr.bf16.mxu1 %v5804_v32  ;;  %v5878_v31 = vld [vmem:[%s6220_s7 + $0xc4c] ss:$16 sps:$4 sm:$0xff]   ;;  %v4637_v32 = vcombine.low %v333_v24, %v333_v24  ;;  %v5935_v24 = vld [vmem:[%s6220_s7 + $0xd84] ss:$16 sps:$4 sm:$0xff]  }
 0x18c   : > { %3812 = vmatpush1.bf16.msra.mxu0 %v5799_v33  ;;  %4220 = vmatpush1.bf16.msra.mxu1 %v5802_v34  ;;  %v6698_v33 = vld [vmem:[%s6222_s8 + $0x30] sm:$0xff] }
 0x18d   : > { %3813 = vmatprep.subr.bf16.mxu0 %v5807_v35  ;;  %4221 = vmatprep.subr.bf16.mxu1 %v5810_v36  ;;  %v6701_v34 = vld [vmem:[%s6222_s8 + $0x70] sm:$0xff]  ;;  %v5876_v36 = vld [vmem:[%s6220_s7 + $0xc48] ss:$16 sps:$4 sm:$0xff]  }
 0x18e   : > { %v3639_v45 = vpop.f32.mrb[8].mxu0  ;;  %v4047_v46 = vpop.f32.mrb[8].mxu1  ;;  %v5873_v35 = vld [vmem:[%s6220_s7 + $0xc40] ss:$16 sps:$4 sm:$0xff]  }
 0x18f   : > { %v6643_v47 = vadd.f32 %v3639_v45, %v6571_v38  ;;  %v6646_v48 = vadd.f32 %v4047_v46, %v6573_v39  ;;  %v3641_v49 = vpop.f32.mrb[9].mxu0  ;;  %v4049_v52 = vpop.f32.mrb[9].mxu1  ;;  %v5819_v39 = vld [vmem:[%s6220_s7 + $0xb24] ss:$16 sps:$4 sm:$0xff]   ;;  %v5882_v45 = vld [vmem:[%s6220_s7 + $0xc68] ss:$16 sps:$4 sm:$0xff]  }
 0x190   : > { %v6649_v53 = vadd.f32 %v3641_v49, %v6575_v40  ;;  %v6652_v54 = vadd.f32 %v4049_v52, %v6577_v41  ;;  %3814 = vmatpush1.bf16.msra.mxu0 %v5805_v37  ;;  %4222 = vmatpush1.bf16.msra.mxu1 %v5808_v42  ;;  %v3643_v38 = vpop.f32.mrb[10].mxu0  ;;  %v4051_v55 = vpop.f32.mrb[10].mxu1  ;;  %v5822_v40 = vld [vmem:[%s6220_s7 + $0xb2c] ss:$16 sps:$4 sm:$0xff]   ;;  %v5817_v41 = vld [vmem:[%s6220_s7 + $0xb20] ss:$16 sps:$4 sm:$0xff]  }
 0x191   : > { %3815 = vmatprep.subr.bf16.mxu0 %v5813_v43  ;;  %4223 = vmatprep.subr.bf16.mxu1 %v5816_v44  ;;  %v3644_v56 = vpop.f32.mrb[11].mxu0  ;;  %v4052_v57 = vpop.f32.mrb[11].mxu1  ;;  %v5881_v37 = vld [vmem:[%s6220_s7 + $0xc64] ss:$16 sps:$4 sm:$0xff]   ;;  %v5884_v42 = vld [vmem:[%s6220_s7 + $0xc6c] ss:$16 sps:$4 sm:$0xff]   ;;  %v4624_v43 = vcombine.high %v6698_v33, %v6701_v34 }
 0x192   : > { %v5879_v44 = vld [vmem:[%s6220_s7 + $0xc60] ss:$16 sps:$4 sm:$0xff]   ;;  %v5887_v46 = vld [vmem:[%s6220_s7 + $0xc84] ss:$16 sps:$4 sm:$0xff]   ;;  %v5890_v49 = vld [vmem:[%s6220_s7 + $0xc8c] ss:$16 sps:$4 sm:$0xff]  }
 0x193   : > { %v5885_v52 = vld [vmem:[%s6220_s7 + $0xc80] ss:$16 sps:$4 sm:$0xff]   ;;  %v5896_v38 = vld [vmem:[%s6220_s7 + $0xcac] ss:$16 sps:$4 sm:$0xff]  }
 0x194   : > { %3816 = vmatpush1.bf16.msra.mxu0 %v5811_v50  ;;  %4224 = vmatpush1.bf16.msra.mxu1 %v5814_v51  ;;  %v5888_v50 = vld [vmem:[%s6220_s7 + $0xc88] ss:$16 sps:$4 sm:$0xff]   ;;  %v5893_v51 = vld [vmem:[%s6220_s7 + $0xca4] ss:$16 sps:$4 sm:$0xff]   ;;  %v5891_v55 = vld [vmem:[%s6220_s7 + $0xca0] ss:$16 sps:$4 sm:$0xff]  }
 0x195   : > { %3817 = vmatprep.subr.bf16.mxu0 %v5819_v39  ;;  %4225 = vmatprep.subr.bf16.mxu1 %v5822_v40  ;;  %v5894_v39 = vld [vmem:[%s6220_s7 + $0xca8] ss:$16 sps:$4 sm:$0xff]   ;;  %v5899_v40 = vld [vmem:[%s6220_s7 + $0xcc4] ss:$16 sps:$4 sm:$0xff]   ;;  %v5902_v56 = vld [vmem:[%s6220_s7 + $0xccc] ss:$16 sps:$4 sm:$0xff]  }
 0x196   : > { %v5897_v57 = vld [vmem:[%s6220_s7 + $0xcc0] ss:$16 sps:$4 sm:$0xff]  }
 0x198   : > { %3818 = vmatpush1.bf16.msra.mxu0 %v5817_v41  ;;  %4226 = vmatpush1.bf16.msra.mxu1 %v5820_v58  ;;  %v5900_v41 = vld [vmem:[%s6220_s7 + $0xcc8] ss:$16 sps:$4 sm:$0xff]   ;;  %v5905_v58 = vld [vmem:[%s6220_s7 + $0xce4] ss:$16 sps:$4 sm:$0xff]  }
 0x199   : > { %3819 = vmatprep.subr.bf16.mxu0 %v5825_v59  ;;  %4227 = vmatprep.subr.bf16.mxu1 %v5828_v60  ;;  %v5908_v59 = vld [vmem:[%s6220_s7 + $0xcec] ss:$16 sps:$4 sm:$0xff]   ;;  %v5903_v60 = vld [vmem:[%s6220_s7 + $0xce0] ss:$16 sps:$4 sm:$0xff]  }
 0x19c   : > { %3820 = vmatpush1.bf16.msra.mxu0 %v5823_v61  ;;  %4228 = vmatpush1.bf16.msra.mxu1 %v5826_v62  ;;  %v5906_v61 = vld [vmem:[%s6220_s7 + $0xce8] ss:$16 sps:$4 sm:$0xff]   ;;  %v5911_v62 = vld [vmem:[%s6220_s7 + $0xd04] ss:$16 sps:$4 sm:$0xff]  }
 0x19d   : > { %3821 = vmatprep.subr.bf16.mxu0 %v5831_v0  ;;  %4229 = vmatprep.subr.bf16.mxu1 %v5834_v2  ;;  %v5914_v0 = vld [vmem:[%s6220_s7 + $0xd0c] ss:$16 sps:$4 sm:$0xff]  }
 0x1a0   : > { %3822 = vmatpush1.bf16.msra.mxu0 %v5829_v3  ;;  %4230 = vmatpush1.bf16.msra.mxu1 %v5832_v4 }
 0x1a1   : > { %3823 = vmatprep.subr.bf16.mxu0 %v5837_v5  ;;  %4231 = vmatprep.subr.bf16.mxu1 %v5840_v6 }
 0x1a4   : > { %3824 = vmatpush1.bf16.msra.mxu0 %v5835_v7  ;;  %4232 = vmatpush1.bf16.msra.mxu1 %v5838_v8 }
 0x1a5   : > { %3825 = vmatprep.subr.bf16.mxu0 %v5843_v9  ;;  %4233 = vmatprep.subr.bf16.mxu1 %v5846_v10  ;;  %v5909_v10 = vld [vmem:[%s6220_s7 + $0xd00] ss:$16 sps:$4 sm:$0xff]  }
 0x1a8   : > { %3826 = vmatpush1.bf16.msra.mxu0 %v5841_v11  ;;  %4234 = vmatpush1.bf16.msra.mxu1 %v5844_v63  ;;  %v5912_v11 = vld [vmem:[%s6220_s7 + $0xd08] ss:$16 sps:$4 sm:$0xff]  }
 0x1a9   : > { %3827 = vmatprep.subr.bf16.mxu0 %v5849_v1  ;;  %4235 = vmatprep.subr.bf16.mxu1 %v5852_v12 }
 0x1ac   : > { %3828 = vmatpush1.bf16.msra.mxu0 %v5847_v14  ;;  %4236 = vmatpush1.bf16.msra.mxu1 %v5850_v15  ;;  %v5918_v14 = vld [vmem:[%s6220_s7 + $0xd28] ss:$16 sps:$4 sm:$0xff]   ;;  %v5923_v15 = vld [vmem:[%s6220_s7 + $0xd44] ss:$16 sps:$4 sm:$0xff]  }
 0x1ad   : > { %3829 = vmatprep.subr.bf16.mxu0 %v5855_v16  ;;  %4237 = vmatprep.subr.bf16.mxu1 %v5858_v18  ;;  %v5926_v16 = vld [vmem:[%s6220_s7 + $0xd4c] ss:$16 sps:$4 sm:$0xff]   ;;  %v5921_v18 = vld [vmem:[%s6220_s7 + $0xd40] ss:$16 sps:$4 sm:$0xff]  }
 0x1b0   : > { %3830 = vmatpush1.bf16.msra.mxu0 %v5853_v19  ;;  %4238 = vmatpush1.bf16.msra.mxu1 %v5856_v20  ;;  %v5924_v19 = vld [vmem:[%s6220_s7 + $0xd48] ss:$16 sps:$4 sm:$0xff]   ;;  %v5929_v20 = vld [vmem:[%s6220_s7 + $0xd64] ss:$16 sps:$4 sm:$0xff]  }
 0x1b1   : > { %3850 = vmatprep.subr.bf16.mxu0 %v5861_v21  ;;  %4258 = vmatprep.subr.bf16.mxu1 %v5864_v22  ;;  %v5932_v21 = vld [vmem:[%s6220_s7 + $0xd6c] ss:$16 sps:$4 sm:$0xff]   ;;  %v5927_v22 = vld [vmem:[%s6220_s7 + $0xd60] ss:$16 sps:$4 sm:$0xff]  }
 0x1b3   : > { %3832 = vmatmul.mubr.bf16.vlgmr.msra.gmra.mrb[0].mxu0 %v4621_v23  ;;  %4240 = vmatmul.mubr.bf16.vlgmr.msra.gmra.mrb[0].mxu1 %v4621_v23  ;;  %v5930_v23 = vld [vmem:[%s6220_s7 + $0xd68] ss:$16 sps:$4 sm:$0xff]  }
 0x1b4   : > { %3851 = vmatpush1.bf16.msra.mxu0 %v5859_v25  ;;  %4259 = vmatpush1.bf16.msra.mxu1 %v5862_v26  ;;  %v5938_v25 = vld [vmem:[%s6220_s7 + $0xd8c] ss:$16 sps:$4 sm:$0xff]   ;;  %v5933_v26 = vld [vmem:[%s6220_s7 + $0xd80] ss:$16 sps:$4 sm:$0xff]  }
 0x1b5   : > { %3852 = vmatprep.subr.bf16.mxu0 %v5867_v27  ;;  %4260 = vmatprep.subr.bf16.mxu1 %v5870_v28  ;;  %v5936_v27 = vld [vmem:[%s6220_s7 + $0xd88] ss:$16 sps:$4 sm:$0xff]   ;;  %v5941_v28 = vld [vmem:[%s6220_s7 + $0xda4] ss:$16 sps:$4 sm:$0xff]  }
 0x1b6   : > { %3841 = vmatprep.mubr.bf16.mxu0 %v4638_v29  ;;  %4249 = vmatprep.mubr.bf16.mxu1 %v4638_v29  ;;  %v5944_v29 = vld [vmem:[%s6220_s7 + $0xdac] ss:$16 sps:$4 sm:$0xff]  }
 0x1b8   : > { %3853 = vmatpush1.bf16.msra.mxu0 %v5865_v13  ;;  %4261 = vmatpush1.bf16.msra.mxu1 %v5868_v17  ;;  %v5939_v13 = vld [vmem:[%s6220_s7 + $0xda0] ss:$16 sps:$4 sm:$0xff]   ;;  %v5942_v17 = vld [vmem:[%s6220_s7 + $0xda8] ss:$16 sps:$4 sm:$0xff]  }
 0x1b9   : > { %3854 = vmatprep.subr.bf16.mxu0 %v5875_v30  ;;  %4262 = vmatprep.subr.bf16.mxu1 %v5878_v31  ;;  %v5947_v30 = vld [vmem:[%s6220_s7 + $0xdc4] ss:$16 sps:$4 sm:$0xff]   ;;  %v5950_v31 = vld [vmem:[%s6220_s7 + $0xdcc] ss:$16 sps:$4 sm:$0xff]  }
 0x1bb   : > { %3842 = vmatmul.mubr.bf16.gmra.mrb[24].mxu0 %v4637_v32  ;;  %4250 = vmatmul.mubr.bf16.gmra.mrb[24].mxu1 %v4637_v32  ;;  %v5945_v32 = vld [vmem:[%s6220_s7 + $0xdc0] ss:$16 sps:$4 sm:$0xff]  }
 0x1bc   : > { %3855 = vmatpush1.bf16.msra.mxu0 %v5873_v35  ;;  %4263 = vmatpush1.bf16.msra.mxu1 %v5876_v36  ;;  %v5948_v35 = vld [vmem:[%s6220_s7 + $0xdc8] ss:$16 sps:$4 sm:$0xff]   ;;  %v5953_v36 = vld [vmem:[%s6220_s7 + $0xde4] ss:$16 sps:$4 sm:$0xff]  }
 0x1bd   : > { %3856 = vmatprep.subr.bf16.mxu0 %v5881_v37  ;;  %4264 = vmatprep.subr.bf16.mxu1 %v5884_v42  ;;  %v5956_v37 = vld [vmem:[%s6220_s7 + $0xdec] ss:$16 sps:$4 sm:$0xff]   ;;  %v5951_v42 = vld [vmem:[%s6220_s7 + $0xde0] ss:$16 sps:$4 sm:$0xff]  }
 0x1be   : > { %3882 = vmatprep.mubr.bf16.mxu0 %v4624_v43  ;;  %4290 = vmatprep.mubr.bf16.mxu1 %v4624_v43  ;;  %v5954_v43 = vld [vmem:[%s6220_s7 + $0xde8] ss:$16 sps:$4 sm:$0xff]  }
 0x1c0   : > { %3857 = vmatpush1.bf16.msra.mxu0 %v5879_v44  ;;  %4265 = vmatpush1.bf16.msra.mxu1 %v5882_v45  ;;  %v5959_v44 = vld [vmem:[%s6220_s7 + $0xe04] ss:$16 sps:$4 sm:$0xff]   ;;  %v5962_v45 = vld [vmem:[%s6220_s7 + $0xe0c] ss:$16 sps:$4 sm:$0xff]  }
 0x1c1   : > { %3858 = vmatprep.subr.bf16.mxu0 %v5887_v46  ;;  %4266 = vmatprep.subr.bf16.mxu1 %v5890_v49  ;;  %v4623_v46 = vcombine.low %v6698_v33, %v6701_v34  ;;  %v334_v49 = vld [vmem:[%s6222_s8 + $0xb0] sm:$0xff]  ;;  %v5966_v34 = vld [vmem:[%s6220_s7 + $0xe28] ss:$16 sps:$4 sm:$0xff]  }
 0x1c2   : > { %v5963_v33 = vld [vmem:[%s6220_s7 + $0xe20] ss:$16 sps:$4 sm:$0xff]  }
 0x1c4   : > { %3859 = vmatpush1.bf16.msra.mxu0 %v5885_v52  ;;  %4267 = vmatpush1.bf16.msra.mxu1 %v5888_v50  ;;  %v5957_v52 = vld [vmem:[%s6220_s7 + $0xe00] ss:$16 sps:$4 sm:$0xff]   ;;  %v5960_v50 = vld [vmem:[%s6220_s7 + $0xe08] ss:$16 sps:$4 sm:$0xff]  }
 0x1c5   : > { %3860 = vmatprep.subr.bf16.mxu0 %v5893_v51  ;;  %4268 = vmatprep.subr.bf16.mxu1 %v5896_v38  ;;  %v5965_v51 = vld [vmem:[%s6220_s7 + $0xe24] ss:$16 sps:$4 sm:$0xff]   ;;  %v5968_v38 = vld [vmem:[%s6220_s7 + $0xe2c] ss:$16 sps:$4 sm:$0xff]  }
 0x1c8   : > { %3861 = vmatpush1.bf16.msra.mxu0 %v5891_v55  ;;  %4269 = vmatpush1.bf16.msra.mxu1 %v5894_v39  ;;  %v4640_v55 = vcombine.high %v334_v49, %v334_v49  ;;  %v5973_v39 = vld [vmem:[%s6220_s7 + $0xe44] ss:$16 sps:$4 sm:$0xff]  }
 0x1c9   : > { %3862 = vmatprep.subr.bf16.mxu0 %v5899_v40  ;;  %4270 = vmatprep.subr.bf16.mxu1 %v5902_v56  ;;  %v5976_v40 = vld [vmem:[%s6220_s7 + $0xe4c] ss:$16 sps:$4 sm:$0xff]   ;;  %v4639_v56 = vcombine.low %v334_v49, %v334_v49  ;;  %v6033_v49 = vld [vmem:[%s6220_s7 + $0xf84] ss:$16 sps:$4 sm:$0xff]  }
 0x1cc   : > { %3863 = vmatpush1.bf16.msra.mxu0 %v5897_v57  ;;  %4271 = vmatpush1.bf16.msra.mxu1 %v5900_v41  ;;  %v6785_v57 = vld [vmem:[%s6222_s8 + $0x38] sm:$0xff] }
 0x1cd   : > { %3864 = vmatprep.subr.bf16.mxu0 %v5905_v58  ;;  %4272 = vmatprep.subr.bf16.mxu1 %v5908_v59  ;;  %v6788_v41 = vld [vmem:[%s6222_s8 + $0x78] sm:$0xff]  ;;  %v5971_v58 = vld [vmem:[%s6220_s7 + $0xe40] ss:$16 sps:$4 sm:$0xff]  }
 0x1ce   : > { %v3690_v2 = vpop.f32.mrb[12].mxu0  ;;  %v4098_v3 = vpop.f32.mrb[12].mxu1  ;;  %v5974_v59 = vld [vmem:[%s6220_s7 + $0xe48] ss:$16 sps:$4 sm:$0xff]  }
 0x1cf   : > { %v6730_v4 = vadd.f32 %v3690_v2, %v6643_v47  ;;  %v6733_v5 = vadd.f32 %v4098_v3, %v6646_v48  ;;  %v3692_v6 = vpop.f32.mrb[13].mxu0  ;;  %v4100_v7 = vpop.f32.mrb[13].mxu1  ;;  %v5917_v48 = vld [vmem:[%s6220_s7 + $0xd24] ss:$16 sps:$4 sm:$0xff]   ;;  %v5980_v2 = vld [vmem:[%s6220_s7 + $0xe68] ss:$16 sps:$4 sm:$0xff]  }
 0x1d0   : > { %v6736_v8 = vadd.f32 %v3692_v6, %v6649_v53  ;;  %v6739_v9 = vadd.f32 %v4100_v7, %v6652_v54  ;;  %3865 = vmatpush1.bf16.msra.mxu0 %v5903_v60  ;;  %4273 = vmatpush1.bf16.msra.mxu1 %v5906_v61  ;;  %v3694_v47 = vpop.f32.mrb[14].mxu0  ;;  %v4102_v63 = vpop.f32.mrb[14].mxu1  ;;  %v5920_v53 = vld [vmem:[%s6220_s7 + $0xd2c] ss:$16 sps:$4 sm:$0xff]   ;;  %v5915_v54 = vld [vmem:[%s6220_s7 + $0xd20] ss:$16 sps:$4 sm:$0xff]  }
 0x1d1   : > { %3866 = vmatprep.subr.bf16.mxu0 %v5911_v62  ;;  %4274 = vmatprep.subr.bf16.mxu1 %v5914_v0  ;;  %v3695_v1 = vpop.f32.mrb[15].mxu0  ;;  %v4103_v12 = vpop.f32.mrb[15].mxu1  ;;  %v5979_v60 = vld [vmem:[%s6220_s7 + $0xe64] ss:$16 sps:$4 sm:$0xff]   ;;  %v5982_v61 = vld [vmem:[%s6220_s7 + $0xe6c] ss:$16 sps:$4 sm:$0xff]   ;;  %v4626_v62 = vcombine.high %v6785_v57, %v6788_v41 }
 0x1d2   : > { %v5977_v0 = vld [vmem:[%s6220_s7 + $0xe60] ss:$16 sps:$4 sm:$0xff]   ;;  %v5985_v3 = vld [vmem:[%s6220_s7 + $0xe84] ss:$16 sps:$4 sm:$0xff]   ;;  %v5988_v6 = vld [vmem:[%s6220_s7 + $0xe8c] ss:$16 sps:$4 sm:$0xff]  }
 0x1d3   : > { %v5983_v7 = vld [vmem:[%s6220_s7 + $0xe80] ss:$16 sps:$4 sm:$0xff]   ;;  %v5994_v47 = vld [vmem:[%s6220_s7 + $0xeac] ss:$16 sps:$4 sm:$0xff]  }
 0x1d4   : > { %3867 = vmatpush1.bf16.msra.mxu0 %v5909_v10  ;;  %4275 = vmatpush1.bf16.msra.mxu1 %v5912_v11  ;;  %v5986_v10 = vld [vmem:[%s6220_s7 + $0xe88] ss:$16 sps:$4 sm:$0xff]   ;;  %v5991_v11 = vld [vmem:[%s6220_s7 + $0xea4] ss:$16 sps:$4 sm:$0xff]   ;;  %v5989_v63 = vld [vmem:[%s6220_s7 + $0xea0] ss:$16 sps:$4 sm:$0xff]  }
 0x1d5   : > { %3868 = vmatprep.subr.bf16.mxu0 %v5917_v48  ;;  %4276 = vmatprep.subr.bf16.mxu1 %v5920_v53  ;;  %v5992_v48 = vld [vmem:[%s6220_s7 + $0xea8] ss:$16 sps:$4 sm:$0xff]   ;;  %v5997_v53 = vld [vmem:[%s6220_s7 + $0xec4] ss:$16 sps:$4 sm:$0xff]   ;;  %v6000_v1 = vld [vmem:[%s6220_s7 + $0xecc] ss:$16 sps:$4 sm:$0xff]  }
 0x1d6   : > { %v5995_v12 = vld [vmem:[%s6220_s7 + $0xec0] ss:$16 sps:$4 sm:$0xff]  }
 0x1d8   : > { %3869 = vmatpush1.bf16.msra.mxu0 %v5915_v54  ;;  %4277 = vmatpush1.bf16.msra.mxu1 %v5918_v14  ;;  %v5998_v54 = vld [vmem:[%s6220_s7 + $0xec8] ss:$16 sps:$4 sm:$0xff]   ;;  %v6003_v14 = vld [vmem:[%s6220_s7 + $0xee4] ss:$16 sps:$4 sm:$0xff]  }
 0x1d9   : > { %3870 = vmatprep.subr.bf16.mxu0 %v5923_v15  ;;  %4278 = vmatprep.subr.bf16.mxu1 %v5926_v16  ;;  %v6006_v15 = vld [vmem:[%s6220_s7 + $0xeec] ss:$16 sps:$4 sm:$0xff]   ;;  %v6001_v16 = vld [vmem:[%s6220_s7 + $0xee0] ss:$16 sps:$4 sm:$0xff]  }
 0x1dc   : > { %3871 = vmatpush1.bf16.msra.mxu0 %v5921_v18  ;;  %4279 = vmatpush1.bf16.msra.mxu1 %v5924_v19  ;;  %v6004_v18 = vld [vmem:[%s6220_s7 + $0xee8] ss:$16 sps:$4 sm:$0xff]   ;;  %v6009_v19 = vld [vmem:[%s6220_s7 + $0xf04] ss:$16 sps:$4 sm:$0xff]  }
 0x1dd   : > { %3872 = vmatprep.subr.bf16.mxu0 %v5929_v20  ;;  %4280 = vmatprep.subr.bf16.mxu1 %v5932_v21  ;;  %v6012_v20 = vld [vmem:[%s6220_s7 + $0xf0c] ss:$16 sps:$4 sm:$0xff]  }
 0x1e0   : > { %3873 = vmatpush1.bf16.msra.mxu0 %v5927_v22  ;;  %4281 = vmatpush1.bf16.msra.mxu1 %v5930_v23 }
 0x1e1   : > { %3874 = vmatprep.subr.bf16.mxu0 %v5935_v24  ;;  %4282 = vmatprep.subr.bf16.mxu1 %v5938_v25 }
 0x1e4   : > { %3875 = vmatpush1.bf16.msra.mxu0 %v5933_v26  ;;  %4283 = vmatpush1.bf16.msra.mxu1 %v5936_v27 }
 0x1e5   : > { %3876 = vmatprep.subr.bf16.mxu0 %v5941_v28  ;;  %4284 = vmatprep.subr.bf16.mxu1 %v5944_v29  ;;  %v6007_v29 = vld [vmem:[%s6220_s7 + $0xf00] ss:$16 sps:$4 sm:$0xff]  }
 0x1e8   : > { %3877 = vmatpush1.bf16.msra.mxu0 %v5939_v13  ;;  %4285 = vmatpush1.bf16.msra.mxu1 %v5942_v17  ;;  %v6010_v13 = vld [vmem:[%s6220_s7 + $0xf08] ss:$16 sps:$4 sm:$0xff]  }
 0x1e9   : > { %3878 = vmatprep.subr.bf16.mxu0 %v5947_v30  ;;  %4286 = vmatprep.subr.bf16.mxu1 %v5950_v31 }
 0x1ec   : > { %3879 = vmatpush1.bf16.msra.mxu0 %v5945_v32  ;;  %4287 = vmatpush1.bf16.msra.mxu1 %v5948_v35  ;;  %v6016_v32 = vld [vmem:[%s6220_s7 + $0xf28] ss:$16 sps:$4 sm:$0xff]   ;;  %v6021_v35 = vld [vmem:[%s6220_s7 + $0xf44] ss:$16 sps:$4 sm:$0xff]  }
 0x1ed   : > { %3880 = vmatprep.subr.bf16.mxu0 %v5953_v36  ;;  %4288 = vmatprep.subr.bf16.mxu1 %v5956_v37  ;;  %v6024_v36 = vld [vmem:[%s6220_s7 + $0xf4c] ss:$16 sps:$4 sm:$0xff]   ;;  %v6019_v37 = vld [vmem:[%s6220_s7 + $0xf40] ss:$16 sps:$4 sm:$0xff]  }
 0x1f0   : > { %3881 = vmatpush1.bf16.msra.mxu0 %v5951_v42  ;;  %4289 = vmatpush1.bf16.msra.mxu1 %v5954_v43  ;;  %v6022_v42 = vld [vmem:[%s6220_s7 + $0xf48] ss:$16 sps:$4 sm:$0xff]   ;;  %v6027_v43 = vld [vmem:[%s6220_s7 + $0xf64] ss:$16 sps:$4 sm:$0xff]  }
 0x1f1   : > { %3901 = vmatprep.subr.bf16.mxu0 %v5959_v44  ;;  %4309 = vmatprep.subr.bf16.mxu1 %v5962_v45  ;;  %v6030_v44 = vld [vmem:[%s6220_s7 + $0xf6c] ss:$16 sps:$4 sm:$0xff]   ;;  %v6025_v45 = vld [vmem:[%s6220_s7 + $0xf60] ss:$16 sps:$4 sm:$0xff]  }
 0x1f3   : > { %3883 = vmatmul.mubr.bf16.vlgmr.msra.gmra.mrb[0].mxu0 %v4623_v46  ;;  %4291 = vmatmul.mubr.bf16.vlgmr.msra.gmra.mrb[0].mxu1 %v4623_v46  ;;  %v6028_v46 = vld [vmem:[%s6220_s7 + $0xf68] ss:$16 sps:$4 sm:$0xff]  }
 0x1f4   : > { %3902 = vmatpush1.bf16.msra.mxu0 %v5957_v52  ;;  %4310 = vmatpush1.bf16.msra.mxu1 %v5960_v50  ;;  %v6036_v52 = vld [vmem:[%s6220_s7 + $0xf8c] ss:$16 sps:$4 sm:$0xff]   ;;  %v6031_v50 = vld [vmem:[%s6220_s7 + $0xf80] ss:$16 sps:$4 sm:$0xff]  }
 0x1f5   : > { %3903 = vmatprep.subr.bf16.mxu0 %v5965_v51  ;;  %4311 = vmatprep.subr.bf16.mxu1 %v5968_v38  ;;  %v6034_v51 = vld [vmem:[%s6220_s7 + $0xf88] ss:$16 sps:$4 sm:$0xff]   ;;  %v6039_v38 = vld [vmem:[%s6220_s7 + $0xfa4] ss:$16 sps:$4 sm:$0xff]  }
 0x1f6   : > { %3892 = vmatprep.mubr.bf16.mxu0 %v4640_v55  ;;  %4300 = vmatprep.mubr.bf16.mxu1 %v4640_v55  ;;  %v6042_v55 = vld [vmem:[%s6220_s7 + $0xfac] ss:$16 sps:$4 sm:$0xff]  }
 0x1f8   : > { %3904 = vmatpush1.bf16.msra.mxu0 %v5963_v33  ;;  %4312 = vmatpush1.bf16.msra.mxu1 %v5966_v34  ;;  %v6037_v33 = vld [vmem:[%s6220_s7 + $0xfa0] ss:$16 sps:$4 sm:$0xff]   ;;  %v6040_v34 = vld [vmem:[%s6220_s7 + $0xfa8] ss:$16 sps:$4 sm:$0xff]  }
 0x1f9   : > { %3905 = vmatprep.subr.bf16.mxu0 %v5973_v39  ;;  %4313 = vmatprep.subr.bf16.mxu1 %v5976_v40  ;;  %v6045_v39 = vld [vmem:[%s6220_s7 + $0xfc4] ss:$16 sps:$4 sm:$0xff]   ;;  %v6048_v40 = vld [vmem:[%s6220_s7 + $0xfcc] ss:$16 sps:$4 sm:$0xff]  }
 0x1fb   : > { %3893 = vmatmul.mubr.bf16.gmra.mrb[28].mxu0 %v4639_v56  ;;  %4301 = vmatmul.mubr.bf16.gmra.mrb[28].mxu1 %v4639_v56  ;;  %v6043_v56 = vld [vmem:[%s6220_s7 + $0xfc0] ss:$16 sps:$4 sm:$0xff]  }
 0x1fc   : > { %3906 = vmatpush1.bf16.msra.mxu0 %v5971_v58  ;;  %4314 = vmatpush1.bf16.msra.mxu1 %v5974_v59  ;;  %v6046_v58 = vld [vmem:[%s6220_s7 + $0xfc8] ss:$16 sps:$4 sm:$0xff]   ;;  %v6051_v59 = vld [vmem:[%s6220_s7 + $0xfe4] ss:$16 sps:$4 sm:$0xff]  }
 0x1fd   : > { %3907 = vmatprep.subr.bf16.mxu0 %v5979_v60  ;;  %4315 = vmatprep.subr.bf16.mxu1 %v5982_v61  ;;  %v6054_v60 = vld [vmem:[%s6220_s7 + $0xfec] ss:$16 sps:$4 sm:$0xff]   ;;  %v6049_v61 = vld [vmem:[%s6220_s7 + $0xfe0] ss:$16 sps:$4 sm:$0xff]  }
 0x1fe   : > { %3933 = vmatprep.mubr.bf16.mxu0 %v4626_v62  ;;  %4341 = vmatprep.mubr.bf16.mxu1 %v4626_v62  ;;  %v6052_v62 = vld [vmem:[%s6220_s7 + $0xfe8] ss:$16 sps:$4 sm:$0xff]  }
 0x200   : > { %3908 = vmatpush1.bf16.msra.mxu0 %v5977_v0  ;;  %4316 = vmatpush1.bf16.msra.mxu1 %v5980_v2  ;;  %v335_v0 = vld [vmem:[%s6222_s8 + $0xb8] sm:$0xff]  ;;  %v4625_v2 = vcombine.low %v6785_v57, %v6788_v41 }
 0x201   : > { %3909 = vmatprep.subr.bf16.mxu0 %v5985_v3  ;;  %4317 = vmatprep.subr.bf16.mxu1 %v5988_v6  ;;  %v4642_v3 = vcombine.high %v335_v0, %v335_v0  ;;  %v4641_v6 = vcombine.low %v335_v0, %v335_v0  ;;  %v308_v0 = vld [vmem:[#allocation2 + $0x40] sm:$0xff] }
 0x204   : > { %3910 = vmatpush1.bf16.msra.mxu0 %v5983_v7  ;;  %4318 = vmatpush1.bf16.msra.mxu1 %v5986_v10 }
 0x205   : > { %3911 = vmatprep.subr.bf16.mxu0 %v5991_v11  ;;  %4319 = vmatprep.subr.bf16.mxu1 %v5994_v47 }
 0x208   : > { %3912 = vmatpush1.bf16.msra.mxu0 %v5989_v63  ;;  %4320 = vmatpush1.bf16.msra.mxu1 %v5992_v48 }
 0x209   : > { %3913 = vmatprep.subr.bf16.mxu0 %v5997_v53  ;;  %4321 = vmatprep.subr.bf16.mxu1 %v6000_v1 }
 0x20c   : > { %3914 = vmatpush1.bf16.msra.mxu0 %v5995_v12  ;;  %4322 = vmatpush1.bf16.msra.mxu1 %v5998_v54 }
 0x20d   : > { %3915 = vmatprep.subr.bf16.mxu0 %v6003_v14  ;;  %4323 = vmatprep.subr.bf16.mxu1 %v6006_v15 }
 0x20e   : > { %v3741_v21 = vpop.f32.mrb[16].mxu0  ;;  %v4149_v22 = vpop.f32.mrb[16].mxu1 }
 0x20f   : > { %v6817_v23 = vadd.f32 %v3741_v21, %v6730_v4  ;;  %v6820_v24 = vadd.f32 %v4149_v22, %v6733_v5  ;;  %v3743_v25 = vpop.f32.mrb[17].mxu0  ;;  %v4151_v26 = vpop.f32.mrb[17].mxu1  ;;  %v6015_v5 = vld [vmem:[%s6220_s7 + $0xf24] ss:$16 sps:$4 sm:$0xff]  }
 0x210   : > { %v6823_v27 = vadd.f32 %v3743_v25, %v6736_v8  ;;  %v6826_v28 = vadd.f32 %v4151_v26, %v6739_v9  ;;  %3916 = vmatpush1.bf16.msra.mxu0 %v6001_v16  ;;  %4324 = vmatpush1.bf16.msra.mxu1 %v6004_v18  ;;  %v3745_v4 = vpop.f32.mrb[18].mxu0  ;;  %v4153_v17 = vpop.f32.mrb[18].mxu1  ;;  %v6018_v8 = vld [vmem:[%s6220_s7 + $0xf2c] ss:$16 sps:$4 sm:$0xff]   ;;  %v6013_v9 = vld [vmem:[%s6220_s7 + $0xf20] ss:$16 sps:$4 sm:$0xff]  }
 0x211   : > { %3917 = vmatprep.subr.bf16.mxu0 %v6009_v19  ;;  %4325 = vmatprep.subr.bf16.mxu1 %v6012_v20  ;;  %v3746_v30 = vpop.f32.mrb[19].mxu0  ;;  %v4154_v31 = vpop.f32.mrb[19].mxu1 }
 0x214   : > { %3918 = vmatpush1.bf16.msra.mxu0 %v6007_v29  ;;  %4326 = vmatpush1.bf16.msra.mxu1 %v6010_v13 }
 0x215   : > { %3919 = vmatprep.subr.bf16.mxu0 %v6015_v5  ;;  %4327 = vmatprep.subr.bf16.mxu1 %v6018_v8 }
 0x218   : > { %3920 = vmatpush1.bf16.msra.mxu0 %v6013_v9  ;;  %4328 = vmatpush1.bf16.msra.mxu1 %v6016_v32 }
 0x219   : > { %3921 = vmatprep.subr.bf16.mxu0 %v6021_v35  ;;  %4329 = vmatprep.subr.bf16.mxu1 %v6024_v36  ;;  %v300_v35 = vld [vmem:[#allocation2] sm:$0xff]  ;;  %v302_v36 = vld [vmem:[#allocation2 + $0x10] sm:$0xff] }
 0x21c   : > { %3922 = vmatpush1.bf16.msra.mxu0 %v6019_v37  ;;  %4330 = vmatpush1.bf16.msra.mxu1 %v6022_v42  ;;  %v301_v37 = vld [vmem:[#allocation2 + $0x8] sm:$0xff]  ;;  %v303_v42 = vld [vmem:[#allocation2 + $0x18] sm:$0xff] }
 0x21d   : > { %3923 = vmatprep.subr.bf16.mxu0 %v6027_v43  ;;  %4331 = vmatprep.subr.bf16.mxu1 %v6030_v44 }
 0x220   : > { %3924 = vmatpush1.bf16.msra.mxu0 %v6025_v45  ;;  %4332 = vmatpush1.bf16.msra.mxu1 %v6028_v46  ;;  %v304_v45 = vld [vmem:[#allocation2 + $0x20] sm:$0xff]  ;;  %v306_v46 = vld [vmem:[#allocation2 + $0x30] sm:$0xff] }
 0x221   : > { %3925 = vmatprep.subr.bf16.mxu0 %v6033_v49  ;;  %4333 = vmatprep.subr.bf16.mxu1 %v6036_v52 }
 0x224   : > { %3926 = vmatpush1.bf16.msra.mxu0 %v6031_v50  ;;  %4334 = vmatpush1.bf16.msra.mxu1 %v6034_v51 }
 0x225   : > { %3927 = vmatprep.subr.bf16.mxu0 %v6039_v38  ;;  %4335 = vmatprep.subr.bf16.mxu1 %v6042_v55  ;;  %v305_v38 = vld [vmem:[#allocation2 + $0x28] sm:$0xff]  ;;  %v307_v55 = vld [vmem:[#allocation2 + $0x38] sm:$0xff] }
 0x228   : > { %3928 = vmatpush1.bf16.msra.mxu0 %v6037_v33  ;;  %4336 = vmatpush1.bf16.msra.mxu1 %v6040_v34 }
 0x229   : > { %3929 = vmatprep.subr.bf16.mxu0 %v6045_v39  ;;  %4337 = vmatprep.subr.bf16.mxu1 %v6048_v40 }
 0x22c   : > { %3930 = vmatpush1.bf16.msra.mxu0 %v6043_v56  ;;  %4338 = vmatpush1.bf16.msra.mxu1 %v6046_v58 }
 0x22d   : > { %3931 = vmatprep.subr.bf16.mxu0 %v6051_v59  ;;  %4339 = vmatprep.subr.bf16.mxu1 %v6054_v60 }
 0x230   : > { %3932 = vmatpush1.bf16.msra.mxu0 %v6049_v61  ;;  %4340 = vmatpush1.bf16.msra.mxu1 %v6052_v62 }
 0x233   : > { %3934 = vmatmul.mubr.bf16.vlgmr.msra.gmra.mrb[0].mxu0 %v4625_v2  ;;  %4342 = vmatmul.mubr.bf16.vlgmr.msra.gmra.mrb[0].mxu1 %v4625_v2 }
 0x234   : > { %3943 = vmatprep.mubr.bf16.mxu0 %v4642_v3  ;;  %4351 = vmatprep.mubr.bf16.mxu1 %v4642_v3  ;;  %v310_v3 = vld [vmem:[#allocation2 + $0x50] sm:$0xff] }
 0x23b   : > { %3944 = vmatmul.mubr.bf16.gmra.mrb[32].mxu0 %v4641_v6  ;;  %4352 = vmatmul.mubr.bf16.gmra.mrb[32].mxu1 %v4641_v6 }
 0x24e   : > { %v3792_v7 = vpop.f32.mrb[20].mxu0  ;;  %v4200_v10 = vpop.f32.mrb[20].mxu1 }
 0x24f   : > { %v3793_v11 = vadd.f32 %v3792_v7, %v6817_v23  ;;  %v4201_v47 = vadd.f32 %v4200_v10, %v6820_v24  ;;  %v3794_v63 = vpop.f32.mrb[21].mxu0  ;;  %v4202_v48 = vpop.f32.mrb[21].mxu1 }
 0x250   : > { %v3795_v57 = vadd.f32 %v3794_v63, %v6823_v27  ;;  %v4203_v41 = vadd.f32 %v4202_v48, %v6826_v28  ;;  %v3796_v53 = vpop.f32.mrb[22].mxu0  ;;  %v4204_v1 = vpop.f32.mrb[22].mxu1  ;;  %v311_v63 = vld [vmem:[#allocation2 + $0x58] sm:$0xff] }
 0x251   : > { %v3797_v12 = vpop.f32.mrb[23].mxu0  ;;  %v4205_v54 = vpop.f32.mrb[23].mxu1 }
 0x28e   : > { %v3843_v14 = vpop.f32.mrb[24].mxu0  ;;  %v4251_v15 = vpop.f32.mrb[24].mxu1 }
 0x28f   : > { %v3844_v16 = vadd.f32 %v3843_v14, %v3793_v11  ;;  %v4252_v18 = vadd.f32 %v4251_v15, %v4201_v47  ;;  %v3845_v19 = vpop.f32.mrb[25].mxu0  ;;  %v4253_v20 = vpop.f32.mrb[25].mxu1  ;;  %v309_v11 = vld [vmem:[#allocation2 + $0x48] sm:$0xff] }
 0x290   : > { %v3846_v21 = vadd.f32 %v3845_v19, %v3795_v57  ;;  %v4254_v22 = vadd.f32 %v4253_v20, %v4203_v41  ;;  %v3847_v23 = vpop.f32.mrb[26].mxu0  ;;  %v4255_v24 = vpop.f32.mrb[26].mxu1  ;;  %v4402_v19 = vlaneseq (!%p5155_p11) }
 0x291   : > { %v3848_v25 = vpop.f32.mrb[27].mxu0  ;;  %v4256_v26 = vpop.f32.mrb[27].mxu1 }
 0x292   : > { %v4403_v20 = vshrl.u32 (!%p5155_p11), %v4402_v19, 7 }
 0x294   : > { %v4404_v24 = vsub.s32 (!%p5155_p11), 0, %v4403_v20  ;;  %v4408_v25 = vsub.s32 (!%p5155_p11), 1, %v4403_v20  ;;  %v4412_v26 = vsub.s32 (!%p5155_p11), 2, %v4403_v20 }
 0x2ce   : > { %v3894_v29 = vpop.f32.mrb[28].mxu0  ;;  %v4302_v27 = vpop.f32.mrb[28].mxu1 }
 0x2cf   : > { %v3895_v13 = vadd.f32 %v3894_v29, %v3844_v16  ;;  %v4303_v28 = vadd.f32 %v4302_v27, %v4252_v18  ;;  %v3896_v4 = vpop.f32.mrb[29].mxu0  ;;  %v4304_v17 = vpop.f32.mrb[29].mxu1  ;;  %v4416_v29 = vsub.s32 (!%p5155_p11), 3, %v4403_v20 }
 0x2d0   : > { %v3897_v5 = vadd.f32 %v3896_v4, %v3846_v21  ;;  %v4305_v8 = vadd.f32 %v4304_v17, %v4254_v22  ;;  %v3898_v30 = vpop.f32.mrb[30].mxu0  ;;  %v4306_v31 = vpop.f32.mrb[30].mxu1  ;;  %v4400_v21 = vld [vmem:[%s6905_s2] sm:$0xf] (!%p5155_p11) }
 0x2d1   : > { %v3899_v9 = vpop.f32.mrb[31].mxu0  ;;  %v4307_v32 = vpop.f32.mrb[31].mxu1  ;;  %v4405_v4 = vrot.slane (!%p5155_p11), %v4400_v21, %v4404_v24  ;;  %v4409_v17 = vrot.slane (!%p5155_p11), %v4400_v21, %v4408_v25 }
 0x306   : > { %v3935_v43 = vpop.f32.mrb[0].mxu0  ;;  %v4343_v44 = vpop.f32.mrb[0].mxu1 }
 0x307   : > { %v4360_v49 = vadd.f32 %v3935_v43, %v300_v35  ;;  %v4362_v52 = vadd.f32 %v4343_v44, %v302_v36  ;;  %v3937_v50 = vpop.f32.mrb[1].mxu0  ;;  %v4345_v51 = vpop.f32.mrb[1].mxu1 }
 0x308   : > { %v4361_v33 = vadd.f32 %v3937_v50, %v301_v37  ;;  %v4363_v34 = vadd.f32 %v4345_v51, %v303_v42  ;;  %v3939_v39 = vpop.f32.mrb[2].mxu0  ;;  %v4347_v40 = vpop.f32.mrb[2].mxu1 }
 0x309   : > { %4372 = vst [vmem:[#allocation2] sm:$0xff] %v4360_v49  ;;  %4374 = vst [vmem:[#allocation2 + $0x10] sm:$0xff] %v4362_v52  ;;  %v4364_v56 = vadd.f32 %v3939_v39, %v304_v45  ;;  %v4366_v58 = vadd.f32 %v4347_v40, %v306_v46  ;;  %v3941_v59 = vpop.f32.mrb[3].mxu0  ;;  %v4349_v60 = vpop.f32.mrb[3].mxu1 }
 0x30a   : > { %4373 = vst [vmem:[#allocation2 + $0x8] sm:$0xff] %v4361_v33  ;;  %4375 = vst [vmem:[#allocation2 + $0x18] sm:$0xff] %v4363_v34  ;;  %v4365_v61 = vadd.f32 %v3941_v59, %v305_v38  ;;  %v4367_v62 = vadd.f32 %v4349_v60, %v307_v55 }
 0x30b   : > { %4376 = vst [vmem:[#allocation2 + $0x20] sm:$0xff] %v4364_v56  ;;  %4378 = vst [vmem:[#allocation2 + $0x30] sm:$0xff] %v4366_v58 }
 0x30c   : > { %4377 = vst [vmem:[#allocation2 + $0x28] sm:$0xff] %v4365_v61  ;;  %4379 = vst [vmem:[#allocation2 + $0x38] sm:$0xff] %v4367_v62 }
 0x30e   : > { %v3945_v2 = vpop.f32.mrb[32].mxu0  ;;  %v4353_v6 = vpop.f32.mrb[32].mxu1  ;;  %4387 = sbr.rel (%p5155_p11) target bundleno = 805 (0x325), region = 63 }
 0x30f   : > { %v3946_v7 = vadd.f32 %v3945_v2, %v3895_v13  ;;  %v4354_v10 = vadd.f32 %v4353_v6, %v4303_v28  ;;  %v3947_v47 = vpop.f32.mrb[33].mxu0  ;;  %v4355_v48 = vpop.f32.mrb[33].mxu1 }
 0x310   : > { %v3948_v57 = vadd.f32 %v3947_v47, %v3897_v5  ;;  %v4356_v41 = vadd.f32 %v4355_v48, %v4305_v8  ;;  %v3949_v53 = vpop.f32.mrb[34].mxu0  ;;  %v4357_v1 = vpop.f32.mrb[34].mxu1  ;;  %v4388_v22 = vld [vmem:[#allocation2] sm:$0xff] (!%p5155_p11)  ;;  %v4390_v27 = vld [vmem:[#allocation2 + $0x10] sm:$0xff] (!%p5155_p11)  ;;  %v4413_v5 = vrot.slane (!%p5155_p11), %v4400_v21, %v4412_v26  ;;  %v4417_v8 = vrot.slane (!%p5155_p11), %v4400_v21, %v4416_v29 }
 0x311   : > { %v4368_v12 = vadd.f32 %v3946_v7, %v308_v0  ;;  %v4370_v54 = vadd.f32 %v4354_v10, %v310_v3  ;;  %v3950_v14 = vpop.f32.mrb[35].mxu0  ;;  %v4358_v15 = vpop.f32.mrb[35].mxu1  ;;  %v4389_v23 = vld [vmem:[#allocation2 + $0x8] sm:$0xff] (!%p5155_p11)  ;;  %v4391_v13 = vld [vmem:[#allocation2 + $0x18] sm:$0xff] (!%p5155_p11)  ;;  %v4422_v32 = vadd.f32 (!%p5155_p11), %v4405_v4, %v4388_v22 }
 0x312   : > { %v4369_v16 = vadd.f32 %v3948_v57, %v309_v11  ;;  %v4371_v18 = vadd.f32 %v4356_v41, %v311_v63  ;;  %v4392_v28 = vld [vmem:[#allocation2 + $0x20] sm:$0xff] (!%p5155_p11)  ;;  %v4394_v31 = vld [vmem:[#allocation2 + $0x30] sm:$0xff] (!%p5155_p11)  ;;  %v4423_v35 = vadd.f32 (!%p5155_p11), %v4409_v17, %v4389_v23  ;;  %v4424_v36 = vadd.f32 (!%p5155_p11), %v4413_v5, %v4390_v27 }
 0x313   : > { %4380 = vst [vmem:[#allocation2 + $0x40] sm:$0xff] %v4368_v12  ;;  %4382 = vst [vmem:[#allocation2 + $0x50] sm:$0xff] %v4370_v54  ;;  %v4393_v30 = vld [vmem:[#allocation2 + $0x28] sm:$0xff] (!%p5155_p11)  ;;  %v4395_v9 = vld [vmem:[#allocation2 + $0x38] sm:$0xff] (!%p5155_p11)  ;;  %v4425_v37 = vadd.f32 (!%p5155_p11), %v4417_v8, %v4391_v13  ;;  %v4426_v42 = vadd.f32 (!%p5155_p11), %v4405_v4, %v4392_v28  ;;  %v4428_v44 = vadd.f32 (!%p5155_p11), %v4413_v5, %v4394_v31  ;;  %vm4434_vm0 = vcmp.ge.f32.partialorder (!%p5155_p11), %v4422_v32, 0.0 }
 0x314   : > { %4381 = vst [vmem:[#allocation2 + $0x48] sm:$0xff] %v4369_v16  ;;  %4383 = vst [vmem:[#allocation2 + $0x58] sm:$0xff] %v4371_v18  ;;  %v4427_v43 = vadd.f32 (!%p5155_p11), %v4409_v17, %v4393_v30  ;;  %v4429_v45 = vadd.f32 (!%p5155_p11), %v4417_v8, %v4395_v9  ;;  %vm4435_vm1 = vcmp.ge.f32.partialorder (!%p5155_p11), %v4423_v35, 0.0  ;;  %v4446_v46 = vmul.f32 (!%p5155_p11), 0.2, %v4422_v32 }
 0x315   : > { %v4447_v49 = vmul.f32 0.2, %v4423_v35  ;;  %vm4436_vm2 = vcmp.ge.f32.partialorder %v4424_v36, 0.0  ;;  %vm4437_vm3 = vcmp.ge.f32.partialorder %v4425_v37, 0.0  ;;  %v4448_v52 = vmul.f32 0.2, %v4424_v36 }
 0x316   : > { %v4449_v50 = vmul.f32 0.2, %v4425_v37  ;;  %v4458_v51 = vsel %vm4434_vm0, %v4422_v32, %v4446_v46  ;;  %vm4438_vm4 = vcmp.ge.f32.partialorder %v4426_v42, 0.0  ;;  %vm4439_vm5 = vcmp.ge.f32.partialorder %v4427_v43, 0.0 }
 0x317   : > { %v4459_v38 = vsel %vm4435_vm1, %v4423_v35, %v4447_v49  ;;  %v4460_v34 = vsel %vm4436_vm2, %v4424_v36, %v4448_v52  ;;  %v4450_v40 = vmul.f32 0.2, %v4426_v42  ;;  %v4451_v61 = vmul.f32 0.2, %v4427_v43 }
 0x318   : > { %v5168_v33 = vpack.c.bf16 %v4459_v38, %v4458_v51  ;;  %v4461_v39 = vsel %vm4437_vm3, %v4425_v37, %v4449_v50  ;;  %vm4440_vm6 = vcmp.ge.f32.partialorder %v4428_v44, 0.0  ;;  %vm4441_vm7 = vcmp.ge.f32.partialorder %v4429_v45, 0.0 }
 0x319   : > { %v5169_v60 = vpack.c.bf16 %v4461_v39, %v4460_v34  ;;  %v4462_v62 = vsel %vm4438_vm4, %v4426_v42, %v4450_v40  ;;  %v4452_v0 = vmul.f32 0.2, %v4428_v44  ;;  %v4453_v2 = vmul.f32 0.2, %v4429_v45 }
 0x31a   : > { %v4396_v55 = vld [vmem:[#allocation2 + $0x40] sm:$0xff]  ;;  %v4398_v58 = vld [vmem:[#allocation2 + $0x50] sm:$0xff]  ;;  %4510 = vst [vmem:[%s6906_s3] sm:$0xff] %v5168_v33  ;;  %v4463_v6 = vsel %vm4439_vm5, %v4427_v43, %v4451_v61 }
 0x31b   : > { %v4397_v56 = vld [vmem:[#allocation2 + $0x48] sm:$0xff]  ;;  %v4399_v59 = vld [vmem:[#allocation2 + $0x58] sm:$0xff]  ;;  %v4430_v3 = vadd.f32 %v4405_v4, %v4396_v55  ;;  %4511 = vst [vmem:[%s6906_s3 + $0x8] sm:$0xff] %v5169_v60  ;;  %v4432_v10 = vadd.f32 %v4413_v5, %v4398_v58  ;;  %v5170_v47 = vpack.c.bf16 %v4463_v6, %v4462_v62  ;;  %v4464_v63 = vsel %vm4440_vm6, %v4428_v44, %v4452_v0 }
 0x31c   : > { %v4431_v7 = vadd.f32 %v4409_v17, %v4397_v56  ;;  %v4433_v11 = vadd.f32 %v4417_v8, %v4399_v59  ;;  %v4465_v48 = vsel %vm4441_vm7, %v4429_v45, %v4453_v2 }
 0x31d   : > { %vm4442_vm8 = vcmp.ge.f32.partialorder %v4430_v3, 0.0  ;;  %v5171_v57 = vpack.c.bf16 %v4465_v48, %v4464_v63  ;;  %v4454_v41 = vmul.f32 0.2, %v4430_v3  ;;  %4512 = vst [vmem:[%s6906_s3 + $0x10] sm:$0xff] %v5170_v47  ;;  %vm4444_vm10 = vcmp.ge.f32.partialorder %v4432_v10, 0.0 }
 0x31e   : > { %vm4443_vm9 = vcmp.ge.f32.partialorder %v4431_v7, 0.0  ;;  %v4455_v53 = vmul.f32 0.2, %v4431_v7  ;;  %vm4445_vm11 = vcmp.ge.f32.partialorder %v4433_v11, 0.0  ;;  %v4456_v1 = vmul.f32 0.2, %v4432_v10 }
 0x31f   : > { %v4457_v12 = vmul.f32 0.2, %v4433_v11  ;;  %4513 = vst [vmem:[%s6906_s3 + $0x18] sm:$0xff] %v5171_v57  ;;  %v4466_v54 = vsel %vm4442_vm8, %v4430_v3, %v4454_v41 }
 0x320   : > { %v4467_v14 = vsel %vm4443_vm9, %v4431_v7, %v4455_v53  ;;  %v4468_v16 = vsel %vm4444_vm10, %v4432_v10, %v4456_v1 }
 0x321   : > { %v5172_v15 = vpack.c.bf16 %v4467_v14, %v4466_v54  ;;  %v4469_v18 = vsel %vm4445_vm11, %v4433_v11, %v4457_v12 }
 0x322   : > { %v5173_v19 = vpack.c.bf16 %v4469_v18, %v4468_v16 }
 0x323   : > { %4514 = vst [vmem:[%s6906_s3 + $0x20] sm:$0xff] %v5172_v15 }
 0x324   : > { %4515 = vst [vmem:[%s6906_s3 + $0x28] sm:$0xff] %v5173_v19 }
 0x325 PF: > { %s13_s16 = sadd.s32 1, %s6095_s16   ;;  %s6907_s12 = smov %s6083_s13 }
 0x326   : > { %p10_p12 = scmp.ge.s32.totalorder %s13_s16, 4   ;;  %s6908_s13 = smov %s6153_s20 }
 0x327   : > { %s6909_s14 = smov %s6091_s15  ;;  %s6910_s15 = smov %s6912_s17 }
 0x328   :  { %12 = sbr.rel (!%p10_p12) target bundleno = 3 (0x3), region = 101 }

// kernel: _lambda_.9
= control target key start
LH: loop header
LB: loop body
LE: loop exit
PB: predicated region body
PF: predicated region fallthrough
CT: control target
= control target key end

     0   :  { %s2275_s12 = smov 0   ;;  %s2277_s13 = smov 0   ;;  %s2460_s0 = inlined_call_operand.vmem [shape: bf16[8,8192], index: 0, kind: input, shape index: {}]   ;;  %s2461_s1 = inlined_call_operand.vmem [shape: bf16[8192,128], index: 1, kind: input, shape index: {}]   ;;  %s2462_s2 = inlined_call_operand.vmem [shape: f32[1,128], index: 2, kind: input, shape index: {}]   ;;  %s2463_s3 = inlined_call_operand.vmem [shape: f32[8,128], index: 3, kind: output, shape index: {}]  }
   0x1   :  { %s2279_s14 = smov 0  }
   0x2 LB: > { %s22_s15 = sadd.s32 1, %s2248_s13  ;;  %p1730_p0 = scmp.ge.s32.totalorder %s2252_s14, 1  ;;  %s2252_s14 = sphi %s2279_s14, %s13_s14   ;;  %s2248_s13 = sphi %s2277_s13, %s2465_s13   ;;  %s2244_s12 = sphi %s2275_s12, %s2464_s12  }
   0x3   : > { %p23_p1 = scmp.ge.s32.totalorder %s22_s15, 4  ;;  %p167_p2 = scmp.lt.s32.totalorder %s2252_s14, 5 }
   0x5   : > { %s2467_s15 = smov (%p23_p1, %s22_s15), 0  ;;  %p168_p3 = pnand %p1730_p0, %p167_p2 }
   0x6   : > { %s1731_s16 = sshll.u32 (!%p168_p3), %s2244_s12, 4  ;;  %s1733_s17 = sshll.u32 (!%p168_p3), %s2244_s12, 8 }
   0x7   : > { %171 = sbr.rel (%p168_p3) target bundleno = 386 (0x182), region = 32  ;;  %p202_p4 = scmp.lt.s32.totalorder (!%p168_p3), %s1731_s16, 63 }
   0x8   : > { %p210_p5 = scmp.lt.s32.totalorder (!%p168_p3), %s1733_s17, 1023  ;;  %p1735_p6 = scmp.ne.s32.totalorder (!%p168_p3), %s2244_s12, 0 }
   0xe   : > { %s2469_s16 = smov (!%p202_p4, %s1731_s16), 63  ;;  %s2471_s17 = smov (!%p210_p5, %s1733_s17), 1023 }
   0xf   : > { %s1732_s18 = sshll.u32 %s2469_s16, 2  ;;  %s1734_s22 = sshll.u32 %s2471_s17, 2  ;;  %v2254_v0 = vmov (!%p1735_p6), 0.0  }
  0x10   : > { %s2300_s21 = scalar_lea.vmem %s2460_s0, %s1732_s18  ;;  %s2305_s25 = scalar_lea.vmem %s2461_s1, %s1734_s22  ;;  %224 = vst [vmem:[#allocation2] sm:$0xff] (!%p1735_p6), %v2254_v0 }
  0x11   : > { %223 = sbr.rel (%p1735_p6) target bundleno = 24 (0x18), region = 36 }
  0x18 PF: > { %v2086_v1 = vld [vmem:[%s2305_s25 + $0x40] sm:$0xff]   ;;  %v2090_v5 = vld [vmem:[%s2305_s25 + $0x48] sm:$0xff]   ;;  %v2094_v9 = vld [vmem:[%s2305_s25 + $0x50] sm:$0xff]   ;;  %p1880_p7 = scmp.ne.s32.totalorder %s2244_s12, 3 }
  0x19   : > { %v2087_v2 = vld [vmem:[%s2305_s25 + $0xc0] sm:$0xff]   ;;  %1885 = vmatprep.subr.bf16.mxu0 %v2086_v1  ;;  %v2091_v6 = vld [vmem:[%s2305_s25 + $0xc8] sm:$0xff]   ;;  %v2095_v10 = vld [vmem:[%s2305_s25 + $0xd0] sm:$0xff]  }
  0x1a   : > { %v2088_v3 = vld [vmem:[%s2305_s25] sm:$0xff]   ;;  %1907 = vmatprep.subr.bf16.mxu1 %v2087_v2  ;;  %v2092_v7 = vld [vmem:[%s2305_s25 + $0x8] sm:$0xff]   ;;  %v2096_v11 = vld [vmem:[%s2305_s25 + $0x10] sm:$0xff]  }
  0x1b   : > { %v2089_v4 = vld [vmem:[%s2305_s25 + $0x80] sm:$0xff]   ;;  %1886 = vmatpush3.bf16.msra.mxu0 %v2088_v3  ;;  %v2093_v8 = vld [vmem:[%s2305_s25 + $0x88] sm:$0xff]   ;;  %v2097_v12 = vld [vmem:[%s2305_s25 + $0x90] sm:$0xff]  }
  0x1c   : > { %1908 = vmatpush3.bf16.msra.mxu1 %v2089_v4  ;;  %1887 = vmatprep.subr.bf16.mxu0 %v2090_v5  ;;  %v2098_v13 = vld [vmem:[%s2305_s25 + $0x58] sm:$0xff]   ;;  %v2102_v17 = vld [vmem:[%s2305_s25 + $0x60] sm:$0xff]   ;;  %v2106_v21 = vld [vmem:[%s2305_s25 + $0x68] sm:$0xff]  }
  0x1d   : > { %1909 = vmatprep.subr.bf16.mxu1 %v2091_v6  ;;  %v2099_v14 = vld [vmem:[%s2305_s25 + $0xd8] sm:$0xff]   ;;  %v2103_v18 = vld [vmem:[%s2305_s25 + $0xe0] sm:$0xff]   ;;  %v2107_v22 = vld [vmem:[%s2305_s25 + $0xe8] sm:$0xff]  }
  0x1e   : > { %v2100_v15 = vld [vmem:[%s2305_s25 + $0x18] sm:$0xff]   ;;  %v2104_v19 = vld [vmem:[%s2305_s25 + $0x20] sm:$0xff]   ;;  %v2108_v23 = vld [vmem:[%s2305_s25 + $0x28] sm:$0xff]  }
  0x1f   : > { %1888 = vmatpush3.bf16.msra.mxu0 %v2092_v7  ;;  %v2101_v16 = vld [vmem:[%s2305_s25 + $0x98] sm:$0xff]   ;;  %v2105_v20 = vld [vmem:[%s2305_s25 + $0xa0] sm:$0xff]   ;;  %v2109_v24 = vld [vmem:[%s2305_s25 + $0xa8] sm:$0xff]  }
  0x20   : > { %1910 = vmatpush3.bf16.msra.mxu1 %v2093_v8  ;;  %1889 = vmatprep.subr.bf16.mxu0 %v2094_v9  ;;  %v2110_v25 = vld [vmem:[%s2305_s25 + $0x70] sm:$0xff]   ;;  %v2114_v29 = vld [vmem:[%s2305_s25 + $0x78] sm:$0xff]   ;;  %v226_v33 = vld [vmem:[%s2300_s21] sm:$0xff] }
  0x21   : > { %1911 = vmatprep.subr.bf16.mxu1 %v2095_v10  ;;  %v2111_v26 = vld [vmem:[%s2305_s25 + $0xf0] sm:$0xff]   ;;  %v2115_v30 = vld [vmem:[%s2305_s25 + $0xf8] sm:$0xff]   ;;  %v227_v34 = vld [vmem:[%s2300_s21 + $0x8] sm:$0xff]  ;;  %v1736_v35 = vcombine.low %v226_v33, %v226_v33  ;;  %v1737_v36 = vcombine.high %v226_v33, %v226_v33 }
  0x22   : > { %v2112_v27 = vld [vmem:[%s2305_s25 + $0x30] sm:$0xff]   ;;  %v2116_v31 = vld [vmem:[%s2305_s25 + $0x38] sm:$0xff]   ;;  %v1738_v37 = vcombine.low %v227_v34, %v227_v34  ;;  %v1739_v38 = vcombine.high %v227_v34, %v227_v34  ;;  %v2122_v39 = vld [vmem:[%s2305_s25 + $0x140] sm:$0xff]  }
  0x23   : > { %1890 = vmatpush3.bf16.msra.mxu0 %v2096_v11  ;;  %v2113_v28 = vld [vmem:[%s2305_s25 + $0xb0] sm:$0xff]   ;;  %v2117_v32 = vld [vmem:[%s2305_s25 + $0xb8] sm:$0xff]   ;;  %v2123_v40 = vld [vmem:[%s2305_s25 + $0x1c0] sm:$0xff]   ;;  %1346 = vmatprep.mubr.bf16.mxu0 %v1737_v36 }
  0x24   : > { %1912 = vmatpush3.bf16.msra.mxu1 %v2097_v12  ;;  %1891 = vmatprep.subr.bf16.mxu0 %v2098_v13  ;;  %v2124_v41 = vld [vmem:[%s2305_s25 + $0x100] sm:$0xff]   ;;  %v2126_v43 = vld [vmem:[%s2305_s25 + $0x148] sm:$0xff]   ;;  %v2130_v47 = vld [vmem:[%s2305_s25 + $0x150] sm:$0xff]  }
  0x25   : > { %1913 = vmatprep.subr.bf16.mxu1 %v2099_v14  ;;  %1386 = vmatprep.mubr.bf16.mxu1 %v1739_v38  ;;  %v2125_v42 = vld [vmem:[%s2305_s25 + $0x180] sm:$0xff]   ;;  %v2127_v44 = vld [vmem:[%s2305_s25 + $0x1c8] sm:$0xff]   ;;  %v2131_v48 = vld [vmem:[%s2305_s25 + $0x1d0] sm:$0xff]  }
  0x26   : > { %v2128_v45 = vld [vmem:[%s2305_s25 + $0x108] sm:$0xff]   ;;  %v2132_v49 = vld [vmem:[%s2305_s25 + $0x110] sm:$0xff]   ;;  %v2134_v51 = vld [vmem:[%s2305_s25 + $0x158] sm:$0xff]  }
  0x27   : > { %1892 = vmatpush3.bf16.msra.mxu0 %v2100_v15  ;;  %v2129_v46 = vld [vmem:[%s2305_s25 + $0x188] sm:$0xff]   ;;  %v2133_v50 = vld [vmem:[%s2305_s25 + $0x190] sm:$0xff]   ;;  %v2135_v52 = vld [vmem:[%s2305_s25 + $0x1d8] sm:$0xff]  }
  0x28   : > { %1914 = vmatpush3.bf16.msra.mxu1 %v2101_v16  ;;  %1893 = vmatprep.subr.bf16.mxu0 %v2102_v17  ;;  %v2136_v53 = vld [vmem:[%s2305_s25 + $0x118] sm:$0xff]   ;;  %v2138_v55 = vld [vmem:[%s2305_s25 + $0x160] sm:$0xff]   ;;  %v2142_v59 = vld [vmem:[%s2305_s25 + $0x168] sm:$0xff]  }
  0x29   : > { %1915 = vmatprep.subr.bf16.mxu1 %v2103_v18  ;;  %v2137_v54 = vld [vmem:[%s2305_s25 + $0x198] sm:$0xff]   ;;  %v2139_v56 = vld [vmem:[%s2305_s25 + $0x1e0] sm:$0xff]   ;;  %v2143_v60 = vld [vmem:[%s2305_s25 + $0x1e8] sm:$0xff]  }
  0x2a   : > { %v2140_v57 = vld [vmem:[%s2305_s25 + $0x120] sm:$0xff]   ;;  %v2144_v61 = vld [vmem:[%s2305_s25 + $0x128] sm:$0xff]   ;;  %v2146_v63 = vld [vmem:[%s2305_s25 + $0x170] sm:$0xff]  }
  0x2b   : > { %1894 = vmatpush3.bf16.msra.mxu0 %v2104_v19  ;;  %v2141_v58 = vld [vmem:[%s2305_s25 + $0x1a0] sm:$0xff]   ;;  %v2145_v62 = vld [vmem:[%s2305_s25 + $0x1a8] sm:$0xff]   ;;  %v2147_v0 = vld [vmem:[%s2305_s25 + $0x1f0] sm:$0xff]  }
  0x2c   : > { %1916 = vmatpush3.bf16.msra.mxu1 %v2105_v20  ;;  %1895 = vmatprep.subr.bf16.mxu0 %v2106_v21  ;;  %v2148_v1 = vld [vmem:[%s2305_s25 + $0x130] sm:$0xff]   ;;  %v2150_v3 = vld [vmem:[%s2305_s25 + $0x178] sm:$0xff]   ;;  %v2158_v13 = vld [vmem:[%s2305_s25 + $0x240] sm:$0xff]  }
  0x2d   : > { %1917 = vmatprep.subr.bf16.mxu1 %v2107_v22  ;;  %v2149_v2 = vld [vmem:[%s2305_s25 + $0x1b0] sm:$0xff]   ;;  %v2151_v4 = vld [vmem:[%s2305_s25 + $0x1f8] sm:$0xff]   ;;  %v2159_v14 = vld [vmem:[%s2305_s25 + $0x2c0] sm:$0xff]  }
  0x2e   : > { %v2152_v5 = vld [vmem:[%s2305_s25 + $0x138] sm:$0xff]   ;;  %v228_v7 = vld [vmem:[%s2300_s21 + $0x10] sm:$0xff]  ;;  %v2160_v15 = vld [vmem:[%s2305_s25 + $0x200] sm:$0xff]  }
  0x2f   : > { %1896 = vmatpush3.bf16.msra.mxu0 %v2108_v23  ;;  %v2153_v6 = vld [vmem:[%s2305_s25 + $0x1b8] sm:$0xff]   ;;  %v1740_v8 = vcombine.low %v228_v7, %v228_v7  ;;  %v1741_v9 = vcombine.high %v228_v7, %v228_v7  ;;  %v2161_v16 = vld [vmem:[%s2305_s25 + $0x280] sm:$0xff]   ;;  %v2162_v17 = vld [vmem:[%s2305_s25 + $0x248] sm:$0xff]  }
  0x30   : > { %1918 = vmatpush3.bf16.msra.mxu1 %v2109_v24  ;;  %1897 = vmatprep.subr.bf16.mxu0 %v2110_v25  ;;  %v229_v10 = vld [vmem:[%s2300_s21 + $0x18] sm:$0xff]  ;;  %v2163_v18 = vld [vmem:[%s2305_s25 + $0x2c8] sm:$0xff]   ;;  %v2166_v21 = vld [vmem:[%s2305_s25 + $0x250] sm:$0xff]  }
  0x31   : > { %1919 = vmatprep.subr.bf16.mxu1 %v2111_v26  ;;  %v1742_v11 = vcombine.low %v229_v10, %v229_v10  ;;  %v1743_v12 = vcombine.high %v229_v10, %v229_v10  ;;  %v2164_v19 = vld [vmem:[%s2305_s25 + $0x208] sm:$0xff]   ;;  %v2167_v22 = vld [vmem:[%s2305_s25 + $0x2d0] sm:$0xff]   ;;  %v2170_v25 = vld [vmem:[%s2305_s25 + $0x258] sm:$0xff]  }
  0x32   : > { %v2165_v20 = vld [vmem:[%s2305_s25 + $0x288] sm:$0xff]   ;;  %v2168_v23 = vld [vmem:[%s2305_s25 + $0x210] sm:$0xff]   ;;  %v2171_v26 = vld [vmem:[%s2305_s25 + $0x2d8] sm:$0xff]  }
  0x33   : > { %1898 = vmatpush3.bf16.msra.mxu0 %v2112_v27  ;;  %v2169_v24 = vld [vmem:[%s2305_s25 + $0x290] sm:$0xff]   ;;  %v2172_v27 = vld [vmem:[%s2305_s25 + $0x218] sm:$0xff]   ;;  %v2178_v33 = vld [vmem:[%s2305_s25 + $0x268] sm:$0xff]  }
  0x34   : > { %1920 = vmatpush3.bf16.msra.mxu1 %v2113_v28  ;;  %1899 = vmatprep.subr.bf16.mxu0 %v2114_v29  ;;  %v2173_v28 = vld [vmem:[%s2305_s25 + $0x298] sm:$0xff]   ;;  %v2174_v29 = vld [vmem:[%s2305_s25 + $0x260] sm:$0xff]   ;;  %v2179_v34 = vld [vmem:[%s2305_s25 + $0x2e8] sm:$0xff]  }
  0x35   : > { %1921 = vmatprep.subr.bf16.mxu1 %v2115_v30  ;;  %v2175_v30 = vld [vmem:[%s2305_s25 + $0x2e0] sm:$0xff]   ;;  %v2181_v36 = vld [vmem:[%s2305_s25 + $0x2a8] sm:$0xff]   ;;  %v2183_v38 = vld [vmem:[%s2305_s25 + $0x2f0] sm:$0xff]  }
  0x36   : > { %v2214_v7 = vld [vmem:[%s2305_s25 + $0x368] sm:$0xff]  }
  0x37   : > { %1900 = vmatpush3.bf16.msra.mxu0 %v2116_v31  ;;  %v2176_v31 = vld [vmem:[%s2305_s25 + $0x220] sm:$0xff]   ;;  %v2217_v10 = vld [vmem:[%s2305_s25 + $0x3a8] sm:$0xff]  }
  0x38   : > { %1922 = vmatpush3.bf16.msra.mxu1 %v2117_v32  ;;  %1929 = vmatprep.subr.bf16.mxu0 %v2122_v39  ;;  %v2177_v32 = vld [vmem:[%s2305_s25 + $0x2a0] sm:$0xff]   ;;  %v2184_v39 = vld [vmem:[%s2305_s25 + $0x230] sm:$0xff]  }
  0x39   : > { %1951 = vmatprep.subr.bf16.mxu1 %v2123_v40  ;;  %v2185_v40 = vld [vmem:[%s2305_s25 + $0x2b0] sm:$0xff]  }
  0x3a   : > { %1347 = vmatmul.mubr.bf16.vlgmr.msra.gmra.mrb[0].mxu0 %v1736_v35  ;;  %v2180_v35 = vld [vmem:[%s2305_s25 + $0x228] sm:$0xff]  }
  0x3b   : > { %1387 = vmatmul.mubr.bf16.vlgmr.msra.gmra.mrb[0].mxu1 %v1738_v37  ;;  %1930 = vmatpush3.bf16.msra.mxu0 %v2124_v41  ;;  %v2182_v37 = vld [vmem:[%s2305_s25 + $0x270] sm:$0xff]   ;;  %v2186_v41 = vld [vmem:[%s2305_s25 + $0x278] sm:$0xff]  }
  0x3c   : > { %1952 = vmatpush3.bf16.msra.mxu1 %v2125_v42  ;;  %1931 = vmatprep.subr.bf16.mxu0 %v2126_v43  ;;  %v2187_v42 = vld [vmem:[%s2305_s25 + $0x2f8] sm:$0xff]  }
  0x3d   : > { %1953 = vmatprep.subr.bf16.mxu1 %v2127_v44  ;;  %1426 = vmatprep.mubr.bf16.mxu0 %v1741_v9  ;;  %v2188_v43 = vld [vmem:[%s2305_s25 + $0x238] sm:$0xff]   ;;  %v2216_v9 = vld [vmem:[%s2305_s25 + $0x328] sm:$0xff]  }
  0x3e   : > { %1466 = vmatprep.mubr.bf16.mxu1 %v1743_v12  ;;  %v2189_v44 = vld [vmem:[%s2305_s25 + $0x2b8] sm:$0xff]   ;;  %v2219_v12 = vld [vmem:[%s2305_s25 + $0x3f0] sm:$0xff]  }
  0x3f   : > { %1932 = vmatpush3.bf16.msra.mxu0 %v2128_v45  ;;  %v230_v45 = vld [vmem:[%s2300_s21 + $0x20] sm:$0xff] }
  0x40   : > { %1954 = vmatpush3.bf16.msra.mxu1 %v2129_v46  ;;  %1933 = vmatprep.subr.bf16.mxu0 %v2130_v47  ;;  %v231_v46 = vld [vmem:[%s2300_s21 + $0x28] sm:$0xff]  ;;  %v1744_v47 = vcombine.low %v230_v45, %v230_v45 }
  0x41   : > { %1955 = vmatprep.subr.bf16.mxu1 %v2131_v48  ;;  %v1745_v48 = vcombine.high %v230_v45, %v230_v45 }
  0x43   : > { %1934 = vmatpush3.bf16.msra.mxu0 %v2132_v49  ;;  %v1746_v49 = vcombine.low %v231_v46, %v231_v46 }
  0x44   : > { %1956 = vmatpush3.bf16.msra.mxu1 %v2133_v50  ;;  %1935 = vmatprep.subr.bf16.mxu0 %v2134_v51  ;;  %v1747_v50 = vcombine.high %v231_v46, %v231_v46  ;;  %v2194_v51 = vld [vmem:[%s2305_s25 + $0x340] sm:$0xff]  }
  0x45   : > { %1957 = vmatprep.subr.bf16.mxu1 %v2135_v52  ;;  %v2195_v52 = vld [vmem:[%s2305_s25 + $0x3c0] sm:$0xff]  }
  0x47   : > { %1936 = vmatpush3.bf16.msra.mxu0 %v2136_v53  ;;  %v2196_v53 = vld [vmem:[%s2305_s25 + $0x300] sm:$0xff]  }
  0x48   : > { %1958 = vmatpush3.bf16.msra.mxu1 %v2137_v54  ;;  %1937 = vmatprep.subr.bf16.mxu0 %v2138_v55  ;;  %v2197_v54 = vld [vmem:[%s2305_s25 + $0x380] sm:$0xff]   ;;  %v2198_v55 = vld [vmem:[%s2305_s25 + $0x348] sm:$0xff]  }
  0x49   : > { %1959 = vmatprep.subr.bf16.mxu1 %v2139_v56  ;;  %v2199_v56 = vld [vmem:[%s2305_s25 + $0x3c8] sm:$0xff]  }
  0x4b   : > { %1938 = vmatpush3.bf16.msra.mxu0 %v2140_v57  ;;  %v2200_v57 = vld [vmem:[%s2305_s25 + $0x308] sm:$0xff]  }
  0x4c   : > { %1960 = vmatpush3.bf16.msra.mxu1 %v2141_v58  ;;  %1939 = vmatprep.subr.bf16.mxu0 %v2142_v59  ;;  %v2201_v58 = vld [vmem:[%s2305_s25 + $0x388] sm:$0xff]   ;;  %v2202_v59 = vld [vmem:[%s2305_s25 + $0x350] sm:$0xff]  }
  0x4d   : > { %1961 = vmatprep.subr.bf16.mxu1 %v2143_v60  ;;  %v2203_v60 = vld [vmem:[%s2305_s25 + $0x3d0] sm:$0xff]  }
  0x4f   : > { %1940 = vmatpush3.bf16.msra.mxu0 %v2144_v61  ;;  %v2204_v61 = vld [vmem:[%s2305_s25 + $0x310] sm:$0xff]  }
  0x50   : > { %1962 = vmatpush3.bf16.msra.mxu1 %v2145_v62  ;;  %1941 = vmatprep.subr.bf16.mxu0 %v2146_v63  ;;  %v2205_v62 = vld [vmem:[%s2305_s25 + $0x390] sm:$0xff]   ;;  %v2206_v63 = vld [vmem:[%s2305_s25 + $0x358] sm:$0xff]  }
  0x51   : > { %1963 = vmatprep.subr.bf16.mxu1 %v2147_v0  ;;  %v2207_v0 = vld [vmem:[%s2305_s25 + $0x3d8] sm:$0xff]  }
  0x53   : > { %1942 = vmatpush3.bf16.msra.mxu0 %v2148_v1  ;;  %v2208_v1 = vld [vmem:[%s2305_s25 + $0x318] sm:$0xff]  }
  0x54   : > { %1964 = vmatpush3.bf16.msra.mxu1 %v2149_v2  ;;  %1943 = vmatprep.subr.bf16.mxu0 %v2150_v3  ;;  %v2209_v2 = vld [vmem:[%s2305_s25 + $0x398] sm:$0xff]   ;;  %v2210_v3 = vld [vmem:[%s2305_s25 + $0x360] sm:$0xff]  }
  0x55   : > { %1965 = vmatprep.subr.bf16.mxu1 %v2151_v4  ;;  %v2211_v4 = vld [vmem:[%s2305_s25 + $0x3e0] sm:$0xff]  }
  0x57   : > { %1944 = vmatpush3.bf16.msra.mxu0 %v2152_v5  ;;  %v2212_v5 = vld [vmem:[%s2305_s25 + $0x320] sm:$0xff]  }
  0x58   : > { %1966 = vmatpush3.bf16.msra.mxu1 %v2153_v6  ;;  %1973 = vmatprep.subr.bf16.mxu0 %v2158_v13  ;;  %v2213_v6 = vld [vmem:[%s2305_s25 + $0x3a0] sm:$0xff]   ;;  %v2220_v13 = vld [vmem:[%s2305_s25 + $0x330] sm:$0xff]  }
  0x59   : > { %1995 = vmatprep.subr.bf16.mxu1 %v2159_v14  ;;  %v2221_v14 = vld [vmem:[%s2305_s25 + $0x3b0] sm:$0xff]  }
  0x5a   : > { %1427 = vmatmul.mubr.bf16.vlgmr.msra.gmra.mrb[4].mxu0 %v1740_v8  ;;  %v2215_v8 = vld [vmem:[%s2305_s25 + $0x3e8] sm:$0xff]  }
  0x5b   : > { %1467 = vmatmul.mubr.bf16.vlgmr.msra.gmra.mrb[4].mxu1 %v1742_v11  ;;  %1974 = vmatpush3.bf16.msra.mxu0 %v2160_v15  ;;  %v2218_v11 = vld [vmem:[%s2305_s25 + $0x370] sm:$0xff]   ;;  %v2222_v15 = vld [vmem:[%s2305_s25 + $0x378] sm:$0xff]  }
  0x5c   : > { %1996 = vmatpush3.bf16.msra.mxu1 %v2161_v16  ;;  %1975 = vmatprep.subr.bf16.mxu0 %v2162_v17  ;;  %v2223_v16 = vld [vmem:[%s2305_s25 + $0x3f8] sm:$0xff]  }
  0x5d   : > { %1997 = vmatprep.subr.bf16.mxu1 %v2163_v18  ;;  %1506 = vmatprep.mubr.bf16.mxu0 %v1745_v48  ;;  %v2224_v17 = vld [vmem:[%s2305_s25 + $0x338] sm:$0xff]  }
  0x5e   : > { %1546 = vmatprep.mubr.bf16.mxu1 %v1747_v50  ;;  %v2225_v18 = vld [vmem:[%s2305_s25 + $0x3b8] sm:$0xff]  }
  0x5f   : > { %1976 = vmatpush3.bf16.msra.mxu0 %v2164_v19  ;;  %v232_v19 = vld [vmem:[%s2300_s21 + $0x30] sm:$0xff] }
  0x60   : > { %1998 = vmatpush3.bf16.msra.mxu1 %v2165_v20  ;;  %1977 = vmatprep.subr.bf16.mxu0 %v2166_v21  ;;  %v233_v20 = vld [vmem:[%s2300_s21 + $0x38] sm:$0xff]  ;;  %v1748_v21 = vcombine.low %v232_v19, %v232_v19 }
  0x61   : > { %1999 = vmatprep.subr.bf16.mxu1 %v2167_v22  ;;  %v1749_v22 = vcombine.high %v232_v19, %v232_v19 }
  0x63   : > { %1978 = vmatpush3.bf16.msra.mxu0 %v2168_v23  ;;  %v1750_v23 = vcombine.low %v233_v20, %v233_v20 }
  0x64   : > { %2000 = vmatpush3.bf16.msra.mxu1 %v2169_v24  ;;  %1979 = vmatprep.subr.bf16.mxu0 %v2170_v25  ;;  %v1751_v24 = vcombine.high %v233_v20, %v233_v20 }
  0x65   : > { %2001 = vmatprep.subr.bf16.mxu1 %v2171_v26 }
  0x67   : > { %1980 = vmatpush3.bf16.msra.mxu0 %v2172_v27 }
  0x68   : > { %2002 = vmatpush3.bf16.msra.mxu1 %v2173_v28  ;;  %1981 = vmatprep.subr.bf16.mxu0 %v2174_v29 }
  0x69   : > { %2003 = vmatprep.subr.bf16.mxu1 %v2175_v30 }
  0x6b   : > { %1982 = vmatpush3.bf16.msra.mxu0 %v2176_v31 }
  0x6c   : > { %2004 = vmatpush3.bf16.msra.mxu1 %v2177_v32  ;;  %1983 = vmatprep.subr.bf16.mxu0 %v2178_v33 }
  0x6d   : > { %2005 = vmatprep.subr.bf16.mxu1 %v2179_v34 }
  0x6f   : > { %1984 = vmatpush3.bf16.msra.mxu0 %v2180_v35 }
  0x70   : > { %2006 = vmatpush3.bf16.msra.mxu1 %v2181_v36  ;;  %1985 = vmatprep.subr.bf16.mxu0 %v2182_v37 }
  0x71   : > { %2007 = vmatprep.subr.bf16.mxu1 %v2183_v38 }
  0x73   : > { %1986 = vmatpush3.bf16.msra.mxu0 %v2184_v39 }
  0x74   : > { %2008 = vmatpush3.bf16.msra.mxu1 %v2185_v40  ;;  %1987 = vmatprep.subr.bf16.mxu0 %v2186_v41 }
  0x75   : > { %2009 = vmatprep.subr.bf16.mxu1 %v2187_v42 }
  0x77   : > { %1988 = vmatpush3.bf16.msra.mxu0 %v2188_v43 }
  0x78   : > { %2010 = vmatpush3.bf16.msra.mxu1 %v2189_v44  ;;  %2017 = vmatprep.subr.bf16.mxu0 %v2194_v51 }
  0x79   : > { %2039 = vmatprep.subr.bf16.mxu1 %v2195_v52 }
  0x7a   : > { %1507 = vmatmul.mubr.bf16.vlgmr.msra.gmra.mrb[8].mxu0 %v1744_v47 }
  0x7b   : > { %1547 = vmatmul.mubr.bf16.vlgmr.msra.gmra.mrb[8].mxu1 %v1746_v49  ;;  %2018 = vmatpush3.bf16.msra.mxu0 %v2196_v53 }
  0x7c   : > { %2040 = vmatpush3.bf16.msra.mxu1 %v2197_v54  ;;  %2019 = vmatprep.subr.bf16.mxu0 %v2198_v55 }
  0x7d   : > { %2041 = vmatprep.subr.bf16.mxu1 %v2199_v56  ;;  %1586 = vmatprep.mubr.bf16.mxu0 %v1749_v22 }
  0x7e   : > { %1626 = vmatprep.mubr.bf16.mxu1 %v1751_v24 }
  0x7f   : > { %2020 = vmatpush3.bf16.msra.mxu0 %v2200_v57 }
  0x80   : > { %2042 = vmatpush3.bf16.msra.mxu1 %v2201_v58  ;;  %2021 = vmatprep.subr.bf16.mxu0 %v2202_v59 }
  0x81   : > { %2043 = vmatprep.subr.bf16.mxu1 %v2203_v60 }
  0x83   : > { %2022 = vmatpush3.bf16.msra.mxu0 %v2204_v61 }
  0x84   : > { %2044 = vmatpush3.bf16.msra.mxu1 %v2205_v62  ;;  %2023 = vmatprep.subr.bf16.mxu0 %v2206_v63 }
  0x85   : > { %2045 = vmatprep.subr.bf16.mxu1 %v2207_v0 }
  0x87   : > { %2024 = vmatpush3.bf16.msra.mxu0 %v2208_v1 }
  0x88   : > { %2046 = vmatpush3.bf16.msra.mxu1 %v2209_v2  ;;  %2025 = vmatprep.subr.bf16.mxu0 %v2210_v3 }
  0x89   : > { %2047 = vmatprep.subr.bf16.mxu1 %v2211_v4 }
  0x8b   : > { %2026 = vmatpush3.bf16.msra.mxu0 %v2212_v5 }
  0x8c   : > { %2048 = vmatpush3.bf16.msra.mxu1 %v2213_v6  ;;  %2027 = vmatprep.subr.bf16.mxu0 %v2214_v7  ;;  %v225_v7 = vld [vmem:[#allocation2] sm:$0xff] }
  0x8d   : > { %2049 = vmatprep.subr.bf16.mxu1 %v2215_v8 }
  0x8f   : > { %2028 = vmatpush3.bf16.msra.mxu0 %v2216_v9 }
  0x90   : > { %2050 = vmatpush3.bf16.msra.mxu1 %v2217_v10  ;;  %2029 = vmatprep.subr.bf16.mxu0 %v2218_v11  ;;  %v1881_v11 = vld [vmem:[%s2462_s2] ss:$0 sm:$0xff] (!%p1880_p7) }
  0x91   : > { %2051 = vmatprep.subr.bf16.mxu1 %v2219_v12 }
  0x93   : > { %2030 = vmatpush3.bf16.msra.mxu0 %v2220_v13 }
  0x94   : > { %2052 = vmatpush3.bf16.msra.mxu1 %v2221_v14  ;;  %2031 = vmatprep.subr.bf16.mxu0 %v2222_v15 }
  0x95   : > { %2053 = vmatprep.subr.bf16.mxu1 %v2223_v16 }
  0x97   : > { %2032 = vmatpush3.bf16.msra.mxu0 %v2224_v17 }
  0x98   : > { %2054 = vmatpush3.bf16.msra.mxu1 %v2225_v18 }
  0x9a   : > { %1587 = vmatmul.mubr.bf16.vlgmr.msra.gmra.mrb[12].mxu0 %v1748_v21 }
  0x9b   : > { %1627 = vmatmul.mubr.bf16.vlgmr.msra.gmra.mrb[12].mxu1 %v1750_v23 }
 0x10d   : > { %v1901_v25 = vpop.f32.mrb[0].mxu0 }
 0x10e   : > { %v1923_v26 = vpop.f32.mrb[0].mxu1  ;;  %v1902_v27 = vpop.f32.mrb[1].mxu0 }
 0x10f   : > { %v1924_v28 = vpop.f32.mrb[1].mxu1  ;;  %v1903_v29 = vadd.f32 %v1902_v27, %v1901_v25  ;;  %v1904_v31 = vpop.f32.mrb[2].mxu0 }
 0x110   : > { %v1925_v30 = vadd.f32 %v1924_v28, %v1923_v26  ;;  %v1926_v32 = vpop.f32.mrb[2].mxu1  ;;  %v1905_v33 = vpop.f32.mrb[3].mxu0 }
 0x111   : > { %v1927_v34 = vpop.f32.mrb[3].mxu1 }
 0x112   : > { %v1389_v35 = vadd.f32 %v1925_v30, %v1903_v29 }
 0x12d   : > { %v1945_v36 = vpop.f32.mrb[4].mxu0 }
 0x12e   : > { %v1967_v37 = vpop.f32.mrb[4].mxu1  ;;  %v1946_v38 = vpop.f32.mrb[5].mxu0 }
 0x12f   : > { %v1968_v39 = vpop.f32.mrb[5].mxu1  ;;  %v1947_v40 = vadd.f32 %v1946_v38, %v1945_v36  ;;  %v1948_v42 = vpop.f32.mrb[6].mxu0 }
 0x130   : > { %v1969_v41 = vadd.f32 %v1968_v39, %v1967_v37  ;;  %v1970_v43 = vpop.f32.mrb[6].mxu1  ;;  %v1949_v44 = vpop.f32.mrb[7].mxu0 }
 0x131   : > { %v1971_v45 = vpop.f32.mrb[7].mxu1  ;;  %v1429_v46 = vadd.f32 %v1947_v40, %v1389_v35 }
 0x133   : > { %v1469_v47 = vadd.f32 %v1969_v41, %v1429_v46 }
 0x14d   : > { %v1989_v48 = vpop.f32.mrb[8].mxu0 }
 0x14e   : > { %v2011_v49 = vpop.f32.mrb[8].mxu1  ;;  %v1990_v50 = vpop.f32.mrb[9].mxu0 }
 0x14f   : > { %v1991_v51 = vadd.f32 %v1990_v50, %v1989_v48  ;;  %v2012_v52 = vpop.f32.mrb[9].mxu1  ;;  %v1992_v53 = vpop.f32.mrb[10].mxu0 }
 0x150   : > { %v2013_v54 = vadd.f32 %v2012_v52, %v2011_v49  ;;  %v2014_v55 = vpop.f32.mrb[10].mxu1  ;;  %v1993_v56 = vpop.f32.mrb[11].mxu0 }
 0x151   : > { %v1509_v57 = vadd.f32 %v1991_v51, %v1469_v47  ;;  %v2015_v58 = vpop.f32.mrb[11].mxu1 }
 0x153   : > { %v1549_v59 = vadd.f32 %v2013_v54, %v1509_v57 }
 0x16d   : > { %v2033_v60 = vpop.f32.mrb[12].mxu0 }
 0x16e   : > { %v2055_v61 = vpop.f32.mrb[12].mxu1  ;;  %v2034_v62 = vpop.f32.mrb[13].mxu0 }
 0x16f   : > { %v2035_v63 = vadd.f32 %v2034_v62, %v2033_v60  ;;  %v2056_v0 = vpop.f32.mrb[13].mxu1  ;;  %v2036_v1 = vpop.f32.mrb[14].mxu0 }
 0x170   : > { %v2057_v2 = vadd.f32 %v2056_v0, %v2055_v61  ;;  %v2058_v3 = vpop.f32.mrb[14].mxu1  ;;  %v2037_v4 = vpop.f32.mrb[15].mxu0 }
 0x171   : > { %v1589_v5 = vadd.f32 %v2035_v63, %v1549_v59  ;;  %v2059_v6 = vpop.f32.mrb[15].mxu1  ;;  %1639 = sbr.rel (%p1880_p7) target bundleno = 386 (0x182), region = 40 }
 0x173   : > { %v1629_v8 = vadd.f32 %v2057_v2, %v1589_v5 }
 0x175   : > { %v1634_v9 = vadd.f32 %v1629_v8, %v225_v7 }
 0x177   : > { %1635 = vst [vmem:[#allocation2] sm:$0xff] %v1634_v9 }
 0x17e   : > { %v1640_v10 = vld [vmem:[#allocation2] sm:$0xff] }
 0x17f   : > { %v1648_v12 = vadd.f32 %v1881_v11, %v1640_v10 }
 0x181   : > { %1649 = vst [vmem:[%s2463_s3] sm:$0xff] %v1648_v12 }
 0x182 PF: > { %s13_s14 = sadd.s32 1, %s2252_s14   ;;  %s2464_s12 = smov %s2248_s13 }
 0x183   : > { %p10_p8 = scmp.ge.s32.totalorder %s13_s14, 6   ;;  %s2465_s13 = smov %s2467_s15 }
 0x185   :  { %12 = sbr.rel (!%p10_p8) target bundleno = 2 (0x2), region = 73 }

</bundles_post_ra>
